<compile_context>
chip_gen: v6e
topology: v6e:2x2x1
jax: 0.10.0
libtpu: 0.0.40
codegen_flags: <defaults>
</compile_context>

<pallas_src>
import numpy as np
import jax
import jax.numpy as jnp
from jax import lax
from jax.experimental import pallas as pl
from jax.experimental.pallas import tpu as pltpu

LANE = 128
EPS = 1e-5
VMEM_LIMIT = 32 * 1024 * 1024


def _round_up(n, m):
    return ((n + m - 1) // m) * m


def _pad_axis(a, axis, target):
    pads = [(0, 0)] * a.ndim
    pads[axis] = (0, target - a.shape[axis])
    return jnp.pad(a, pads)


# --------------------------- Pallas kernels ---------------------------

def _conv3x3_core(xin, w_ref, y_ref, sum_ref, sq_ref, xpad_ref, acc_ref):
    """Shared 3x3 / pad=1 conv body for one image.

    xin     : (H, W, Cin)      bf16  activation (already BN+ReLU'd for conv2)
    w_ref   : (9, Cin, Cout)   bf16  tap-major packed weights
    y_ref   : (1, H, W, Cout)  bf16  conv output
    sum_ref : (1, 1, Cout)     f32   per-image BN partial sum
    sq_ref  : (1, 1, Cout)     f32   per-image BN partial sum of squares
    xpad_ref: (H+2, W+2, Cin)  bf16  VMEM scratch: zero-halo slab
    acc_ref : (H*W, Cout)      f32   VMEM scratch: accumulator
    """
    H, W, cin = xin.shape
    cout = y_ref.shape[-1]

    # Build the zero-halo'd bf16 slab entirely on-chip (no XLA pad / HBM traffic).
    xpad_ref[...] = jnp.zeros_like(xpad_ref)
    xpad_ref[1:H + 1, 1:W + 1, :] = xin

    # 9-tap shift + matmul accumulation.  LHS stays bf16 (no f32 upcast, no per-tap
    # cast); accumulation is f32 in a VMEM scratch.
    acc_ref[...] = jnp.zeros_like(acc_ref)
    for ky in range(3):
        for kx in range(3):
            patch = xpad_ref[ky:ky + H, kx:kx + W, :]          # static bf16 slice
            acc_ref[...] += jnp.dot(patch.reshape(H * W, cin),
                                    w_ref[3 * ky + kx],
                                    preferred_element_type=jnp.float32)

    # BN statistics from the f32 accumulator; stored activations are bf16.
    acc = acc_ref[...]
    sum_ref[0] = jnp.sum(acc, axis=0, keepdims=True)
    sq_ref[0] = jnp.sum(acc * acc, axis=0, keepdims=True)
    y_ref[0] = acc.reshape(H, W, cout).astype(y_ref.dtype)


def _conv1_kernel(x_ref, w_ref, y_ref, sum_ref, sq_ref, xpad_ref, acc_ref):
    _conv3x3_core(x_ref[0], w_ref, y_ref, sum_ref, sq_ref, xpad_ref, acc_ref)


def _conv2_fused_kernel(y1_ref, scale_ref, shift_ref, w_ref,
                        y_ref, sum_ref, sq_ref, xpad_ref, acc_ref):
    # Fused bn1 affine + ReLU on the incoming bf16 conv1 output (computed in f32).
    a = jnp.maximum(
        y1_ref[0].astype(jnp.float32) * scale_ref[...] + shift_ref[...], 0.0)
    _conv3x3_core(a.astype(jnp.bfloat16), w_ref, y_ref, sum_ref, sq_ref,
                  xpad_ref, acc_ref)


def _bn_relu_chw_kernel(z_ref, s_ref, t_ref, o_ref):
    """o = relu(z*scale + shift), emitted channel-major (C, H*W) via XLU transpose."""
    _, H, W, C = z_ref.shape
    o = jnp.maximum(z_ref[0].astype(jnp.float32) * s_ref[...] + t_ref[...], 0.0)
    o_ref[0] = jnp.transpose(o.reshape(H * W, C), (1, 0)).astype(o_ref.dtype)


# --------------------------- pallas_call wrappers ---------------------------

def _conv_scratch(H, W, cin, cout):
    return [pltpu.VMEM((H + 2, W + 2, cin), jnp.bfloat16),
            pltpu.VMEM((H * W, cout), jnp.float32)]


def _conv_out_shapes(N, H, W, cout):
    return (jax.ShapeDtypeStruct((N, H, W, cout), jnp.bfloat16),
            jax.ShapeDtypeStruct((N, 1, cout), jnp.float32),
            jax.ShapeDtypeStruct((N, 1, cout), jnp.float32))


def _conv_out_specs():
    return (pl.BlockSpec((1, None, None, None), lambda i: (i, 0, 0, 0)),
            pl.BlockSpec((1, 1, None), lambda i: (i, 0, 0)),
            pl.BlockSpec((1, 1, None), lambda i: (i, 0, 0)))


def conv1(x, w9):
    """x: (N, H, W, Cin) bf16 ; w9: (9, Cin, Cout) bf16."""
    N, H, W, cin = x.shape
    cout = w9.shape[-1]
    return pl.pallas_call(
        _conv1_kernel,
        out_shape=_conv_out_shapes(N, H, W, cout),
        grid=(N,),
        in_specs=[
            pl.BlockSpec((1, H, W, cin), lambda i: (i, 0, 0, 0)),
            # grid-invariant weights (TODO(synk): pl.Buffered(1) at prod widths)
            pl.BlockSpec((9, cin, cout), lambda i: (0, 0, 0)),
        ],
        out_specs=(
            pl.BlockSpec((1, H, W, cout), lambda i: (i, 0, 0, 0)),
            pl.BlockSpec((1, 1, cout), lambda i: (i, 0, 0)),   # disjoint partials
            pl.BlockSpec((1, 1, cout), lambda i: (i, 0, 0)),   # -> safe "parallel"
        ),
        scratch_shapes=_conv_scratch(H, W, cin, cout),
        compiler_params=pltpu.CompilerParams(
            dimension_semantics=("parallel",),
            vmem_limit_bytes=VMEM_LIMIT),
    )(x, w9)


def conv2_fused(y1, scale, shift, w9):
    """y1: (N, H, W, Cmid) bf16 ; scale/shift: (1, Cmid) f32 ; w9: (9, Cmid, Cout)."""
    N, H, W, cin = y1.shape
    cout = w9.shape[-1]
    return pl.pallas_call(
        _conv2_fused_kernel,
        out_shape=_conv_out_shapes(N, H, W, cout),
        grid=(N,),
        in_specs=[
            pl.BlockSpec((1, H, W, cin), lambda i: (i, 0, 0, 0)),
            pl.BlockSpec((1, cin), lambda i: (0, 0)),
            pl.BlockSpec((1, cin), lambda i: (0, 0)),
            pl.BlockSpec((9, cin, cout), lambda i: (0, 0, 0)),
        ],
        out_specs=(
            pl.BlockSpec((1, H, W, cout), lambda i: (i, 0, 0, 0)),
            pl.BlockSpec((1, 1, cout), lambda i: (i, 0, 0)),
            pl.BlockSpec((1, 1, cout), lambda i: (i, 0, 0)),
        ),
        scratch_shapes=_conv_scratch(H, W, cin, cout),
        compiler_params=pltpu.CompilerParams(
            dimension_semantics=("parallel",),
            vmem_limit_bytes=VMEM_LIMIT),
    )(y1, scale, shift, w9)


def bn_relu_chw(z, scale, shift):
    """z: (N, H, W, C) bf16 -> relu(z*s+t) as (N, C, H*W) f32 (channel-major)."""
    N, H, W, C = z.shape
    return pl.pallas_call(
        _bn_relu_chw_kernel,
        out_shape=jax.ShapeDtypeStruct((N, C, H * W), jnp.float32),
        grid=(N,),
        in_specs=[
            pl.BlockSpec((1, H, W, C), lambda i: (i, 0, 0, 0)),
            pl.BlockSpec((1, C), lambda i: (0, 0)),
            pl.BlockSpec((1, C), lambda i: (0, 0)),
        ],
        out_specs=pl.BlockSpec((1, C, H * W), lambda i: (i, 0, 0)),
        compiler_params=pltpu.CompilerParams(
            dimension_semantics=("parallel",),
            vmem_limit_bytes=VMEM_LIMIT),
    )(z, scale, shift)


# --------------------------- glue ---------------------------

def _pack_conv_w(w_oihw, cin_p, cout_p):
    # (O, I, 3, 3) -> (3, 3, I, O) -> pad channels -> (9, Cin_p, Cout_p), bf16.
    w = jnp.transpose(w_oihw, (2, 3, 1, 0))
    w = _pad_axis(_pad_axis(w, 2, cin_p), 3, cout_p)
    return w.reshape(9, cin_p, cout_p).astype(jnp.bfloat16)


def _bn_scale_shift(s_part, q_part, m, gamma, beta, c, cp):
    # Tiny (grid, C) -> (C,) reduction + per-channel BN parameters, in f32/JAX.
    s = jnp.sum(s_part[:, 0, :c], axis=0)
    q = jnp.sum(q_part[:, 0, :c], axis=0)
    mean = s / m
    var = jnp.maximum(q / m - mean * mean, 0.0)   # biased var (PyTorch BN forward)
    scale = gamma / jnp.sqrt(var + EPS)
    shift = beta - mean * scale
    return (_pad_axis(scale, 0, cp)[None, :].astype(jnp.float32),
            _pad_axis(shift, 0, cp)[None, :].astype(jnp.float32))


def vgg_block_forward(x_nchw, params):
    N, cin, H, W = x_nchw.shape
    cmid = params["w1"].shape[0]
    cout = params["w2"].shape[0]
    M = N * H * W
    cin_p, cmid_p, cout_p = (_round_up(c, LANE) for c in (cin, cmid, cout))

    # NCHW -> NHWC, pad channels to a lane multiple, bf16 (halo is built in-kernel).
    x = jnp.transpose(x_nchw, (0, 2, 3, 1))
    x = _pad_axis(x, 3, cin_p).astype(jnp.bfloat16)

    w1 = _pack_conv_w(params["w1"], cin_p, cmid_p)
    w2 = _pack_conv_w(params["w2"], cmid_p, cout_p)

    # conv1 (+per-image BN partials).  Conv bias is dropped: training-mode BatchNorm
    # cancels a per-channel constant shift, so the forward output is unchanged.
    y1, s1, q1 = conv1(x, w1)
    scale1, shift1 = _bn_scale_shift(s1, q1, M, params["gamma1"], params["beta1"],
                                     cmid, cmid_p)

    # bn1 + ReLU + halo re-pad + conv2, fused into a single kernel.
    y2, s2, q2 = conv2_fused(y1, scale1, shift1, w2)
    scale2, shift2 = _bn_scale_shift(s2, q2, M, params["gamma2"], params["beta2"],
                                     cout, cout_p)

    # bn2 + ReLU, transposed in-kernel to channel-major -> no XLA NCHW transpose.
    out_cm = bn_relu_chw(y2, scale2, shift2)            # (N, Cout_p, H*W) f32
    return out_cm[:, :cout, :].reshape(N, cout, H, W)   # NCHW, like PyTorch


# ------------------ Pure-JAX reference (mirrors the PyTorch forward) ------------------

def reference_forward(x, params):
    def conv(x, w, b):
        y = lax.conv_general_dilated(
            x, w, window_strides=(1, 1), padding=((1, 1), (1, 1)),
            dimension_numbers=("NCHW", "OIHW", "NCHW"),
            precision=lax.Precision.HIGHEST)
        return y + b[None, :, None, None]

    def bn(x, g, b):
        mean = jnp.mean(x, axis=(0, 2, 3), keepdims=True)
        var = jnp.var(x, axis=(0, 2, 3), keepdims=True)
        return g[None, :, None, None] * (x - mean) / jnp.sqrt(var + EPS) \
            + b[None, :, None, None]

    out = jnp.maximum(bn(conv(x, params["w1"], params["b1"]),
                         params["gamma1"], params["beta1"]), 0.0)
    out = jnp.maximum(bn(conv(out, params["w2"], params["b2"]),
                         params["gamma2"], params["beta2"]), 0.0)
    return out


if __name__ == "__main__":
    N, Cin, H, W = 2, 4, 16, 16
    Cmid, Cout = 8, 8

    key = jax.random.PRNGKey(0)
    ks = jax.random.split(key, 9)
    params = {
        "w1": 0.1 * jax.random.normal(ks[0], (Cmid, Cin, 3, 3), jnp.float32),
        "b1": 0.1 * jax.random.normal(ks[1], (Cmid,), jnp.float32),
        "gamma1": 1.0 + 0.1 * jax.random.normal(ks[2], (Cmid,), jnp.float32),
        "beta1": 0.1 * jax.random.normal(ks[3], (Cmid,), jnp.float32),
        "w2": 0.1 * jax.random.normal(ks[4], (Cout, Cmid, 3, 3), jnp.float32),
        "b2": 0.1 * jax.random.normal(ks[5], (Cout,), jnp.float32),
        "gamma2": 1.0 + 0.1 * jax.random.normal(ks[6], (Cout,), jnp.float32),
        "beta2": 0.1 * jax.random.normal(ks[7], (Cout,), jnp.float32),
    }
    x = jax.random.normal(ks[8], (N, Cin, H, W), jnp.float32)

    out = jax.block_until_ready(jax.jit(vgg_block_forward)(x, params))
    ref = jax.block_until_ready(jax.jit(reference_forward)(x, params))

    assert out.shape == (N, Cout, H, W)
    # Kernel stores activations in bf16 and feeds the MXU bf16 (per perf feedback);
    # reference is f32 HIGHEST, so allow ~bf16-level tolerance.  Structural bugs
    # produce errors >> 0.03.
    np.testing.assert_allclose(np.asarray(out), np.asarray(ref), rtol=3e-2, atol=3e-2)
    print("KERNEL_OK")
</pallas_src>

<mosaic_0001>
module attributes {stable_mosaic.version = 11 : i64} {
  func.func @_conv1_kernel(%arg0: i32, %arg1: memref<1x16x16x128xbf16, #tpu.memory_space<vmem>>, %arg2: memref<9x128x128xbf16, #tpu.memory_space<vmem>>, %arg3: memref<1x16x16x128xbf16, #tpu.memory_space<vmem>>, %arg4: memref<1x1x128xf32, #tpu.memory_space<vmem>>, %arg5: memref<1x1x128xf32, #tpu.memory_space<vmem>>, %arg6: memref<18x18x128xbf16, #tpu.memory_space<vmem>>, %arg7: memref<256x128xf32, #tpu.memory_space<vmem>>) attributes {dimension_semantics = [#tpu.dimension_semantics<parallel>], iteration_bounds = array<i64: 2>, scalar_prefetch = 0 : i64, scratch_operands = 2 : i64, tpu.core_type = #tpu.core_type<tc>, window_params = [{transform_indices = @transform_0, window_bounds = array<i64: 1, 16, 16, 128>}, {pipeline_mode = #tpu.pipeline_mode<synchronous>, transform_indices = @transform_1, window_bounds = array<i64: 9, 128, 128>}, {transform_indices = @transform_2, window_bounds = array<i64: 1, 16, 16, 128>}, {transform_indices = @transform_3, window_bounds = array<i64: 1, 1, 128>}, {transform_indices = @transform_4, window_bounds = array<i64: 1, 1, 128>}]} {
    %c0 = arith.constant 0 : index
    %c0_0 = arith.constant 0 : index
    %c0_1 = arith.constant 0 : index
    %c0_2 = arith.constant 0 : index
    %0 = vector.load %arg1[%c0, %c0_0, %c0_1, %c0_2] : memref<1x16x16x128xbf16, #tpu.memory_space<vmem>>, vector<1x16x16x128xbf16>
    %1 = vector.shape_cast %0 : vector<1x16x16x128xbf16> to vector<16x16x128xbf16>
    %cst = arith.constant 0.000000e+00 : bf16
    %2 = vector.broadcast %cst : bf16 to vector<18x18x128xbf16>
    %c0_3 = arith.constant 0 : index
    %c0_4 = arith.constant 0 : index
    %c0_5 = arith.constant 0 : index
    %3 = vector.load %arg6[%c0_3, %c0_4, %c0_5] : memref<18x18x128xbf16, #tpu.memory_space<vmem>>, vector<18x18x128xbf16>
    tpu.vector_store %arg6[%c0_3, %c0_4, %c0_5], %2 {strides = array<i32>} : memref<18x18x128xbf16, #tpu.memory_space<vmem>>, vector<18x18x128xbf16>,
    %c1 = arith.constant 1 : index
    %c1_6 = arith.constant 1 : index
    %c0_7 = arith.constant 0 : index
    %4 = vector.load %arg6[%c1, %c1_6, %c0_7] : memref<18x18x128xbf16, #tpu.memory_space<vmem>>, vector<16x16x128xbf16>
    tpu.vector_store %arg6[%c1, %c1_6, %c0_7], %1 {strides = array<i32>} : memref<18x18x128xbf16, #tpu.memory_space<vmem>>, vector<16x16x128xbf16>,
    %cst_8 = arith.constant 0.000000e+00 : f32
    %5 = vector.broadcast %cst_8 : f32 to vector<256x128xf32>
    %c0_9 = arith.constant 0 : index
    %c0_10 = arith.constant 0 : index
    %6 = vector.load %arg7[%c0_9, %c0_10] : memref<256x128xf32, #tpu.memory_space<vmem>>, vector<256x128xf32>
    tpu.vector_store %arg7[%c0_9, %c0_10], %5 {strides = array<i32>} : memref<256x128xf32, #tpu.memory_space<vmem>>, vector<256x128xf32>,
    %c0_11 = arith.constant 0 : index
    %c0_12 = arith.constant 0 : index
    %c0_13 = arith.constant 0 : index
    %7 = vector.load %arg6[%c0_11, %c0_12, %c0_13] : memref<18x18x128xbf16, #tpu.memory_space<vmem>>, vector<16x16x128xbf16>
    %c0_14 = arith.constant 0 : index
    %c0_15 = arith.constant 0 : index
    %8 = vector.load %arg7[%c0_14, %c0_15] : memref<256x128xf32, #tpu.memory_space<vmem>>, vector<256x128xf32>
    %9 = vector.shape_cast %7 : vector<16x16x128xbf16> to vector<256x128xbf16>
    %c0_16 = arith.constant 0 : index
    %c0_17 = arith.constant 0 : index
    %c0_18 = arith.constant 0 : index
    %10 = vector.load %arg2[%c0_16, %c0_17, %c0_18] : memref<9x128x128xbf16, #tpu.memory_space<vmem>>, vector<1x128x128xbf16>
    %11 = vector.shape_cast %10 : vector<1x128x128xbf16> to vector<128x128xbf16>
    %cst_19 = arith.constant dense<0.000000e+00> : vector<256x128xf32>
    %12 = tpu.matmul %9, %11, %cst_19 {dimension_numbers = #tpu.dot_dimension_numbers<[1], [0], [0], [1], [0, 0, 1, 1], [], []>} : vector<256x128xbf16>, vector<128x128xbf16>, vector<256x128xf32> -> vector<256x128xf32>
    %13 = arith.addf %8, %12 : vector<256x128xf32>
    %c0_20 = arith.constant 0 : index
    %c0_21 = arith.constant 0 : index
    %14 = vector.load %arg7[%c0_20, %c0_21] : memref<256x128xf32, #tpu.memory_space<vmem>>, vector<256x128xf32>
    tpu.vector_store %arg7[%c0_20, %c0_21], %13 {strides = array<i32>} : memref<256x128xf32, #tpu.memory_space<vmem>>, vector<256x128xf32>,
    %c0_22 = arith.constant 0 : index
    %c1_23 = arith.constant 1 : index
    %c0_24 = arith.constant 0 : index
    %15 = vector.load %arg6[%c0_22, %c1_23, %c0_24] : memref<18x18x128xbf16, #tpu.memory_space<vmem>>, vector<16x16x128xbf16>
    %c0_25 = arith.constant 0 : index
    %c0_26 = arith.constant 0 : index
    %16 = vector.load %arg7[%c0_25, %c0_26] : memref<256x128xf32, #tpu.memory_space<vmem>>, vector<256x128xf32>
    %17 = vector.shape_cast %15 : vector<16x16x128xbf16> to vector<256x128xbf16>
    %c1_27 = arith.constant 1 : index
    %c0_28 = arith.constant 0 : index
    %c0_29 = arith.constant 0 : index
    %18 = vector.load %arg2[%c1_27, %c0_28, %c0_29] : memref<9x128x128xbf16, #tpu.memory_space<vmem>>, vector<1x128x128xbf16>
    %19 = vector.shape_cast %18 : vector<1x128x128xbf16> to vector<128x128xbf16>
    %cst_30 = arith.constant dense<0.000000e+00> : vector<256x128xf32>
    %20 = tpu.matmul %17, %19, %cst_30 {dimension_numbers = #tpu.dot_dimension_numbers<[1], [0], [0], [1], [0, 0, 1, 1], [], []>} : vector<256x128xbf16>, vector<128x128xbf16>, vector<256x128xf32> -> vector<256x128xf32>
    %21 = arith.addf %16, %20 : vector<256x128xf32>
    %c0_31 = arith.constant 0 : index
    %c0_32 = arith.constant 0 : index
    %22 = vector.load %arg7[%c0_31, %c0_32] : memref<256x128xf32, #tpu.memory_space<vmem>>, vector<256x128xf32>
    tpu.vector_store %arg7[%c0_31, %c0_32], %21 {strides = array<i32>} : memref<256x128xf32, #tpu.memory_space<vmem>>, vector<256x128xf32>,
    %c0_33 = arith.constant 0 : index
    %c2 = arith.constant 2 : index
    %c0_34 = arith.constant 0 : index
    %23 = vector.load %arg6[%c0_33, %c2, %c0_34] : memref<18x18x128xbf16, #tpu.memory_space<vmem>>, vector<16x16x128xbf16>
    %c0_35 = arith.constant 0 : index
    %c0_36 = arith.constant 0 : index
    %24 = vector.load %arg7[%c0_35, %c0_36] : memref<256x128xf32, #tpu.memory_space<vmem>>, vector<256x128xf32>
    %25 = vector.shape_cast %23 : vector<16x16x128xbf16> to vector<256x128xbf16>
    %c2_37 = arith.constant 2 : index
    %c0_38 = arith.constant 0 : index
    %c0_39 = arith.constant 0 : index
    %26 = vector.load %arg2[%c2_37, %c0_38, %c0_39] : memref<9x128x128xbf16, #tpu.memory_space<vmem>>, vector<1x128x128xbf16>
    %27 = vector.shape_cast %26 : vector<1x128x128xbf16> to vector<128x128xbf16>
    %cst_40 = arith.constant dense<0.000000e+00> : vector<256x128xf32>
    %28 = tpu.matmul %25, %27, %cst_40 {dimension_numbers = #tpu.dot_dimension_numbers<[1], [0], [0], [1], [0, 0, 1, 1], [], []>} : vector<256x128xbf16>, vector<128x128xbf16>, vector<256x128xf32> -> vector<256x128xf32>
    %29 = arith.addf %24, %28 : vector<256x128xf32>
    %c0_41 = arith.constant 0 : index
    %c0_42 = arith.constant 0 : index
    %30 = vector.load %arg7[%c0_41, %c0_42] : memref<256x128xf32, #tpu.memory_space<vmem>>, vector<256x128xf32>
    tpu.vector_store %arg7[%c0_41, %c0_42], %29 {strides = array<i32>} : memref<256x128xf32, #tpu.memory_space<vmem>>, vector<256x128xf32>,
    %c1_43 = arith.constant 1 : index
    %c0_44 = arith.constant 0 : index
    %c0_45 = arith.constant 0 : index
    %31 = vector.load %arg6[%c1_43, %c0_44, %c0_45] : memref<18x18x128xbf16, #tpu.memory_space<vmem>>, vector<16x16x128xbf16>
    %c0_46 = arith.constant 0 : index
    %c0_47 = arith.constant 0 : index
    %32 = vector.load %arg7[%c0_46, %c0_47] : memref<256x128xf32, #tpu.memory_space<vmem>>, vector<256x128xf32>
    %33 = vector.shape_cast %31 : vector<16x16x128xbf16> to vector<256x128xbf16>
    %c3 = arith.constant 3 : index
    %c0_48 = arith.constant 0 : index
    %c0_49 = arith.constant 0 : index
    %34 = vector.load %arg2[%c3, %c0_48, %c0_49] : memref<9x128x128xbf16, #tpu.memory_space<vmem>>, vector<1x128x128xbf16>
    %35 = vector.shape_cast %34 : vector<1x128x128xbf16> to vector<128x128xbf16>
    %cst_50 = arith.constant dense<0.000000e+00> : vector<256x128xf32>
    %36 = tpu.matmul %33, %35, %cst_50 {dimension_numbers = #tpu.dot_dimension_numbers<[1], [0], [0], [1], [0, 0, 1, 1], [], []>} : vector<256x128xbf16>, vector<128x128xbf16>, vector<256x128xf32> -> vector<256x128xf32>
    %37 = arith.addf %32, %36 : vector<256x128xf32>
    %c0_51 = arith.constant 0 : index
    %c0_52 = arith.constant 0 : index
    %38 = vector.load %arg7[%c0_51, %c0_52] : memref<256x128xf32, #tpu.memory_space<vmem>>, vector<256x128xf32>
    tpu.vector_store %arg7[%c0_51, %c0_52], %37 {strides = array<i32>} : memref<256x128xf32, #tpu.memory_space<vmem>>, vector<256x128xf32>,
    %c1_53 = arith.constant 1 : index
    %c1_54 = arith.constant 1 : index
    %c0_55 = arith.constant 0 : index
    %39 = vector.load %arg6[%c1_53, %c1_54, %c0_55] : memref<18x18x128xbf16, #tpu.memory_space<vmem>>, vector<16x16x128xbf16>
    %c0_56 = arith.constant 0 : index
    %c0_57 = arith.constant 0 : index
    %40 = vector.load %arg7[%c0_56, %c0_57] : memref<256x128xf32, #tpu.memory_space<vmem>>, vector<256x128xf32>
    %41 = vector.shape_cast %39 : vector<16x16x128xbf16> to vector<256x128xbf16>
    %c4 = arith.constant 4 : index
    %c0_58 = arith.constant 0 : index
    %c0_59 = arith.constant 0 : index
    %42 = vector.load %arg2[%c4, %c0_58, %c0_59] : memref<9x128x128xbf16, #tpu.memory_space<vmem>>, vector<1x128x128xbf16>
    %43 = vector.shape_cast %42 : vector<1x128x128xbf16> to vector<128x128xbf16>
    %cst_60 = arith.constant dense<0.000000e+00> : vector<256x128xf32>
    %44 = tpu.matmul %41, %43, %cst_60 {dimension_numbers = #tpu.dot_dimension_numbers<[1], [0], [0], [1], [0, 0, 1, 1], [], []>} : vector<256x128xbf16>, vector<128x128xbf16>, vector<256x128xf32> -> vector<256x128xf32>
    %45 = arith.addf %40, %44 : vector<256x128xf32>
    %c0_61 = arith.constant 0 : index
    %c0_62 = arith.constant 0 : index
    %46 = vector.load %arg7[%c0_61, %c0_62] : memref<256x128xf32, #tpu.memory_space<vmem>>, vector<256x128xf32>
    tpu.vector_store %arg7[%c0_61, %c0_62], %45 {strides = array<i32>} : memref<256x128xf32, #tpu.memory_space<vmem>>, vector<256x128xf32>,
    %c1_63 = arith.constant 1 : index
    %c2_64 = arith.constant 2 : index
    %c0_65 = arith.constant 0 : index
    %47 = vector.load %arg6[%c1_63, %c2_64, %c0_65] : memref<18x18x128xbf16, #tpu.memory_space<vmem>>, vector<16x16x128xbf16>
    %c0_66 = arith.constant 0 : index
    %c0_67 = arith.constant 0 : index
    %48 = vector.load %arg7[%c0_66, %c0_67] : memref<256x128xf32, #tpu.memory_space<vmem>>, vector<256x128xf32>
    %49 = vector.shape_cast %47 : vector<16x16x128xbf16> to vector<256x128xbf16>
    %c5 = arith.constant 5 : index
    %c0_68 = arith.constant 0 : index
    %c0_69 = arith.constant 0 : index
    %50 = vector.load %arg2[%c5, %c0_68, %c0_69] : memref<9x128x128xbf16, #tpu.memory_space<vmem>>, vector<1x128x128xbf16>
    %51 = vector.shape_cast %50 : vector<1x128x128xbf16> to vector<128x128xbf16>
    %cst_70 = arith.constant dense<0.000000e+00> : vector<256x128xf32>
    %52 = tpu.matmul %49, %51, %cst_70 {dimension_numbers = #tpu.dot_dimension_numbers<[1], [0], [0], [1], [0, 0, 1, 1], [], []>} : vector<256x128xbf16>, vector<128x128xbf16>, vector<256x128xf32> -> vector<256x128xf32>
    %53 = arith.addf %48, %52 : vector<256x128xf32>
    %c0_71 = arith.constant 0 : index
    %c0_72 = arith.constant 0 : index
    %54 = vector.load %arg7[%c0_71, %c0_72] : memref<256x128xf32, #tpu.memory_space<vmem>>, vector<256x128xf32>
    tpu.vector_store %arg7[%c0_71, %c0_72], %53 {strides = array<i32>} : memref<256x128xf32, #tpu.memory_space<vmem>>, vector<256x128xf32>,
    %c2_73 = arith.constant 2 : index
    %c0_74 = arith.constant 0 : index
    %c0_75 = arith.constant 0 : index
    %55 = vector.load %arg6[%c2_73, %c0_74, %c0_75] : memref<18x18x128xbf16, #tpu.memory_space<vmem>>, vector<16x16x128xbf16>
    %c0_76 = arith.constant 0 : index
    %c0_77 = arith.constant 0 : index
    %56 = vector.load %arg7[%c0_76, %c0_77] : memref<256x128xf32, #tpu.memory_space<vmem>>, vector<256x128xf32>
    %57 = vector.shape_cast %55 : vector<16x16x128xbf16> to vector<256x128xbf16>
    %c6 = arith.constant 6 : index
    %c0_78 = arith.constant 0 : index
    %c0_79 = arith.constant 0 : index
    %58 = vector.load %arg2[%c6, %c0_78, %c0_79] : memref<9x128x128xbf16, #tpu.memory_space<vmem>>, vector<1x128x128xbf16>
    %59 = vector.shape_cast %58 : vector<1x128x128xbf16> to vector<128x128xbf16>
    %cst_80 = arith.constant dense<0.000000e+00> : vector<256x128xf32>
    %60 = tpu.matmul %57, %59, %cst_80 {dimension_numbers = #tpu.dot_dimension_numbers<[1], [0], [0], [1], [0, 0, 1, 1], [], []>} : vector<256x128xbf16>, vector<128x128xbf16>, vector<256x128xf32> -> vector<256x128xf32>
    %61 = arith.addf %56, %60 : vector<256x128xf32>
    %c0_81 = arith.constant 0 : index
    %c0_82 = arith.constant 0 : index
    %62 = vector.load %arg7[%c0_81, %c0_82] : memref<256x128xf32, #tpu.memory_space<vmem>>, vector<256x128xf32>
    tpu.vector_store %arg7[%c0_81, %c0_82], %61 {strides = array<i32>} : memref<256x128xf32, #tpu.memory_space<vmem>>, vector<256x128xf32>,
    %c2_83 = arith.constant 2 : index
    %c1_84 = arith.constant 1 : index
    %c0_85 = arith.constant 0 : index
    %63 = vector.load %arg6[%c2_83, %c1_84, %c0_85] : memref<18x18x128xbf16, #tpu.memory_space<vmem>>, vector<16x16x128xbf16>
    %c0_86 = arith.constant 0 : index
    %c0_87 = arith.constant 0 : index
    %64 = vector.load %arg7[%c0_86, %c0_87] : memref<256x128xf32, #tpu.memory_space<vmem>>, vector<256x128xf32>
    %65 = vector.shape_cast %63 : vector<16x16x128xbf16> to vector<256x128xbf16>
    %c7 = arith.constant 7 : index
    %c0_88 = arith.constant 0 : index
    %c0_89 = arith.constant 0 : index
    %66 = vector.load %arg2[%c7, %c0_88, %c0_89] : memref<9x128x128xbf16, #tpu.memory_space<vmem>>, vector<1x128x128xbf16>
    %67 = vector.shape_cast %66 : vector<1x128x128xbf16> to vector<128x128xbf16>
    %cst_90 = arith.constant dense<0.000000e+00> : vector<256x128xf32>
    %68 = tpu.matmul %65, %67, %cst_90 {dimension_numbers = #tpu.dot_dimension_numbers<[1], [0], [0], [1], [0, 0, 1, 1], [], []>} : vector<256x128xbf16>, vector<128x128xbf16>, vector<256x128xf32> -> vector<256x128xf32>
    %69 = arith.addf %64, %68 : vector<256x128xf32>
    %c0_91 = arith.constant 0 : index
    %c0_92 = arith.constant 0 : index
    %70 = vector.load %arg7[%c0_91, %c0_92] : memref<256x128xf32, #tpu.memory_space<vmem>>, vector<256x128xf32>
    tpu.vector_store %arg7[%c0_91, %c0_92], %69 {strides = array<i32>} : memref<256x128xf32, #tpu.memory_space<vmem>>, vector<256x128xf32>,
    %c2_93 = arith.constant 2 : index
    %c2_94 = arith.constant 2 : index
    %c0_95 = arith.constant 0 : index
    %71 = vector.load %arg6[%c2_93, %c2_94, %c0_95] : memref<18x18x128xbf16, #tpu.memory_space<vmem>>, vector<16x16x128xbf16>
    %c0_96 = arith.constant 0 : index
    %c0_97 = arith.constant 0 : index
    %72 = vector.load %arg7[%c0_96, %c0_97] : memref<256x128xf32, #tpu.memory_space<vmem>>, vector<256x128xf32>
    %73 = vector.shape_cast %71 : vector<16x16x128xbf16> to vector<256x128xbf16>
    %c8 = arith.constant 8 : index
    %c0_98 = arith.constant 0 : index
    %c0_99 = arith.constant 0 : index
    %74 = vector.load %arg2[%c8, %c0_98, %c0_99] : memref<9x128x128xbf16, #tpu.memory_space<vmem>>, vector<1x128x128xbf16>
    %75 = vector.shape_cast %74 : vector<1x128x128xbf16> to vector<128x128xbf16>
    %cst_100 = arith.constant dense<0.000000e+00> : vector<256x128xf32>
    %76 = tpu.matmul %73, %75, %cst_100 {dimension_numbers = #tpu.dot_dimension_numbers<[1], [0], [0], [1], [0, 0, 1, 1], [], []>} : vector<256x128xbf16>, vector<128x128xbf16>, vector<256x128xf32> -> vector<256x128xf32>
    %77 = arith.addf %72, %76 : vector<256x128xf32>
    %c0_101 = arith.constant 0 : index
    %c0_102 = arith.constant 0 : index
    %78 = vector.load %arg7[%c0_101, %c0_102] : memref<256x128xf32, #tpu.memory_space<vmem>>, vector<256x128xf32>
    tpu.vector_store %arg7[%c0_101, %c0_102], %77 {strides = array<i32>} : memref<256x128xf32, #tpu.memory_space<vmem>>, vector<256x128xf32>,
    %c0_103 = arith.constant 0 : index
    %c0_104 = arith.constant 0 : index
    %79 = vector.load %arg7[%c0_103, %c0_104] : memref<256x128xf32, #tpu.memory_space<vmem>>, vector<256x128xf32>
    %cst_105 = arith.constant dense<0.000000e+00> : vector<128xf32>
    %80 = vector.multi_reduction <add>, %79, %cst_105 [0] : vector<256x128xf32> to vector<128xf32>
    %81 = vector.shape_cast %80 : vector<128xf32> to vector<1x128xf32>
    %c0_106 = arith.constant 0 : index
    %c0_107 = arith.constant 0 : index
    %c0_108 = arith.constant 0 : index
    %82 = vector.load %arg4[%c0_106, %c0_107, %c0_108] : memref<1x1x128xf32, #tpu.memory_space<vmem>>, vector<1x1x128xf32>
    %83 = vector.shape_cast %82 : vector<1x1x128xf32> to vector<1x128xf32>
    %84 = vector.shape_cast %81 : vector<1x128xf32> to vector<1x1x128xf32>
    tpu.vector_store %arg4[%c0_106, %c0_107, %c0_108], %84 {strides = array<i32>} : memref<1x1x128xf32, #tpu.memory_space<vmem>>, vector<1x1x128xf32>,
    %85 = arith.mulf %79, %79 : vector<256x128xf32>
    %cst_109 = arith.constant dense<0.000000e+00> : vector<128xf32>
    %86 = vector.multi_reduction <add>, %85, %cst_109 [0] : vector<256x128xf32> to vector<128xf32>
    %87 = vector.shape_cast %86 : vector<128xf32> to vector<1x128xf32>
    %c0_110 = arith.constant 0 : index
    %c0_111 = arith.constant 0 : index
    %c0_112 = arith.constant 0 : index
    %88 = vector.load %arg5[%c0_110, %c0_111, %c0_112] : memref<1x1x128xf32, #tpu.memory_space<vmem>>, vector<1x1x128xf32>
    %89 = vector.shape_cast %88 : vector<1x1x128xf32> to vector<1x128xf32>
    %90 = vector.shape_cast %87 : vector<1x128xf32> to vector<1x1x128xf32>
    tpu.vector_store %arg5[%c0_110, %c0_111, %c0_112], %90 {strides = array<i32>} : memref<1x1x128xf32, #tpu.memory_space<vmem>>, vector<1x1x128xf32>,
    %91 = vector.shape_cast %79 : vector<256x128xf32> to vector<16x16x128xf32>
    %92 = arith.truncf %91 : vector<16x16x128xf32> to vector<16x16x128xbf16>
    %c0_113 = arith.constant 0 : index
    %c0_114 = arith.constant 0 : index
    %c0_115 = arith.constant 0 : index
    %c0_116 = arith.constant 0 : index
    %93 = vector.load %arg3[%c0_113, %c0_114, %c0_115, %c0_116] : memref<1x16x16x128xbf16, #tpu.memory_space<vmem>>, vector<1x16x16x128xbf16>
    %94 = vector.shape_cast %93 : vector<1x16x16x128xbf16> to vector<16x16x128xbf16>
    %95 = vector.shape_cast %92 : vector<16x16x128xbf16> to vector<1x16x16x128xbf16>
    tpu.vector_store %arg3[%c0_113, %c0_114, %c0_115, %c0_116], %95 {strides = array<i32>} : memref<1x16x16x128xbf16, #tpu.memory_space<vmem>>, vector<1x16x16x128xbf16>,
    return
  }
  func.func @transform_0(%arg0: i32) -> (i32, i32, i32, i32) {
    %c0_i32 = arith.constant 0 : i32
    %c0_i32_0 = arith.constant 0 : i32
    %c0_i32_1 = arith.constant 0 : i32
    %c0_i32_2 = arith.constant 0 : i32
    return %arg0, %c0_i32, %c0_i32_0, %c0_i32_1 : i32, i32, i32, i32
  }
  func.func @transform_1(%arg0: i32) -> (i32, i32, i32) {
    %c0_i32 = arith.constant 0 : i32
    %c0_i32_0 = arith.constant 0 : i32
    %c0_i32_1 = arith.constant 0 : i32
    %c0_i32_2 = arith.constant 0 : i32
    return %c0_i32, %c0_i32_0, %c0_i32_1 : i32, i32, i32
  }
  func.func @transform_2(%arg0: i32) -> (i32, i32, i32, i32) {
    %c0_i32 = arith.constant 0 : i32
    %c0_i32_0 = arith.constant 0 : i32
    %c0_i32_1 = arith.constant 0 : i32
    %c0_i32_2 = arith.constant 0 : i32
    return %arg0, %c0_i32, %c0_i32_0, %c0_i32_1 : i32, i32, i32, i32
  }
  func.func @transform_3(%arg0: i32) -> (i32, i32, i32) {
    %c0_i32 = arith.constant 0 : i32
    %c0_i32_0 = arith.constant 0 : i32
    %c0_i32_1 = arith.constant 0 : i32
    return %arg0, %c0_i32, %c0_i32_0 : i32, i32, i32
  }
  func.func @transform_4(%arg0: i32) -> (i32, i32, i32) {
    %c0_i32 = arith.constant 0 : i32
    %c0_i32_0 = arith.constant 0 : i32
    %c0_i32_1 = arith.constant 0 : i32
    return %arg0, %c0_i32, %c0_i32_0 : i32, i32, i32
  }
}

module attributes {stable_mosaic.version = 11 : i64} {
  func.func @_conv2_fused_kernel(%arg0: i32, %arg1: memref<1x16x16x128xbf16, #tpu.memory_space<vmem>>, %arg2: memref<1x128xf32, #tpu.memory_space<vmem>>, %arg3: memref<1x128xf32, #tpu.memory_space<vmem>>, %arg4: memref<9x128x128xbf16, #tpu.memory_space<vmem>>, %arg5: memref<1x16x16x128xbf16, #tpu.memory_space<vmem>>, %arg6: memref<1x1x128xf32, #tpu.memory_space<vmem>>, %arg7: memref<1x1x128xf32, #tpu.memory_space<vmem>>, %arg8: memref<18x18x128xbf16, #tpu.memory_space<vmem>>, %arg9: memref<256x128xf32, #tpu.memory_space<vmem>>) attributes {dimension_semantics = [#tpu.dimension_semantics<parallel>], iteration_bounds = array<i64: 2>, scalar_prefetch = 0 : i64, scratch_operands = 2 : i64, tpu.core_type = #tpu.core_type<tc>, window_params = [{transform_indices = @transform_0, window_bounds = array<i64: 1, 16, 16, 128>}, {pipeline_mode = #tpu.pipeline_mode<synchronous>, transform_indices = @transform_1, window_bounds = array<i64: 1, 128>}, {pipeline_mode = #tpu.pipeline_mode<synchronous>, transform_indices = @transform_2, window_bounds = array<i64: 1, 128>}, {pipeline_mode = #tpu.pipeline_mode<synchronous>, transform_indices = @transform_3, window_bounds = array<i64: 9, 128, 128>}, {transform_indices = @transform_4, window_bounds = array<i64: 1, 16, 16, 128>}, {transform_indices = @transform_5, window_bounds = array<i64: 1, 1, 128>}, {transform_indices = @transform_6, window_bounds = array<i64: 1, 1, 128>}]} {
    %c0 = arith.constant 0 : index
    %c0_0 = arith.constant 0 : index
    %c0_1 = arith.constant 0 : index
    %c0_2 = arith.constant 0 : index
    %0 = vector.load %arg1[%c0, %c0_0, %c0_1, %c0_2] : memref<1x16x16x128xbf16, #tpu.memory_space<vmem>>, vector<1x16x16x128xbf16>
    %1 = vector.shape_cast %0 : vector<1x16x16x128xbf16> to vector<16x16x128xbf16>
    %2 = arith.extf %1 : vector<16x16x128xbf16> to vector<16x16x128xf32>
    %c0_3 = arith.constant 0 : index
    %c0_4 = arith.constant 0 : index
    %3 = vector.load %arg2[%c0_3, %c0_4] : memref<1x128xf32, #tpu.memory_space<vmem>>, vector<1x128xf32>
    %4 = vector.shape_cast %3 : vector<1x128xf32> to vector<1x1x128xf32>
    %5 = vector.broadcast %4 : vector<1x1x128xf32> to vector<16x16x128xf32>
    %6 = arith.mulf %2, %5 : vector<16x16x128xf32>
    %c0_5 = arith.constant 0 : index
    %c0_6 = arith.constant 0 : index
    %7 = vector.load %arg3[%c0_5, %c0_6] : memref<1x128xf32, #tpu.memory_space<vmem>>, vector<1x128xf32>
    %8 = vector.shape_cast %7 : vector<1x128xf32> to vector<1x1x128xf32>
    %9 = vector.broadcast %8 : vector<1x1x128xf32> to vector<16x16x128xf32>
    %10 = arith.addf %6, %9 : vector<16x16x128xf32>
    %cst = arith.constant 0.000000e+00 : f32
    %11 = vector.broadcast %cst : f32 to vector<16x16x128xf32>
    %12 = arith.maximumf %10, %11 : vector<16x16x128xf32>
    %13 = arith.truncf %12 : vector<16x16x128xf32> to vector<16x16x128xbf16>
    %cst_7 = arith.constant 0.000000e+00 : bf16
    %14 = vector.broadcast %cst_7 : bf16 to vector<18x18x128xbf16>
    %c0_8 = arith.constant 0 : index
    %c0_9 = arith.constant 0 : index
    %c0_10 = arith.constant 0 : index
    %15 = vector.load %arg8[%c0_8, %c0_9, %c0_10] : memref<18x18x128xbf16, #tpu.memory_space<vmem>>, vector<18x18x128xbf16>
    tpu.vector_store %arg8[%c0_8, %c0_9, %c0_10], %14 {strides = array<i32>} : memref<18x18x128xbf16, #tpu.memory_space<vmem>>, vector<18x18x128xbf16>,
    %c1 = arith.constant 1 : index
    %c1_11 = arith.constant 1 : index
    %c0_12 = arith.constant 0 : index
    %16 = vector.load %arg8[%c1, %c1_11, %c0_12] : memref<18x18x128xbf16, #tpu.memory_space<vmem>>, vector<16x16x128xbf16>
    tpu.vector_store %arg8[%c1, %c1_11, %c0_12], %13 {strides = array<i32>} : memref<18x18x128xbf16, #tpu.memory_space<vmem>>, vector<16x16x128xbf16>,
    %cst_13 = arith.constant 0.000000e+00 : f32
    %17 = vector.broadcast %cst_13 : f32 to vector<256x128xf32>
    %c0_14 = arith.constant 0 : index
    %c0_15 = arith.constant 0 : index
    %18 = vector.load %arg9[%c0_14, %c0_15] : memref<256x128xf32, #tpu.memory_space<vmem>>, vector<256x128xf32>
    tpu.vector_store %arg9[%c0_14, %c0_15], %17 {strides = array<i32>} : memref<256x128xf32, #tpu.memory_space<vmem>>, vector<256x128xf32>,
    %c0_16 = arith.constant 0 : index
    %c0_17 = arith.constant 0 : index
    %c0_18 = arith.constant 0 : index
    %19 = vector.load %arg8[%c0_16, %c0_17, %c0_18] : memref<18x18x128xbf16, #tpu.memory_space<vmem>>, vector<16x16x128xbf16>
    %c0_19 = arith.constant 0 : index
    %c0_20 = arith.constant 0 : index
    %20 = vector.load %arg9[%c0_19, %c0_20] : memref<256x128xf32, #tpu.memory_space<vmem>>, vector<256x128xf32>
    %21 = vector.shape_cast %19 : vector<16x16x128xbf16> to vector<256x128xbf16>
    %c0_21 = arith.constant 0 : index
    %c0_22 = arith.constant 0 : index
    %c0_23 = arith.constant 0 : index
    %22 = vector.load %arg4[%c0_21, %c0_22, %c0_23] : memref<9x128x128xbf16, #tpu.memory_space<vmem>>, vector<1x128x128xbf16>
    %23 = vector.shape_cast %22 : vector<1x128x128xbf16> to vector<128x128xbf16>
    %cst_24 = arith.constant dense<0.000000e+00> : vector<256x128xf32>
    %24 = tpu.matmul %21, %23, %cst_24 {dimension_numbers = #tpu.dot_dimension_numbers<[1], [0], [0], [1], [0, 0, 1, 1], [], []>} : vector<256x128xbf16>, vector<128x128xbf16>, vector<256x128xf32> -> vector<256x128xf32>
    %25 = arith.addf %20, %24 : vector<256x128xf32>
    %c0_25 = arith.constant 0 : index
    %c0_26 = arith.constant 0 : index
    %26 = vector.load %arg9[%c0_25, %c0_26] : memref<256x128xf32, #tpu.memory_space<vmem>>, vector<256x128xf32>
    tpu.vector_store %arg9[%c0_25, %c0_26], %25 {strides = array<i32>} : memref<256x128xf32, #tpu.memory_space<vmem>>, vector<256x128xf32>,
    %c0_27 = arith.constant 0 : index
    %c1_28 = arith.constant 1 : index
    %c0_29 = arith.constant 0 : index
    %27 = vector.load %arg8[%c0_27, %c1_28, %c0_29] : memref<18x18x128xbf16, #tpu.memory_space<vmem>>, vector<16x16x128xbf16>
    %c0_30 = arith.constant 0 : index
    %c0_31 = arith.constant 0 : index
    %28 = vector.load %arg9[%c0_30, %c0_31] : memref<256x128xf32, #tpu.memory_space<vmem>>, vector<256x128xf32>
    %29 = vector.shape_cast %27 : vector<16x16x128xbf16> to vector<256x128xbf16>
    %c1_32 = arith.constant 1 : index
    %c0_33 = arith.constant 0 : index
    %c0_34 = arith.constant 0 : index
    %30 = vector.load %arg4[%c1_32, %c0_33, %c0_34] : memref<9x128x128xbf16, #tpu.memory_space<vmem>>, vector<1x128x128xbf16>
    %31 = vector.shape_cast %30 : vector<1x128x128xbf16> to vector<128x128xbf16>
    %cst_35 = arith.constant dense<0.000000e+00> : vector<256x128xf32>
    %32 = tpu.matmul %29, %31, %cst_35 {dimension_numbers = #tpu.dot_dimension_numbers<[1], [0], [0], [1], [0, 0, 1, 1], [], []>} : vector<256x128xbf16>, vector<128x128xbf16>, vector<256x128xf32> -> vector<256x128xf32>
    %33 = arith.addf %28, %32 : vector<256x128xf32>
    %c0_36 = arith.constant 0 : index
    %c0_37 = arith.constant 0 : index
    %34 = vector.load %arg9[%c0_36, %c0_37] : memref<256x128xf32, #tpu.memory_space<vmem>>, vector<256x128xf32>
    tpu.vector_store %arg9[%c0_36, %c0_37], %33 {strides = array<i32>} : memref<256x128xf32, #tpu.memory_space<vmem>>, vector<256x128xf32>,
    %c0_38 = arith.constant 0 : index
    %c2 = arith.constant 2 : index
    %c0_39 = arith.constant 0 : index
    %35 = vector.load %arg8[%c0_38, %c2, %c0_39] : memref<18x18x128xbf16, #tpu.memory_space<vmem>>, vector<16x16x128xbf16>
    %c0_40 = arith.constant 0 : index
    %c0_41 = arith.constant 0 : index
    %36 = vector.load %arg9[%c0_40, %c0_41] : memref<256x128xf32, #tpu.memory_space<vmem>>, vector<256x128xf32>
    %37 = vector.shape_cast %35 : vector<16x16x128xbf16> to vector<256x128xbf16>
    %c2_42 = arith.constant 2 : index
    %c0_43 = arith.constant 0 : index
    %c0_44 = arith.constant 0 : index
    %38 = vector.load %arg4[%c2_42, %c0_43, %c0_44] : memref<9x128x128xbf16, #tpu.memory_space<vmem>>, vector<1x128x128xbf16>
    %39 = vector.shape_cast %38 : vector<1x128x128xbf16> to vector<128x128xbf16>
    %cst_45 = arith.constant dense<0.000000e+00> : vector<256x128xf32>
    %40 = tpu.matmul %37, %39, %cst_45 {dimension_numbers = #tpu.dot_dimension_numbers<[1], [0], [0], [1], [0, 0, 1, 1], [], []>} : vector<256x128xbf16>, vector<128x128xbf16>, vector<256x128xf32> -> vector<256x128xf32>
    %41 = arith.addf %36, %40 : vector<256x128xf32>
    %c0_46 = arith.constant 0 : index
    %c0_47 = arith.constant 0 : index
    %42 = vector.load %arg9[%c0_46, %c0_47] : memref<256x128xf32, #tpu.memory_space<vmem>>, vector<256x128xf32>
    tpu.vector_store %arg9[%c0_46, %c0_47], %41 {strides = array<i32>} : memref<256x128xf32, #tpu.memory_space<vmem>>, vector<256x128xf32>,
    %c1_48 = arith.constant 1 : index
    %c0_49 = arith.constant 0 : index
    %c0_50 = arith.constant 0 : index
    %43 = vector.load %arg8[%c1_48, %c0_49, %c0_50] : memref<18x18x128xbf16, #tpu.memory_space<vmem>>, vector<16x16x128xbf16>
    %c0_51 = arith.constant 0 : index
    %c0_52 = arith.constant 0 : index
    %44 = vector.load %arg9[%c0_51, %c0_52] : memref<256x128xf32, #tpu.memory_space<vmem>>, vector<256x128xf32>
    %45 = vector.shape_cast %43 : vector<16x16x128xbf16> to vector<256x128xbf16>
    %c3 = arith.constant 3 : index
    %c0_53 = arith.constant 0 : index
    %c0_54 = arith.constant 0 : index
    %46 = vector.load %arg4[%c3, %c0_53, %c0_54] : memref<9x128x128xbf16, #tpu.memory_space<vmem>>, vector<1x128x128xbf16>
    %47 = vector.shape_cast %46 : vector<1x128x128xbf16> to vector<128x128xbf16>
    %cst_55 = arith.constant dense<0.000000e+00> : vector<256x128xf32>
    %48 = tpu.matmul %45, %47, %cst_55 {dimension_numbers = #tpu.dot_dimension_numbers<[1], [0], [0], [1], [0, 0, 1, 1], [], []>} : vector<256x128xbf16>, vector<128x128xbf16>, vector<256x128xf32> -> vector<256x128xf32>
    %49 = arith.addf %44, %48 : vector<256x128xf32>
    %c0_56 = arith.constant 0 : index
    %c0_57 = arith.constant 0 : index
    %50 = vector.load %arg9[%c0_56, %c0_57] : memref<256x128xf32, #tpu.memory_space<vmem>>, vector<256x128xf32>
    tpu.vector_store %arg9[%c0_56, %c0_57], %49 {strides = array<i32>} : memref<256x128xf32, #tpu.memory_space<vmem>>, vector<256x128xf32>,
    %c1_58 = arith.constant 1 : index
    %c1_59 = arith.constant 1 : index
    %c0_60 = arith.constant 0 : index
    %51 = vector.load %arg8[%c1_58, %c1_59, %c0_60] : memref<18x18x128xbf16, #tpu.memory_space<vmem>>, vector<16x16x128xbf16>
    %c0_61 = arith.constant 0 : index
    %c0_62 = arith.constant 0 : index
    %52 = vector.load %arg9[%c0_61, %c0_62] : memref<256x128xf32, #tpu.memory_space<vmem>>, vector<256x128xf32>
    %53 = vector.shape_cast %51 : vector<16x16x128xbf16> to vector<256x128xbf16>
    %c4 = arith.constant 4 : index
    %c0_63 = arith.constant 0 : index
    %c0_64 = arith.constant 0 : index
    %54 = vector.load %arg4[%c4, %c0_63, %c0_64] : memref<9x128x128xbf16, #tpu.memory_space<vmem>>, vector<1x128x128xbf16>
    %55 = vector.shape_cast %54 : vector<1x128x128xbf16> to vector<128x128xbf16>
    %cst_65 = arith.constant dense<0.000000e+00> : vector<256x128xf32>
    %56 = tpu.matmul %53, %55, %cst_65 {dimension_numbers = #tpu.dot_dimension_numbers<[1], [0], [0], [1], [0, 0, 1, 1], [], []>} : vector<256x128xbf16>, vector<128x128xbf16>, vector<256x128xf32> -> vector<256x128xf32>
    %57 = arith.addf %52, %56 : vector<256x128xf32>
    %c0_66 = arith.constant 0 : index
    %c0_67 = arith.constant 0 : index
    %58 = vector.load %arg9[%c0_66, %c0_67] : memref<256x128xf32, #tpu.memory_space<vmem>>, vector<256x128xf32>
    tpu.vector_store %arg9[%c0_66, %c0_67], %57 {strides = array<i32>} : memref<256x128xf32, #tpu.memory_space<vmem>>, vector<256x128xf32>,
    %c1_68 = arith.constant 1 : index
    %c2_69 = arith.constant 2 : index
    %c0_70 = arith.constant 0 : index
    %59 = vector.load %arg8[%c1_68, %c2_69, %c0_70] : memref<18x18x128xbf16, #tpu.memory_space<vmem>>, vector<16x16x128xbf16>
    %c0_71 = arith.constant 0 : index
    %c0_72 = arith.constant 0 : index
    %60 = vector.load %arg9[%c0_71, %c0_72] : memref<256x128xf32, #tpu.memory_space<vmem>>, vector<256x128xf32>
    %61 = vector.shape_cast %59 : vector<16x16x128xbf16> to vector<256x128xbf16>
    %c5 = arith.constant 5 : index
    %c0_73 = arith.constant 0 : index
    %c0_74 = arith.constant 0 : index
    %62 = vector.load %arg4[%c5, %c0_73, %c0_74] : memref<9x128x128xbf16, #tpu.memory_space<vmem>>, vector<1x128x128xbf16>
    %63 = vector.shape_cast %62 : vector<1x128x128xbf16> to vector<128x128xbf16>
    %cst_75 = arith.constant dense<0.000000e+00> : vector<256x128xf32>
    %64 = tpu.matmul %61, %63, %cst_75 {dimension_numbers = #tpu.dot_dimension_numbers<[1], [0], [0], [1], [0, 0, 1, 1], [], []>} : vector<256x128xbf16>, vector<128x128xbf16>, vector<256x128xf32> -> vector<256x128xf32>
    %65 = arith.addf %60, %64 : vector<256x128xf32>
    %c0_76 = arith.constant 0 : index
    %c0_77 = arith.constant 0 : index
    %66 = vector.load %arg9[%c0_76, %c0_77] : memref<256x128xf32, #tpu.memory_space<vmem>>, vector<256x128xf32>
    tpu.vector_store %arg9[%c0_76, %c0_77], %65 {strides = array<i32>} : memref<256x128xf32, #tpu.memory_space<vmem>>, vector<256x128xf32>,
    %c2_78 = arith.constant 2 : index
    %c0_79 = arith.constant 0 : index
    %c0_80 = arith.constant 0 : index
    %67 = vector.load %arg8[%c2_78, %c0_79, %c0_80] : memref<18x18x128xbf16, #tpu.memory_space<vmem>>, vector<16x16x128xbf16>
    %c0_81 = arith.constant 0 : index
    %c0_82 = arith.constant 0 : index
    %68 = vector.load %arg9[%c0_81, %c0_82] : memref<256x128xf32, #tpu.memory_space<vmem>>, vector<256x128xf32>
    %69 = vector.shape_cast %67 : vector<16x16x128xbf16> to vector<256x128xbf16>
    %c6 = arith.constant 6 : index
    %c0_83 = arith.constant 0 : index
    %c0_84 = arith.constant 0 : index
    %70 = vector.load %arg4[%c6, %c0_83, %c0_84] : memref<9x128x128xbf16, #tpu.memory_space<vmem>>, vector<1x128x128xbf16>
    %71 = vector.shape_cast %70 : vector<1x128x128xbf16> to vector<128x128xbf16>
    %cst_85 = arith.constant dense<0.000000e+00> : vector<256x128xf32>
    %72 = tpu.matmul %69, %71, %cst_85 {dimension_numbers = #tpu.dot_dimension_numbers<[1], [0], [0], [1], [0, 0, 1, 1], [], []>} : vector<256x128xbf16>, vector<128x128xbf16>, vector<256x128xf32> -> vector<256x128xf32>
    %73 = arith.addf %68, %72 : vector<256x128xf32>
    %c0_86 = arith.constant 0 : index
    %c0_87 = arith.constant 0 : index
    %74 = vector.load %arg9[%c0_86, %c0_87] : memref<256x128xf32, #tpu.memory_space<vmem>>, vector<256x128xf32>
    tpu.vector_store %arg9[%c0_86, %c0_87], %73 {strides = array<i32>} : memref<256x128xf32, #tpu.memory_space<vmem>>, vector<256x128xf32>,
    %c2_88 = arith.constant 2 : index
    %c1_89 = arith.constant 1 : index
    %c0_90 = arith.constant 0 : index
    %75 = vector.load %arg8[%c2_88, %c1_89, %c0_90] : memref<18x18x128xbf16, #tpu.memory_space<vmem>>, vector<16x16x128xbf16>
    %c0_91 = arith.constant 0 : index
    %c0_92 = arith.constant 0 : index
    %76 = vector.load %arg9[%c0_91, %c0_92] : memref<256x128xf32, #tpu.memory_space<vmem>>, vector<256x128xf32>
    %77 = vector.shape_cast %75 : vector<16x16x128xbf16> to vector<256x128xbf16>
    %c7 = arith.constant 7 : index
    %c0_93 = arith.constant 0 : index
    %c0_94 = arith.constant 0 : index
    %78 = vector.load %arg4[%c7, %c0_93, %c0_94] : memref<9x128x128xbf16, #tpu.memory_space<vmem>>, vector<1x128x128xbf16>
    %79 = vector.shape_cast %78 : vector<1x128x128xbf16> to vector<128x128xbf16>
    %cst_95 = arith.constant dense<0.000000e+00> : vector<256x128xf32>
    %80 = tpu.matmul %77, %79, %cst_95 {dimension_numbers = #tpu.dot_dimension_numbers<[1], [0], [0], [1], [0, 0, 1, 1], [], []>} : vector<256x128xbf16>, vector<128x128xbf16>, vector<256x128xf32> -> vector<256x128xf32>
    %81 = arith.addf %76, %80 : vector<256x128xf32>
    %c0_96 = arith.constant 0 : index
    %c0_97 = arith.constant 0 : index
    %82 = vector.load %arg9[%c0_96, %c0_97] : memref<256x128xf32, #tpu.memory_space<vmem>>, vector<256x128xf32>
    tpu.vector_store %arg9[%c0_96, %c0_97], %81 {strides = array<i32>} : memref<256x128xf32, #tpu.memory_space<vmem>>, vector<256x128xf32>,
    %c2_98 = arith.constant 2 : index
    %c2_99 = arith.constant 2 : index
    %c0_100 = arith.constant 0 : index
    %83 = vector.load %arg8[%c2_98, %c2_99, %c0_100] : memref<18x18x128xbf16, #tpu.memory_space<vmem>>, vector<16x16x128xbf16>
    %c0_101 = arith.constant 0 : index
    %c0_102 = arith.constant 0 : index
    %84 = vector.load %arg9[%c0_101, %c0_102] : memref<256x128xf32, #tpu.memory_space<vmem>>, vector<256x128xf32>
    %85 = vector.shape_cast %83 : vector<16x16x128xbf16> to vector<256x128xbf16>
    %c8 = arith.constant 8 : index
    %c0_103 = arith.constant 0 : index
    %c0_104 = arith.constant 0 : index
    %86 = vector.load %arg4[%c8, %c0_103, %c0_104] : memref<9x128x128xbf16, #tpu.memory_space<vmem>>, vector<1x128x128xbf16>
    %87 = vector.shape_cast %86 : vector<1x128x128xbf16> to vector<128x128xbf16>
    %cst_105 = arith.constant dense<0.000000e+00> : vector<256x128xf32>
    %88 = tpu.matmul %85, %87, %cst_105 {dimension_numbers = #tpu.dot_dimension_numbers<[1], [0], [0], [1], [0, 0, 1, 1], [], []>} : vector<256x128xbf16>, vector<128x128xbf16>, vector<256x128xf32> -> vector<256x128xf32>
    %89 = arith.addf %84, %88 : vector<256x128xf32>
    %c0_106 = arith.constant 0 : index
    %c0_107 = arith.constant 0 : index
    %90 = vector.load %arg9[%c0_106, %c0_107] : memref<256x128xf32, #tpu.memory_space<vmem>>, vector<256x128xf32>
    tpu.vector_store %arg9[%c0_106, %c0_107], %89 {strides = array<i32>} : memref<256x128xf32, #tpu.memory_space<vmem>>, vector<256x128xf32>,
    %c0_108 = arith.constant 0 : index
    %c0_109 = arith.constant 0 : index
    %91 = vector.load %arg9[%c0_108, %c0_109] : memref<256x128xf32, #tpu.memory_space<vmem>>, vector<256x128xf32>
    %cst_110 = arith.constant dense<0.000000e+00> : vector<128xf32>
    %92 = vector.multi_reduction <add>, %91, %cst_110 [0] : vector<256x128xf32> to vector<128xf32>
    %93 = vector.shape_cast %92 : vector<128xf32> to vector<1x128xf32>
    %c0_111 = arith.constant 0 : index
    %c0_112 = arith.constant 0 : index
    %c0_113 = arith.constant 0 : index
    %94 = vector.load %arg6[%c0_111, %c0_112, %c0_113] : memref<1x1x128xf32, #tpu.memory_space<vmem>>, vector<1x1x128xf32>
    %95 = vector.shape_cast %94 : vector<1x1x128xf32> to vector<1x128xf32>
    %96 = vector.shape_cast %93 : vector<1x128xf32> to vector<1x1x128xf32>
    tpu.vector_store %arg6[%c0_111, %c0_112, %c0_113], %96 {strides = array<i32>} : memref<1x1x128xf32, #tpu.memory_space<vmem>>, vector<1x1x128xf32>,
    %97 = arith.mulf %91, %91 : vector<256x128xf32>
    %cst_114 = arith.constant dense<0.000000e+00> : vector<128xf32>
    %98 = vector.multi_reduction <add>, %97, %cst_114 [0] : vector<256x128xf32> to vector<128xf32>
    %99 = vector.shape_cast %98 : vector<128xf32> to vector<1x128xf32>
    %c0_115 = arith.constant 0 : index
    %c0_116 = arith.constant 0 : index
    %c0_117 = arith.constant 0 : index
    %100 = vector.load %arg7[%c0_115, %c0_116, %c0_117] : memref<1x1x128xf32, #tpu.memory_space<vmem>>, vector<1x1x128xf32>
    %101 = vector.shape_cast %100 : vector<1x1x128xf32> to vector<1x128xf32>
    %102 = vector.shape_cast %99 : vector<1x128xf32> to vector<1x1x128xf32>
    tpu.vector_store %arg7[%c0_115, %c0_116, %c0_117], %102 {strides = array<i32>} : memref<1x1x128xf32, #tpu.memory_space<vmem>>, vector<1x1x128xf32>,
    %103 = vector.shape_cast %91 : vector<256x128xf32> to vector<16x16x128xf32>
    %104 = arith.truncf %103 : vector<16x16x128xf32> to vector<16x16x128xbf16>
    %c0_118 = arith.constant 0 : index
    %c0_119 = arith.constant 0 : index
    %c0_120 = arith.constant 0 : index
    %c0_121 = arith.constant 0 : index
    %105 = vector.load %arg5[%c0_118, %c0_119, %c0_120, %c0_121] : memref<1x16x16x128xbf16, #tpu.memory_space<vmem>>, vector<1x16x16x128xbf16>
    %106 = vector.shape_cast %105 : vector<1x16x16x128xbf16> to vector<16x16x128xbf16>
    %107 = vector.shape_cast %104 : vector<16x16x128xbf16> to vector<1x16x16x128xbf16>
    tpu.vector_store %arg5[%c0_118, %c0_119, %c0_120, %c0_121], %107 {strides = array<i32>} : memref<1x16x16x128xbf16, #tpu.memory_space<vmem>>, vector<1x16x16x128xbf16>,
    return
  }
  func.func @transform_0(%arg0: i32) -> (i32, i32, i32, i32) {
    %c0_i32 = arith.constant 0 : i32
    %c0_i32_0 = arith.constant 0 : i32
    %c0_i32_1 = arith.constant 0 : i32
    %c0_i32_2 = arith.constant 0 : i32
    return %arg0, %c0_i32, %c0_i32_0, %c0_i32_1 : i32, i32, i32, i32
  }
  func.func @transform_1(%arg0: i32) -> (i32, i32) {
    %c0_i32 = arith.constant 0 : i32
    %c0_i32_0 = arith.constant 0 : i32
    %c0_i32_1 = arith.constant 0 : i32
    return %c0_i32, %c0_i32_0 : i32, i32
  }
  func.func @transform_2(%arg0: i32) -> (i32, i32) {
    %c0_i32 = arith.constant 0 : i32
    %c0_i32_0 = arith.constant 0 : i32
    %c0_i32_1 = arith.constant 0 : i32
    return %c0_i32, %c0_i32_0 : i32, i32
  }
  func.func @transform_3(%arg0: i32) -> (i32, i32, i32) {
    %c0_i32 = arith.constant 0 : i32
    %c0_i32_0 = arith.constant 0 : i32
    %c0_i32_1 = arith.constant 0 : i32
    %c0_i32_2 = arith.constant 0 : i32
    return %c0_i32, %c0_i32_0, %c0_i32_1 : i32, i32, i32
  }
  func.func @transform_4(%arg0: i32) -> (i32, i32, i32, i32) {
    %c0_i32 = arith.constant 0 : i32
    %c0_i32_0 = arith.constant 0 : i32
    %c0_i32_1 = arith.constant 0 : i32
    %c0_i32_2 = arith.constant 0 : i32
    return %arg0, %c0_i32, %c0_i32_0, %c0_i32_1 : i32, i32, i32, i32
  }
  func.func @transform_5(%arg0: i32) -> (i32, i32, i32) {
    %c0_i32 = arith.constant 0 : i32
    %c0_i32_0 = arith.constant 0 : i32
    %c0_i32_1 = arith.constant 0 : i32
    return %arg0, %c0_i32, %c0_i32_0 : i32, i32, i32
  }
  func.func @transform_6(%arg0: i32) -> (i32, i32, i32) {
    %c0_i32 = arith.constant 0 : i32
    %c0_i32_0 = arith.constant 0 : i32
    %c0_i32_1 = arith.constant 0 : i32
    return %arg0, %c0_i32, %c0_i32_0 : i32, i32, i32
  }
}

module attributes {stable_mosaic.version = 11 : i64} {
  func.func @_bn_relu_chw_kernel(%arg0: i32, %arg1: memref<1x16x16x128xbf16, #tpu.memory_space<vmem>>, %arg2: memref<1x128xf32, #tpu.memory_space<vmem>>, %arg3: memref<1x128xf32, #tpu.memory_space<vmem>>, %arg4: memref<1x128x256xf32, #tpu.memory_space<vmem>>) attributes {dimension_semantics = [#tpu.dimension_semantics<parallel>], iteration_bounds = array<i64: 2>, scalar_prefetch = 0 : i64, scratch_operands = 0 : i64, tpu.core_type = #tpu.core_type<tc>, window_params = [{transform_indices = @transform_0, window_bounds = array<i64: 1, 16, 16, 128>}, {pipeline_mode = #tpu.pipeline_mode<synchronous>, transform_indices = @transform_1, window_bounds = array<i64: 1, 128>}, {pipeline_mode = #tpu.pipeline_mode<synchronous>, transform_indices = @transform_2, window_bounds = array<i64: 1, 128>}, {transform_indices = @transform_3, window_bounds = array<i64: 1, 128, 256>}]} {
    %c0 = arith.constant 0 : index
    %c0_0 = arith.constant 0 : index
    %c0_1 = arith.constant 0 : index
    %c0_2 = arith.constant 0 : index
    %0 = vector.load %arg1[%c0, %c0_0, %c0_1, %c0_2] : memref<1x16x16x128xbf16, #tpu.memory_space<vmem>>, vector<1x16x16x128xbf16>
    %1 = vector.shape_cast %0 : vector<1x16x16x128xbf16> to vector<16x16x128xbf16>
    %2 = arith.extf %1 : vector<16x16x128xbf16> to vector<16x16x128xf32>
    %c0_3 = arith.constant 0 : index
    %c0_4 = arith.constant 0 : index
    %3 = vector.load %arg2[%c0_3, %c0_4] : memref<1x128xf32, #tpu.memory_space<vmem>>, vector<1x128xf32>
    %4 = vector.shape_cast %3 : vector<1x128xf32> to vector<1x1x128xf32>
    %5 = vector.broadcast %4 : vector<1x1x128xf32> to vector<16x16x128xf32>
    %6 = arith.mulf %2, %5 : vector<16x16x128xf32>
    %c0_5 = arith.constant 0 : index
    %c0_6 = arith.constant 0 : index
    %7 = vector.load %arg3[%c0_5, %c0_6] : memref<1x128xf32, #tpu.memory_space<vmem>>, vector<1x128xf32>
    %8 = vector.shape_cast %7 : vector<1x128xf32> to vector<1x1x128xf32>
    %9 = vector.broadcast %8 : vector<1x1x128xf32> to vector<16x16x128xf32>
    %10 = arith.addf %6, %9 : vector<16x16x128xf32>
    %cst = arith.constant 0.000000e+00 : f32
    %11 = vector.broadcast %cst : f32 to vector<16x16x128xf32>
    %12 = arith.maximumf %10, %11 : vector<16x16x128xf32>
    %13 = vector.shape_cast %12 : vector<16x16x128xf32> to vector<256x128xf32>
    %14 = tpu.transpose %13, [1, 0] : vector<256x128xf32> -> vector<128x256xf32>
    %c0_7 = arith.constant 0 : index
    %c0_8 = arith.constant 0 : index
    %c0_9 = arith.constant 0 : index
    %15 = vector.load %arg4[%c0_7, %c0_8, %c0_9] : memref<1x128x256xf32, #tpu.memory_space<vmem>>, vector<1x128x256xf32>
    %16 = vector.shape_cast %15 : vector<1x128x256xf32> to vector<128x256xf32>
    %17 = vector.shape_cast %14 : vector<128x256xf32> to vector<1x128x256xf32>
    tpu.vector_store %arg4[%c0_7, %c0_8, %c0_9], %17 {strides = array<i32>} : memref<1x128x256xf32, #tpu.memory_space<vmem>>, vector<1x128x256xf32>,
    return
  }
  func.func @transform_0(%arg0: i32) -> (i32, i32, i32, i32) {
    %c0_i32 = arith.constant 0 : i32
    %c0_i32_0 = arith.constant 0 : i32
    %c0_i32_1 = arith.constant 0 : i32
    %c0_i32_2 = arith.constant 0 : i32
    return %arg0, %c0_i32, %c0_i32_0, %c0_i32_1 : i32, i32, i32, i32
  }
  func.func @transform_1(%arg0: i32) -> (i32, i32) {
    %c0_i32 = arith.constant 0 : i32
    %c0_i32_0 = arith.constant 0 : i32
    %c0_i32_1 = arith.constant 0 : i32
    return %c0_i32, %c0_i32_0 : i32, i32
  }
  func.func @transform_2(%arg0: i32) -> (i32, i32) {
    %c0_i32 = arith.constant 0 : i32
    %c0_i32_0 = arith.constant 0 : i32
    %c0_i32_1 = arith.constant 0 : i32
    return %c0_i32, %c0_i32_0 : i32, i32
  }
  func.func @transform_3(%arg0: i32) -> (i32, i32, i32) {
    %c0_i32 = arith.constant 0 : i32
    %c0_i32_0 = arith.constant 0 : i32
    %c0_i32_1 = arith.constant 0 : i32
    return %arg0, %c0_i32, %c0_i32_0 : i32, i32, i32
  }
}

</mosaic_0001>

<bundles_post_ra>
// kernel: vgg_block_forward.5
= control target key start
LH: loop header
LB: loop body
LE: loop exit
PB: predicated region body
PF: predicated region fallthrough
CT: control target
= control target key end

     0   :  { %s626_s12 = smov 0   ;;  %s773_s0 = inlined_call_operand.vmem [shape: bf16[2,16,16,128], index: 0, kind: input, shape index: {}]   ;;  %s774_s1 = inlined_call_operand.vmem [shape: f32[1,128], index: 1, kind: input, shape index: {}]   ;;  %s775_s2 = inlined_call_operand.vmem [shape: f32[1,128], index: 2, kind: input, shape index: {}]   ;;  %s776_s3 = inlined_call_operand.vmem [shape: f32[2,128,256], index: 3, kind: output, shape index: {}]  }
   0x1 LB: > { %s496_s13 = sadd.s32 4294967295, %s604_s12   ;;  %p500_p0 = scmp.ge.s32.totalorder %s604_s12, 1  ;;  %s604_s12 = sphi %s626_s12, %s13_s12  }
   0x2   : > { %p137_p1 = scmp.lt.s32.totalorder %s604_s12, 3 }
   0x4   : > { %p138_p2 = pnand %p500_p0, %p137_p1 }
   0x5   : > { %p161_p3 = scmp.lt.s32.totalorder (!%p138_p2), %s496_s13, 1 }
   0x6   : > { %141 = sbr.rel (%p138_p2) target bundleno = 210 (0xd2), region = 32 }
   0xb   : > { %s778_s13 = smov (!%p161_p3, %s496_s13), 1  ;;  %v645_v0 = vld [vmem:[%s774_s1] ss:$0 sm:$0xff] }
   0xc   : > { %s509_s14 = sshll.u32 %s778_s13, 7  ;;  %v654_v9 = vld [vmem:[%s775_s2] ss:$0 sm:$0xff]  ;;  %s510_s22 = sshll.u32 %s778_s13, 8 }
   0xd   : > { %s640_s17 = scalar_lea.vmem %s773_s0, %s509_s14  ;;  %s736_s25 = scalar_lea.vmem %s776_s3, %s510_s22 }
   0xe   : > { %v582_v1 = vld [vmem:[%s640_s17 + $0x40] sm:$0xff]   ;;  %v583_v3 = vld [vmem:[%s640_s17 + $0x48] sm:$0xff]   ;;  %v584_v24 = vld [vmem:[%s640_s17 + $0x50] sm:$0xff]  }
   0xf   : > { %v512_v2 = vld [vmem:[%s640_s17] sm:$0xff]   ;;  %v545_v4 = vunpack.c.l.bf16 %v582_v1  ;;  %v546_v6 = vunpack.c.h.bf16 %v582_v1  ;;  %v575_v8 = vld [vmem:[%s640_s17 + $0x8] sm:$0xff]   ;;  %v549_v10 = vunpack.c.l.bf16 %v583_v3  ;;  %v550_v18 = vunpack.c.h.bf16 %v583_v3  ;;  %v576_v25 = vld [vmem:[%s640_s17 + $0x10] sm:$0xff]  }
  0x10   : > { %v513_v5 = vunpack.c.l.bf16 %v512_v2  ;;  %v514_v7 = vunpack.c.h.bf16 %v512_v2  ;;  %v517_v11 = vunpack.c.l.bf16 %v575_v8  ;;  %v518_v19 = vunpack.c.h.bf16 %v575_v8  ;;  %v585_v44 = vld [vmem:[%s640_s17 + $0x58] sm:$0xff]   ;;  %v586_v62 = vld [vmem:[%s640_s17 + $0x60] sm:$0xff]  }
  0x11   : > { %v258_v12 = vmul.f32 %v545_v4, %v645_v0  ;;  %v259_v14 = vmul.f32 %v546_v6, %v645_v0  ;;  %v260_v16 = vmul.f32 %v549_v10, %v645_v0  ;;  %v261_v30 = vmul.f32 %v550_v18, %v645_v0  ;;  %v577_v45 = vld [vmem:[%s640_s17 + $0x18] sm:$0xff]   ;;  %v578_v63 = vld [vmem:[%s640_s17 + $0x20] sm:$0xff]   ;;  %v587_v18 = vld [vmem:[%s640_s17 + $0x68] sm:$0xff]  }
  0x12   : > { %v242_v13 = vmul.f32 %v513_v5, %v645_v0  ;;  %v243_v15 = vmul.f32 %v514_v7, %v645_v0  ;;  %v244_v17 = vmul.f32 %v517_v11, %v645_v0  ;;  %v245_v31 = vmul.f32 %v518_v19, %v645_v0  ;;  %v579_v19 = vld [vmem:[%s640_s17 + $0x28] sm:$0xff]  }
  0x13   : > { %v297_v20 = vadd.f32 %v654_v9, %v258_v12  ;;  %v298_v22 = vadd.f32 %v654_v9, %v259_v14  ;;  %v299_v28 = vadd.f32 %v654_v9, %v260_v16  ;;  %v553_v34 = vunpack.c.l.bf16 %v584_v24 }
  0x14   : > { %v281_v21 = vadd.f32 %v654_v9, %v242_v13  ;;  %v282_v23 = vadd.f32 %v654_v9, %v243_v15  ;;  %v283_v29 = vadd.f32 %v654_v9, %v244_v17  ;;  %v521_v35 = vunpack.c.l.bf16 %v576_v25 }
  0x15   : > { %v329_v26 = vmax.f32 %v297_v20, 0.0  ;;  %v330_v32 = vmax.f32 %v298_v22, 0.0  ;;  %v331_v36 = vmax.f32 %v299_v28, 0.0  ;;  %v300_v37 = vadd.f32 %v654_v9, %v261_v30 }
  0x16   : > { %v313_v27 = vmax.f32 %v281_v21, 0.0  ;;  %v314_v33 = vmax.f32 %v282_v23, 0.0  ;;  %v284_v38 = vadd.f32 %v654_v9, %v245_v31  ;;  %v554_v39 = vunpack.c.h.bf16 %v584_v24 }
  0x17   : > { %377 = vxpose.xlu1.b32.start [1/16] %v329_v26, 128  ;;  %v315_v40 = vmax.f32 %v283_v29, 0.0  ;;  %v262_v41 = vmul.f32 %v553_v34, %v645_v0  ;;  %v246_v42 = vmul.f32 %v521_v35, %v645_v0  ;;  %v522_v43 = vunpack.c.h.bf16 %v576_v25 }
  0x18   : > { %345 = vxpose.xlu0.b32.start [1/16] %v313_v27, 128  ;;  %v332_v46 = vmax.f32 %v300_v37, 0.0  ;;  %v263_v47 = vmul.f32 %v554_v39, %v645_v0  ;;  %v557_v48 = vunpack.c.l.bf16 %v585_v44  ;;  %v525_v49 = vunpack.c.l.bf16 %v577_v45  ;;  %v580_v37 = vld [vmem:[%s640_s17 + $0x30] sm:$0xff]  }
  0x19   : > { %v316_v50 = vmax.f32 %v284_v38, 0.0  ;;  %v301_v51 = vadd.f32 %v654_v9, %v262_v41  ;;  %v285_v52 = vadd.f32 %v654_v9, %v246_v42  ;;  %v247_v53 = vmul.f32 %v522_v43, %v645_v0 }
  0x1a   : > { %v264_v54 = vmul.f32 %v557_v48, %v645_v0  ;;  %v248_v55 = vmul.f32 %v525_v49, %v645_v0  ;;  %v558_v56 = vunpack.c.h.bf16 %v585_v44  ;;  %v526_v57 = vunpack.c.h.bf16 %v577_v45 }
  0x1b   : > { %378 = vxpose.xlu1.b32.cont [2/16] %v330_v32, 128  ;;  %v333_v58 = vmax.f32 %v301_v51, 0.0  ;;  %v317_v59 = vmax.f32 %v285_v52, 0.0  ;;  %v302_v60 = vadd.f32 %v654_v9, %v263_v47  ;;  %v286_v61 = vadd.f32 %v654_v9, %v247_v53 }
  0x1c   : > { %346 = vxpose.xlu0.b32.cont [2/16] %v314_v33, 128  ;;  %v303_v1 = vadd.f32 %v654_v9, %v264_v54  ;;  %v265_v2 = vmul.f32 %v558_v56, %v645_v0  ;;  %v249_v3 = vmul.f32 %v526_v57, %v645_v0  ;;  %v561_v4 = vunpack.c.l.bf16 %v586_v62  ;;  %v589_v54 = vld [vmem:[%s640_s17 + $0x78] sm:$0xff]  }
  0x1d   : > { %v334_v5 = vmax.f32 %v302_v60, 0.0  ;;  %v318_v6 = vmax.f32 %v286_v61, 0.0  ;;  %v287_v7 = vadd.f32 %v654_v9, %v248_v55  ;;  %v529_v8 = vunpack.c.l.bf16 %v578_v63  ;;  %v581_v55 = vld [vmem:[%s640_s17 + $0x38] sm:$0xff]  }
  0x1e   : > { %v335_v10 = vmax.f32 %v303_v1, 0.0  ;;  %v304_v11 = vadd.f32 %v654_v9, %v265_v2  ;;  %v288_v12 = vadd.f32 %v654_v9, %v249_v3  ;;  %v266_v13 = vmul.f32 %v561_v4, %v645_v0 }
  0x1f   : > { %379 = vxpose.xlu1.b32.cont [3/16] %v331_v36, 128  ;;  %v319_v14 = vmax.f32 %v287_v7, 0.0  ;;  %v250_v15 = vmul.f32 %v529_v8, %v645_v0  ;;  %v562_v16 = vunpack.c.h.bf16 %v586_v62  ;;  %v530_v17 = vunpack.c.h.bf16 %v578_v63  ;;  %v588_v36 = vld [vmem:[%s640_s17 + $0x70] sm:$0xff]  }
  0x20   : > { %347 = vxpose.xlu0.b32.cont [3/16] %v315_v40, 128  ;;  %v336_v20 = vmax.f32 %v304_v11, 0.0  ;;  %v305_v21 = vadd.f32 %v654_v9, %v266_v13  ;;  %v565_v22 = vunpack.c.l.bf16 %v587_v18  ;;  %v533_v23 = vunpack.c.l.bf16 %v579_v19 }
  0x21   : > { %v320_v24 = vmax.f32 %v288_v12, 0.0  ;;  %v289_v25 = vadd.f32 %v654_v9, %v250_v15  ;;  %v267_v26 = vmul.f32 %v562_v16, %v645_v0  ;;  %v251_v27 = vmul.f32 %v530_v17, %v645_v0 }
  0x22   : > { %v268_v28 = vmul.f32 %v565_v22, %v645_v0  ;;  %v252_v29 = vmul.f32 %v533_v23, %v645_v0  ;;  %v566_v30 = vunpack.c.h.bf16 %v587_v18  ;;  %v534_v31 = vunpack.c.h.bf16 %v579_v19 }
  0x23   : > { %380 = vxpose.xlu1.b32.cont [4/16] %v332_v46, 128  ;;  %v337_v32 = vmax.f32 %v305_v21, 0.0  ;;  %v321_v33 = vmax.f32 %v289_v25, 0.0  ;;  %v306_v34 = vadd.f32 %v654_v9, %v267_v26  ;;  %v290_v35 = vadd.f32 %v654_v9, %v251_v27 }
  0x24   : > { %348 = vxpose.xlu0.b32.cont [4/16] %v316_v50, 128  ;;  %v307_v38 = vadd.f32 %v654_v9, %v268_v28  ;;  %v269_v39 = vmul.f32 %v566_v30, %v645_v0  ;;  %v253_v40 = vmul.f32 %v534_v31, %v645_v0  ;;  %v569_v41 = vunpack.c.l.bf16 %v588_v36 }
  0x25   : > { %v338_v42 = vmax.f32 %v306_v34, 0.0  ;;  %v322_v43 = vmax.f32 %v290_v35, 0.0  ;;  %v291_v44 = vadd.f32 %v654_v9, %v252_v29  ;;  %v537_v45 = vunpack.c.l.bf16 %v580_v37 }
  0x26   : > { %v339_v46 = vmax.f32 %v307_v38, 0.0  ;;  %v308_v47 = vadd.f32 %v654_v9, %v269_v39  ;;  %v292_v48 = vadd.f32 %v654_v9, %v253_v40  ;;  %v270_v49 = vmul.f32 %v569_v41, %v645_v0 }
  0x27   : > { %381 = vxpose.xlu1.b32.cont [5/16] %v333_v58, 128  ;;  %v323_v50 = vmax.f32 %v291_v44, 0.0  ;;  %v254_v51 = vmul.f32 %v537_v45, %v645_v0  ;;  %v570_v52 = vunpack.c.h.bf16 %v588_v36  ;;  %v538_v53 = vunpack.c.h.bf16 %v580_v37 }
  0x28   : > { %349 = vxpose.xlu0.b32.cont [5/16] %v317_v59, 128  ;;  %v340_v56 = vmax.f32 %v308_v47, 0.0  ;;  %v309_v57 = vadd.f32 %v654_v9, %v270_v49  ;;  %v573_v58 = vunpack.c.l.bf16 %v589_v54  ;;  %v541_v59 = vunpack.c.l.bf16 %v581_v55 }
  0x29   : > { %v324_v60 = vmax.f32 %v292_v48, 0.0  ;;  %v293_v61 = vadd.f32 %v654_v9, %v254_v51  ;;  %v271_v62 = vmul.f32 %v570_v52, %v645_v0  ;;  %v255_v63 = vmul.f32 %v538_v53, %v645_v0 }
  0x2a   : > { %v272_v1 = vmul.f32 %v573_v58, %v645_v0  ;;  %v256_v2 = vmul.f32 %v541_v59, %v645_v0  ;;  %v574_v3 = vunpack.c.h.bf16 %v589_v54  ;;  %v542_v4 = vunpack.c.h.bf16 %v581_v55 }
  0x2b   : > { %382 = vxpose.xlu1.b32.cont [6/16] %v334_v5, 128  ;;  %v341_v5 = vmax.f32 %v309_v57, 0.0  ;;  %v310_v7 = vadd.f32 %v654_v9, %v271_v62  ;;  %v294_v8 = vadd.f32 %v654_v9, %v255_v63 }
  0x2c   : > { %350 = vxpose.xlu0.b32.cont [6/16] %v318_v6, 128  ;;  %v325_v6 = vmax.f32 %v293_v61, 0.0  ;;  %v257_v11 = vmul.f32 %v542_v4, %v645_v0  ;;  %v295_v15 = vadd.f32 %v654_v9, %v256_v2 }
  0x2d   : > { %v342_v12 = vmax.f32 %v310_v7, 0.0  ;;  %v326_v13 = vmax.f32 %v294_v8, 0.0 }
  0x2e   : > { %v327_v17 = vmax.f32 %v295_v15, 0.0  ;;  %v296_v19 = vadd.f32 %v654_v9, %v257_v11 }
  0x2f   : > { %383 = vxpose.xlu1.b32.cont [7/16] %v335_v10, 128  ;;  %v273_v10 = vmul.f32 %v574_v3, %v645_v0 }
  0x30   : > { %351 = vxpose.xlu0.b32.cont [7/16] %v319_v14, 128  ;;  %v311_v14 = vadd.f32 %v654_v9, %v272_v1 }
  0x31   : > { %v312_v18 = vadd.f32 %v654_v9, %v273_v10 }
  0x32   : > { %v343_v16 = vmax.f32 %v311_v14, 0.0 }
  0x33   : > { %384 = vxpose.xlu1.b32.cont [8/16] %v336_v20, 128  ;;  %v344_v0 = vmax.f32 %v312_v18, 0.0  ;;  %v328_v20 = vmax.f32 %v296_v19, 0.0 }
  0x34   : > { %352 = vxpose.xlu0.b32.cont [8/16] %v320_v24, 128 }
  0x37   : > { %385 = vxpose.xlu1.b32.cont [9/16] %v337_v32, 128 }
  0x38   : > { %353 = vxpose.xlu0.b32.cont [9/16] %v321_v33, 128 }
  0x3b   : > { %386 = vxpose.xlu1.b32.cont [10/16] %v338_v42, 128 }
  0x3c   : > { %354 = vxpose.xlu0.b32.cont [10/16] %v322_v43, 128 }
  0x3f   : > { %387 = vxpose.xlu1.b32.cont [11/16] %v339_v46, 128 }
  0x40   : > { %355 = vxpose.xlu0.b32.cont [11/16] %v323_v50, 128 }
  0x43   : > { %388 = vxpose.xlu1.b32.cont [12/16] %v340_v56, 128 }
  0x44   : > { %356 = vxpose.xlu0.b32.cont [12/16] %v324_v60, 128 }
  0x47   : > { %389 = vxpose.xlu1.b32.cont [13/16] %v341_v5, 128 }
  0x48   : > { %357 = vxpose.xlu0.b32.cont [13/16] %v325_v6, 128 }
  0x4b   : > { %390 = vxpose.xlu1.b32.cont [14/16] %v342_v12, 128 }
  0x4c   : > { %358 = vxpose.xlu0.b32.cont [14/16] %v326_v13, 128 }
  0x4f   : > { %391 = vxpose.xlu1.b32.cont [15/16] %v343_v16, 128 }
  0x50   : > { %359 = vxpose.xlu0.b32.cont [15/16] %v327_v17, 128 }
  0x53   : > { %392 = vxpose.xlu1.b32.end [16/16] %v344_v0, 128 }
  0x54   : > { %360 = vxpose.xlu0.b32.end [16/16] %v328_v20, 128 }
  0x93   : > { %v393_v9 = vpop.trf.xlu1 }
  0x94   : > { %v361_v21 = vpop.trf.xlu0  ;;  %410 = vst [vmem:[%s736_s25 + $0x8] sm:$0xff] %v393_v9 }
  0x95   : > { %409 = vst [vmem:[%s736_s25] sm:$0xff] %v361_v21 }
  0x97   : > { %v394_v22 = vpop.trf.xlu1 }
  0x98   : > { %v362_v23 = vpop.trf.xlu0  ;;  %412 = vst [vmem:[%s736_s25 + $0x18] sm:$0xff] %v394_v22 }
  0x99   : > { %411 = vst [vmem:[%s736_s25 + $0x10] sm:$0xff] %v362_v23 }
  0x9b   : > { %v395_v24 = vpop.trf.xlu1 }
  0x9c   : > { %v363_v25 = vpop.trf.xlu0  ;;  %414 = vst [vmem:[%s736_s25 + $0x28] sm:$0xff] %v395_v24 }
  0x9d   : > { %413 = vst [vmem:[%s736_s25 + $0x20] sm:$0xff] %v363_v25 }
  0x9f   : > { %v396_v26 = vpop.trf.xlu1 }
  0xa0   : > { %v364_v27 = vpop.trf.xlu0  ;;  %416 = vst [vmem:[%s736_s25 + $0x38] sm:$0xff] %v396_v26 }
  0xa1   : > { %415 = vst [vmem:[%s736_s25 + $0x30] sm:$0xff] %v364_v27 }
  0xa3   : > { %v397_v28 = vpop.trf.xlu1 }
  0xa4   : > { %v365_v29 = vpop.trf.xlu0  ;;  %418 = vst [vmem:[%s736_s25 + $0x48] sm:$0xff] %v397_v28 }
  0xa5   : > { %417 = vst [vmem:[%s736_s25 + $0x40] sm:$0xff] %v365_v29 }
  0xa7   : > { %v398_v30 = vpop.trf.xlu1 }
  0xa8   : > { %v366_v31 = vpop.trf.xlu0  ;;  %420 = vst [vmem:[%s736_s25 + $0x58] sm:$0xff] %v398_v30 }
  0xa9   : > { %419 = vst [vmem:[%s736_s25 + $0x50] sm:$0xff] %v366_v31 }
  0xab   : > { %v399_v32 = vpop.trf.xlu1 }
  0xac   : > { %v367_v33 = vpop.trf.xlu0  ;;  %422 = vst [vmem:[%s736_s25 + $0x68] sm:$0xff] %v399_v32 }
  0xad   : > { %421 = vst [vmem:[%s736_s25 + $0x60] sm:$0xff] %v367_v33 }
  0xaf   : > { %v400_v34 = vpop.trf.xlu1 }
  0xb0   : > { %v368_v35 = vpop.trf.xlu0  ;;  %424 = vst [vmem:[%s736_s25 + $0x78] sm:$0xff] %v400_v34 }
  0xb1   : > { %423 = vst [vmem:[%s736_s25 + $0x70] sm:$0xff] %v368_v35 }
  0xb3   : > { %v401_v36 = vpop.trf.xlu1 }
  0xb4   : > { %v369_v37 = vpop.trf.xlu0  ;;  %426 = vst [vmem:[%s736_s25 + $0x88] sm:$0xff] %v401_v36 }
  0xb5   : > { %425 = vst [vmem:[%s736_s25 + $0x80] sm:$0xff] %v369_v37 }
  0xb7   : > { %v402_v38 = vpop.trf.xlu1 }
  0xb8   : > { %v370_v39 = vpop.trf.xlu0  ;;  %428 = vst [vmem:[%s736_s25 + $0x98] sm:$0xff] %v402_v38 }
  0xb9   : > { %427 = vst [vmem:[%s736_s25 + $0x90] sm:$0xff] %v370_v39 }
  0xbb   : > { %v403_v40 = vpop.trf.xlu1 }
  0xbc   : > { %v371_v41 = vpop.trf.xlu0  ;;  %430 = vst [vmem:[%s736_s25 + $0xa8] sm:$0xff] %v403_v40 }
  0xbd   : > { %429 = vst [vmem:[%s736_s25 + $0xa0] sm:$0xff] %v371_v41 }
  0xbf   : > { %v404_v42 = vpop.trf.xlu1 }
  0xc0   : > { %v372_v43 = vpop.trf.xlu0  ;;  %432 = vst [vmem:[%s736_s25 + $0xb8] sm:$0xff] %v404_v42 }
  0xc1   : > { %431 = vst [vmem:[%s736_s25 + $0xb0] sm:$0xff] %v372_v43 }
  0xc3   : > { %v405_v44 = vpop.trf.xlu1 }
  0xc4   : > { %v373_v45 = vpop.trf.xlu0  ;;  %434 = vst [vmem:[%s736_s25 + $0xc8] sm:$0xff] %v405_v44 }
  0xc5   : > { %433 = vst [vmem:[%s736_s25 + $0xc0] sm:$0xff] %v373_v45 }
  0xc7   : > { %v406_v46 = vpop.trf.xlu1 }
  0xc8   : > { %v374_v47 = vpop.trf.xlu0  ;;  %436 = vst [vmem:[%s736_s25 + $0xd8] sm:$0xff] %v406_v46 }
  0xc9   : > { %435 = vst [vmem:[%s736_s25 + $0xd0] sm:$0xff] %v374_v47 }
  0xcb   : > { %v407_v48 = vpop.trf.xlu1 }
  0xcc   : > { %v375_v49 = vpop.trf.xlu0  ;;  %438 = vst [vmem:[%s736_s25 + $0xe8] sm:$0xff] %v407_v48 }
  0xcd   : > { %437 = vst [vmem:[%s736_s25 + $0xe0] sm:$0xff] %v375_v49 }
  0xcf   : > { %v408_v50 = vpop.trf.xlu1 }
  0xd0   : > { %v376_v51 = vpop.trf.xlu0  ;;  %440 = vst [vmem:[%s736_s25 + $0xf8] sm:$0xff] %v408_v50 }
  0xd1   : > { %439 = vst [vmem:[%s736_s25 + $0xf0] sm:$0xff] %v376_v51 }
  0xd2 PF: > { %s13_s12 = sadd.s32 1, %s604_s12  }
  0xd3   : > { %p10_p4 = scmp.ge.s32.totalorder %s13_s12, 4  }
  0xd5   :  { %12 = sbr.rel (!%p10_p4) target bundleno = 1 (0x1), region = 62 }

// kernel: vgg_block_forward.3
= control target key start
LH: loop header
LB: loop body
LE: loop exit
PB: predicated region body
PF: predicated region fallthrough
CT: control target
= control target key end

     0   :  { %s8163_s15 = smov 0   ;;  %s9912_s0 = inlined_call_operand.vmem [shape: bf16[2,16,16,128], index: 0, kind: input, shape index: {}]   ;;  %s9913_s1 = inlined_call_operand.vmem [shape: bf16[9,128,128], index: 1, kind: input, shape index: {}]   ;;  %s9914_s2 = inlined_call_operand.vmem [shape: bf16[2,16,16,128], index: 2, kind: output, shape index: {0}]   ;;  %s9915_s3 = inlined_call_operand.vmem [shape: f32[2,1,128], index: 3, kind: output, shape index: {1}]   ;;  %s9916_s4 = inlined_call_operand.vmem [shape: f32[2,1,128], index: 4, kind: output, shape index: {2}]  }
   0x1 LB: > { %s6772_s16 = sadd.s32 4294967295, %s8135_s15   ;;  %p6776_p0 = scmp.ge.s32.totalorder %s8135_s15, 1  ;;  %s8135_s15 = sphi %s8163_s15, %s15_s15  }
   0x2   : > { %p167_p1 = scmp.lt.s32.totalorder %s8135_s15, 3 }
   0x4   : > { %p168_p2 = pnand %p6776_p0, %p167_p1 }
   0x6   : > { %171 = sbr.rel (%p168_p2) target bundleno = 648 (0x288), region = 28 }
   0xb   : > { %v8009_v0 = vld [vmem:[%s9913_s1 + $0x38] sm:$0xff]   ;;  %v8177_v1 = vld [vmem:[%s9913_s1 + $0x30] sm:$0xff]   ;;  %v8137_v2 = vmov 0   ;;  %p199_p3 = scmp.lt.s32.totalorder %s6772_s16, 1  ;;  %v8011_v3 = vld [vmem:[%s9913_s1 + $0x28] sm:$0xff]   ;;  %vm626_vm0 = vcmask 1043456  }
   0xc   : > { %248 = vst [vmem:[#allocation2] sm:$0xf] %v8137_v2  ;;  %249 = vst [vmem:[#allocation2 + $0x4] sm:$0xf] %v8137_v2  ;;  %7552 = vmatprep.subr.bf16.mxu0 %v8009_v0  ;;  %7984 = vmatprep.subr.bf16.mxu1 %v8009_v0  ;;  %v8012_v4 = vld [vmem:[%s9913_s1 + $0x20] sm:$0xff]   ;;  %v8013_v11 = vld [vmem:[%s9913_s1 + $0x18] sm:$0xff]  }
   0xd   : > { %250 = vst [vmem:[#allocation2 + $0x8] sm:$0x1] %v8137_v2  ;;  %251 = vst [vmem:[#allocation2 + $0xc] sm:$0xf] %v8137_v2  ;;  %7553 = vmatpush3.bf16.msra.mxu0 %v8009_v0  ;;  %7992 = vmatpush3.bf16.msra.mxu1 %v8009_v0  ;;  %s10028_s16 = smov (!%p199_p3, %s6772_s16), 1  ;;  %vm633_vm4 = vcmask 1040384  }
   0xe   : > { %252 = vst [vmem:[#allocation2 + $0x10] sm:$0xf] %v8137_v2  ;;  %253 = vst [vmem:[#allocation2 + $0x14] sm:$0x1] %v8137_v2  ;;  %7554 = vmatprep.subr.bf16.mxu0 %v8177_v1  ;;  %7985 = vmatprep.subr.bf16.mxu1 %v8177_v1  ;;  %s7207_s23 = sshll.u32 %s10028_s16, 7  ;;  %v8014_v24 = vld [vmem:[%s9913_s1 + $0x10] sm:$0xff]   ;;  %s211_s9 = scalar_lea.vmem %s9915_s3, %s10028_s16 }
   0xf   : > { %254 = vst [vmem:[#allocation2 + $0x18] sm:$0xf] %v8137_v2  ;;  %255 = vst [vmem:[#allocation2 + $0x1c] sm:$0xf] %v8137_v2  ;;  %s8196_s26 = scalar_lea.vmem %s9912_s0, %s7207_s23  ;;  %vm302_vm1 = vsmask.f32 256  ;;  %s9844_s7 = scalar_lea.vmem %s9914_s2, %s7207_s23 }
  0x10   : > { %256 = vst [vmem:[#allocation2 + $0x20] sm:$0x1] %v8137_v2  ;;  %257 = vst [vmem:[#allocation2 + $0x24] sm:$0xf] %v8137_v2  ;;  %v230_v6 = vld [vmem:[%s8196_s26 + $0x38] sm:$0xf]  ;;  %s214_s12 = scalar_lea.vmem %s9916_s4, %s10028_s16 }
  0x11   : > { %258 = vst [vmem:[#allocation2 + $0x28] sm:$0xf] %v8137_v2  ;;  %259 = vst [vmem:[#allocation2 + $0x2c] sm:$0x1] %v8137_v2  ;;  %7555 = vmatpush3.bf16.msra.mxu0 %v8177_v1  ;;  %7993 = vmatpush3.bf16.msra.mxu1 %v8177_v1  ;;  %v231_v7 = vld [vmem:[%s8196_s26 + $0x3c] sm:$0xf] }
  0x12   : > { %260 = vst [vmem:[#allocation2 + $0x30] sm:$0xf] %v8137_v2  ;;  %261 = vst [vmem:[#allocation2 + $0x34] sm:$0xf] %v8137_v2  ;;  %7556 = vmatprep.subr.bf16.mxu0 %v8011_v3  ;;  %7986 = vmatprep.subr.bf16.mxu1 %v8011_v3  ;;  %vm303_vm2 = vsmask.f32 4368 }
  0x13   : > { %262 = vst [vmem:[#allocation2 + $0x38] sm:$0x1] %v8137_v2  ;;  %263 = vst [vmem:[#allocation2 + $0x3c] sm:$0xf] %v8137_v2  ;;  %v8017_v5 = vld [vmem:[#allocation2] sm:$0xff]   ;;  %v425_v8 = vshrl.u32 %v230_v6, 16 }
  0x14   : > { %264 = vst [vmem:[#allocation2 + $0x40] sm:$0xf] %v8137_v2  ;;  %265 = vst [vmem:[#allocation2 + $0x44] sm:$0x1] %v8137_v2  ;;  %7568 = vmatprep.mubr.bf16.mxu0 %v8017_v5  ;;  %v428_v9 = vshll.u32 %v230_v6, 16  ;;  %v433_v10 = vshrl.u32 %v231_v7, 16 }
  0x15   : > { %266 = vst [vmem:[#allocation2 + $0x48] sm:$0xf] %v8137_v2  ;;  %267 = vst [vmem:[#allocation2 + $0x4c] sm:$0xf] %v8137_v2  ;;  %7557 = vmatpush3.bf16.msra.mxu0 %v8011_v3  ;;  %7994 = vmatpush3.bf16.msra.mxu1 %v8011_v3  ;;  %v436_v12 = vshll.u32 %v231_v7, 16  ;;  %v427_v14 = vrot.slane %v425_v8, 7 }
  0x16   : > { %268 = vst [vmem:[#allocation2 + $0x50] sm:$0x1] %v8137_v2  ;;  %269 = vst [vmem:[#allocation2 + $0x54] sm:$0xf] %v8137_v2  ;;  %vm627_vm3 = vsmask.f32 7938  ;;  %7558 = vmatprep.subr.bf16.mxu0 %v8012_v4  ;;  %7987 = vmatprep.subr.bf16.mxu1 %v8012_v4 }
  0x17   : > { %270 = vst [vmem:[#allocation2 + $0x58] sm:$0xf] %v8137_v2  ;;  %271 = vst [vmem:[#allocation2 + $0x5c] sm:$0x1] %v8137_v2  ;;  %v8213_v15 = vrot.slane %v433_v10, 7  ;;  %v430_v25 = vor.u32 %v428_v9, %v427_v14  ;;  %v431_v26 = vrot.slane %v427_v14, 4 }
  0x18   : > { %272 = vst [vmem:[#allocation2 + $0x60] sm:$0xf] %v8137_v2  ;;  %273 = vst [vmem:[#allocation2 + $0x64] sm:$0xf] %v8137_v2  ;;  %v216_v16 = vld [vmem:[%s8196_s26] sm:$0xf] }
  0x19   : > { %274 = vst [vmem:[#allocation2 + $0x68] sm:$0x1] %v8137_v2  ;;  %275 = vst [vmem:[#allocation2 + $0x6c] sm:$0xf] %v8137_v2  ;;  %v217_v17 = vld [vmem:[%s8196_s26 + $0x4] sm:$0xf]  ;;  %v438_v27 = vor.u32 %v436_v12, %v8213_v15  ;;  %7559 = vmatpush3.bf16.msra.mxu0 %v8012_v4  ;;  %7995 = vmatpush3.bf16.msra.mxu1 %v8012_v4 }
  0x1a   : > { %276 = vst [vmem:[#allocation2 + $0x70] sm:$0xf] %v8137_v2  ;;  %277 = vst [vmem:[#allocation2 + $0x74] sm:$0x1] %v8137_v2  ;;  %v306_v20 = vshrl.u32 %v216_v16, 16  ;;  %v309_v21 = vshll.u32 %v216_v16, 16  ;;  %7560 = vmatprep.subr.bf16.mxu0 %v8013_v11  ;;  %7988 = vmatprep.subr.bf16.mxu1 %v8013_v11 }
  0x1b   : > { %278 = vst [vmem:[#allocation2 + $0x78] sm:$0xf] %v8137_v2  ;;  %279 = vst [vmem:[#allocation2 + $0x7c] sm:$0xf] %v8137_v2  ;;  %v314_v22 = vshrl.u32 %v217_v17, 16  ;;  %v317_v23 = vshll.u32 %v217_v17, 16 }
  0x1c   : > { %280 = vst [vmem:[#allocation2 + $0x80] sm:$0x1] %v8137_v2  ;;  %281 = vst [vmem:[#allocation2 + $0x84] sm:$0xf] %v8137_v2  ;;  %v629_v28 = vld [vmem:[#allocation2 + $0xc] sm:$0xf] }
  0x1d   : > { %282 = vst [vmem:[#allocation2 + $0x88] sm:$0xf] %v8137_v2  ;;  %283 = vst [vmem:[#allocation2 + $0x8c] sm:$0x1] %v8137_v2  ;;  %v232_v29 = vld [vmem:[%s8196_s26 + $0x40] sm:$0xf]  ;;  %7561 = vmatpush3.bf16.msra.mxu0 %v8013_v11  ;;  %7996 = vmatpush3.bf16.msra.mxu1 %v8013_v11 }
  0x1e   : > { %284 = vst [vmem:[#allocation2 + $0x90] sm:$0xf] %v8137_v2  ;;  %285 = vst [vmem:[#allocation2 + $0x94] sm:$0xf] %v8137_v2  ;;  %v308_v30 = vrot.slane %v306_v20, 7  ;;  %v316_v31 = vrot.slane %v314_v22, 7  ;;  %7562 = vmatprep.subr.bf16.mxu0 %v8014_v24  ;;  %7989 = vmatprep.subr.bf16.mxu1 %v8014_v24 }
  0x1f   : > { %286 = vst [vmem:[#allocation2 + $0x98] sm:$0x1] %v8137_v2  ;;  %287 = vst [vmem:[#allocation2 + $0x9c] sm:$0xf] %v8137_v2  ;;  %v680_v19 = vld [vmem:[#allocation2 + $0x60] sm:$0xf] }
  0x20   : > { %288 = vst [vmem:[#allocation2 + $0xa0] sm:$0xf] %v8137_v2  ;;  %289 = vst [vmem:[#allocation2 + $0xa4] sm:$0x1] %v8137_v2  ;;  %v233_v32 = vld [vmem:[%s8196_s26 + $0x44] sm:$0xf]  ;;  %v311_v41 = vor.u32 %v309_v21, %v308_v30  ;;  %v319_v43 = vor.u32 %v317_v23, %v316_v31 }
  0x21   : > { %290 = vst [vmem:[#allocation2 + $0xa8] sm:$0xf] %v8137_v2  ;;  %291 = vst [vmem:[#allocation2 + $0xac] sm:$0xf] %v8137_v2  ;;  %v442_v33 = vshrl.u32 %v232_v29, 16  ;;  %v445_v34 = vshll.u32 %v232_v29, 16  ;;  %7563 = vmatpush3.bf16.msra.mxu0 %v8014_v24  ;;  %7997 = vmatpush3.bf16.msra.mxu1 %v8014_v24 }
  0x22   : > { %292 = vst [vmem:[#allocation2 + $0xb0] sm:$0x1] %v8137_v2  ;;  %293 = vst [vmem:[#allocation2 + $0xb4] sm:$0xf] %v8137_v2  ;;  %v635_v38 = vld [vmem:[#allocation2 + $0x14] sm:$0x1] }
  0x23   : > { %294 = vst [vmem:[#allocation2 + $0xb8] sm:$0xf] %v8137_v2  ;;  %295 = vst [vmem:[#allocation2 + $0xbc] sm:$0x1] %v8137_v2  ;;  %v450_v39 = vshrl.u32 %v233_v32, 16  ;;  %v453_v40 = vshll.u32 %v233_v32, 16 }
  0x24   : > { %296 = vst [vmem:[#allocation2 + $0xc0] sm:$0xf] %v8137_v2  ;;  %297 = vst [vmem:[#allocation2 + $0xc4] sm:$0xf] %v8137_v2  ;;  %v312_v42 = vrot.slane %v308_v30, 4  ;;  %v321_v44 = vrot.slane %v316_v31, 4 }
  0x25   : > { %298 = vst [vmem:[#allocation2 + $0xc8] sm:$0x1] %v8137_v2  ;;  %299 = vst [vmem:[#allocation2 + $0xcc] sm:$0xf] %v8137_v2  ;;  %v444_v45 = vrot.slane %v442_v33, 7  ;;  %v8238_v46 = vrot.slane %v450_v39, 7 }
  0x26   : > { %300 = vst [vmem:[#allocation2 + $0xd0] sm:$0xf] %v8137_v2  ;;  %301 = vst [vmem:[#allocation2 + $0xd4] sm:$0x1] %v8137_v2  ;;  %v687_v50 = vld [vmem:[#allocation2 + $0x6c] sm:$0xf] }
  0x27   : > { %vm8209_vm5 = vmor %vm302_vm1, %vm303_vm2  ;;  %v8015_v51 = vld [vmem:[%s9913_s1 + $0x8] sm:$0xff]   ;;  %v447_v52 = vor.u32 %v445_v34, %v444_v45  ;;  %v448_v53 = vrot.slane %v444_v45, 4  ;;  %v455_v54 = vor.u32 %v453_v40, %v8238_v46  ;;  %v8016_v57 = vld [vmem:[%s9913_s1] sm:$0xff]   ;;  %vm2173_vm8 = vcmask 1042432  }
  0x28   : > { %vm8218_vm6 = vmand %vm626_vm0, %vm627_vm3  ;;  %v439_v35 = vsel %vm8209_vm5, %v431_v26, %v438_v27  ;;  %v320_v47 = vsel %vm8209_vm5, %v312_v42, %v319_v43  ;;  %v218_v55 = vld [vmem:[%s8196_s26 + $0x8] sm:$0xf]  ;;  %v219_v56 = vld [vmem:[%s8196_s26 + $0xc] sm:$0xf]  ;;  %7564 = vmatprep.subr.bf16.mxu0 %v8015_v51  ;;  %7990 = vmatprep.subr.bf16.mxu1 %v8015_v51  ;;  %vm2174_vm9 = vcmask 1046532  }
  0x29   : > { %vm8232_vm7 = vmand %vm633_vm4, %vm302_vm1  ;;  %v681_v37 = vsel %vm8218_vm6, %v430_v25, %v680_v19  ;;  %683 = vst [vmem:[#allocation2 + $0x64] sm:$0xf] %v439_v35  ;;  %v630_v48 = vsel %vm8218_vm6, %v311_v41, %v629_v28  ;;  %v456_v58 = vsel %vm8209_vm5, %v448_v53, %v455_v54  ;;  %v688_v59 = vsel %vm8218_vm6, %v447_v52, %v687_v50  ;;  %v234_v62 = vld [vmem:[%s8196_s26 + $0x48] sm:$0xf]  ;;  %v235_v63 = vld [vmem:[%s8196_s26 + $0x4c] sm:$0xf] }
  0x2a   : > { %682 = vst [vmem:[#allocation2 + $0x60] sm:$0xf] %v681_v37  ;;  %v636_v49 = vsel %vm8232_vm7, %v321_v44, %v635_v38  ;;  %631 = vst [vmem:[#allocation2 + $0xc] sm:$0xf] %v630_v48  ;;  %v323_v60 = vshrl.u32 %v218_v55, 16  ;;  %v326_v61 = vshll.u32 %v218_v55, 16  ;;  %7565 = vmatpush3.bf16.msra.mxu0 %v8015_v51  ;;  %7998 = vmatpush3.bf16.msra.mxu1 %v8015_v51 }
  0x2b   : > { %632 = vst [vmem:[#allocation2 + $0x10] sm:$0xf] %v320_v47  ;;  %637 = vst [vmem:[#allocation2 + $0x14] sm:$0x1] %v636_v49  ;;  %v331_v0 = vshrl.u32 %v219_v56, 16  ;;  %v334_v1 = vshll.u32 %v219_v56, 16  ;;  %7566 = vmatprep.subr.bf16.mxu0 %v8016_v57  ;;  %7991 = vmatprep.subr.bf16.mxu1 %v8016_v57 }
  0x2c   : > { %689 = vst [vmem:[#allocation2 + $0x6c] sm:$0xf] %v688_v59  ;;  %690 = vst [vmem:[#allocation2 + $0x70] sm:$0xf] %v456_v58  ;;  %v638_v2 = vld [vmem:[#allocation2 + $0x18] sm:$0xf] }
  0x2d   : > { %v459_v3 = vshrl.u32 %v234_v62, 16  ;;  %v462_v4 = vshll.u32 %v234_v62, 16  ;;  %v325_v6 = vrot.slane %v323_v60, 7  ;;  %v694_v7 = vld [vmem:[#allocation2 + $0x78] sm:$0xf]  ;;  %v8261_v8 = vrot.slane %v331_v0, 7  ;;  %vm8439_vm12 = vmor %vm2173_vm8, %vm2174_vm9 }
  0x2e   : > { %v467_v10 = vshrl.u32 %v235_v63, 16  ;;  %v470_v11 = vshll.u32 %v235_v63, 16  ;;  %v220_v12 = vld [vmem:[%s8196_s26 + $0x10] sm:$0xf]  ;;  %v8021_v14 = vld [vmem:[%s9913_s1 + $0x78] sm:$0xff]   ;;  %7567 = vmatpush3.bf16.msra.mxu0 %v8016_v57  ;;  %7999 = vmatpush3.bf16.msra.mxu1 %v8016_v57  ;;  %v8029_v59 = vld [vmem:[%s9913_s1 + $0x68] sm:$0xff]  }
  0x2f   : > { %v461_v9 = vrot.slane %v459_v3, 7  ;;  %v328_v16 = vor.u32 %v326_v61, %v325_v6  ;;  %v329_v17 = vrot.slane %v325_v6, 4  ;;  %v221_v19 = vld [vmem:[%s8196_s26 + $0x14] sm:$0xf]  ;;  %v340_v20 = vshrl.u32 %v220_v12, 16  ;;  %v8022_v22 = vld [vmem:[%s9913_s1 + $0xb8] sm:$0xff]   ;;  %7600 = vmatprep.subr.bf16.mxu1 %v8021_v14 }
  0x30   : > { %v343_v21 = vshll.u32 %v220_v12, 16  ;;  %v336_v23 = vor.u32 %v334_v1, %v8261_v8  ;;  %v8274_v28 = vrot.slane %v467_v10, 7  ;;  %v645_v30 = vld [vmem:[#allocation2 + $0x24] sm:$0xf]  ;;  %v348_v33 = vshrl.u32 %v221_v19, 16  ;;  %v8023_v41 = vld [vmem:[%s9913_s1 + $0x70] sm:$0xff]   ;;  %7648 = vmatprep.subr.bf16.mxu0 %v8022_v22 }
  0x31   : > { %v8018_v5 = vld [vmem:[#allocation2 + $0x60] sm:$0xff]   ;;  %v464_v24 = vor.u32 %v462_v4, %v461_v9  ;;  %v639_v26 = vsel %vm8218_vm6, %v328_v16, %v638_v2  ;;  %v465_v27 = vrot.slane %v461_v9, 4  ;;  %v342_v29 = vrot.slane %v340_v20, 7  ;;  %v236_v35 = vld [vmem:[%s8196_s26 + $0x50] sm:$0xf]  ;;  %v8030_v62 = vld [vmem:[%s9913_s1 + $0xa8] sm:$0xff]  }
  0x32   : > { %7584 = vmatprep.mubr.bf16.mxu1 %v8018_v5  ;;  %v8019_v25 = vld [vmem:[#allocation2 + $0xc] sm:$0xff]   ;;  %v337_v31 = vsel %vm8209_vm5, %v329_v17, %v336_v23  ;;  %640 = vst [vmem:[#allocation2 + $0x18] sm:$0xf] %v639_v26  ;;  %v351_v34 = vshll.u32 %v221_v19, 16  ;;  %v237_v37 = vld [vmem:[%s8196_s26 + $0x54] sm:$0xf]  ;;  %v472_v39 = vor.u32 %v470_v11, %v8274_v28 }
  0x33   : > { %v695_v32 = vsel %vm8218_vm6, %v464_v24, %v694_v7  ;;  %v8020_v38 = vld [vmem:[#allocation2 + $0x6c] sm:$0xff]   ;;  %641 = vst [vmem:[#allocation2 + $0x1c] sm:$0xf] %v337_v31  ;;  %v345_v40 = vor.u32 %v343_v21, %v342_v29  ;;  %v346_v43 = vrot.slane %v342_v29, 4  ;;  %v8289_v44 = vrot.slane %v348_v33, 7  ;;  %7569 = vmatmul.mubr.bf16.vlgmr.msra.gmra.mxu0 %v8019_v25  ;;  %v8031_v4 = vld [vmem:[%s9913_s1 + $0x60] sm:$0xff]  }
  0x34   : > { %696 = vst [vmem:[#allocation2 + $0x78] sm:$0xf] %v695_v32  ;;  %v8024_v42 = vld [vmem:[%s9913_s1 + $0xb0] sm:$0xff]   ;;  %v476_v45 = vshrl.u32 %v236_v35, 16  ;;  %v479_v47 = vshll.u32 %v236_v35, 16  ;;  %v473_v48 = vsel %vm8209_vm5, %v465_v27, %v472_v39  ;;  %v484_v50 = vshrl.u32 %v237_v37, 16  ;;  %7585 = vmatmul.mubr.bf16.vlgmr.msra.gmra.mxu1 %v8020_v38  ;;  %7649 = vmatpush3.bf16.msra.mxu0 %v8022_v22 }
  0x35   : > { %v646_v49 = vsel %vm8218_vm6, %v345_v40, %v645_v30  ;;  %v487_v51 = vshll.u32 %v237_v37, 16  ;;  %v701_v52 = vld [vmem:[#allocation2 + $0x84] sm:$0xf]  ;;  %697 = vst [vmem:[#allocation2 + $0x7c] sm:$0xf] %v473_v48  ;;  %v353_v53 = vor.u32 %v351_v34, %v8289_v44  ;;  %7601 = vmatpush3.bf16.msra.mxu1 %v8021_v14  ;;  %v440_v60 = vrot.slane %v8213_v15, 4  ;;  %7650 = vmatprep.subr.bf16.mxu0 %v8024_v42 }
  0x36   : > { %647 = vst [vmem:[#allocation2 + $0x24] sm:$0xf] %v646_v49  ;;  %v478_v54 = vrot.slane %v476_v45, 7  ;;  %v8296_v55 = vrot.slane %v484_v50, 7  ;;  %7602 = vmatprep.subr.bf16.mxu1 %v8023_v41  ;;  %v222_v63 = vld [vmem:[%s8196_s26 + $0x18] sm:$0xf] }
  0x37   : > { %v354_v56 = vsel %vm8209_vm5, %v346_v43, %v353_v53  ;;  %v357_v2 = vshrl.u32 %v222_v63, 16  ;;  %v223_v5 = vld [vmem:[%s8196_s26 + $0x1c] sm:$0xf]  ;;  %v360_v6 = vshll.u32 %v222_v63, 16  ;;  %v652_v7 = vld [vmem:[#allocation2 + $0x30] sm:$0xf] }
  0x38   : > { %v481_v57 = vor.u32 %v479_v47, %v478_v54  ;;  %v482_v58 = vrot.slane %v478_v54, 4  ;;  %648 = vst [vmem:[#allocation2 + $0x28] sm:$0xf] %v354_v56  ;;  %v489_v61 = vor.u32 %v487_v51, %v8296_v55  ;;  %7651 = vmatpush3.bf16.msra.mxu0 %v8024_v42  ;;  %v8032_v9 = vld [vmem:[%s9913_s1 + $0xa0] sm:$0xff]   ;;  %v365_v11 = vshrl.u32 %v223_v5, 16  ;;  %v8038_v48 = vld [vmem:[%s9913_s1 + $0x98] sm:$0xff]  }
  0x39   : > { %7603 = vmatpush3.bf16.msra.mxu1 %v8023_v41  ;;  %v359_v10 = vrot.slane %v357_v2, 7  ;;  %v368_v12 = vshll.u32 %v223_v5, 16  ;;  %v238_v14 = vld [vmem:[%s8196_s26 + $0x58] sm:$0xf]  ;;  %7652 = vmatprep.subr.bf16.mxu0 %v8030_v62  ;;  %v239_v22 = vld [vmem:[%s8196_s26 + $0x5c] sm:$0xf] }
  0x3a   : > { %v8025_v0 = vld [vmem:[#allocation2 + $0x18] sm:$0xff]   ;;  %v702_v1 = vsel %vm8218_vm6, %v481_v57, %v701_v52  ;;  %v490_v3 = vsel %vm8209_vm5, %v482_v58, %v489_v61  ;;  %7604 = vmatprep.subr.bf16.mxu1 %v8029_v59  ;;  %v493_v17 = vshrl.u32 %v238_v14, 16  ;;  %v8321_v21 = vrot.slane %v365_v11, 7  ;;  %v708_v29 = vld [vmem:[#allocation2 + $0x90] sm:$0xf] }
  0x3b   : > { %703 = vst [vmem:[#allocation2 + $0x84] sm:$0xf] %v702_v1  ;;  %704 = vst [vmem:[#allocation2 + $0x88] sm:$0xf] %v490_v3  ;;  %7572 = vmatprep.mubr.bf16.mxu0 %v8025_v0  ;;  %v362_v19 = vor.u32 %v360_v6, %v359_v10  ;;  %v363_v20 = vrot.slane %v359_v10, 4  ;;  %v496_v23 = vshll.u32 %v238_v14, 16 }
  0x3c   : > { %v8026_v16 = vld [vmem:[#allocation2 + $0x78] sm:$0xff]   ;;  %v457_v24 = vrot.slane %v8238_v46, 4  ;;  %v495_v25 = vrot.slane %v493_v17, 7  ;;  %v501_v26 = vshrl.u32 %v239_v22, 16  ;;  %v504_v27 = vshll.u32 %v239_v22, 16  ;;  %7653 = vmatpush3.bf16.msra.mxu0 %v8030_v62  ;;  %v8039_v1 = vld [vmem:[%s9913_s1 + $0x50] sm:$0xff]  }
  0x3d   : > { %7588 = vmatprep.mubr.bf16.mxu1 %v8026_v16  ;;  %v338_v30 = vrot.slane %v8261_v8, 4  ;;  %7605 = vmatpush3.bf16.msra.mxu1 %v8029_v59  ;;  %v370_v32 = vor.u32 %v368_v12, %v8321_v21  ;;  %v653_v33 = vsel %vm8218_vm6, %v362_v19, %v652_v7  ;;  %v224_v34 = vld [vmem:[%s8196_s26 + $0x20] sm:$0xf]  ;;  %v225_v39 = vld [vmem:[%s8196_s26 + $0x24] sm:$0xf]  ;;  %v8037_v41 = vld [vmem:[%s9913_s1 + $0x58] sm:$0xff]  }
  0x3e   : > { %7606 = vmatprep.subr.bf16.mxu1 %v8031_v4  ;;  %7654 = vmatprep.subr.bf16.mxu0 %v8032_v9  ;;  %654 = vst [vmem:[#allocation2 + $0x30] sm:$0xf] %v653_v33  ;;  %v498_v35 = vor.u32 %v496_v23, %v495_v25  ;;  %v499_v37 = vrot.slane %v495_v25, 4  ;;  %v8330_v38 = vrot.slane %v501_v26, 7  ;;  %v374_v40 = vshrl.u32 %v224_v34, 16  ;;  %v8040_v2 = vld [vmem:[%s9913_s1 + $0x90] sm:$0xff]  }
  0x3f   : > { %v8027_v31 = vld [vmem:[#allocation2 + $0x24] sm:$0xff]   ;;  %v371_v42 = vsel %vm8209_vm5, %v363_v20, %v370_v32  ;;  %v377_v43 = vshll.u32 %v224_v34, 16  ;;  %v382_v45 = vshrl.u32 %v225_v39, 16  ;;  %v385_v47 = vshll.u32 %v225_v39, 16  ;;  %v659_v57 = vld [vmem:[#allocation2 + $0x3c] sm:$0xf] }
  0x40   : > { %7573 = vmatmul.mubr.bf16.gmra.mxu0 %v8027_v31  ;;  %v474_v49 = vrot.slane %v8274_v28, 4  ;;  %655 = vst [vmem:[#allocation2 + $0x34] sm:$0xf] %v371_v42  ;;  %v506_v51 = vor.u32 %v504_v27, %v8330_v38  ;;  %v709_v52 = vsel %vm8218_vm6, %v498_v35, %v708_v29  ;;  %v376_v53 = vrot.slane %v374_v40, 7  ;;  %v240_v58 = vld [vmem:[%s8196_s26 + $0x60] sm:$0xf] }
  0x41   : > { %v355_v54 = vrot.slane %v8289_v44, 4  ;;  %7607 = vmatpush3.bf16.msra.mxu1 %v8031_v4  ;;  %7655 = vmatpush3.bf16.msra.mxu0 %v8032_v9  ;;  %710 = vst [vmem:[#allocation2 + $0x90] sm:$0xf] %v709_v52  ;;  %v8346_v56 = vrot.slane %v382_v45, 7  ;;  %v241_v63 = vld [vmem:[%s8196_s26 + $0x64] sm:$0xf] }
  0x42   : > { %v8028_v50 = vld [vmem:[#allocation2 + $0x84] sm:$0xff]   ;;  %v507_v59 = vsel %vm8209_vm5, %v499_v37, %v506_v51  ;;  %v379_v61 = vor.u32 %v377_v43, %v376_v53  ;;  %v380_v62 = vrot.slane %v376_v53, 4  ;;  %v510_v0 = vshrl.u32 %v240_v58, 16  ;;  %7608 = vmatprep.subr.bf16.mxu1 %v8037_v41  ;;  %v715_v6 = vld [vmem:[#allocation2 + $0x9c] sm:$0xf]  ;;  %7656 = vmatprep.subr.bf16.mxu0 %v8038_v48 }
  0x43   : > { %7589 = vmatmul.mubr.bf16.gmra.mxu1 %v8028_v50  ;;  %711 = vst [vmem:[#allocation2 + $0x94] sm:$0xf] %v507_v59  ;;  %v387_v3 = vor.u32 %v385_v47, %v8346_v56  ;;  %v513_v4 = vshll.u32 %v240_v58, 16  ;;  %v518_v5 = vshrl.u32 %v241_v63, 16  ;;  %v521_v10 = vshll.u32 %v241_v63, 16  ;;  %v8045_v14 = vld [vmem:[%s9913_s1 + $0x48] sm:$0xff]  }
  0x44   : > { %v660_v7 = vsel %vm8218_vm6, %v379_v61, %v659_v57  ;;  %v512_v9 = vrot.slane %v510_v0, 7  ;;  %v8046_v19 = vld [vmem:[%s9913_s1 + $0x88] sm:$0xff]   ;;  %v491_v20 = vrot.slane %v8296_v55, 4  ;;  %v372_v27 = vrot.slane %v8321_v21, 4  ;;  %v8047_v40 = vld [vmem:[%s9913_s1 + $0x40] sm:$0xff]  }
  0x45   : > { %v388_v11 = vsel %vm8209_vm5, %v380_v62, %v387_v3  ;;  %661 = vst [vmem:[#allocation2 + $0x3c] sm:$0xf] %v660_v7  ;;  %v8363_v12 = vrot.slane %v518_v5, 7  ;;  %7609 = vmatpush3.bf16.msra.mxu1 %v8037_v41  ;;  %7657 = vmatpush3.bf16.msra.mxu0 %v8038_v48  ;;  %v226_v26 = vld [vmem:[%s8196_s26 + $0x28] sm:$0xf]  ;;  %v8048_v45 = vld [vmem:[%s9913_s1 + $0x80] sm:$0xff]  }
  0x46   : > { %662 = vst [vmem:[#allocation2 + $0x40] sm:$0xf] %v388_v11  ;;  %v515_v16 = vor.u32 %v513_v4, %v512_v9  ;;  %v516_v17 = vrot.slane %v512_v9, 4  ;;  %7610 = vmatprep.subr.bf16.mxu1 %v8039_v1  ;;  %7658 = vmatprep.subr.bf16.mxu0 %v8040_v2  ;;  %v227_v31 = vld [vmem:[%s8196_s26 + $0x2c] sm:$0xf]  ;;  %v391_v32 = vshrl.u32 %v226_v26, 16 }
  0x47   : > { %v8033_v22 = vld [vmem:[#allocation2 + $0x30] sm:$0xff]   ;;  %v523_v23 = vor.u32 %v521_v10, %v8363_v12  ;;  %v394_v33 = vshll.u32 %v226_v26, 16  ;;  %v399_v35 = vshrl.u32 %v227_v31, 16  ;;  %v402_v37 = vshll.u32 %v227_v31, 16  ;;  %v666_v39 = vld [vmem:[#allocation2 + $0x48] sm:$0xf] }
  0x48   : > { %v716_v25 = vsel %vm8218_vm6, %v515_v16, %v715_v6  ;;  %7576 = vmatprep.mubr.bf16.mxu0 %v8033_v22  ;;  %v393_v41 = vrot.slane %v391_v32, 7  ;;  %v242_v42 = vld [vmem:[%s8196_s26 + $0x68] sm:$0xf]  ;;  %v243_v43 = vld [vmem:[%s8196_s26 + $0x6c] sm:$0xf]  ;;  %v508_v52 = vrot.slane %v8330_v38, 4 }
  0x49   : > { %v524_v29 = vsel %vm8209_vm5, %v516_v17, %v523_v23  ;;  %717 = vst [vmem:[#allocation2 + $0x9c] sm:$0xf] %v716_v25  ;;  %7611 = vmatpush3.bf16.msra.mxu1 %v8039_v1  ;;  %7659 = vmatpush3.bf16.msra.mxu0 %v8040_v2  ;;  %v8388_v47 = vrot.slane %v399_v35, 7  ;;  %v527_v48 = vshrl.u32 %v242_v42, 16  ;;  %v530_v50 = vshll.u32 %v242_v42, 16  ;;  %v8398_v1 = vld [vmem:[%s9913_s1 + $0xf8] sm:$0xff]  }
  0x4a   : > { %v8034_v34 = vld [vmem:[#allocation2 + $0x90] sm:$0xff]   ;;  %718 = vst [vmem:[#allocation2 + $0xa0] sm:$0xf] %v524_v29  ;;  %7612 = vmatprep.subr.bf16.mxu1 %v8045_v14  ;;  %7660 = vmatprep.subr.bf16.mxu0 %v8046_v19  ;;  %v535_v51 = vshrl.u32 %v243_v43, 16  ;;  %v396_v57 = vor.u32 %v394_v33, %v393_v41  ;;  %v397_v58 = vrot.slane %v393_v41, 4  ;;  %v538_v59 = vshll.u32 %v243_v43, 16 }
  0x4b   : > { %7592 = vmatprep.mubr.bf16.mxu1 %v8034_v34  ;;  %v389_v61 = vrot.slane %v8346_v56, 4  ;;  %v404_v62 = vor.u32 %v402_v37, %v8388_v47  ;;  %v529_v63 = vrot.slane %v527_v48, 7  ;;  %v8403_v2 = vld [vmem:[%s9913_s1 + $0x138] sm:$0xff]   ;;  %v722_v4 = vld [vmem:[#allocation2 + $0xa8] sm:$0xf]  ;;  %v525_v16 = vrot.slane %v8363_v12, 4 }
  0x4c   : > { %v8393_v0 = vrot.slane %v535_v51, 7  ;;  %v667_v3 = vsel %vm8218_vm6, %v396_v57, %v666_v39  ;;  %v228_v5 = vld [vmem:[%s8196_s26 + $0x30] sm:$0xf]  ;;  %v229_v6 = vld [vmem:[%s8196_s26 + $0x34] sm:$0xf]  ;;  %v8054_v44 = vld [vmem:[%s9913_s1 + $0x128] sm:$0xff]  }
  0x4d   : > { %v8035_v53 = vld [vmem:[#allocation2 + $0x3c] sm:$0xff]   ;;  %7613 = vmatpush3.bf16.msra.mxu1 %v8045_v14  ;;  %7661 = vmatpush3.bf16.msra.mxu0 %v8046_v19  ;;  %v405_v7 = vsel %vm8209_vm5, %v397_v58, %v404_v62  ;;  %668 = vst [vmem:[#allocation2 + $0x48] sm:$0xf] %v667_v3  ;;  %v532_v9 = vor.u32 %v530_v50, %v529_v63  ;;  %v533_v10 = vrot.slane %v529_v63, 4  ;;  %v244_v14 = vld [vmem:[%s8196_s26 + $0x70] sm:$0xf] }
  0x4e   : > { %7614 = vmatprep.subr.bf16.mxu1 %v8047_v40  ;;  %7577 = vmatmul.mubr.bf16.gmra.mxu0 %v8035_v53  ;;  %v540_v11 = vor.u32 %v538_v59, %v8393_v0  ;;  %669 = vst [vmem:[#allocation2 + $0x4c] sm:$0xf] %v405_v7  ;;  %v408_v19 = vshrl.u32 %v228_v5, 16  ;;  %v411_v22 = vshll.u32 %v228_v5, 16  ;;  %v416_v26 = vshrl.u32 %v229_v6, 16 }
  0x4f   : > { %7662 = vmatprep.subr.bf16.mxu0 %v8048_v45  ;;  %v723_v25 = vsel %vm8218_vm6, %v532_v9, %v722_v4  ;;  %v419_v29 = vshll.u32 %v229_v6, 16  ;;  %v673_v31 = vld [vmem:[#allocation2 + $0x54] sm:$0xf]  ;;  %v544_v34 = vshrl.u32 %v244_v14, 16  ;;  %v547_v35 = vshll.u32 %v244_v14, 16 }
  0x50   : > { %v541_v23 = vsel %vm8209_vm5, %v533_v10, %v540_v11  ;;  %v245_v32 = vld [vmem:[%s8196_s26 + $0x74] sm:$0xf]  ;;  %724 = vst [vmem:[#allocation2 + $0xa8] sm:$0xf] %v723_v25  ;;  %v410_v33 = vrot.slane %v408_v19, 7  ;;  %v8421_v39 = vrot.slane %v416_v26, 7 }
  0x51   : > { %v8036_v17 = vld [vmem:[#allocation2 + $0x9c] sm:$0xff]   ;;  %7615 = vmatpush3.bf16.msra.mxu1 %v8047_v40  ;;  %7663 = vmatpush3.bf16.msra.mxu0 %v8048_v45  ;;  %725 = vst [vmem:[#allocation2 + $0xac] sm:$0xf] %v541_v23  ;;  %v552_v37 = vshrl.u32 %v245_v32, 16  ;;  %v555_v40 = vshll.u32 %v245_v32, 16  ;;  %v546_v43 = vrot.slane %v544_v34, 7 }
  0x52   : > { %7696 = vmatprep.subr.bf16.mxu1 %v8398_v1  ;;  %7593 = vmatmul.mubr.bf16.gmra.mxu1 %v8036_v17  ;;  %v413_v41 = vor.u32 %v411_v22, %v410_v33  ;;  %v414_v42 = vrot.slane %v410_v33, 4  ;;  %v421_v48 = vor.u32 %v419_v29, %v8421_v39  ;;  %v729_v50 = vld [vmem:[#allocation2 + $0xb4] sm:$0xf]  ;;  %v406_v59 = vrot.slane %v8388_v47, 4  ;;  %v1224_v5 = vld [vmem:[#allocation2] sm:$0xf] }
  0x53   : > { %7744 = vmatprep.subr.bf16.mxu0 %v8403_v2  ;;  %v8423_v45 = vrot.slane %v552_v37, 7  ;;  %v549_v53 = vor.u32 %v547_v35, %v546_v43  ;;  %v550_v57 = vrot.slane %v546_v43, 4  ;;  %v1225_v6 = vld [vmem:[#allocation2 + $0x4] sm:$0xf]  ;;  %v1226_v7 = vld [vmem:[#allocation2 + $0x8] sm:$0x1] }
  0x54   : > { %v674_v51 = vsel %vm8218_vm6, %v413_v41, %v673_v31  ;;  %v422_v63 = vsel %vm8209_vm5, %v414_v42, %v421_v48  ;;  %v1308_v10 = vshrl.u32 %v1224_v5, 16  ;;  %vm1304_vm10 = vsmask.f32 3328  ;;  %v2045_v25 = vld [vmem:[#allocation2] sm:$0xe]  ;;  %v8062_v47 = vld [vmem:[%s9913_s1 + $0x108] sm:$0xff]  }
  0x55   : > { %v557_v58 = vor.u32 %v555_v40, %v8423_v45  ;;  %v8041_v62 = vld [vmem:[#allocation2 + $0x48] sm:$0xff]   ;;  %675 = vst [vmem:[#allocation2 + $0x54] sm:$0xf] %v674_v51  ;;  %676 = vst [vmem:[#allocation2 + $0x58] sm:$0xf] %v422_v63  ;;  %v730_v4 = vsel %vm8218_vm6, %v549_v53, %v729_v50  ;;  %v1311_v11 = vshll.u32 %v1224_v5, 16 }
  0x56   : > { %7580 = vmatprep.mubr.bf16.mxu0 %v8041_v62  ;;  %731 = vst [vmem:[#allocation2 + $0xb4] sm:$0xf] %v730_v4  ;;  %vm1305_vm11 = vsmask.f32 7440  ;;  %v1317_v14 = vshll.u32 %v1225_v6, 16  ;;  %v542_v17 = vrot.slane %v8393_v0, 4 }
  0x57   : > { %v558_v3 = vsel %vm8209_vm5, %v550_v57, %v557_v58  ;;  %v1310_v19 = vrot.slane %v1308_v10, 4  ;;  %v1321_v22 = vshrl.u32 %v1225_v6, 16  ;;  %v1327_v23 = vshll.u32 %v1226_v7, 16  ;;  %v2046_v31 = vld [vmem:[#allocation2 + $0x4] sm:$0xf]  ;;  %vm8445_vm13 = vmor %vm1304_vm10, %vm1305_vm11 }
  0x58   : > { %v8042_v9 = vld [vmem:[#allocation2 + $0xa8] sm:$0xff]   ;;  %732 = vst [vmem:[#allocation2 + $0xb8] sm:$0xf] %v558_v3  ;;  %v1313_v26 = vrot.slane %v1311_v11, 5  ;;  %v1319_v29 = vrot.slane %v1317_v14, 5  ;;  %v6845_v37 = vrot.slane %v2045_v25, 9 }
  0x59   : > { %7596 = vmatprep.mubr.bf16.mxu1 %v8042_v9  ;;  %v2047_v32 = vld [vmem:[#allocation2 + $0x8] sm:$0x1]  ;;  %v1323_v34 = vrot.slane %v1321_v22, 4  ;;  %v1329_v35 = vrot.slane %v1327_v23, 5  ;;  %v2178_v40 = vrot.slane %v2046_v31, 5 }
  0x5a   : > { %v1227_v41 = vld [vmem:[#allocation2 + $0xc] sm:$0xf]  ;;  %v1314_v43 = vor.u32 %v1313_v26, %v1310_v19  ;;  %v2181_v48 = vrot.slane %v2047_v32, 5  ;;  %v1228_v50 = vld [vmem:[#allocation2 + $0x10] sm:$0xf] }
  0x5b   : > { %v1332_v51 = vshrl.u32 %v1227_v41, 16  ;;  %v1324_v57 = vor.u32 %v1323_v34, %v1319_v29  ;;  %v2179_v58 = vsel %vm8439_vm12, %v6845_v37, %v2178_v40  ;;  %v2180_v62 = vrot.slane %v2178_v40, 4  ;;  %v1229_v63 = vld [vmem:[#allocation2 + $0x14] sm:$0x1]  ;;  %v2048_v10 = vld [vmem:[#allocation2 + $0xc] sm:$0xe] }
  0x5c   : > { %v8043_v53 = vld [vmem:[#allocation2 + $0x54] sm:$0xff]   ;;  %v1315_v4 = vrot.slane %v1314_v43, 4  ;;  %v1335_v9 = vshll.u32 %v1227_v41, 16  ;;  %v1341_v19 = vshll.u32 %v1228_v50, 16  ;;  %v1345_v22 = vshrl.u32 %v1228_v50, 16 }
  0x5d   : > { %7581 = vmatmul.mubr.bf16.gmra.mxu0 %v8043_v53  ;;  %v1325_v5 = vrot.slane %v1324_v57, 4  ;;  %v2182_v6 = vsel %vm8439_vm12, %v2180_v62, %v2181_v48  ;;  %v1334_v7 = vrot.slane %v1332_v51, 4  ;;  %v2049_v23 = vld [vmem:[#allocation2 + $0x10] sm:$0xf]  ;;  %v2050_v25 = vld [vmem:[#allocation2 + $0x14] sm:$0x1] }
  0x5e   : > { %v1320_v11 = vsel %vm8445_vm13, %v1315_v4, %v1319_v29  ;;  %v6877_v14 = vcombine.low %v2179_v58, %v2182_v6  ;;  %v1337_v31 = vrot.slane %v1335_v9, 5  ;;  %v1351_v32 = vshll.u32 %v1229_v63, 16  ;;  %v1230_v62 = vld [vmem:[#allocation2 + $0x18] sm:$0xf]  ;;  %v1231_v4 = vld [vmem:[#allocation2 + $0x1c] sm:$0xf] }
  0x5f   : > { %v8044_v3 = vld [vmem:[#allocation2 + $0xb4] sm:$0xff]   ;;  %v1330_v26 = vsel %vm8445_vm13, %v1325_v5, %v1329_v35  ;;  %v6846_v34 = vrot.slane %v2048_v10, 9  ;;  %v1343_v40 = vrot.slane %v1341_v19, 5  ;;  %v1347_v41 = vrot.slane %v1345_v22, 4  ;;  %v642_v35 = vld [vmem:[#allocation2 + $0x20] sm:$0x1] }
  0x60   : > { %7597 = vmatmul.mubr.bf16.gmra.mxu1 %v8044_v3  ;;  %v6821_v37 = vcombine.low %v1320_v11, %v1330_v26  ;;  %7664 = vmatprep.mubr.bf16.mxu0 %v6877_v14  ;;  %v2185_v43 = vrot.slane %v2049_v23, 5  ;;  %v423_v48 = vrot.slane %v8421_v39, 4  ;;  %v1338_v51 = vor.u32 %v1337_v31, %v1334_v7  ;;  %v2051_v14 = vld [vmem:[#allocation2 + $0x18] sm:$0xe]  ;;  %v8052_v19 = vld [vmem:[%s9913_s1 + $0x130] sm:$0xff]  }
  0x61   : > { %v2188_v29 = vrot.slane %v2050_v25, 5  ;;  %v1348_v53 = vor.u32 %v1347_v41, %v1343_v40  ;;  %v1353_v50 = vrot.slane %v1351_v32, 5  ;;  %v643_v3 = vsel %vm8232_vm7, %v338_v30, %v642_v35  ;;  %v2052_v25 = vld [vmem:[#allocation2 + $0x1c] sm:$0xf]  ;;  %v649_v26 = vld [vmem:[#allocation2 + $0x2c] sm:$0x1] }
  0x62   : > { %7616 = vmatprep.mubr.bf16.mxu1 %v6821_v37  ;;  %v2186_v57 = vsel %vm8439_vm12, %v6846_v34, %v2185_v43  ;;  %v2187_v58 = vrot.slane %v2185_v43, 4  ;;  %v1339_v63 = vrot.slane %v1338_v51, 4  ;;  %v1356_v5 = vshrl.u32 %v1230_v62, 16  ;;  %644 = vst [vmem:[#allocation2 + $0x20] sm:$0x1] %v643_v3 }
  0x63   : > { %v1359_v6 = vshll.u32 %v1230_v62, 16  ;;  %v1349_v7 = vrot.slane %v1348_v53, 4  ;;  %v1365_v10 = vshll.u32 %v1231_v4, 16  ;;  %v1369_v11 = vshrl.u32 %v1231_v4, 16  ;;  %v1233_v41 = vld [vmem:[#allocation2 + $0x24] sm:$0xf] }
  0x64   : > { %v2189_v9 = vsel %vm8439_vm12, %v2187_v58, %v2188_v29  ;;  %v1344_v8 = vsel %vm8445_vm13, %v1339_v63, %v1343_v40  ;;  %v1358_v30 = vrot.slane %v1356_v5, 4  ;;  %v6847_v37 = vrot.slane %v2051_v14, 9  ;;  %v1234_v53 = vld [vmem:[#allocation2 + $0x28] sm:$0xf] }
  0x65   : > { %v6878_v22 = vcombine.low %v2186_v57, %v2189_v9  ;;  %v1361_v23 = vrot.slane %v1359_v6, 5  ;;  %v1354_v31 = vsel %vm8445_vm13, %v1349_v7, %v1353_v50  ;;  %v8473_v32 = vrot.slane %v1365_v10, 5  ;;  %v2054_v57 = vld [vmem:[#allocation2 + $0x24] sm:$0xe]  ;;  %v8051_v50 = vld [vmem:[%s9913_s1 + $0xf0] sm:$0xff]  }
  0x66   : > { %v1371_v34 = vrot.slane %v1369_v11, 4  ;;  %v6822_v43 = vcombine.low %v1344_v8, %v1354_v31  ;;  %v2192_v29 = vrot.slane %v2052_v25, 5  ;;  %v650_v40 = vsel %vm8232_vm7, %v355_v54, %v649_v26  ;;  %v2055_v3 = vld [vmem:[#allocation2 + $0x28] sm:$0xf] }
  0x67   : > { %7665 = vmatmul.mubr.bf16.vlgmr.msra.gmra.mxu0 %v6878_v22  ;;  %v1362_v51 = vor.u32 %v1361_v23, %v1358_v30  ;;  %651 = vst [vmem:[#allocation2 + $0x2c] sm:$0x1] %v650_v40  ;;  %v1380_v35 = vshrl.u32 %v1233_v41, 16  ;;  %v1383_v62 = vshll.u32 %v1233_v41, 16  ;;  %v1389_v63 = vshll.u32 %v1234_v53, 16 }
  0x68   : > { %7745 = vmatpush3.bf16.msra.mxu0 %v8403_v2  ;;  %v1372_v58 = vor.u32 %v1371_v34, %v8473_v32  ;;  %v559_v54 = vrot.slane %v8423_v45, 4  ;;  %7617 = vmatmul.mubr.bf16.vlgmr.msra.gmra.mxu1 %v6822_v43  ;;  %v2194_v5 = vrot.slane %v2192_v29, 4  ;;  %v1393_v6 = vshrl.u32 %v1234_v53, 16  ;;  %v8053_v2 = vld [vmem:[%s9913_s1 + $0xe8] sm:$0xff]  }
  0x69   : > { %v1363_v4 = vrot.slane %v1362_v51, 4  ;;  %7746 = vmatprep.subr.bf16.mxu0 %v8052_v19  ;;  %7697 = vmatpush3.bf16.msra.mxu1 %v8398_v1  ;;  %v1382_v9 = vrot.slane %v1380_v35, 4  ;;  %v1385_v10 = vrot.slane %v1383_v62, 5  ;;  %v8492_v11 = vrot.slane %v1389_v63, 5  ;;  %v1232_v14 = vld [vmem:[#allocation2 + $0x20] sm:$0x1] }
  0x6a   : > { %v1373_v7 = vrot.slane %v1372_v58, 4  ;;  %v2053_v8 = vld [vmem:[#allocation2 + $0x20] sm:$0x1]  ;;  %v2193_v22 = vsel %vm8439_vm12, %v6847_v37, %v2192_v29  ;;  %v1395_v30 = vrot.slane %v1393_v6, 4  ;;  %v6848_v23 = vrot.slane %v2054_v57, 9  ;;  %7698 = vmatprep.subr.bf16.mxu1 %v8051_v50 }
  0x6b   : > { %v1375_v25 = vshll.u32 %v1232_v14, 16  ;;  %v2195_v26 = vrot.slane %v2053_v8, 5  ;;  %v1386_v31 = vor.u32 %v1385_v10, %v1382_v9  ;;  %v2199_v34 = vrot.slane %v2055_v3, 5  ;;  %v8056_v1 = vld [vmem:[%s9913_s1 + $0x120] sm:$0xff]   ;;  %v656_v51 = vld [vmem:[#allocation2 + $0x38] sm:$0x1] }
  0x6c   : > { %7747 = vmatpush3.bf16.msra.mxu0 %v8052_v19  ;;  %v1368_v41 = vsel %vm8445_vm13, %v1363_v4, %v8473_v32  ;;  %v1396_v43 = vor.u32 %v1395_v30, %v8492_v11  ;;  %v1236_v37 = vld [vmem:[#allocation2 + $0x30] sm:$0xf]  ;;  %v8506_v29 = vld [vmem:[%s9913_s1 + $0xe0] sm:$0xff]   ;;  %v1237_v32 = vld [vmem:[#allocation2 + $0x34] sm:$0xf]  ;;  %v657_v6 = vsel %vm8232_vm7, %v372_v27, %v656_v51 }
  0x6d   : > { %7748 = vmatprep.subr.bf16.mxu0 %v8054_v44  ;;  %v1377_v40 = vrot.slane %v1375_v25, 5  ;;  %v2196_v19 = vsel %vm8439_vm12, %v2194_v5, %v2195_v26  ;;  %v1387_v53 = vrot.slane %v1386_v31, 4  ;;  %v2200_v57 = vsel %vm8439_vm12, %v6848_v23, %v2199_v34  ;;  %7699 = vmatpush3.bf16.msra.mxu1 %v8051_v50  ;;  %v8512_v58 = vld [vmem:[#allocation2 + $0x30] sm:$0xe]  ;;  %658 = vst [vmem:[#allocation2 + $0x38] sm:$0x1] %v657_v6 }
  0x6e   : > { %v6879_v35 = vcombine.low %v2193_v22, %v2196_v19  ;;  %v1235_v62 = vld [vmem:[#allocation2 + $0x2c] sm:$0x1]  ;;  %v1397_v63 = vrot.slane %v1396_v43, 4  ;;  %v2201_v4 = vrot.slane %v2199_v34, 4  ;;  %7700 = vmatprep.subr.bf16.mxu1 %v8053_v2  ;;  %v2058_v14 = vld [vmem:[#allocation2 + $0x34] sm:$0xf] }
  0x6f   : > { %v2056_v3 = vld [vmem:[#allocation2 + $0x2c] sm:$0x1]  ;;  %v1378_v5 = vsel %vm8445_vm13, %v1373_v7, %v1377_v40  ;;  %v1392_v50 = vsel %vm8445_vm13, %v1387_v53, %v8492_v11  ;;  %v1399_v9 = vshll.u32 %v1235_v62, 16  ;;  %v1404_v22 = vshrl.u32 %v1236_v37, 16  ;;  %v663_v23 = vld [vmem:[#allocation2 + $0x44] sm:$0x1] }
  0x70   : > { %v2202_v10 = vrot.slane %v2056_v3, 5  ;;  %7749 = vmatpush3.bf16.msra.mxu0 %v8054_v44  ;;  %v6823_v8 = vcombine.low %v1368_v41, %v1378_v5  ;;  %7668 = vmatprep.mubr.bf16.mxu0 %v6879_v35  ;;  %v1407_v21 = vshll.u32 %v1236_v37, 16  ;;  %v1413_v30 = vshll.u32 %v1237_v32, 16  ;;  %v8058_v27 = vld [vmem:[%s9913_s1 + $0x118] sm:$0xff]   ;;  %v1240_v37 = vld [vmem:[#allocation2 + $0x40] sm:$0xf] }
  0x71   : > { %7750 = vmatprep.subr.bf16.mxu0 %v8056_v1  ;;  %v1401_v7 = vrot.slane %v1399_v9, 5  ;;  %v1417_v25 = vshrl.u32 %v1237_v32, 16  ;;  %v6849_v26 = vrot.slane %v8512_v58, 9  ;;  %v1239_v31 = vld [vmem:[#allocation2 + $0x3c] sm:$0xf]  ;;  %7701 = vmatpush3.bf16.msra.mxu1 %v8053_v2  ;;  %v1406_v41 = vrot.slane %v1404_v22, 4 }
  0x72   : > { %v2203_v11 = vsel %vm8439_vm12, %v2201_v4, %v2202_v10  ;;  %v8057_v44 = vld [vmem:[%s9913_s1 + $0xd8] sm:$0xff]   ;;  %7620 = vmatprep.mubr.bf16.mxu1 %v6823_v8  ;;  %v1409_v43 = vrot.slane %v1407_v21, 5  ;;  %v8532_v51 = vrot.slane %v1413_v30, 5  ;;  %7702 = vmatprep.subr.bf16.mxu1 %v8506_v29  ;;  %v8060_v40 = vld [vmem:[%s9913_s1 + $0x110] sm:$0xff]   ;;  %v2206_v53 = vrot.slane %v2058_v14, 5 }
  0x73   : > { %v6880_v34 = vcombine.low %v2200_v57, %v2203_v11  ;;  %v1402_v2 = vsel %vm8445_vm13, %v1397_v63, %v1401_v7  ;;  %v1419_v19 = vrot.slane %v1417_v25, 4  ;;  %v664_v57 = vsel %vm8232_vm7, %v389_v61, %v663_v23  ;;  %v2060_v32 = vld [vmem:[#allocation2 + $0x3c] sm:$0xe]  ;;  %v2061_v4 = vld [vmem:[#allocation2 + $0x40] sm:$0xf]  ;;  %v8059_v63 = vld [vmem:[%s9913_s1 + $0xd0] sm:$0xff]  }
  0x74   : > { %7751 = vmatpush3.bf16.msra.mxu0 %v8056_v1  ;;  %v6824_v58 = vcombine.low %v1392_v50, %v1402_v2  ;;  %v1410_v35 = vor.u32 %v1409_v43, %v1406_v41  ;;  %665 = vst [vmem:[#allocation2 + $0x44] sm:$0x1] %v664_v57  ;;  %v1428_v62 = vshrl.u32 %v1239_v31, 16  ;;  %v1431_v3 = vshll.u32 %v1239_v31, 16  ;;  %v670_v9 = vld [vmem:[#allocation2 + $0x50] sm:$0x1] }
  0x75   : > { %7669 = vmatmul.mubr.bf16.gmra.mxu0 %v6880_v34  ;;  %7752 = vmatprep.subr.bf16.mxu0 %v8058_v27  ;;  %v1420_v6 = vor.u32 %v1419_v19, %v8532_v51  ;;  %v2208_v56 = vrot.slane %v2206_v53, 4  ;;  %v1437_v5 = vshll.u32 %v1240_v37, 16  ;;  %v1238_v61 = vld [vmem:[#allocation2 + $0x38] sm:$0x1]  ;;  %v2207_v10 = vsel %vm8439_vm12, %v6849_v26, %v2206_v53  ;;  %v8571_v53 = vld [vmem:[%s9913_s1 + $0x100] sm:$0xff]  }
  0x76   : > { %7703 = vmatpush3.bf16.msra.mxu1 %v8506_v29  ;;  %v1411_v1 = vrot.slane %v1410_v35, 4  ;;  %v2059_v50 = vld [vmem:[#allocation2 + $0x38] sm:$0x1]  ;;  %v1430_v14 = vrot.slane %v1428_v62, 4  ;;  %v671_v8 = vsel %vm8232_vm7, %v406_v59, %v670_v9  ;;  %v1423_v21 = vshll.u32 %v1238_v61, 16 }
  0x77   : > { %7621 = vmatmul.mubr.bf16.gmra.mxu1 %v6824_v58  ;;  %7704 = vmatprep.subr.bf16.mxu1 %v8057_v44  ;;  %v1421_v22 = vrot.slane %v1420_v6, 4  ;;  %v2209_v30 = vrot.slane %v2059_v50, 5  ;;  %v1433_v23 = vrot.slane %v1431_v3, 5  ;;  %672 = vst [vmem:[#allocation2 + $0x50] sm:$0x1] %v671_v8  ;;  %v8558_v11 = vrot.slane %v1437_v5, 5 }
  0x78   : > { %v1242_v29 = vld [vmem:[#allocation2 + $0x48] sm:$0xf]  ;;  %7753 = vmatpush3.bf16.msra.mxu0 %v8058_v27  ;;  %v1416_v7 = vsel %vm8445_vm13, %v1411_v1, %v8532_v51  ;;  %v1441_v25 = vshrl.u32 %v1240_v37, 16  ;;  %v6850_v26 = vrot.slane %v2060_v32, 9  ;;  %v1425_v59 = vrot.slane %v1423_v21, 5 }
  0x79   : > { %7754 = vmatprep.subr.bf16.mxu0 %v8060_v40  ;;  %v2210_v31 = vsel %vm8439_vm12, %v2208_v56, %v2209_v30  ;;  %v1434_v34 = vor.u32 %v1433_v23, %v1430_v14  ;;  %v2213_v41 = vrot.slane %v2061_v4, 5  ;;  %v8061_v27 = vld [vmem:[%s9913_s1 + $0xc8] sm:$0xff]   ;;  %v1452_v2 = vshrl.u32 %v1242_v29, 16  ;;  %v677_v14 = vld [vmem:[#allocation2 + $0x5c] sm:$0x1] }
  0x7a   : > { %7705 = vmatpush3.bf16.msra.mxu1 %v8057_v44  ;;  %v6881_v43 = vcombine.low %v2207_v10, %v2210_v31  ;;  %v1443_v51 = vrot.slane %v1441_v25, 4  ;;  %v1243_v37 = vld [vmem:[#allocation2 + $0x4c] sm:$0xf]  ;;  %v1455_v19 = vshll.u32 %v1242_v29, 16  ;;  %v1426_v57 = vsel %vm8445_vm13, %v1421_v22, %v1425_v59  ;;  %v2063_v5 = vld [vmem:[#allocation2 + $0x48] sm:$0xe] }
  0x7b   : > { %7706 = vmatprep.subr.bf16.mxu1 %v8059_v63  ;;  %v1241_v32 = vld [vmem:[#allocation2 + $0x44] sm:$0x1]  ;;  %v1435_v44 = vrot.slane %v1434_v34, 4  ;;  %v2214_v35 = vsel %vm8439_vm12, %v6850_v26, %v2213_v41  ;;  %v2215_v62 = vrot.slane %v2213_v41, 4  ;;  %v6825_v3 = vcombine.low %v1416_v7, %v1426_v57  ;;  %v2064_v9 = vld [vmem:[#allocation2 + $0x4c] sm:$0xf] }
  0x7c   : > { %v2062_v58 = vld [vmem:[#allocation2 + $0x44] sm:$0x1]  ;;  %7755 = vmatpush3.bf16.msra.mxu0 %v8060_v40  ;;  %7672 = vmatprep.mubr.bf16.mxu0 %v6881_v43  ;;  %v1444_v4 = vor.u32 %v1443_v51, %v8558_v11  ;;  %v1447_v6 = vshll.u32 %v1241_v32, 16  ;;  %v1454_v1 = vrot.slane %v1452_v2, 4  ;;  %v1457_v50 = vrot.slane %v1455_v19, 5 }
  0x7d   : > { %v2216_v56 = vrot.slane %v2062_v58, 5  ;;  %7756 = vmatprep.subr.bf16.mxu0 %v8062_v47  ;;  %v1440_v61 = vsel %vm8445_vm13, %v1435_v44, %v8558_v11  ;;  %v1461_v10 = vshll.u32 %v1243_v37, 16  ;;  %7624 = vmatprep.mubr.bf16.mxu1 %v6825_v3  ;;  %v1465_v30 = vshrl.u32 %v1243_v37, 16  ;;  %v1245_v23 = vld [vmem:[#allocation2 + $0x54] sm:$0xf]  ;;  %v8063_v7 = vld [vmem:[%s9913_s1 + $0xc0] sm:$0xff]  }
  0x7e   : > { %7707 = vmatpush3.bf16.msra.mxu1 %v8059_v63  ;;  %v1445_v40 = vrot.slane %v1444_v4, 4  ;;  %v1449_v8 = vrot.slane %v1447_v6, 5  ;;  %v1244_v21 = vld [vmem:[#allocation2 + $0x50] sm:$0x1]  ;;  %v1246_v29 = vld [vmem:[#allocation2 + $0x58] sm:$0xf]  ;;  %v1458_v25 = vor.u32 %v1457_v50, %v1454_v1 }
  0x7f   : > { %v2217_v22 = vsel %vm8439_vm12, %v2215_v62, %v2216_v56  ;;  %7708 = vmatprep.subr.bf16.mxu1 %v8061_v27  ;;  %v1463_v26 = vrot.slane %v1461_v10, 5  ;;  %v1471_v59 = vshll.u32 %v1244_v21, 16  ;;  %v2065_v63 = vld [vmem:[#allocation2 + $0x50] sm:$0x1]  ;;  %v8586_v31 = vld [vmem:[#allocation2 + $0x54] sm:$0xe]  ;;  %v678_v62 = vsel %vm8232_vm7, %v423_v48, %v677_v14 }
  0x80   : > { %v6882_v11 = vcombine.low %v2214_v35, %v2217_v22  ;;  %7757 = vmatpush3.bf16.msra.mxu0 %v8062_v47  ;;  %v1450_v34 = vsel %vm8445_vm13, %v1445_v40, %v1449_v8  ;;  %v1467_v41 = vrot.slane %v1465_v30, 4  ;;  %v6851_v43 = vrot.slane %v2063_v5, 9  ;;  %v8594_v37 = vld [vmem:[%s9913_s1 + $0x1b8] sm:$0xff]   ;;  %679 = vst [vmem:[#allocation2 + $0x5c] sm:$0x1] %v678_v62 }
  0x81   : > { %v2220_v51 = vrot.slane %v2064_v9, 5  ;;  %7758 = vmatprep.subr.bf16.mxu0 %v8571_v53  ;;  %v6826_v2 = vcombine.low %v1440_v61, %v1450_v34  ;;  %v1459_v19 = vrot.slane %v1458_v25, 4  ;;  %v1473_v57 = vrot.slane %v1471_v59, 5  ;;  %v2067_v44 = vld [vmem:[#allocation2 + $0x58] sm:$0xf] }
  0x82   : > { %7673 = vmatmul.mubr.bf16.gmra.mxu0 %v6882_v11  ;;  %v2223_v32 = vrot.slane %v2065_v63, 5  ;;  %7709 = vmatpush3.bf16.msra.mxu1 %v8061_v27  ;;  %v1468_v47 = vor.u32 %v1467_v41, %v1463_v26  ;;  %v8605_v3 = vld [vmem:[%s9913_s1 + $0x178] sm:$0xff]   ;;  %v1476_v4 = vshrl.u32 %v1245_v23, 16  ;;  %v1479_v6 = vshll.u32 %v1245_v23, 16  ;;  %v684_v5 = vld [vmem:[#allocation2 + $0x68] sm:$0x1] }
  0x83   : > { %v2221_v58 = vsel %vm8439_vm12, %v6851_v43, %v2220_v51  ;;  %v2222_v35 = vrot.slane %v2220_v51, 4  ;;  %7710 = vmatprep.subr.bf16.mxu1 %v8063_v7  ;;  %7625 = vmatmul.mubr.bf16.gmra.mxu1 %v6826_v2  ;;  %v1464_v27 = vsel %vm8445_vm13, %v1459_v19, %v1463_v26  ;;  %v1485_v56 = vshll.u32 %v1246_v29, 16  ;;  %v1248_v1 = vld [vmem:[#allocation2 + $0x60] sm:$0xf]  ;;  %v1249_v8 = vld [vmem:[#allocation2 + $0x64] sm:$0xf] }
  0x84   : > { %7759 = vmatpush3.bf16.msra.mxu0 %v8571_v53  ;;  %v1469_v39 = vrot.slane %v1468_v47, 4  ;;  %v1489_v9 = vshrl.u32 %v1246_v29, 16  ;;  %v6852_v61 = vrot.slane %v8586_v31, 9  ;;  %v1478_v10 = vrot.slane %v1476_v4, 4  ;;  %v691_v26 = vld [vmem:[#allocation2 + $0x74] sm:$0x1] }
  0x85   : > { %v2224_v48 = vsel %vm8439_vm12, %v2222_v35, %v2223_v32  ;;  %7840 = vmatprep.subr.bf16.mxu0 %v8594_v37  ;;  %v1481_v14 = vrot.slane %v1479_v6, 5  ;;  %v1487_v40 = vrot.slane %v1485_v56, 5  ;;  %v2227_v21 = vrot.slane %v2067_v44, 5  ;;  %v2069_v31 = vld [vmem:[#allocation2 + $0x60] sm:$0xe] }
  0x86   : > { %v6883_v50 = vcombine.low %v2221_v58, %v2224_v48  ;;  %7711 = vmatpush3.bf16.msra.mxu1 %v8063_v7  ;;  %v1474_v22 = vsel %vm8445_vm13, %v1469_v39, %v1473_v57  ;;  %v1491_v53 = vrot.slane %v1489_v9, 4  ;;  %v685_v30 = vsel %vm8232_vm7, %v440_v60, %v684_v5  ;;  %v2070_v34 = vld [vmem:[#allocation2 + $0x64] sm:$0xf]  ;;  %v1251_v60 = vld [vmem:[#allocation2 + $0x6c] sm:$0xf] }
  0x87   : > { %7792 = vmatprep.subr.bf16.mxu1 %v8605_v3  ;;  %v6827_v23 = vcombine.low %v1464_v27, %v1474_v22  ;;  %v1482_v29 = vor.u32 %v1481_v14, %v1478_v10  ;;  %686 = vst [vmem:[#allocation2 + $0x68] sm:$0x1] %v685_v30  ;;  %v1500_v11 = vshrl.u32 %v1248_v1, 16  ;;  %v1503_v25 = vshll.u32 %v1248_v1, 16  ;;  %v1247_v2 = vld [vmem:[#allocation2 + $0x5c] sm:$0x1] }
  0x88   : > { %7676 = vmatprep.mubr.bf16.mxu0 %v6883_v50  ;;  %v1492_v7 = vor.u32 %v1491_v53, %v1487_v40  ;;  %v2229_v59 = vrot.slane %v2227_v21, 4  ;;  %v1509_v63 = vshll.u32 %v1249_v8, 16  ;;  %v1513_v51 = vshrl.u32 %v1249_v8, 16  ;;  %v2068_v57 = vld [vmem:[#allocation2 + $0x5c] sm:$0x1] }
  0x89   : > { %7628 = vmatprep.mubr.bf16.mxu1 %v6827_v23  ;;  %v1483_v41 = vrot.slane %v1482_v29, 4  ;;  %v1502_v15 = vrot.slane %v1500_v11, 4  ;;  %v1505_v43 = vrot.slane %v1503_v25, 5  ;;  %v2228_v32 = vsel %vm8439_vm12, %v6852_v61, %v2227_v21  ;;  %v1252_v5 = vld [vmem:[#allocation2 + $0x70] sm:$0xf] }
  0x8a   : > { %v1493_v19 = vrot.slane %v1492_v7, 4  ;;  %v1511_v44 = vrot.slane %v1509_v63, 5  ;;  %v692_v47 = vsel %vm8232_vm7, %v457_v24, %v691_v26  ;;  %v1495_v35 = vshll.u32 %v1247_v2, 16  ;;  %v2072_v30 = vld [vmem:[#allocation2 + $0x6c] sm:$0xe] }
  0x8b   : > { %v1488_v58 = vsel %vm8445_vm13, %v1483_v41, %v1487_v40  ;;  %v2230_v62 = vrot.slane %v2068_v57, 5  ;;  %v1506_v27 = vor.u32 %v1505_v43, %v1502_v15  ;;  %693 = vst [vmem:[#allocation2 + $0x74] sm:$0x1] %v692_v47  ;;  %v1515_v4 = vrot.slane %v1513_v51, 4  ;;  %v2073_v23 = vld [vmem:[#allocation2 + $0x70] sm:$0xf] }
  0x8c   : > { %v6853_v6 = vrot.slane %v2069_v31, 9  ;;  %v2234_v56 = vrot.slane %v2070_v34, 5  ;;  %v1524_v39 = vshrl.u32 %v1251_v60, 16  ;;  %v1497_v48 = vrot.slane %v1495_v35, 5  ;;  %v698_v7 = vld [vmem:[#allocation2 + $0x80] sm:$0x1] }
  0x8d   : > { %v2231_v9 = vsel %vm8439_vm12, %v2229_v59, %v2230_v62  ;;  %v1507_v46 = vrot.slane %v1506_v27, 4  ;;  %v1527_v61 = vshll.u32 %v1251_v60, 16  ;;  %v1516_v50 = vor.u32 %v1515_v4, %v1511_v44  ;;  %v1254_v41 = vld [vmem:[#allocation2 + $0x78] sm:$0xf]  ;;  %v1266_v12 = vld [vmem:[#allocation2 + $0xa8] sm:$0xf] }
  0x8e   : > { %v6884_v1 = vcombine.low %v2228_v32, %v2231_v9  ;;  %v1250_v24 = vld [vmem:[#allocation2 + $0x68] sm:$0x1]  ;;  %v2235_v14 = vsel %vm8439_vm12, %v6853_v6, %v2234_v56  ;;  %v2236_v40 = vrot.slane %v2234_v56, 4  ;;  %v1498_v8 = vsel %vm8445_vm13, %v1493_v19, %v1497_v48  ;;  %v2075_v6 = vld [vmem:[#allocation2 + $0x78] sm:$0xe] }
  0x8f   : > { %v2071_v10 = vld [vmem:[#allocation2 + $0x68] sm:$0x1]  ;;  %v1512_v22 = vsel %vm8445_vm13, %v1507_v46, %v1511_v44  ;;  %v1519_v53 = vshll.u32 %v1250_v24, 16  ;;  %v6828_v29 = vcombine.low %v1488_v58, %v1498_v8  ;;  %v1517_v11 = vrot.slane %v1516_v50, 4  ;;  %v1255_v58 = vld [vmem:[#allocation2 + $0x7c] sm:$0xf] }
  0x90   : > { %v2237_v21 = vrot.slane %v2071_v10, 5  ;;  %7677 = vmatmul.mubr.bf16.gmra.mxu0 %v6884_v1  ;;  %v1526_v25 = vrot.slane %v1524_v39, 4  ;;  %v1529_v26 = vrot.slane %v1527_v61, 5  ;;  %v1533_v31 = vshll.u32 %v1252_v5, 16  ;;  %v2076_v56 = vld [vmem:[#allocation2 + $0x7c] sm:$0xf] }
  0x91   : > { %v1521_v59 = vrot.slane %v1519_v53, 5  ;;  %v1537_v34 = vshrl.u32 %v1252_v5, 16  ;;  %7629 = vmatmul.mubr.bf16.gmra.mxu1 %v6828_v29  ;;  %v6854_v2 = vrot.slane %v2072_v30, 9  ;;  %v2241_v19 = vrot.slane %v2073_v23, 5  ;;  %v705_v46 = vld [vmem:[#allocation2 + $0x8c] sm:$0x1] }
  0x92   : > { %v2238_v63 = vsel %vm8439_vm12, %v2236_v40, %v2237_v21  ;;  %v1253_v43 = vld [vmem:[#allocation2 + $0x74] sm:$0x1]  ;;  %v1530_v51 = vor.u32 %v1529_v26, %v1526_v25  ;;  %v1535_v32 = vrot.slane %v1533_v31, 5  ;;  %v699_v9 = vsel %vm8232_vm7, %v474_v49, %v698_v7  ;;  %v1257_v61 = vld [vmem:[#allocation2 + $0x84] sm:$0xf] }
  0x93   : > { %v6885_v15 = vcombine.low %v2235_v14, %v2238_v63  ;;  %v2074_v60 = vld [vmem:[#allocation2 + $0x74] sm:$0x1]  ;;  %v1522_v57 = vsel %vm8445_vm13, %v1517_v11, %v1521_v59  ;;  %v1539_v44 = vrot.slane %v1537_v34, 4  ;;  %v1543_v47 = vshll.u32 %v1253_v43, 16  ;;  %700 = vst [vmem:[#allocation2 + $0x80] sm:$0x1] %v699_v9 }
  0x94   : > { %v6829_v35 = vcombine.low %v1512_v22, %v1522_v57  ;;  %v1531_v62 = vrot.slane %v1530_v51, 4  ;;  %v2242_v27 = vsel %vm8439_vm12, %v6854_v2, %v2241_v19  ;;  %v2243_v4 = vrot.slane %v2241_v19, 4  ;;  %v1258_v14 = vld [vmem:[#allocation2 + $0x88] sm:$0xf]  ;;  %v712_v31 = vld [vmem:[#allocation2 + $0x98] sm:$0x1] }
  0x95   : > { %7680 = vmatprep.mubr.bf16.mxu0 %v6885_v15  ;;  %v1540_v5 = vor.u32 %v1539_v44, %v1535_v32  ;;  %v1545_v39 = vrot.slane %v1543_v47, 5  ;;  %v2244_v48 = vrot.slane %v2074_v60, 5  ;;  %v1548_v24 = vshrl.u32 %v1254_v41, 16  ;;  %v2078_v43 = vld [vmem:[#allocation2 + $0x84] sm:$0xe] }
  0x96   : > { %7632 = vmatprep.mubr.bf16.mxu1 %v6829_v35  ;;  %v1536_v1 = vsel %vm8445_vm13, %v1531_v62, %v1535_v32  ;;  %v1551_v50 = vshll.u32 %v1254_v41, 16  ;;  %v1557_v10 = vshll.u32 %v1255_v58, 16  ;;  %v1561_v22 = vshrl.u32 %v1255_v58, 16  ;;  %v2079_v51 = vld [vmem:[#allocation2 + $0x88] sm:$0xf] }
  0x97   : > { %v1541_v40 = vrot.slane %v1540_v5, 4  ;;  %v2245_v8 = vsel %vm8439_vm12, %v2243_v4, %v2244_v48  ;;  %v6855_v28 = vrot.slane %v2075_v6, 9  ;;  %v1550_v21 = vrot.slane %v1548_v24, 4  ;;  %v1260_v57 = vld [vmem:[#allocation2 + $0x90] sm:$0xf] }
  0x98   : > { %v6886_v53 = vcombine.low %v2242_v27, %v2245_v8  ;;  %v1553_v49 = vrot.slane %v1551_v50, 5  ;;  %v1559_v30 = vrot.slane %v1557_v10, 5  ;;  %v1563_v29 = vrot.slane %v1561_v22, 4  ;;  %v1261_v48 = vld [vmem:[#allocation2 + $0x94] sm:$0xf] }
  0x99   : > { %v1546_v23 = vsel %vm8445_vm13, %v1541_v40, %v1545_v39  ;;  %v2248_v11 = vrot.slane %v2076_v56, 5  ;;  %v706_v25 = vsel %vm8232_vm7, %v491_v20, %v705_v46  ;;  %v1572_v59 = vshrl.u32 %v1257_v61, 16  ;;  %v2081_v24 = vld [vmem:[#allocation2 + $0x90] sm:$0xe]  ;;  %v3915_v18 = vld [vmem:[#allocation2 + $0x20] sm:$0x1] }
  0x9a   : > { %v6830_v26 = vcombine.low %v1536_v1, %v1546_v23  ;;  %7681 = vmatmul.mubr.bf16.gmra.mxu0 %v6886_v53  ;;  %v1554_v7 = vor.u32 %v1553_v49, %v1550_v21  ;;  %707 = vst [vmem:[#allocation2 + $0x8c] sm:$0x1] %v706_v25  ;;  %v1575_v63 = vshll.u32 %v1257_v61, 16  ;;  %v1564_v34 = vor.u32 %v1563_v29, %v1559_v30  ;;  %v1256_v32 = vld [vmem:[#allocation2 + $0x80] sm:$0x1] }
  0x9b   : > { %v2250_v41 = vrot.slane %v2248_v11, 4  ;;  %v1581_v15 = vshll.u32 %v1258_v14, 16  ;;  %v1574_v2 = vrot.slane %v1572_v59, 4  ;;  %v1585_v55 = vshrl.u32 %v1258_v14, 16  ;;  %v2077_v44 = vld [vmem:[#allocation2 + $0x80] sm:$0x1] }
  0x9c   : > { %7633 = vmatmul.mubr.bf16.gmra.mxu1 %v6830_v26  ;;  %v1555_v60 = vrot.slane %v1554_v7, 4  ;;  %v1577_v19 = vrot.slane %v1575_v63, 5  ;;  %v1565_v20 = vrot.slane %v1564_v34, 4  ;;  %v2249_v47 = vsel %vm8439_vm12, %v6855_v28, %v2248_v11  ;;  %v2082_v49 = vld [vmem:[#allocation2 + $0x94] sm:$0xf] }
  0x9d   : > { %v1583_v58 = vrot.slane %v1581_v15, 5  ;;  %v713_v35 = vsel %vm8232_vm7, %v508_v52, %v712_v31  ;;  %v1567_v27 = vshll.u32 %v1256_v32, 16  ;;  %v2251_v4 = vrot.slane %v2077_v44, 5  ;;  %v719_v25 = vld [vmem:[#allocation2 + $0xa4] sm:$0x1] }
  0x9e   : > { %v1560_v62 = vsel %vm8445_vm13, %v1555_v60, %v1559_v30  ;;  %v1578_v6 = vor.u32 %v1577_v19, %v1574_v2  ;;  %714 = vst [vmem:[#allocation2 + $0x98] sm:$0x1] %v713_v35  ;;  %v1587_v56 = vrot.slane %v1585_v55, 4  ;;  %v6856_v5 = vrot.slane %v2078_v43, 9  ;;  %v1263_v31 = vld [vmem:[#allocation2 + $0x9c] sm:$0xf] }
  0x9f   : > { %v2255_v39 = vrot.slane %v2079_v51, 5  ;;  %v1596_v9 = vshrl.u32 %v1260_v57, 16  ;;  %v1569_v46 = vrot.slane %v1567_v27, 5  ;;  %v2252_v61 = vsel %vm8439_vm12, %v2250_v41, %v2251_v4  ;;  %v1264_v34 = vld [vmem:[#allocation2 + $0xa0] sm:$0xf] }
  0xa0   : > { %v1579_v38 = vrot.slane %v1578_v6, 4  ;;  %v1599_v1 = vshll.u32 %v1260_v57, 16  ;;  %v6887_v52 = vcombine.low %v2249_v47, %v2252_v61  ;;  %v1588_v10 = vor.u32 %v1587_v56, %v1583_v58  ;;  %v2084_v35 = vld [vmem:[#allocation2 + $0x9c] sm:$0xe]  ;;  %v2085_v56 = vld [vmem:[#allocation2 + $0xa0] sm:$0xf] }
  0xa1   : > { %v1259_v50 = vld [vmem:[#allocation2 + $0x8c] sm:$0x1]  ;;  %v2256_v40 = vsel %vm8439_vm12, %v6856_v5, %v2255_v39  ;;  %v2257_v8 = vrot.slane %v2255_v39, 4  ;;  %v1570_v22 = vsel %vm8445_vm13, %v1565_v20, %v1569_v46  ;;  %v1598_v29 = vrot.slane %v1596_v9, 4  ;;  %v726_v46 = vld [vmem:[#allocation2 + $0xb0] sm:$0x1] }
  0xa2   : > { %v2080_v14 = vld [vmem:[#allocation2 + $0x8c] sm:$0x1]  ;;  %v1584_v28 = vsel %vm8445_vm13, %v1579_v38, %v1583_v58  ;;  %v1591_v53 = vshll.u32 %v1259_v50, 16  ;;  %v6831_v30 = vcombine.low %v1560_v62, %v1570_v22  ;;  %7684 = vmatprep.mubr.bf16.mxu0 %v6887_v52  ;;  %v1589_v23 = vrot.slane %v1588_v10, 4 }
  0xa3   : > { %v2258_v21 = vrot.slane %v2080_v14, 5  ;;  %v1601_v11 = vrot.slane %v1599_v1, 5  ;;  %v1605_v59 = vshll.u32 %v1261_v48, 16  ;;  %v1609_v63 = vshrl.u32 %v1261_v48, 16  ;;  %v1267_v14 = vld [vmem:[#allocation2 + $0xac] sm:$0xf] }
  0xa4   : > { %v1593_v26 = vrot.slane %v1591_v53, 5  ;;  %7636 = vmatprep.mubr.bf16.mxu1 %v6831_v30  ;;  %v6857_v60 = vrot.slane %v2081_v24, 9  ;;  %v2262_v2 = vrot.slane %v2082_v49, 5  ;;  %v720_v6 = vsel %vm8232_vm7, %v525_v16, %v719_v25  ;;  %v733_v53 = vld [vmem:[#allocation2 + $0xbc] sm:$0x1] }
  0xa5   : > { %v2259_v7 = vsel %vm8439_vm12, %v2257_v8, %v2258_v21  ;;  %v1262_v15 = vld [vmem:[#allocation2 + $0x98] sm:$0x1]  ;;  %v1602_v43 = vor.u32 %v1601_v11, %v1598_v29  ;;  %v1607_v55 = vrot.slane %v1605_v59, 5  ;;  %v1611_v57 = vrot.slane %v1609_v63, 4  ;;  %721 = vst [vmem:[#allocation2 + $0xa4] sm:$0x1] %v720_v6 }
  0xa6   : > { %v6888_v41 = vcombine.low %v2256_v40, %v2259_v7  ;;  %v2083_v51 = vld [vmem:[#allocation2 + $0x98] sm:$0x1]  ;;  %v1594_v19 = vsel %vm8445_vm13, %v1589_v23, %v1593_v26  ;;  %v1615_v32 = vshll.u32 %v1262_v15, 16  ;;  %v2263_v47 = vsel %vm8439_vm12, %v6857_v60, %v2262_v2  ;;  %v2087_v29 = vld [vmem:[#allocation2 + $0xa8] sm:$0xe] }
  0xa7   : > { %v6832_v20 = vcombine.low %v1584_v28, %v1594_v19  ;;  %v1603_v44 = vrot.slane %v1602_v43, 4  ;;  %v2264_v58 = vrot.slane %v2262_v2, 4  ;;  %v1612_v62 = vor.u32 %v1611_v57, %v1607_v55  ;;  %v2088_v11 = vld [vmem:[#allocation2 + $0xac] sm:$0xf]  ;;  %v1269_v25 = vld [vmem:[#allocation2 + $0xb4] sm:$0xf] }
  0xa8   : > { %7685 = vmatmul.mubr.bf16.gmra.mxu0 %v6888_v41  ;;  %v1617_v27 = vrot.slane %v1615_v32, 5  ;;  %v2265_v4 = vrot.slane %v2083_v51, 5  ;;  %v1620_v39 = vshrl.u32 %v1263_v31, 16  ;;  %v1623_v48 = vshll.u32 %v1263_v31, 16 }
  0xa9   : > { %7637 = vmatmul.mubr.bf16.gmra.mxu1 %v6832_v20  ;;  %v1608_v5 = vsel %vm8445_vm13, %v1603_v44, %v1607_v55  ;;  %v1629_v9 = vshll.u32 %v1264_v34, 16  ;;  %v1613_v61 = vrot.slane %v1612_v62, 4  ;;  %v1633_v1 = vshrl.u32 %v1264_v34, 16 }
  0xaa   : > { %v2266_v38 = vsel %vm8439_vm12, %v2264_v58, %v2265_v4  ;;  %v6858_v24 = vrot.slane %v2084_v35, 9  ;;  %v1622_v50 = vrot.slane %v1620_v39, 4  ;;  %v1625_v16 = vrot.slane %v1623_v48, 5  ;;  %v2090_v4 = vld [vmem:[#allocation2 + $0xb4] sm:$0xe] }
  0xab   : > { %v6889_v52 = vcombine.low %v2263_v47, %v2266_v38  ;;  %v1631_v10 = vrot.slane %v1629_v9, 5  ;;  %v1618_v40 = vsel %vm8445_vm13, %v1613_v61, %v1617_v27  ;;  %v1635_v8 = vrot.slane %v1633_v1, 4  ;;  %v1270_v47 = vld [vmem:[#allocation2 + $0xb8] sm:$0xf] }
  0xac   : > { %v2269_v22 = vrot.slane %v2085_v56, 5  ;;  %v727_v28 = vsel %vm8232_vm7, %v542_v17, %v726_v46  ;;  %v6833_v21 = vcombine.low %v1608_v5, %v1618_v40  ;;  %v1626_v49 = vor.u32 %v1625_v16, %v1622_v50  ;;  %v1265_v41 = vld [vmem:[#allocation2 + $0xa4] sm:$0x1]  ;;  %v2091_v1 = vld [vmem:[#allocation2 + $0xb8] sm:$0xf] }
  0xad   : > { %7688 = vmatprep.mubr.bf16.mxu0 %v6889_v52  ;;  %728 = vst [vmem:[#allocation2 + $0xb0] sm:$0x1] %v727_v28  ;;  %v1644_v30 = vshrl.u32 %v1266_v12, 16  ;;  %v1647_v23 = vshll.u32 %v1266_v12, 16  ;;  %v1636_v26 = vor.u32 %v1635_v8, %v1631_v10  ;;  %v1653_v59 = vshll.u32 %v1267_v14, 16 }
  0xae   : > { %v2271_v7 = vrot.slane %v2269_v22, 4  ;;  %7640 = vmatprep.mubr.bf16.mxu1 %v6833_v21  ;;  %v1627_v63 = vrot.slane %v1626_v49, 4  ;;  %v1657_v34 = vshrl.u32 %v1267_v14, 16  ;;  %v2086_v15 = vld [vmem:[#allocation2 + $0xa4] sm:$0x1]  ;;  %v2270_v43 = vsel %vm8439_vm12, %v6858_v24, %v2269_v22 }
  0xaf   : > { %v1646_v31 = vrot.slane %v1644_v30, 4  ;;  %v1649_v0 = vrot.slane %v1647_v23, 5  ;;  %v1637_v17 = vrot.slane %v1636_v26, 4  ;;  %v1655_v51 = vrot.slane %v1653_v59, 5  ;;  %v3092_v16 = vld [vmem:[#allocation2 + $0xc] sm:$0xf] }
  0xb0   : > { %v734_v60 = vsel %vm8232_vm7, %v559_v54, %v733_v53  ;;  %v1632_v2 = vsel %vm8445_vm13, %v1627_v63, %v1631_v10  ;;  %v1639_v19 = vshll.u32 %v1265_v41, 16  ;;  %v2272_v55 = vrot.slane %v2086_v15, 5  ;;  %v3093_v22 = vld [vmem:[#allocation2 + $0x10] sm:$0xf] }
  0xb1   : > { %v1650_v57 = vor.u32 %v1649_v0, %v1646_v31  ;;  %735 = vst [vmem:[#allocation2 + $0xbc] sm:$0x1] %v734_v60  ;;  %v1659_v32 = vrot.slane %v1657_v34, 4  ;;  %v6859_v20 = vrot.slane %v2087_v29, 9  ;;  %v2276_v44 = vrot.slane %v2088_v11, 5 }
  0xb2   : > { %v1668_v58 = vshrl.u32 %v1269_v25, 16  ;;  %v1641_v35 = vrot.slane %v1639_v19, 5  ;;  %v2273_v62 = vsel %vm8439_vm12, %v2271_v7, %v2272_v55  ;;  %v1671_v27 = vshll.u32 %v1269_v25, 16  ;;  %v3094_v7 = vld [vmem:[#allocation2 + $0x14] sm:$0x1] }
  0xb3   : > { %v1651_v45 = vrot.slane %v1650_v57, 4  ;;  %v6890_v54 = vcombine.low %v2270_v43, %v2273_v62  ;;  %v1660_v56 = vor.u32 %v1659_v32, %v1655_v51  ;;  %v2277_v39 = vsel %vm8439_vm12, %v6859_v20, %v2276_v44  ;;  %v3095_v34 = vld [vmem:[#allocation2 + $0x18] sm:$0xf]  ;;  %v3097_v57 = vld [vmem:[#allocation2 + $0x20] sm:$0x1] }
  0xb4   : > { %v1268_v6 = vld [vmem:[#allocation2 + $0xb0] sm:$0x1]  ;;  %v2278_v48 = vrot.slane %v2276_v44, 4  ;;  %v1642_v9 = vsel %vm8445_vm13, %v1637_v17, %v1641_v35  ;;  %v1670_v52 = vrot.slane %v1668_v58, 4  ;;  %v1673_v50 = vrot.slane %v1671_v27, 5 }
  0xb5   : > { %v2089_v5 = vld [vmem:[#allocation2 + $0xb0] sm:$0x1]  ;;  %v1656_v46 = vsel %vm8445_vm13, %v1651_v45, %v1655_v51  ;;  %v1663_v61 = vshll.u32 %v1268_v6, 16  ;;  %v6834_v24 = vcombine.low %v1632_v2, %v1642_v9  ;;  %7689 = vmatmul.mubr.bf16.gmra.mxu0 %v6890_v54  ;;  %v1661_v12 = vrot.slane %v1660_v56, 4  ;;  %v3096_v51 = vld [vmem:[#allocation2 + $0x1c] sm:$0xf] }
  0xb6   : > { %v2279_v38 = vrot.slane %v2089_v5, 5  ;;  %v1677_v40 = vshll.u32 %v1270_v47, 16  ;;  %v1681_v8 = vshrl.u32 %v1270_v47, 16  ;;  %v1674_v21 = vor.u32 %v1673_v50, %v1670_v52  ;;  %v3100_v52 = vld [vmem:[#allocation2 + $0x2c] sm:$0x1] }
  0xb7   : > { %v1665_v10 = vrot.slane %v1663_v61, 5  ;;  %7641 = vmatmul.mubr.bf16.gmra.mxu1 %v6834_v24  ;;  %v6860_v30 = vrot.slane %v2090_v4, 9  ;;  %v2283_v23 = vrot.slane %v2091_v1, 5  ;;  %v3173_v43 = vshrl.u32 %v3092_v16, 16  ;;  %v8065_v4 = vld [vmem:[#allocation2 + $0xc] sm:$0xff]  }
  0xb8   : > { %v2280_v14 = vsel %vm8439_vm12, %v2278_v48, %v2279_v38  ;;  %v1271_v53 = vld [vmem:[#allocation2 + $0xbc] sm:$0x1]  ;;  %v1679_v11 = vrot.slane %v1677_v40, 5  ;;  %v1683_v25 = vrot.slane %v1681_v8, 4  ;;  %v1675_v63 = vrot.slane %v1674_v21, 4 }
  0xb9   : > { %v6891_v28 = vcombine.low %v2277_v39, %v2280_v14  ;;  %v2092_v49 = vld [vmem:[#allocation2 + $0xbc] sm:$0x1]  ;;  %v1666_v29 = vsel %vm8445_vm13, %v1661_v12, %v1665_v10  ;;  %v1687_v26 = vshll.u32 %v1271_v53, 16  ;;  %v2284_v31 = vsel %vm8439_vm12, %v6860_v30, %v2283_v23  ;;  %v3099_v61 = vld [vmem:[#allocation2 + $0x28] sm:$0xf] }
  0xba   : > { %v6835_v59 = vcombine.low %v1656_v46, %v1666_v29  ;;  %v2285_v0 = vrot.slane %v2283_v23, 4  ;;  %v1684_v41 = vor.u32 %v1683_v25, %v1679_v11  ;;  %v2286_v15 = vrot.slane %v2092_v49, 5  ;;  %v3098_v46 = vld [vmem:[#allocation2 + $0x24] sm:$0xf]  ;;  %v8066_v49 = vld [vmem:[#allocation2 + $0x18] sm:$0xff]  }
  0xbb   : > { %7692 = vmatprep.mubr.bf16.mxu0 %v6891_v28  ;;  %v1689_v17 = vrot.slane %v1687_v26, 5  ;;  %v1680_v60 = vsel %vm8445_vm13, %v1675_v63, %v1679_v11  ;;  %v3176_v2 = vshll.u32 %v3092_v16, 16  ;;  %v3182_v19 = vshll.u32 %v3093_v22, 16  ;;  %v3101_v29 = vld [vmem:[#allocation2 + $0x30] sm:$0xf] }
  0xbc   : > { %7644 = vmatprep.mubr.bf16.mxu1 %v6835_v59  ;;  %v3186_v55 = vshrl.u32 %v3093_v22, 16  ;;  %v1685_v32 = vrot.slane %v1684_v41, 4  ;;  %v2287_v20 = vsel %vm8439_vm12, %v2285_v0, %v2286_v15  ;;  %v3175_v44 = vrot.slane %v3173_v43, 4  ;;  %v3102_v11 = vld [vmem:[#allocation2 + $0x34] sm:$0xf]  ;;  %v8069_v59 = vld [vmem:[#allocation2 + $0x24] sm:$0xff]  }
  0xbd   : > { %v3192_v47 = vshll.u32 %v3094_v7, 16  ;;  %v6892_v58 = vcombine.low %v2284_v31, %v2287_v20  ;;  %v3178_v35 = vrot.slane %v3176_v2, 5  ;;  %v3184_v62 = vrot.slane %v3182_v19, 5  ;;  %v3103_v31 = vld [vmem:[#allocation2 + $0x38] sm:$0x1]  ;;  %v8071_v15 = vld [vmem:[%s9913_s1 + $0x170] sm:$0xff]  }
  0xbe   : > { %v3188_v45 = vrot.slane %v3186_v55, 4  ;;  %v1690_v27 = vsel %vm8445_vm13, %v1685_v32, %v1689_v17  ;;  %v3197_v6 = vshrl.u32 %v3095_v34, 16  ;;  %v3200_v56 = vshll.u32 %v3095_v34, 16 }
  0xbf   : > { %v3194_v54 = vrot.slane %v3192_v47, 5  ;;  %v6836_v5 = vcombine.low %v1680_v60, %v1690_v27  ;;  %7693 = vmatmul.mubr.bf16.gmra.mxu0 %v6892_v58  ;;  %v3179_v39 = vor.u32 %v3178_v35, %v3175_v44  ;;  %v3206_v9 = vshll.u32 %v3096_v51, 16  ;;  %v8072_v35 = vld [vmem:[%s9913_s1 + $0x1b0] sm:$0xff]  }
  0xc0   : > { %v3189_v48 = vor.u32 %v3188_v45, %v3184_v62  ;;  %v3199_v38 = vrot.slane %v3197_v6, 4  ;;  %v3202_v1 = vrot.slane %v3200_v56, 5  ;;  %v3210_v24 = vshrl.u32 %v3096_v51, 16  ;;  %v3105_v6 = vld [vmem:[#allocation2 + $0x40] sm:$0xf]  ;;  %v8075_v56 = vld [vmem:[%s9913_s1 + $0x168] sm:$0xff]  }
  0xc1   : > { %v3216_v12 = vshll.u32 %v3097_v57, 16  ;;  %7645 = vmatmul.mubr.bf16.gmra.mxu1 %v6836_v5  ;;  %v3180_v50 = vrot.slane %v3179_v39, 4  ;;  %v3208_v10 = vrot.slane %v3206_v9, 5  ;;  %v3221_v14 = vshrl.u32 %v3098_v46, 16  ;;  %v3106_v9 = vld [vmem:[#allocation2 + $0x44] sm:$0x1] }
  0xc2   : > { %v3190_v16 = vrot.slane %v3189_v48, 4  ;;  %7712 = vmatprep.mubr.bf16.mxu1 %v8065_v4  ;;  %v3203_v40 = vor.u32 %v3202_v1, %v3199_v38  ;;  %v3212_v8 = vrot.slane %v3210_v24, 4  ;;  %v3224_v28 = vshll.u32 %v3098_v46, 16  ;;  %v8070_v38 = vld [vmem:[#allocation2 + $0x30] sm:$0xff]  }
  0xc3   : > { %v3218_v22 = vrot.slane %v3216_v12, 5  ;;  %v3185_v53 = vsel %vm8445_vm13, %v3180_v50, %v3184_v62  ;;  %v3223_v30 = vrot.slane %v3221_v14, 4  ;;  %v3230_v23 = vshll.u32 %v3099_v61, 16  ;;  %v3107_v14 = vld [vmem:[#allocation2 + $0x48] sm:$0xf] }
  0xc4   : > { %v3195_v21 = vsel %vm8445_vm13, %v3190_v16, %v3194_v54  ;;  %v3204_v26 = vrot.slane %v3203_v40, 4  ;;  %v3213_v7 = vor.u32 %v3212_v8, %v3208_v10  ;;  %v3226_v63 = vrot.slane %v3224_v28, 5  ;;  %v3104_v54 = vld [vmem:[#allocation2 + $0x3c] sm:$0xf]  ;;  %v8076_v40 = vld [vmem:[%s9913_s1 + $0x1a8] sm:$0xff]  }
  0xc5   : > { %v6957_v25 = vcombine.low %v3185_v53, %v3195_v21  ;;  %v3232_v0 = vrot.slane %v3230_v23, 5  ;;  %v3234_v34 = vshrl.u32 %v3099_v61, 16  ;;  %v3240_v41 = vshll.u32 %v3100_v52, 16  ;;  %v3108_v21 = vld [vmem:[#allocation2 + $0x4c] sm:$0xf] }
  0xc6   : > { %v3245_v17 = vshrl.u32 %v3101_v29, 16  ;;  %v3209_v43 = vsel %vm8445_vm13, %v3204_v26, %v3208_v10  ;;  %v3214_v51 = vrot.slane %v3213_v7, 4  ;;  %v3227_v60 = vor.u32 %v3226_v63, %v3223_v30  ;;  %v8080_v63 = vld [vmem:[%s9913_s1 + $0x1a0] sm:$0xff]  }
  0xc7   : > { %7760 = vmatprep.mubr.bf16.mxu0 %v6957_v25  ;;  %v3248_v2 = vshll.u32 %v3101_v29, 16  ;;  %v3236_v19 = vrot.slane %v3234_v34, 4  ;;  %v3242_v55 = vrot.slane %v3240_v41, 5  ;;  %v3254_v32 = vshll.u32 %v3102_v11, 16 }
  0xc8   : > { %v3247_v57 = vrot.slane %v3245_v17, 4  ;;  %v3219_v20 = vsel %vm8445_vm13, %v3214_v51, %v3218_v22  ;;  %v3228_v44 = vrot.slane %v3227_v60, 4  ;;  %v3258_v58 = vshrl.u32 %v3102_v11, 16  ;;  %v3109_v11 = vld [vmem:[#allocation2 + $0x50] sm:$0x1]  ;;  %v8083_v60 = vld [vmem:[%s9913_s1 + $0x158] sm:$0xff]  }
  0xc9   : > { %v3250_v47 = vrot.slane %v3248_v2, 5  ;;  %7713 = vmatmul.mubr.bf16.vlgmr.msra.gmra.mxu1 %v8066_v49  ;;  %v6958_v62 = vcombine.low %v3209_v43, %v3219_v20  ;;  %v3237_v45 = vor.u32 %v3236_v19, %v3232_v0  ;;  %v3256_v27 = vrot.slane %v3254_v32, 5  ;;  %v8074_v20 = vld [vmem:[#allocation2 + $0x48] sm:$0xff]  }
  0xca   : > { %v3264_v4 = vshll.u32 %v3103_v31, 16  ;;  %7793 = vmatpush3.bf16.msra.mxu1 %v8605_v3  ;;  %7716 = vmatprep.mubr.bf16.mxu1 %v8069_v59  ;;  %v3233_v5 = vsel %vm8445_vm13, %v3228_v44, %v3232_v0  ;;  %v3260_v48 = vrot.slane %v3258_v58, 4  ;;  %v3269_v46 = vshrl.u32 %v3104_v54, 16  ;;  %v8073_v3 = vld [vmem:[#allocation2 + $0x3c] sm:$0xff]   ;;  %v3111_v58 = vld [vmem:[#allocation2 + $0x58] sm:$0xf] }
  0xcb   : > { %v3251_v39 = vor.u32 %v3250_v47, %v3247_v57  ;;  %7761 = vmatmul.mubr.bf16.vlgmr.msra.gmra.mxu0 %v6958_v62  ;;  %v3238_v61 = vrot.slane %v3237_v45, 4  ;;  %7794 = vmatprep.subr.bf16.mxu1 %v8071_v15  ;;  %v3272_v24 = vshll.u32 %v3104_v54, 16  ;;  %v3278_v12 = vshll.u32 %v3105_v6, 16  ;;  %v3110_v47 = vld [vmem:[#allocation2 + $0x54] sm:$0xf] }
  0xcc   : > { %v3266_v1 = vrot.slane %v3264_v4, 5  ;;  %7841 = vmatpush3.bf16.msra.mxu0 %v8594_v37  ;;  %v3261_v50 = vor.u32 %v3260_v48, %v3256_v27  ;;  %v3271_v16 = vrot.slane %v3269_v46, 4  ;;  %v3282_v10 = vshrl.u32 %v3105_v6, 16  ;;  %v8079_v37 = vld [vmem:[%s9913_s1 + $0x160] sm:$0xff]   ;;  %v8077_v4 = vld [vmem:[#allocation2 + $0x54] sm:$0xff]  }
  0xcd   : > { %v3252_v52 = vrot.slane %v3251_v39, 4  ;;  %v3243_v8 = vsel %vm8445_vm13, %v3238_v61, %v3242_v55  ;;  %7842 = vmatprep.subr.bf16.mxu0 %v8072_v35  ;;  %v3274_v22 = vrot.slane %v3272_v24, 5  ;;  %v3280_v28 = vrot.slane %v3278_v12, 5  ;;  %v3113_v48 = vld [vmem:[#allocation2 + $0x60] sm:$0xf] }
  0xce   : > { %v3288_v53 = vshll.u32 %v3106_v9, 16  ;;  %v6959_v49 = vcombine.low %v3233_v5, %v3243_v8  ;;  %v3262_v23 = vrot.slane %v3261_v50, 4  ;;  %7795 = vmatpush3.bf16.msra.mxu1 %v8071_v15  ;;  %v3284_v29 = vrot.slane %v3282_v10, 4  ;;  %v8084_v9 = vld [vmem:[%s9913_s1 + $0x198] sm:$0xff]   ;;  %v3114_v24 = vld [vmem:[#allocation2 + $0x64] sm:$0xf] }
  0xcf   : > { %v3257_v30 = vsel %vm8445_vm13, %v3252_v52, %v3256_v27  ;;  %v3275_v25 = vor.u32 %v3274_v22, %v3271_v16  ;;  %v3293_v7 = vshrl.u32 %v3107_v14, 16  ;;  %v3296_v59 = vshll.u32 %v3107_v14, 16  ;;  %7796 = vmatprep.subr.bf16.mxu1 %v8075_v56  ;;  %v8087_v10 = vld [vmem:[%s9913_s1 + $0x150] sm:$0xff]  }
  0xd0   : > { %v3290_v26 = vrot.slane %v3288_v53, 5  ;;  %7764 = vmatprep.mubr.bf16.mxu0 %v6959_v49  ;;  %v3267_v31 = vsel %vm8445_vm13, %v3262_v23, %v3266_v1  ;;  %7843 = vmatpush3.bf16.msra.mxu0 %v8072_v35  ;;  %v3285_v0 = vor.u32 %v3284_v29, %v3280_v28  ;;  %v3302_v34 = vshll.u32 %v3108_v21, 16  ;;  %v3112_v35 = vld [vmem:[#allocation2 + $0x5c] sm:$0x1] }
  0xd1   : > { %v3306_v41 = vshrl.u32 %v3108_v21, 16  ;;  %7717 = vmatmul.mubr.bf16.gmra.mxu1 %v8070_v38  ;;  %v6960_v17 = vcombine.low %v3257_v30, %v3267_v31  ;;  %v3276_v15 = vrot.slane %v3275_v25, 4  ;;  %v3295_v43 = vrot.slane %v3293_v7, 4  ;;  %7844 = vmatprep.subr.bf16.mxu0 %v8076_v40  ;;  %v8091_v25 = vld [vmem:[%s9913_s1 + $0x148] sm:$0xff]   ;;  %v8078_v7 = vld [vmem:[#allocation2 + $0x60] sm:$0xff]  }
  0xd2   : > { %v3298_v51 = vrot.slane %v3296_v59, 5  ;;  %7720 = vmatprep.mubr.bf16.mxu1 %v8073_v3  ;;  %v3286_v2 = vrot.slane %v3285_v0, 4  ;;  %v3304_v19 = vrot.slane %v3302_v34, 5  ;;  %v3312_v57 = vshll.u32 %v3109_v11, 16  ;;  %7797 = vmatpush3.bf16.msra.mxu1 %v8075_v56  ;;  %v3115_v3 = vld [vmem:[#allocation2 + $0x68] sm:$0x1] }
  0xd3   : > { %v3308_v55 = vrot.slane %v3306_v41, 4  ;;  %7765 = vmatmul.mubr.bf16.gmra.mxu0 %v6960_v17  ;;  %v3281_v32 = vsel %vm8445_vm13, %v3276_v15, %v3280_v28  ;;  %7798 = vmatprep.subr.bf16.mxu1 %v8079_v37  ;;  %v3317_v54 = vshrl.u32 %v3110_v47, 16  ;;  %v3320_v5 = vshll.u32 %v3110_v47, 16  ;;  %v8088_v28 = vld [vmem:[%s9913_s1 + $0x190] sm:$0xff]   ;;  %v3116_v17 = vld [vmem:[#allocation2 + $0x6c] sm:$0xf] }
  0xd4   : > { %v3299_v44 = vor.u32 %v3298_v51, %v3295_v43  ;;  %v3291_v62 = vsel %vm8445_vm13, %v3286_v2, %v3290_v26  ;;  %v3314_v27 = vrot.slane %v3312_v57, 5  ;;  %7845 = vmatpush3.bf16.msra.mxu0 %v8076_v40  ;;  %v3326_v39 = vshll.u32 %v3111_v58, 16  ;;  %v8081_v41 = vld [vmem:[#allocation2 + $0x6c] sm:$0xff]   ;;  %v3118_v51 = vld [vmem:[#allocation2 + $0x74] sm:$0x1] }
  0xd5   : > { %v3309_v45 = vor.u32 %v3308_v55, %v3304_v19  ;;  %v6961_v6 = vcombine.low %v3281_v32, %v3291_v62  ;;  %7846 = vmatprep.subr.bf16.mxu0 %v8080_v63  ;;  %v3319_v61 = vrot.slane %v3317_v54, 4  ;;  %v3330_v38 = vshrl.u32 %v3111_v58, 16  ;;  %v3117_v43 = vld [vmem:[#allocation2 + $0x70] sm:$0xf]  ;;  %v3119_v62 = vld [vmem:[#allocation2 + $0x78] sm:$0xf] }
  0xd6   : > { %v3300_v56 = vrot.slane %v3299_v44, 4  ;;  %v3336_v1 = vshll.u32 %v3112_v35, 16  ;;  %7799 = vmatpush3.bf16.msra.mxu1 %v8079_v37  ;;  %v3322_v52 = vrot.slane %v3320_v5, 5  ;;  %v3328_v50 = vrot.slane %v3326_v39, 5 }
  0xd7   : > { %v3310_v46 = vrot.slane %v3309_v45, 4  ;;  %7768 = vmatprep.mubr.bf16.mxu0 %v6961_v6  ;;  %v3341_v16 = vshrl.u32 %v3113_v48, 16  ;;  %7800 = vmatprep.subr.bf16.mxu1 %v8083_v60  ;;  %v3332_v40 = vrot.slane %v3330_v38, 4  ;;  %v3344_v22 = vshll.u32 %v3113_v48, 16  ;;  %v8095_v45 = vld [vmem:[%s9913_s1 + $0x140] sm:$0xff]  }
  0xd8   : > { %v3305_v12 = vsel %vm8445_vm13, %v3300_v56, %v3304_v19  ;;  %v3338_v8 = vrot.slane %v3336_v1, 5  ;;  %7847 = vmatpush3.bf16.msra.mxu0 %v8080_v63  ;;  %v3323_v21 = vor.u32 %v3322_v52, %v3319_v61  ;;  %v3350_v49 = vshll.u32 %v3114_v24, 16  ;;  %v8092_v19 = vld [vmem:[%s9913_s1 + $0x188] sm:$0xff]   ;;  %v3120_v56 = vld [vmem:[#allocation2 + $0x7c] sm:$0xf]  ;;  %v8096_v61 = vld [vmem:[%s9913_s1 + $0x180] sm:$0xff]  }
  0xd9   : > { %v3315_v14 = vsel %vm8445_vm13, %v3310_v46, %v3314_v27  ;;  %7721 = vmatmul.mubr.bf16.gmra.mxu1 %v8074_v20  ;;  %v3343_v37 = vrot.slane %v3341_v16, 4  ;;  %7848 = vmatprep.subr.bf16.mxu0 %v8084_v9  ;;  %v3333_v30 = vor.u32 %v3332_v40, %v3328_v50  ;;  %v3346_v23 = vrot.slane %v3344_v22, 5  ;;  %v3121_v48 = vld [vmem:[#allocation2 + $0x80] sm:$0x1]  ;;  %v8800_v52 = vld [vmem:[%s9913_s1 + $0x1f8] sm:$0xff]  }
  0xda   : > { %v6962_v53 = vcombine.low %v3305_v12, %v3315_v14  ;;  %7724 = vmatprep.mubr.bf16.mxu1 %v8077_v4  ;;  %v3354_v29 = vshrl.u32 %v3114_v24, 16  ;;  %v3360_v11 = vshll.u32 %v3115_v3, 16  ;;  %7801 = vmatpush3.bf16.msra.mxu1 %v8083_v60  ;;  %v3324_v26 = vrot.slane %v3323_v21, 4 }
  0xdb   : > { %v3352_v59 = vrot.slane %v3350_v49, 5  ;;  %7802 = vmatprep.subr.bf16.mxu1 %v8087_v10  ;;  %v3334_v63 = vrot.slane %v3333_v30, 4  ;;  %v3347_v31 = vor.u32 %v3346_v23, %v3343_v37  ;;  %v3365_v60 = vshrl.u32 %v3116_v17, 16  ;;  %v8807_v37 = vld [vmem:[%s9913_s1 + $0x238] sm:$0xff]  }
  0xdc   : > { %7769 = vmatmul.mubr.bf16.gmra.mxu0 %v6962_v53  ;;  %v3356_v0 = vrot.slane %v3354_v29, 4  ;;  %v3362_v34 = vrot.slane %v3360_v11, 5  ;;  %v3329_v15 = vsel %vm8445_vm13, %v3324_v26, %v3328_v50  ;;  %v3368_v2 = vshll.u32 %v3116_v17, 16  ;;  %v8085_v29 = vld [vmem:[#allocation2 + $0x84] sm:$0xff]  }
  0xdd   : > { %7849 = vmatpush3.bf16.msra.mxu0 %v8084_v9  ;;  %v3339_v55 = vsel %vm8445_vm13, %v3334_v63, %v3338_v8  ;;  %v3348_v57 = vrot.slane %v3347_v31, 4  ;;  %v3374_v20 = vshll.u32 %v3117_v43, 16  ;;  %v3367_v47 = vrot.slane %v3365_v60, 4  ;;  %v3122_v11 = vld [vmem:[#allocation2 + $0x84] sm:$0xf] }
  0xde   : > { %7850 = vmatprep.subr.bf16.mxu0 %v8088_v28  ;;  %v3357_v32 = vor.u32 %v3356_v0, %v3352_v59  ;;  %7803 = vmatpush3.bf16.msra.mxu1 %v8087_v10  ;;  %v6963_v44 = vcombine.low %v3329_v15, %v3339_v55  ;;  %v3370_v58 = vrot.slane %v3368_v2, 5  ;;  %v3378_v35 = vshrl.u32 %v3117_v43, 16  ;;  %v8082_v10 = vld [vmem:[#allocation2 + $0x78] sm:$0xff]  }
  0xdf   : > { %7804 = vmatprep.subr.bf16.mxu1 %v8091_v25  ;;  %v3353_v27 = vsel %vm8445_vm13, %v3348_v57, %v3352_v59  ;;  %v3376_v54 = vrot.slane %v3374_v20, 5  ;;  %v3384_v6 = vshll.u32 %v3118_v51, 16  ;;  %v3389_v9 = vshrl.u32 %v3119_v62, 16  ;;  %v3125_v57 = vld [vmem:[#allocation2 + $0x90] sm:$0xf] }
  0xe0   : > { %v3358_v4 = vrot.slane %v3357_v32, 4  ;;  %7772 = vmatprep.mubr.bf16.mxu0 %v6963_v44  ;;  %v3371_v5 = vor.u32 %v3370_v58, %v3367_v47  ;;  %v3380_v39 = vrot.slane %v3378_v35, 4  ;;  %v3392_v46 = vshll.u32 %v3119_v62, 16  ;;  %v3126_v32 = vld [vmem:[#allocation2 + $0x94] sm:$0xf] }
  0xe1   : > { %7851 = vmatpush3.bf16.msra.mxu0 %v8088_v28  ;;  %7725 = vmatmul.mubr.bf16.gmra.mxu1 %v8078_v7  ;;  %v3386_v1 = vrot.slane %v3384_v6, 5  ;;  %v3398_v24 = vshll.u32 %v3120_v56, 16  ;;  %v3402_v12 = vshrl.u32 %v3120_v56, 16  ;;  %v3391_v14 = vrot.slane %v3389_v9, 4  ;;  %v3124_v7 = vld [vmem:[#allocation2 + $0x8c] sm:$0x1] }
  0xe2   : > { %v3363_v38 = vsel %vm8445_vm13, %v3358_v4, %v3362_v34  ;;  %7728 = vmatprep.mubr.bf16.mxu1 %v8081_v41  ;;  %7805 = vmatpush3.bf16.msra.mxu1 %v8091_v25  ;;  %v3372_v3 = vrot.slane %v3371_v5, 4  ;;  %v3381_v16 = vor.u32 %v3380_v39, %v3376_v54  ;;  %v3394_v40 = vrot.slane %v3392_v46, 5  ;;  %v3123_v25 = vld [vmem:[#allocation2 + $0x88] sm:$0xf]  ;;  %v3127_v58 = vld [vmem:[#allocation2 + $0x98] sm:$0x1] }
  0xe3   : > { %v6964_v50 = vcombine.low %v3353_v27, %v3363_v38  ;;  %7852 = vmatprep.subr.bf16.mxu0 %v8092_v19  ;;  %7806 = vmatprep.subr.bf16.mxu1 %v8095_v45  ;;  %v3400_v8 = vrot.slane %v3398_v24, 5  ;;  %v3404_v22 = vrot.slane %v3402_v12, 4  ;;  %v3408_v28 = vshll.u32 %v3121_v48, 16  ;;  %v8089_v39 = vld [vmem:[#allocation2 + $0x9c] sm:$0xff]  }
  0xe4   : > { %v3377_v53 = vsel %vm8445_vm13, %v3372_v3, %v3376_v54  ;;  %v3382_v21 = vrot.slane %v3381_v16, 4  ;;  %v3395_v49 = vor.u32 %v3394_v40, %v3391_v14  ;;  %v3413_v59 = vshrl.u32 %v3122_v11, 16  ;;  %v3128_v14 = vld [vmem:[#allocation2 + $0x9c] sm:$0xf]  ;;  %v3129_v40 = vld [vmem:[#allocation2 + $0xa0] sm:$0xf] }
  0xe5   : > { %7853 = vmatpush3.bf16.msra.mxu0 %v8092_v19  ;;  %v3405_v30 = vor.u32 %v3404_v22, %v3400_v8  ;;  %v3410_v23 = vrot.slane %v3408_v28, 5  ;;  %v3416_v63 = vshll.u32 %v3122_v11, 16  ;;  %v3422_v31 = vshll.u32 %v3123_v25, 16 }
  0xe6   : > { %7773 = vmatmul.mubr.bf16.gmra.mxu0 %v6964_v50  ;;  %7854 = vmatprep.subr.bf16.mxu0 %v8096_v61  ;;  %v3387_v26 = vsel %vm8445_vm13, %v3382_v21, %v3386_v1  ;;  %v3396_v34 = vrot.slane %v3395_v49, 4  ;;  %v3426_v17 = vshrl.u32 %v3123_v25, 16  ;;  %v3415_v15 = vrot.slane %v3413_v59, 4  ;;  %v8090_v59 = vld [vmem:[#allocation2 + $0xa8] sm:$0xff]  }
  0xe7   : > { %7807 = vmatpush3.bf16.msra.mxu1 %v8095_v45  ;;  %v6965_v0 = vcombine.low %v3377_v53, %v3387_v26  ;;  %v3406_v41 = vrot.slane %v3405_v30, 4  ;;  %v3418_v43 = vrot.slane %v3416_v63, 5  ;;  %v3424_v51 = vrot.slane %v3422_v31, 5  ;;  %v8086_v45 = vld [vmem:[#allocation2 + $0x90] sm:$0xff]   ;;  %v3131_v63 = vld [vmem:[#allocation2 + $0xa8] sm:$0xf] }
  0xe8   : > { %7888 = vmatprep.subr.bf16.mxu1 %v8800_v52  ;;  %v3432_v60 = vshll.u32 %v3124_v7, 16  ;;  %v3401_v2 = vsel %vm8445_vm13, %v3396_v34, %v3400_v8  ;;  %v3428_v55 = vrot.slane %v3426_v17, 4  ;;  %v3437_v35 = vshrl.u32 %v3125_v57, 16  ;;  %v3130_v8 = vld [vmem:[#allocation2 + $0xa4] sm:$0x1] }
  0xe9   : > { %7855 = vmatpush3.bf16.msra.mxu0 %v8096_v61  ;;  %7729 = vmatmul.mubr.bf16.gmra.mxu1 %v8082_v10  ;;  %v3411_v19 = vsel %vm8445_vm13, %v3406_v41, %v3410_v23  ;;  %v3419_v44 = vor.u32 %v3418_v43, %v3415_v15  ;;  %v3440_v27 = vshll.u32 %v3125_v57, 16  ;;  %v3446_v4 = vshll.u32 %v3126_v32, 16  ;;  %v3132_v15 = vld [vmem:[#allocation2 + $0xac] sm:$0xf]  ;;  %v3133_v43 = vld [vmem:[#allocation2 + $0xb0] sm:$0x1] }
  0xea   : > { %7936 = vmatprep.subr.bf16.mxu0 %v8807_v37  ;;  %7776 = vmatprep.mubr.bf16.mxu0 %v6965_v0  ;;  %v6966_v20 = vcombine.low %v3401_v2, %v3411_v19  ;;  %v3434_v47 = vrot.slane %v3432_v60, 5  ;;  %v3429_v62 = vor.u32 %v3428_v55, %v3424_v51  ;;  %v3450_v54 = vshrl.u32 %v3126_v32, 16 }
  0xeb   : > { %7732 = vmatprep.mubr.bf16.mxu1 %v8085_v29  ;;  %v3420_v6 = vrot.slane %v3419_v44, 4  ;;  %v3439_v56 = vrot.slane %v3437_v35, 4  ;;  %v3456_v5 = vshll.u32 %v3127_v58, 16  ;;  %v3442_v61 = vrot.slane %v3440_v27, 5 }
  0xec   : > { %v3430_v46 = vrot.slane %v3429_v62, 4  ;;  %v3448_v38 = vrot.slane %v3446_v4, 5  ;;  %v3452_v1 = vrot.slane %v3450_v54, 4  ;;  %v3461_v53 = vshrl.u32 %v3128_v14, 16 }
  0xed   : > { %v3425_v24 = vsel %vm8445_vm13, %v3420_v6, %v3424_v51  ;;  %v3458_v12 = vrot.slane %v3456_v5, 5  ;;  %v3443_v16 = vor.u32 %v3442_v61, %v3439_v56  ;;  %v3464_v21 = vshll.u32 %v3128_v14, 16  ;;  %v3135_v61 = vld [vmem:[#allocation2 + $0xb8] sm:$0xf] }
  0xee   : > { %7777 = vmatmul.mubr.bf16.gmra.mxu0 %v6966_v20  ;;  %v3435_v3 = vsel %vm8445_vm13, %v3430_v46, %v3434_v47  ;;  %v3453_v10 = vor.u32 %v3452_v1, %v3448_v38  ;;  %v3470_v49 = vshll.u32 %v3129_v40, 16  ;;  %v3474_v29 = vshrl.u32 %v3129_v40, 16  ;;  %v8093_v47 = vld [vmem:[#allocation2 + $0xb4] sm:$0xff]  }
  0xef   : > { %v6967_v28 = vcombine.low %v3425_v24, %v3435_v3  ;;  %v3444_v30 = vrot.slane %v3443_v16, 4  ;;  %v3480_v11 = vshll.u32 %v3130_v8, 16  ;;  %v3463_v25 = vrot.slane %v3461_v53, 4  ;;  %v3134_v46 = vld [vmem:[#allocation2 + $0xb4] sm:$0xf] }
  0xf0   : > { %v3454_v23 = vrot.slane %v3453_v10, 4  ;;  %v3466_v26 = vrot.slane %v3464_v21, 5  ;;  %v3472_v7 = vrot.slane %v3470_v49, 5  ;;  %v3476_v41 = vrot.slane %v3474_v29, 4  ;;  %v3136_v24 = vld [vmem:[#allocation2 + $0xbc] sm:$0x1] }
  0xf1   : > { %7733 = vmatmul.mubr.bf16.gmra.mxu1 %v8086_v45  ;;  %7780 = vmatprep.mubr.bf16.mxu0 %v6967_v28  ;;  %v3449_v0 = vsel %vm8445_vm13, %v3444_v30, %v3448_v38  ;;  %v3482_v17 = vrot.slane %v3480_v11, 5  ;;  %v3485_v19 = vshrl.u32 %v3131_v63, 16  ;;  %v3488_v55 = vshll.u32 %v3131_v63, 16  ;;  %v246_v16 = vld [vmem:[%s8196_s26 + $0x78] sm:$0xf] }
  0xf2   : > { %7736 = vmatprep.mubr.bf16.mxu1 %v8089_v39  ;;  %v3459_v34 = vsel %vm8445_vm13, %v3454_v23, %v3458_v12  ;;  %v3467_v2 = vor.u32 %v3466_v26, %v3463_v25  ;;  %v3477_v57 = vor.u32 %v3476_v41, %v3472_v7  ;;  %v3494_v32 = vshll.u32 %v3132_v15, 16  ;;  %v247_v23 = vld [vmem:[%s8196_s26 + $0x7c] sm:$0xf]  ;;  %v736_v41 = vld [vmem:[#allocation2 + $0xc0] sm:$0xf] }
  0xf3   : > { %v8817_v48 = vpop.f32.mrf.mxu0  ;;  %v6968_v60 = vcombine.low %v3449_v0, %v3459_v34  ;;  %v3498_v20 = vshrl.u32 %v3132_v15, 16  ;;  %v3504_v44 = vshll.u32 %v3133_v43, 16  ;;  %v3487_v35 = vrot.slane %v3485_v19, 4 }
  0xf4   : > { %v8819_v9 = vpop.f32.mrf.mxu1  ;;  %v3468_v58 = vrot.slane %v3467_v2, 4  ;;  %v3490_v62 = vrot.slane %v3488_v55, 5  ;;  %v3478_v27 = vrot.slane %v3477_v57, 4  ;;  %v3496_v4 = vrot.slane %v3494_v32, 5  ;;  %v3910_v57 = vld [vmem:[#allocation2 + $0xc] sm:$0xe] }
  0xf5   : > { %v8823_v50 = vpop.f32.mrf.mxu0  ;;  %v3500_v54 = vrot.slane %v3498_v20, 4  ;;  %v3506_v6 = vrot.slane %v3504_v44, 5  ;;  %v3509_v12 = vshrl.u32 %v3134_v46, 16  ;;  %v3512_v3 = vshll.u32 %v3134_v46, 16  ;;  %v3911_v32 = vld [vmem:[#allocation2 + $0x10] sm:$0xf] }
  0xf6   : > { %v8827_v22 = vpop.f32.mrf.mxu1  ;;  %7781 = vmatmul.mubr.bf16.gmra.mxu0 %v6968_v60  ;;  %v3473_v5 = vsel %vm8445_vm13, %v3468_v58, %v3472_v7  ;;  %v3491_v39 = vor.u32 %v3490_v62, %v3487_v35  ;;  %v3483_v38 = vsel %vm8445_vm13, %v3478_v27, %v3482_v17  ;;  %v3518_v40 = vshll.u32 %v3135_v61, 16  ;;  %v3912_v62 = vld [vmem:[#allocation2 + $0x14] sm:$0x1] }
  0xf7   : > { %v8829_v31 = vpop.f32.mrf.mxu0  ;;  %v3501_v1 = vor.u32 %v3500_v54, %v3496_v4  ;;  %v6969_v10 = vcombine.low %v3473_v5, %v3483_v38  ;;  %v3522_v8 = vshrl.u32 %v3135_v61, 16  ;;  %v3511_v21 = vrot.slane %v3509_v12, 4  ;;  %v3913_v12 = vld [vmem:[#allocation2 + $0x18] sm:$0xe] }
  0xf8   : > { %v8835_v51 = vpop.f32.mrf.mxu1  ;;  %v3492_v14 = vrot.slane %v3491_v39, 4  ;;  %v3514_v49 = vrot.slane %v3512_v3, 5  ;;  %v3528_v30 = vshll.u32 %v3136_v24, 16  ;;  %v3520_v25 = vrot.slane %v3518_v40, 5  ;;  %v3914_v3 = vld [vmem:[#allocation2 + $0x1c] sm:$0xf] }
  0xf9   : > { %v8837_v45 = vpop.f32.mrf.mxu0  ;;  %7737 = vmatmul.mubr.bf16.gmra.mxu1 %v8090_v59  ;;  %v3502_v53 = vrot.slane %v3501_v1, 4  ;;  %7784 = vmatprep.mubr.bf16.mxu0 %v6969_v10  ;;  %v3524_v26 = vrot.slane %v3522_v8, 4  ;;  %v561_v7 = vshrl.u32 %v246_v16, 16  ;;  %v564_v34 = vshll.u32 %v246_v16, 16 }
  0xfa   : > { %v8839_v56 = vpop.f32.mrf.mxu1  ;;  %7740 = vmatprep.mubr.bf16.mxu1 %v8093_v47  ;;  %v3497_v11 = vsel %vm8445_vm13, %v3492_v14, %v3496_v4  ;;  %v3515_v63 = vor.u32 %v3514_v49, %v3511_v21  ;;  %v3530_v0 = vrot.slane %v3528_v30, 5  ;;  %v569_v60 = vshrl.u32 %v247_v23, 16  ;;  %v740_v4 = vld [vmem:[#allocation2 + $0xc8] sm:$0x1]  ;;  %v3918_v30 = vld [vmem:[#allocation2 + $0x2c] sm:$0x1] }
  0xfb   : > { %v3507_v59 = vsel %vm8445_vm13, %v3502_v53, %v3506_v6  ;;  %v3525_v15 = vor.u32 %v3524_v26, %v3520_v25  ;;  %v563_v43 = vrot.slane %v561_v7, 7  ;;  %v572_v55 = vshll.u32 %v247_v23, 16  ;;  %v3916_v53 = vld [vmem:[#allocation2 + $0x24] sm:$0xe]  ;;  %v3917_v49 = vld [vmem:[#allocation2 + $0x28] sm:$0xf] }
  0xfc   : > { %v6970_v17 = vcombine.low %v3497_v11, %v3507_v59  ;;  %v3516_v19 = vrot.slane %v3515_v63, 4  ;;  %v571_v35 = vrot.slane %v569_v60, 7  ;;  %v4040_v54 = vrot.slane %v3911_v32, 5  ;;  %v3919_v60 = vld [vmem:[#allocation2 + $0x30] sm:$0xe] }
  0xfd   : > { %v3526_v44 = vrot.slane %v3525_v15, 4  ;;  %v566_v47 = vor.u32 %v564_v34, %v563_v43  ;;  %v567_v58 = vrot.slane %v563_v43, 4  ;;  %v6981_v1 = vrot.slane %v3910_v57, 9  ;;  %v3920_v34 = vld [vmem:[#allocation2 + $0x34] sm:$0xf] }
  0xfe   : > { %7785 = vmatmul.mubr.bf16.gmra.mxu0 %v6970_v17  ;;  %v3521_v27 = vsel %vm8445_vm13, %v3516_v19, %v3520_v25  ;;  %v574_v5 = vor.u32 %v572_v55, %v571_v35  ;;  %v576_v39 = vrot.slane %v571_v35, 4  ;;  %v4043_v24 = vrot.slane %v3912_v62, 5  ;;  %v3921_v19 = vld [vmem:[#allocation2 + $0x38] sm:$0x1] }
  0xff   : > { %v3531_v6 = vsel %vm8445_vm13, %v3526_v44, %v3530_v0  ;;  %v737_v46 = vsel %vm8218_vm6, %v566_v47, %v736_v41  ;;  %v4042_v40 = vrot.slane %v4040_v54, 4  ;;  %v4047_v8 = vrot.slane %v3914_v3, 5 }
 0x100   : > { %v8846_v28 = vpop.f32.mrf.mxu0  ;;  %v6971_v38 = vcombine.low %v3521_v27, %v3531_v6  ;;  %738 = vst [vmem:[#allocation2 + $0xc0] sm:$0xf] %v737_v46  ;;  %v575_v10 = vsel %vm8209_vm5, %v567_v58, %v574_v5  ;;  %v741_v14 = vsel %vm8232_vm7, %v576_v39, %v740_v4  ;;  %v4041_v13 = vsel %vm8439_vm12, %v6981_v1, %v4040_v54 }
 0x101   : > { %739 = vst [vmem:[#allocation2 + $0xc4] sm:$0xf] %v575_v10  ;;  %742 = vst [vmem:[#allocation2 + $0xc8] sm:$0x1] %v741_v14  ;;  %v4044_v36 = vsel %vm8439_vm12, %v4042_v40, %v4043_v24  ;;  %v6982_v11 = vrot.slane %v3913_v12, 9  ;;  %v4054_v25 = vrot.slane %v3917_v49, 5 }
 0x102   : > { %v8855_v2 = vpop.f32.mrf.mxu0  ;;  %7788 = vmatprep.mubr.bf16.mxu0 %v6971_v38  ;;  %v4049_v26 = vrot.slane %v4047_v8, 4  ;;  %v4050_v7 = vrot.slane %v3915_v18, 5  ;;  %v6983_v59 = vrot.slane %v3916_v53, 9  ;;  %v4057_v63 = vrot.slane %v3918_v30, 5  ;;  %v3922_v40 = vld [vmem:[#allocation2 + $0x3c] sm:$0xe] }
 0x103   : > { %v8849_v29 = vpop.f32.mrf.mxu1  ;;  %v7013_v43 = vcombine.low %v4041_v13, %v4044_v36  ;;  %v4056_v44 = vrot.slane %v4054_v25, 4  ;;  %v4048_v54 = vsel %vm8439_vm12, %v6982_v11, %v4047_v8  ;;  %v4061_v6 = vrot.slane %v3920_v34, 5  ;;  %v3923_v49 = vld [vmem:[#allocation2 + $0x40] sm:$0xf]  ;;  %v3924_v30 = vld [vmem:[#allocation2 + $0x44] sm:$0x1] }
 0x104   : > { %v8865_v61 = vpop.f32.mrf.mxu0  ;;  %v4051_v1 = vsel %vm8439_vm12, %v4049_v26, %v4050_v7  ;;  %v4055_v12 = vsel %vm8439_vm12, %v6983_v59, %v4054_v25  ;;  %v6984_v10 = vrot.slane %v3919_v60, 9  ;;  %v4064_v14 = vrot.slane %v3921_v19, 5  ;;  %v8097_v34 = vld [vmem:[#allocation2 + $0x18] sm:$0xff]  }
 0x105   : > { %v8857_v20 = vpop.f32.mrf.mxu1  ;;  %v4058_v3 = vsel %vm8439_vm12, %v4056_v44, %v4057_v63  ;;  %v7014_v13 = vcombine.low %v4048_v54, %v4051_v1  ;;  %v4063_v36 = vrot.slane %v4061_v6, 4  ;;  %v4068_v11 = vrot.slane %v3923_v49, 5  ;;  %v8101_v49 = vld [vmem:[#allocation2 + $0x30] sm:$0xff]  }
 0x106   : > { %9928 = vst [vmem:[#allocation4_spill] sm:$0xff] %v8857_v20  ;;  %v8873_v21 = vpop.f32.mrf.mxu0  ;;  %v7015_v59 = vcombine.low %v4055_v12, %v4058_v3  ;;  %v4071_v60 = vrot.slane %v3924_v30, 5  ;;  %v8098_v12 = vld [vmem:[#allocation2 + $0x24] sm:$0xff]  }
 0x107   : > { %v8867_v16 = vpop.f32.mrf.mxu1  ;;  %v3137_v0 = vld [vmem:[#allocation2 + $0xc0] sm:$0xf] }
 0x108   : > { %9929 = vst [vmem:[#allocation5_spill] sm:$0xff] %v8867_v16  ;;  %v3533_v17 = vshrl.u32 %v3137_v0, 16  ;;  %v3536_v15 = vshll.u32 %v3137_v0, 16  ;;  %v8094_v57 = vld [vmem:[#allocation2 + $0xc0] sm:$0xff]   ;;  %v3139_v47 = vld [vmem:[#allocation2 + $0xc8] sm:$0x1] }
 0x109   : > { %v8875_v23 = vpop.f32.mrf.mxu1  ;;  %v3138_v32 = vld [vmem:[#allocation2 + $0xc4] sm:$0xf]  ;;  %7741 = vmatmul.mubr.bf16.gmra.mxu1 %v8094_v57  ;;  %v3552_v4 = vshll.u32 %v3139_v47, 16  ;;  %v3926_v0 = vld [vmem:[#allocation2 + $0x4c] sm:$0xf]  ;;  %v4062_v47 = vsel %vm8439_vm12, %v6984_v10, %v4061_v6 }
 0x10a   : > { %9930 = vst [vmem:[#allocation6_spill] sm:$0xff] %v8875_v23  ;;  %v3535_v58 = vrot.slane %v3533_v17, 4  ;;  %v3538_v35 = vrot.slane %v3536_v15, 5  ;;  %v3542_v62 = vshll.u32 %v3138_v32, 16  ;;  %v3546_v27 = vshrl.u32 %v3138_v32, 16  ;;  %7808 = vmatprep.mubr.bf16.mxu1 %v7013_v43  ;;  %v8103_v17 = vld [vmem:[%s9913_s1 + $0x1f0] sm:$0xff]  }
 0x10b   : > { %v3554_v53 = vrot.slane %v3552_v4, 5  ;;  %v6985_v15 = vrot.slane %v3922_v40, 9  ;;  %v4070_v43 = vrot.slane %v4068_v11, 4  ;;  %v3925_v57 = vld [vmem:[#allocation2 + $0x48] sm:$0xe] }
 0x10c   : > { %v3539_v39 = vor.u32 %v3538_v35, %v3535_v58  ;;  %v3544_v46 = vrot.slane %v3542_v62, 5  ;;  %v3548_v38 = vrot.slane %v3546_v27, 4  ;;  %v3927_v32 = vld [vmem:[#allocation2 + $0x50] sm:$0x1]  ;;  %v4065_v58 = vsel %vm8439_vm12, %v4063_v36, %v4064_v14  ;;  %v3928_v27 = vld [vmem:[#allocation2 + $0x54] sm:$0xe] }
 0x10d   : > { %v4075_v35 = vrot.slane %v3926_v0, 5  ;;  %v4069_v54 = vsel %vm8439_vm12, %v6985_v15, %v4068_v11  ;;  %v4072_v6 = vsel %vm8439_vm12, %v4070_v43, %v4071_v60  ;;  %v6986_v3 = vrot.slane %v3925_v57, 9  ;;  %v8931_v36 = vld [vmem:[#allocation2 + $0x68] sm:$0x1]  ;;  %v8104_v0 = vld [vmem:[%s9913_s1 + $0x230] sm:$0xff]  }
 0x10e   : > { %v8881_v41 = vpop.f32.mrf.mxu0  ;;  %v3540_v8 = vrot.slane %v3539_v39, 4  ;;  %v3549_v18 = vor.u32 %v3548_v38, %v3544_v46  ;;  %v8107_v39 = vld [vmem:[%s9913_s1 + $0x1e8] sm:$0xff]   ;;  %v3930_v38 = vld [vmem:[#allocation2 + $0x5c] sm:$0x1]  ;;  %v4078_v14 = vrot.slane %v3927_v32, 5  ;;  %v6987_v40 = vrot.slane %v3928_v27, 9 }
 0x10f   : > { %v4077_v10 = vrot.slane %v4075_v35, 4  ;;  %v7017_v30 = vcombine.low %v4069_v54, %v4072_v6  ;;  %v3935_v43 = vld [vmem:[#allocation2 + $0x70] sm:$0xf]  ;;  %v4092_v54 = vrot.slane %v8931_v36, 5  ;;  %v3936_v6 = vld [vmem:[#allocation2 + $0x74] sm:$0x1] }
 0x110   : > { %v8887_v5 = vpop.f32.mrf.mxu0  ;;  %v3545_v7 = vsel %vm8445_vm13, %v3540_v8, %v3544_v46  ;;  %v3550_v25 = vrot.slane %v3549_v18, 4  ;;  %v3929_v46 = vld [vmem:[#allocation2 + $0x58] sm:$0xf]  ;;  %v8924_v8 = vld [vmem:[#allocation2 + $0x64] sm:$0xf]  ;;  %v4099_v36 = vrot.slane %v3936_v6, 5 }
 0x111   : > { %7809 = vmatmul.mubr.bf16.vlgmr.msra.gmra.mxu1 %v7014_v13  ;;  %v4082_v1 = vrot.slane %v3929_v46, 5  ;;  %v8111_v18 = vld [vmem:[%s9913_s1 + $0x1e0] sm:$0xff]   ;;  %v4079_v57 = vsel %vm8439_vm12, %v4077_v10, %v4078_v14  ;;  %v4968_v16 = vld [vmem:[#allocation2 + $0x4c] sm:$0xf] }
 0x112   : > { %v8883_v55 = vpop.f32.mrf.mxu1  ;;  %v8897_v26 = vpop.f32.mrf.mxu0  ;;  %v3555_v19 = vsel %vm8445_vm13, %v3550_v25, %v3554_v53  ;;  %7889 = vmatpush3.bf16.msra.mxu1 %v8800_v52  ;;  %7812 = vmatprep.mubr.bf16.mxu1 %v7015_v59  ;;  %v7016_v52 = vcombine.low %v4062_v47, %v4065_v58  ;;  %v3931_v13 = vld [vmem:[#allocation2 + $0x60] sm:$0xe]  ;;  %v4085_v25 = vrot.slane %v3930_v38, 5  ;;  %v8108_v58 = vld [vmem:[%s9913_s1 + $0x228] sm:$0xff]   ;;  %v8969_v14 = vld [vmem:[#allocation2 + $0x80] sm:$0x1] }
 0x113   : > { %9931 = vst [vmem:[#allocation7_spill] sm:$0xff] %v8883_v55  ;;  %v6972_v44 = vcombine.low %v3545_v7, %v3555_v19  ;;  %7890 = vmatprep.subr.bf16.mxu1 %v8103_v17  ;;  %v4084_v7 = vrot.slane %v4082_v1, 4  ;;  %v4076_v19 = vsel %vm8439_vm12, %v6986_v3, %v4075_v35  ;;  %v6988_v32 = vrot.slane %v3931_v13, 9  ;;  %v8967_v3 = vld [vmem:[#allocation2 + $0x7c] sm:$0xf] }
 0x114   : > { %v8891_v24 = vpop.f32.mrf.mxu1  ;;  %v8912_v62 = vpop.f32.mrf.mxu0  ;;  %v4083_v27 = vsel %vm8439_vm12, %v6987_v40, %v4082_v1  ;;  %v8102_v1 = vld [vmem:[#allocation2 + $0x3c] sm:$0xff]   ;;  %v7018_v10 = vcombine.low %v4076_v19, %v4079_v57  ;;  %v8119_v40 = vld [vmem:[%s9913_s1 + $0x1d0] sm:$0xff]   ;;  %v8983_v19 = vld [vmem:[#allocation2 + $0x88] sm:$0xf] }
 0x115   : > { %9932 = vst [vmem:[#allocation8_spill] sm:$0xff] %v8891_v24  ;;  %7789 = vmatmul.mubr.bf16.gmra.mxu0 %v6972_v44  ;;  %v8115_v44 = vld [vmem:[%s9913_s1 + $0x1d8] sm:$0xff]   ;;  %v4086_v35 = vsel %vm8439_vm12, %v4084_v7, %v4085_v25  ;;  %v8985_v57 = vld [vmem:[#allocation2 + $0x8c] sm:$0x1] }
 0x116   : > { %v8901_v63 = vpop.f32.mrf.mxu1  ;;  %7856 = vmatprep.mubr.bf16.mxu0 %v8097_v34  ;;  %7891 = vmatpush3.bf16.msra.mxu1 %v8103_v17  ;;  %v4089_v34 = vrot.slane %v8924_v8, 5  ;;  %v3934_v17 = vld [vmem:[#allocation2 + $0x6c] sm:$0xe] }
 0x117   : > { %9933 = vst [vmem:[#allocation9_spill] sm:$0xff] %v8901_v63  ;;  %7892 = vmatprep.subr.bf16.mxu1 %v8107_v39  ;;  %v4964_v63 = vld [vmem:[#allocation2 + $0x3c] sm:$0xf] }
 0x118   : > { %v8915_v4 = vpop.f32.mrf.mxu1  ;;  %v4091_v38 = vrot.slane %v4089_v34, 4  ;;  %v5111_v55 = vshll.u32 %v4964_v63, 16 }
 0x119   : > { %9934 = vst [vmem:[#allocation10_spill] sm:$0xff] %v8915_v4  ;;  %7813 = vmatmul.mubr.bf16.gmra.mxu1 %v7016_v52  ;;  %v6989_v52 = vrot.slane %v3934_v17, 9  ;;  %v3949_v4 = vld [vmem:[#allocation2 + $0xa8] sm:$0xe] }
 0x11a   : > { %7816 = vmatprep.mubr.bf16.mxu1 %v7017_v30  ;;  %7893 = vmatpush3.bf16.msra.mxu1 %v8107_v39  ;;  %v4096_v39 = vrot.slane %v3935_v43, 5  ;;  %v8105_v30 = vld [vmem:[#allocation2 + $0x48] sm:$0xff]   ;;  %v8981_v43 = vld [vmem:[#allocation2 + $0x84] sm:$0xe] }
 0x11b   : > { %7894 = vmatprep.subr.bf16.mxu1 %v8111_v18 }
 0x11c   : > { %v4098_v13 = vrot.slane %v4096_v39, 4  ;;  %v4097_v25 = vsel %vm8439_vm12, %v6989_v52, %v4096_v39 }
 0x11d   : > { %v8929_v53 = vpop.f32.mrf.mxu0  ;;  %7857 = vmatmul.mubr.bf16.vlgmr.msra.gmra.mxu0 %v8098_v12  ;;  %v8965_v12 = vld [vmem:[#allocation2 + $0x78] sm:$0xe] }
 0x11e   : > { %7937 = vmatpush3.bf16.msra.mxu0 %v8807_v37  ;;  %7860 = vmatprep.mubr.bf16.mxu0 %v8101_v49  ;;  %v7019_v37 = vcombine.low %v4083_v27, %v4086_v35  ;;  %v8112_v49 = vld [vmem:[%s9913_s1 + $0x220] sm:$0xff]   ;;  %v4106_v27 = vrot.slane %v8969_v14, 5  ;;  %v9917_v35 = vrot.slane %v8983_v19, 5  ;;  %v9939_v14 = vrot.slane %v8967_v3, 5 }
 0x11f   : > { %v8935_v59 = vpop.f32.mrf.mxu0  ;;  %7938 = vmatprep.subr.bf16.mxu0 %v8104_v0  ;;  %7895 = vmatpush3.bf16.msra.mxu1 %v8111_v18  ;;  %v4090_v18 = vsel %vm8439_vm12, %v6988_v32, %v4089_v34  ;;  %v4100_v32 = vsel %vm8439_vm12, %v4098_v13, %v4099_v36 }
 0x120   : > { %v8933_v11 = vpop.f32.mrf.mxu1  ;;  %7896 = vmatprep.subr.bf16.mxu1 %v8115_v44  ;;  %v4112_v52 = vrot.slane %v9917_v35, 4  ;;  %v8109_v35 = vld [vmem:[#allocation2 + $0x60] sm:$0xff]  }
 0x121   : > { %9935 = vst [vmem:[#allocation11_spill] sm:$0xff] %v8933_v11  ;;  %v8943_v60 = vpop.f32.mrf.mxu0  ;;  %7817 = vmatmul.mubr.bf16.gmra.mxu1 %v7018_v10  ;;  %v8997_v10 = vld [vmem:[#allocation2 + $0x94] sm:$0xf]  ;;  %v7021_v11 = vcombine.low %v4097_v25, %v4100_v32  ;;  %v3951_v32 = vld [vmem:[#allocation2 + $0xb0] sm:$0x1] }
 0x122   : > { %v8941_v15 = vpop.f32.mrf.mxu1  ;;  %7939 = vmatpush3.bf16.msra.mxu0 %v8104_v0  ;;  %7820 = vmatprep.mubr.bf16.mxu1 %v7019_v37  ;;  %v4093_v0 = vsel %vm8439_vm12, %v4091_v38, %v4092_v54  ;;  %v4105_v37 = vrot.slane %v9939_v14, 4  ;;  %v8116_v54 = vld [vmem:[%s9913_s1 + $0x218] sm:$0xff]   ;;  %v4117_v39 = vrot.slane %v8997_v10, 5 }
 0x123   : > { %9936 = vst [vmem:[#allocation12_spill] sm:$0xff] %v8941_v15  ;;  %v8962_v46 = vpop.f32.mrf.mxu0  ;;  %7940 = vmatprep.subr.bf16.mxu0 %v8108_v58  ;;  %7897 = vmatpush3.bf16.msra.mxu1 %v8115_v44  ;;  %v6991_v44 = vrot.slane %v8981_v43, 9  ;;  %v8106_v43 = vld [vmem:[#allocation2 + $0x54] sm:$0xff]  }
 0x124   : > { %v8952_v47 = vpop.f32.mrf.mxu1  ;;  %7898 = vmatprep.subr.bf16.mxu1 %v8119_v40 }
 0x125   : > { %9937 = vst [vmem:[#allocation13_spill] sm:$0xff] %v8952_v47  ;;  %v8999_v47 = vld [vmem:[#allocation2 + $0x98] sm:$0x1]  ;;  %7861 = vmatmul.mubr.bf16.gmra.mxu0 %v8102_v1  ;;  %v4113_v1 = vrot.slane %v8985_v57, 5  ;;  %v3947_v57 = vld [vmem:[#allocation2 + $0xa0] sm:$0xf] }
 0x126   : > { %v8974_v8 = vpop.f32.mrf.mxu1  ;;  %7864 = vmatprep.mubr.bf16.mxu0 %v8105_v30  ;;  %7941 = vmatpush3.bf16.msra.mxu0 %v8108_v58  ;;  %v4120_v14 = vrot.slane %v8999_v47, 5  ;;  %v8127_v58 = vld [vmem:[%s9913_s1 + $0x1c0] sm:$0xff]   ;;  %v8120_v47 = vld [vmem:[%s9913_s1 + $0x210] sm:$0xff]  }
 0x127   : > { %9938 = vst [vmem:[#allocation14_spill] sm:$0xff] %v8974_v8  ;;  %v7666_v17 = vpop.f32.mrf.mxu0  ;;  %v8995_v8 = vld [vmem:[#allocation2 + $0x90] sm:$0xe]  ;;  %7942 = vmatprep.subr.bf16.mxu0 %v8112_v49  ;;  %7899 = vmatpush3.bf16.msra.mxu1 %v8119_v40 }
 0x128   : > { %v7618_v6 = vpop.f32.mrf.mxu1  ;;  %v6992_v10 = vrot.slane %v8995_v8, 9  ;;  %v3948_v8 = vld [vmem:[#allocation2 + $0xa4] sm:$0x1] }
 0x129   : > { %v2451_v7 = vpop.f32.mrf.mxu0  ;;  %v1983_v34 = vadd.f32 %v7618_v6, %v8817_v48  ;;  %v8123_v48 = vld [vmem:[%s9913_s1 + $0x1c8] sm:$0xff]   ;;  %v7020_v6 = vcombine.low %v4090_v18, %v4093_v0  ;;  %v4119_v18 = vrot.slane %v4117_v39, 4  ;;  %v4124_v0 = vrot.slane %v3947_v57, 5 }
 0x12a   : > { %v1854_v38 = vpop.f32.mrf.mxu1  ;;  %7900 = vmatprep.subr.bf16.mxu1 %v8123_v48  ;;  %7943 = vmatpush3.bf16.msra.mxu0 %v8112_v49  ;;  %v4134_v57 = vrot.slane %v3951_v32, 5 }
 0x12b   : > { %v9017_v13 = vadd.f32 %v7666_v17, %v1983_v34  ;;  %v1981_v36 = vadd.f32 %v1854_v38, %v8823_v50  ;;  %v7667_v15 = vpop.f32.mrf.mxu0  ;;  %v3946_v17 = vld [vmem:[#allocation2 + $0x9c] sm:$0xe]  ;;  %7821 = vmatmul.mubr.bf16.gmra.mxu1 %v7020_v6  ;;  %7944 = vmatprep.subr.bf16.mxu0 %v8116_v54  ;;  %v4126_v40 = vrot.slane %v4124_v0, 4 }
 0x12c   : > { %v7619_v30 = vpop.f32.mrf.mxu1  ;;  %v6993_v38 = vrot.slane %v3946_v17, 9  ;;  %7824 = vmatprep.mubr.bf16.mxu1 %v7021_v11  ;;  %v4107_v17 = vsel %vm8439_vm12, %v4105_v37, %v4106_v27  ;;  %7901 = vmatpush3.bf16.msra.mxu1 %v8123_v48  ;;  %v4114_v11 = vsel %vm8439_vm12, %v4112_v52, %v4113_v1  ;;  %v9049_v37 = vsel %vm8439_vm12, %v6992_v10, %v4117_v39  ;;  %v3954_v48 = vld [vmem:[#allocation2 + $0xbc] sm:$0x1] }
 0x12d   : > { %9940 = vst [vmem:[#allocation15_spill] sm:$0xff] %v9017_v13  ;;  %v9025_v34 = vadd.f32 %v2451_v7, %v1981_v36  ;;  %v1984_v50 = vadd.f32 %v7619_v30, %v8829_v31  ;;  %v4127_v13 = vrot.slane %v3948_v8, 5  ;;  %v3950_v7 = vld [vmem:[#allocation2 + $0xac] sm:$0xf]  ;;  %v6994_v31 = vrot.slane %v3949_v4, 9  ;;  %v2454_v36 = vpop.f32.mrf.mxu0  ;;  %7865 = vmatmul.mubr.bf16.gmra.mxu0 %v8106_v43  ;;  %7902 = vmatprep.subr.bf16.mxu1 %v8127_v58 }
 0x12e   : > { %v9943_v30 = vrot.slane %v8967_v3, 5  ;;  %v1857_v6 = vpop.f32.mrf.mxu1  ;;  %7868 = vmatprep.mubr.bf16.mxu0 %v8109_v35  ;;  %7945 = vmatpush3.bf16.msra.mxu0 %v8116_v54  ;;  %v3952_v3 = vld [vmem:[#allocation2 + $0xb4] sm:$0xe]  ;;  %v9057_v1 = vsel %vm8439_vm12, %v4119_v18, %v4120_v14  ;;  %v9061_v39 = vsel %vm8439_vm12, %v6993_v38, %v4124_v0  ;;  %v3955_v14 = vld [vmem:[#allocation2 + $0xc0] sm:$0xe] }
 0x12f   : > { %9941 = vst [vmem:[#allocation16_spill] sm:$0xff] %v9025_v34  ;;  %v9031_v25 = vadd.f32 %v7667_v15, %v1984_v50  ;;  %v9944_v34 = vrot.slane %v8965_v12, 9  ;;  %v4131_v15 = vrot.slane %v3950_v7, 5  ;;  %v9945_v50 = vrot.slane %v8983_v19, 5  ;;  %7946 = vmatprep.subr.bf16.mxu0 %v8120_v47  ;;  %v8124_v19 = vld [vmem:[%s9913_s1 + $0x208] sm:$0xff]  }
 0x130   : > { %v6995_v43 = vrot.slane %v3952_v3, 9  ;;  %v1982_v52 = vadd.f32 %v1857_v6, %v8837_v45  ;;  %v4141_v7 = vrot.slane %v3954_v48, 5  ;;  %7903 = vmatpush3.bf16.msra.mxu1 %v8127_v58  ;;  %v9065_v10 = vsel %vm8439_vm12, %v4126_v40, %v4127_v13  ;;  %v3956_v18 = vld [vmem:[#allocation2 + $0xc4] sm:$0xf]  ;;  %v4956_v48 = vld [vmem:[#allocation2 + $0x1c] sm:$0xf] }
 0x131   : > { %9942 = vst [vmem:[#allocation17_spill] sm:$0xff] %v9031_v25  ;;  %v4104_v49 = vsel %vm8439_vm12, %v9944_v34, %v9943_v30  ;;  %v4111_v4 = vsel %vm8439_vm12, %v6991_v44, %v9945_v50  ;;  %v4133_v12 = vrot.slane %v4131_v15, 4  ;;  %v8110_v34 = vld [vmem:[#allocation2 + $0x6c] sm:$0xff]   ;;  %v3953_v44 = vld [vmem:[#allocation2 + $0xb8] sm:$0xf]  ;;  %v9069_v45 = vsel %vm8439_vm12, %v6994_v31, %v4131_v15 }
 0x132   : > { %v7022_v27 = vcombine.low %v4104_v49, %v4107_v17  ;;  %v7023_v54 = vcombine.low %v4111_v4, %v4114_v11  ;;  %v4138_v8 = vrot.slane %v3953_v44, 5  ;;  %v3957_v30 = vld [vmem:[#allocation2 + $0xc8] sm:$0x1]  ;;  %v8113_v17 = vld [vmem:[#allocation2 + $0x78] sm:$0xff]   ;;  %7947 = vmatpush3.bf16.msra.mxu0 %v8120_v47  ;;  %v6996_v38 = vrot.slane %v3955_v14, 9 }
 0x133   : > { %v9073_v32 = vsel %vm8439_vm12, %v4133_v12, %v4134_v57  ;;  %v4145_v40 = vrot.slane %v3956_v18, 5  ;;  %v7024_v31 = vcombine.low %v9049_v37, %v9057_v1  ;;  %7948 = vmatprep.subr.bf16.mxu0 %v8124_v19  ;;  %v4148_v15 = vrot.slane %v3957_v30, 5  ;;  %v8128_v57 = vld [vmem:[%s9913_s1 + $0x200] sm:$0xff]   ;;  %v4955_v44 = vld [vmem:[#allocation2 + $0x18] sm:$0xf] }
 0x134   : > { %v9077_v0 = vsel %vm8439_vm12, %v6995_v43, %v4138_v8  ;;  %v4140_v13 = vrot.slane %v4138_v8, 4  ;;  %7825 = vmatmul.mubr.bf16.gmra.mxu1 %v7022_v27  ;;  %v9084_v6 = vadd.f32 %v2454_v36, %v1982_v52  ;;  %v7025_v36 = vcombine.low %v9061_v39, %v9065_v10  ;;  %v5774_v18 = vld [vmem:[#allocation2 + $0x1c] sm:$0xf]  ;;  %v4958_v39 = vld [vmem:[#allocation2 + $0x24] sm:$0xf] }
 0x135   : > { %v7670_v35 = vpop.f32.mrf.mxu0  ;;  %7828 = vmatprep.mubr.bf16.mxu1 %v7023_v54  ;;  %v9093_v11 = vsel %vm8439_vm12, %v6996_v38, %v4145_v40  ;;  %v4147_v12 = vrot.slane %v4145_v40, 4  ;;  %7869 = vmatmul.mubr.bf16.gmra.mxu0 %v8110_v34  ;;  %v4957_v34 = vld [vmem:[#allocation2 + $0x20] sm:$0x1]  ;;  %v5036_v52 = vshrl.u32 %v4955_v44, 16  ;;  %v5039_v54 = vshll.u32 %v4955_v44, 16 }
 0x136   : > { %9946 = vst [vmem:[#allocation18_spill] sm:$0xff] %v9084_v6  ;;  %v9089_v4 = vsel %vm8439_vm12, %v4140_v13, %v4141_v7  ;;  %7872 = vmatprep.mubr.bf16.mxu0 %v8113_v17  ;;  %7949 = vmatpush3.bf16.msra.mxu0 %v8124_v19  ;;  %v5045_v1 = vshll.u32 %v4956_v48, 16  ;;  %v8114_v7 = vld [vmem:[#allocation2 + $0x84] sm:$0xff]   ;;  %v5049_v10 = vshrl.u32 %v4956_v48, 16  ;;  %v5055_v14 = vshll.u32 %v4957_v34, 16  ;;  %v8117_v19 = vld [vmem:[#allocation2 + $0x90] sm:$0xff]  }
 0x137   : > { %v7622_v58 = vpop.f32.mrf.mxu1  ;;  %v2467_v49 = vpop.f32.mrf.mxu0  ;;  %7950 = vmatprep.subr.bf16.mxu0 %v8128_v57  ;;  %v5041_v17 = vrot.slane %v5039_v54, 5  ;;  %v5775_v38 = vld [vmem:[#allocation2 + $0x20] sm:$0x1]  ;;  %v4959_v34 = vld [vmem:[#allocation2 + $0x28] sm:$0xf]  ;;  %v9949_v6 = vcombine.low %v9069_v45, %v9073_v32 }
 0x138   : > { %v1987_v47 = vadd.f32 %v7622_v58, %v8846_v28  ;;  %v5038_v58 = vrot.slane %v5036_v52, 4  ;;  %v5047_v13 = vrot.slane %v5045_v1, 5  ;;  %v5906_v44 = vrot.slane %v5775_v38, 5  ;;  %v4960_v37 = vld [vmem:[#allocation2 + $0x2c] sm:$0x1] }
 0x139   : > { %v1870_v50 = vpop.f32.mrf.mxu1  ;;  %v9096_v27 = vpop.f32.mrf.mxu0  ;;  %v5060_v28 = vshrl.u32 %v4958_v39, 16 }
 0x13a   : > { %v1985_v3 = vadd.f32 %v1870_v50, %v8855_v2  ;;  %v9104_v43 = vadd.f32 %v7670_v35, %v1987_v47  ;;  %v9108_v2 = vsel %vm8439_vm12, %v4147_v12, %v4148_v15  ;;  %v5773_v35 = vld [vmem:[#allocation2 + $0x18] sm:$0xe]  ;;  %v5051_v47 = vrot.slane %v5049_v10, 4  ;;  %7951 = vmatpush3.bf16.msra.mxu0 %v8128_v57 }
 0x13b   : > { %v7623_v8 = vpop.f32.mrf.mxu1  ;;  %v7117_v40 = vrot.slane %v5773_v35, 9  ;;  %v9114_v15 = vpop.f32.mrf.mxu0  ;;  %v5057_v50 = vrot.slane %v5055_v14, 5  ;;  %v5903_v12 = vrot.slane %v5774_v18, 5  ;;  %v5042_v48 = vor.u32 %v5041_v17, %v5038_v58  ;;  %v5776_v35 = vld [vmem:[#allocation2 + $0x24] sm:$0xe] }
 0x13c   : > { %9947 = vst [vmem:[#allocation19_spill] sm:$0xff] %v9104_v43  ;;  %v9112_v30 = vadd.f32 %v2467_v49, %v1985_v3  ;;  %v5063_v49 = vshll.u32 %v4958_v39, 16  ;;  %v9117_v3 = vadd.f32 %v7623_v8, %v8865_v61  ;;  %7829 = vmatmul.mubr.bf16.gmra.mxu1 %v7024_v31  ;;  %v5052_v54 = vor.u32 %v5051_v47, %v5047_v13  ;;  %v5777_v39 = vld [vmem:[#allocation2 + $0x28] sm:$0xf]  ;;  %v5778_v47 = vld [vmem:[#allocation2 + $0x2c] sm:$0x1] }
 0x13d   : > { %v9119_v52 = vpop.f32.mrf.mxu1  ;;  %v9123_v1 = vsel %vm8439_vm12, %v7117_v40, %v5903_v12  ;;  %v5905_v10 = vrot.slane %v5903_v12, 4  ;;  %v5069_v14 = vshll.u32 %v4959_v34, 16  ;;  %7832 = vmatprep.mubr.bf16.mxu1 %v7025_v36  ;;  %v5043_v57 = vrot.slane %v5042_v48, 4  ;;  %7873 = vmatmul.mubr.bf16.gmra.mxu0 %v8114_v7 }
 0x13e   : > { %9948 = vst [vmem:[#allocation20_spill] sm:$0xff] %v9112_v30  ;;  %v5062_v18 = vrot.slane %v5060_v28, 4  ;;  %v5065_v58 = vrot.slane %v5063_v49, 5  ;;  %v5073_v17 = vshrl.u32 %v4959_v34, 16  ;;  %v5053_v61 = vrot.slane %v5052_v54, 4  ;;  %7876 = vmatprep.mubr.bf16.mxu0 %v8117_v19 }
 0x13f   : > { %v9129_v31 = vsel %vm8439_vm12, %v5905_v10, %v5906_v44  ;;  %v5071_v8 = vrot.slane %v5069_v14, 5  ;;  %v5079_v40 = vshll.u32 %v4960_v37, 16  ;;  %v5048_v36 = vsel %vm8445_vm13, %v5043_v57, %v5047_v13  ;;  %v4961_v34 = vld [vmem:[#allocation2 + $0x30] sm:$0xf]  ;;  %v4962_v37 = vld [vmem:[#allocation2 + $0x34] sm:$0xf] }
 0x140   : > { %v5066_v12 = vor.u32 %v5065_v58, %v5062_v18  ;;  %v5075_v48 = vrot.slane %v5073_v17, 4  ;;  %v5058_v7 = vsel %vm8445_vm13, %v5053_v61, %v5057_v50  ;;  %v7118_v54 = vrot.slane %v5776_v35, 9  ;;  %v4963_v28 = vld [vmem:[#allocation2 + $0x38] sm:$0x1]  ;;  %v5779_v18 = vld [vmem:[#allocation2 + $0x30] sm:$0xe] }
 0x141   : > { %v5081_v44 = vrot.slane %v5079_v40, 5  ;;  %v5910_v10 = vrot.slane %v5777_v39, 5  ;;  %v9141_v19 = vcombine.low %v5048_v36, %v5058_v7  ;;  %v5913_v30 = vrot.slane %v5778_v47, 5  ;;  %v8118_v58 = vld [vmem:[#allocation2 + $0x9c] sm:$0xff]   ;;  %v5780_v35 = vld [vmem:[#allocation2 + $0x34] sm:$0xf] }
 0x142   : > { %v9125_v38 = vpop.f32.mrf.mxu0  ;;  %v5067_v13 = vrot.slane %v5066_v12, 4  ;;  %v5076_v57 = vor.u32 %v5075_v48, %v5071_v8  ;;  %v5084_v50 = vshrl.u32 %v4961_v34, 16  ;;  %v5087_v61 = vshll.u32 %v4961_v34, 16  ;;  %v8121_v40 = vld [vmem:[#allocation2 + $0xa8] sm:$0xff]   ;;  %v5781_v7 = vld [vmem:[#allocation2 + $0x38] sm:$0x1] }
 0x143   : > { %v9135_v49 = vpop.f32.mrf.mxu1  ;;  %v9145_v17 = vsel %vm8439_vm12, %v7118_v54, %v5910_v10  ;;  %v5912_v43 = vrot.slane %v5910_v10, 4  ;;  %v5093_v48 = vshll.u32 %v4962_v37, 16  ;;  %v5097_v47 = vshrl.u32 %v4962_v37, 16 }
 0x144   : > { %v9139_v14 = vpop.f32.mrf.mxu0  ;;  %v5072_v36 = vsel %vm8445_vm13, %v5067_v13, %v5071_v8  ;;  %v5077_v12 = vrot.slane %v5076_v57, 4  ;;  %7833 = vmatmul.mubr.bf16.gmra.mxu1 %v9949_v6  ;;  %v5086_v34 = vrot.slane %v5084_v50, 4  ;;  %v5089_v10 = vrot.slane %v5087_v61, 5 }
 0x145   : > { %v9147_v39 = vpop.f32.mrf.mxu1  ;;  %v9156_v54 = vsel %vm8439_vm12, %v5912_v43, %v5913_v30  ;;  %v5103_v25 = vshll.u32 %v4963_v28, 16  ;;  %v9950_v8 = vcombine.low %v9077_v0, %v9089_v4  ;;  %v5095_v32 = vrot.slane %v5093_v48, 5  ;;  %v4965_v43 = vld [vmem:[#allocation2 + $0x40] sm:$0xf]  ;;  %7877 = vmatmul.mubr.bf16.gmra.mxu0 %v8118_v58 }
 0x146   : > { %v9158_v24 = vpop.f32.mrf.mxu0  ;;  %v5082_v37 = vsel %vm8445_vm13, %v5077_v12, %v5081_v44  ;;  %v5099_v6 = vrot.slane %v5097_v47, 4  ;;  %v5090_v28 = vor.u32 %v5089_v10, %v5086_v34  ;;  %v7119_v57 = vrot.slane %v5779_v18, 9  ;;  %7880 = vmatprep.mubr.bf16.mxu0 %v8121_v40  ;;  %v5782_v47 = vld [vmem:[#allocation2 + $0x3c] sm:$0xe]  ;;  %v5783_v40 = vld [vmem:[#allocation2 + $0x40] sm:$0xf] }
 0x147   : > { %7836 = vmatprep.mubr.bf16.mxu1 %v9950_v8  ;;  %v9167_v30 = vcombine.low %v5072_v36, %v5082_v37  ;;  %v5105_v13 = vrot.slane %v5103_v25, 5  ;;  %v9169_v50 = vpop.f32.mrf.mxu1  ;;  %v5917_v4 = vrot.slane %v5780_v35, 5  ;;  %v5920_v61 = vrot.slane %v5781_v7, 5  ;;  %v4966_v8 = vld [vmem:[#allocation2 + $0x44] sm:$0x1]  ;;  %v8122_v34 = vld [vmem:[#allocation2 + $0xb4] sm:$0xff]  }
 0x148   : > { %v5100_v0 = vor.u32 %v5099_v6, %v5095_v32  ;;  %v5108_v44 = vshrl.u32 %v4964_v63, 16  ;;  %v5091_v12 = vrot.slane %v5090_v28, 4  ;;  %v5117_v45 = vshll.u32 %v4965_v43, 16  ;;  %v9171_v23 = vpop.f32.mrf.mxu0  ;;  %v5784_v37 = vld [vmem:[#allocation2 + $0x44] sm:$0x1] }
 0x149   : > { %v5121_v48 = vshrl.u32 %v4965_v43, 16  ;;  %v9175_v25 = vsel %vm8439_vm12, %v7119_v57, %v5917_v4  ;;  %v5919_v18 = vrot.slane %v5917_v4, 4  ;;  %v5113_v7 = vrot.slane %v5111_v55, 5  ;;  %v9179_v6 = vpop.f32.mrf.mxu1  ;;  %v8125_v43 = vld [vmem:[#allocation2 + $0xc0] sm:$0xff]  }
 0x14a   : > { %v5101_v58 = vrot.slane %v5100_v0, 4  ;;  %v5110_v36 = vrot.slane %v5108_v44, 4  ;;  %v5096_v35 = vsel %vm8445_vm13, %v5091_v12, %v5095_v32  ;;  %v5119_v10 = vrot.slane %v5117_v45, 5  ;;  %v4967_v44 = vld [vmem:[#allocation2 + $0x48] sm:$0xf] }
 0x14b   : > { %v5123_v63 = vrot.slane %v5121_v48, 4  ;;  %v9185_v57 = vsel %vm8439_vm12, %v5919_v18, %v5920_v61  ;;  %v5127_v0 = vshll.u32 %v4966_v8, 16  ;;  %v7120_v4 = vrot.slane %v5782_v47, 9  ;;  %v4969_v18 = vld [vmem:[#allocation2 + $0x50] sm:$0x1] }
 0x14c   : > { %v5106_v28 = vsel %vm8445_vm13, %v5101_v58, %v5105_v13  ;;  %v9951_v32 = vcombine.low %v9093_v11, %v9108_v2  ;;  %v5114_v12 = vor.u32 %v5113_v7, %v5110_v36  ;;  %v5924_v61 = vrot.slane %v5783_v40, 5 }
 0x14d   : > { %v7095_v55 = vcombine.low %v5096_v35, %v5106_v28  ;;  %v5124_v48 = vor.u32 %v5123_v63, %v5119_v10  ;;  %v5129_v13 = vrot.slane %v5127_v0, 5  ;;  %v5927_v8 = vrot.slane %v5784_v37, 5  ;;  %7881 = vmatmul.mubr.bf16.gmra.mxu0 %v8122_v34  ;;  %v5785_v34 = vld [vmem:[#allocation2 + $0x48] sm:$0xe]  ;;  %v5786_v28 = vld [vmem:[#allocation2 + $0x4c] sm:$0xf] }
 0x14e   : > { %7837 = vmatmul.mubr.bf16.gmra.mxu1 %v9951_v32  ;;  %v9197_v47 = vadd.f32 %v9096_v27, %v9117_v3  ;;  %v5115_v11 = vrot.slane %v5114_v12, 4  ;;  %v1986_v58 = vadd.f32 %v9119_v52, %v8873_v21  ;;  %v5132_v36 = vshrl.u32 %v4967_v44, 16  ;;  %7884 = vmatprep.mubr.bf16.mxu0 %v8125_v43  ;;  %v5787_v43 = vld [vmem:[#allocation2 + $0x50] sm:$0x1] }
 0x14f   : > { %7904 = vmatprep.mubr.bf16.mxu1 %v9141_v19  ;;  %v5125_v2 = vrot.slane %v5124_v48, 4  ;;  %v9207_v19 = vsel %vm8439_vm12, %v7120_v4, %v5924_v61  ;;  %v5926_v40 = vrot.slane %v5924_v61, 4  ;;  %v5135_v27 = vshll.u32 %v4967_v44, 16  ;;  %v4970_v48 = vld [vmem:[#allocation2 + $0x54] sm:$0xf] }
 0x150   : > { %v9192_v20 = vpop.f32.mrf.mxu0  ;;  %v5141_v3 = vshll.u32 %v4968_v16, 16  ;;  %v5120_v63 = vsel %vm8445_vm13, %v5115_v11, %v5119_v10  ;;  %v9214_v52 = vadd.f32 %v9114_v15, %v1986_v58  ;;  %v5134_v37 = vrot.slane %v5132_v36, 4 }
 0x151   : > { %v9201_v35 = vpop.f32.mrf.mxu1  ;;  %v5130_v21 = vsel %vm8445_vm13, %v5125_v2, %v5129_v13  ;;  %v9224_v44 = vsel %vm8439_vm12, %v5926_v40, %v5927_v8  ;;  %v5137_v10 = vrot.slane %v5135_v27, 5  ;;  %v8126_v13 = vld [vmem:[#allocation2 + $0xcc] sm:$0xff]   ;;  %v5145_v61 = vshrl.u32 %v4968_v16, 16  ;;  %v4971_v40 = vld [vmem:[#allocation2 + $0x58] sm:$0xf] }
 0x152   : > { %v9203_v7 = vpop.f32.mrf.mxu0  ;;  %9952 = vst [vmem:[#allocation21_spill] sm:$0xff] %v9214_v52  ;;  %v9220_v32 = vcombine.low %v5120_v63, %v5130_v21  ;;  %v5143_v12 = vrot.slane %v5141_v3, 5  ;;  %v5151_v11 = vshll.u32 %v4969_v18, 16  ;;  %v7121_v2 = vrot.slane %v5785_v34, 9  ;;  %v4972_v52 = vld [vmem:[#allocation2 + $0x5c] sm:$0x1] }
 0x153   : > { %v9216_v0 = vpop.f32.mrf.mxu1  ;;  %v5138_v63 = vor.u32 %v5137_v10, %v5134_v37  ;;  %v5931_v21 = vrot.slane %v5786_v28, 5  ;;  %v5934_v45 = vrot.slane %v5787_v43, 5  ;;  %v1991_v8 = vadd.f32 %v9135_v49, %v8881_v41  ;;  %v5788_v41 = vld [vmem:[#allocation2 + $0x54] sm:$0xe] }
 0x154   : > { %v9218_v4 = vpop.f32.mrf.mxu0  ;;  %v5147_v27 = vrot.slane %v5145_v61, 4  ;;  %v5153_v3 = vrot.slane %v5151_v11, 5  ;;  %v5156_v15 = vshrl.u32 %v4970_v48, 16  ;;  %v5159_v16 = vshll.u32 %v4970_v48, 16  ;;  %v5789_v11 = vld [vmem:[#allocation2 + $0x58] sm:$0xf] }
 0x155   : > { %v9228_v58 = vpop.f32.mrf.mxu1  ;;  %v5139_v34 = vrot.slane %v5138_v63, 4  ;;  %v9239_v37 = vsel %vm8439_vm12, %v7121_v2, %v5931_v21  ;;  %v5933_v28 = vrot.slane %v5931_v21, 4  ;;  %v9242_v43 = vadd.f32 %v9125_v38, %v1991_v8  ;;  %7885 = vmatmul.mubr.bf16.gmra.mxu0 %v8126_v13  ;;  %v5790_v21 = vld [vmem:[#allocation2 + $0x5c] sm:$0x1] }
 0x156   : > { %v9230_v36 = vpop.f32.mrf.mxu0  ;;  %7905 = vmatmul.mubr.bf16.vlgmr.msra.gmra.mxu1 %v9167_v30  ;;  %v5148_v49 = vor.u32 %v5147_v27, %v5143_v12  ;;  %v5158_v30 = vrot.slane %v5156_v15, 4  ;;  %v5161_v10 = vrot.slane %v5159_v16, 5  ;;  %v5165_v61 = vshll.u32 %v4971_v40, 16 }
 0x157   : > { %v9235_v18 = vpop.f32.mrf.mxu1  ;;  %7908 = vmatprep.mubr.bf16.mxu1 %v7095_v55  ;;  %9953 = vst [vmem:[#allocation22_spill] sm:$0xff] %v9242_v43  ;;  %v9954_v55 = vcombine.low %v9123_v1, %v9129_v31  ;;  %v5144_v2 = vsel %vm8445_vm13, %v5139_v34, %v5143_v12  ;;  %v9253_v38 = vsel %vm8439_vm12, %v5933_v28, %v5934_v45  ;;  %v5169_v63 = vshrl.u32 %v4971_v40, 16 }
 0x158   : > { %v5175_v13 = vshll.u32 %v4972_v52, 16  ;;  %v5149_v15 = vrot.slane %v5148_v49, 4  ;;  %v5162_v27 = vor.u32 %v5161_v10, %v5158_v30  ;;  %v5167_v16 = vrot.slane %v5165_v61, 5  ;;  %v4973_v49 = vld [vmem:[#allocation2 + $0x60] sm:$0xf] }
 0x159   : > { %7952 = vmatprep.mubr.bf16.mxu0 %v9954_v55  ;;  %v5171_v31 = vrot.slane %v5169_v63, 4  ;;  %v7122_v12 = vrot.slane %v5788_v41, 9  ;;  %v5938_v34 = vrot.slane %v5789_v11, 5  ;;  %v5941_v52 = vrot.slane %v5790_v21, 5  ;;  %v4974_v41 = vld [vmem:[#allocation2 + $0x64] sm:$0xf] }
 0x15a   : > { %v9244_v48 = vpop.f32.mrf.mxu0  ;;  %v5177_v55 = vrot.slane %v5175_v13, 5  ;;  %v5154_v45 = vsel %vm8445_vm13, %v5149_v15, %v5153_v3  ;;  %v5163_v40 = vrot.slane %v5162_v27, 4  ;;  %v1989_v28 = vadd.f32 %v9147_v39, %v8887_v5  ;;  %v4975_v13 = vld [vmem:[#allocation2 + $0x68] sm:$0x1] }
 0x15b   : > { %v7097_v30 = vcombine.low %v5144_v2, %v5154_v45  ;;  %v5172_v10 = vor.u32 %v5171_v31, %v5167_v16  ;;  %v9269_v61 = vsel %vm8439_vm12, %v7122_v12, %v5938_v34  ;;  %v5940_v63 = vrot.slane %v5938_v34, 4  ;;  %v5791_v31 = vld [vmem:[#allocation2 + $0x60] sm:$0xe]  ;;  %v5792_v12 = vld [vmem:[#allocation2 + $0x64] sm:$0xf] }
 0x15c   : > { %v9257_v43 = vpop.f32.mrf.mxu1  ;;  %v9259_v1 = vpop.f32.mrf.mxu0  ;;  %v5168_v3 = vsel %vm8445_vm13, %v5163_v40, %v5167_v16  ;;  %v9277_v5 = vadd.f32 %v9139_v14, %v1989_v28  ;;  %v1992_v39 = vadd.f32 %v9169_v50, %v8897_v26  ;;  %v1990_v2 = vadd.f32 %v9179_v6, %v8912_v62  ;;  %v5793_v34 = vld [vmem:[#allocation2 + $0x68] sm:$0x1]  ;;  %v4976_v28 = vld [vmem:[#allocation2 + $0x6c] sm:$0xf]  ;;  %v4977_v26 = vld [vmem:[#allocation2 + $0x70] sm:$0xf] }
 0x15d   : > { %v5173_v21 = vrot.slane %v5172_v10, 4  ;;  %v9285_v15 = vsel %vm8439_vm12, %v5940_v63, %v5941_v52  ;;  %v5183_v27 = vshll.u32 %v4973_v49, 16  ;;  %v9955_v14 = vcombine.low %v9145_v17, %v9156_v54 }
 0x15e   : > { %v9265_v8 = vpop.f32.mrf.mxu1  ;;  %v9271_v11 = vpop.f32.mrf.mxu0  ;;  %7909 = vmatmul.mubr.bf16.gmra.mxu1 %v9220_v32  ;;  %v5180_v32 = vshrl.u32 %v4973_v49, 16  ;;  %v9295_v62 = vadd.f32 %v9158_v24, %v1992_v39  ;;  %v9298_v50 = vadd.f32 %v9171_v23, %v1990_v2  ;;  %v5189_v6 = vshll.u32 %v4974_v41, 16 }
 0x15f   : > { %7912 = vmatprep.mubr.bf16.mxu1 %v7097_v30  ;;  %7953 = vmatmul.mubr.bf16.vlgmr.msra.gmra.mxu0 %v9955_v14  ;;  %v9956_v45 = vcombine.low %v9175_v25, %v9185_v57  ;;  %v5178_v17 = vsel %vm8445_vm13, %v5173_v21, %v5177_v55  ;;  %v5185_v40 = vrot.slane %v5183_v27, 5  ;;  %v5193_v52 = vshrl.u32 %v4974_v41, 16 }
 0x160   : > { %v9287_v16 = vpop.f32.mrf.mxu1  ;;  %v5182_v54 = vrot.slane %v5180_v32, 4  ;;  %v9305_v49 = vpop.f32.mrf.mxu0  ;;  %v7098_v24 = vcombine.low %v5168_v3, %v5178_v17  ;;  %v5191_v30 = vrot.slane %v5189_v6, 5  ;;  %v5199_v23 = vshll.u32 %v4975_v13, 16  ;;  %v5794_v6 = vld [vmem:[#allocation2 + $0x6c] sm:$0xe] }
 0x161   : > { %7956 = vmatprep.mubr.bf16.mxu0 %v9956_v45  ;;  %v7123_v10 = vrot.slane %v5791_v31, 9  ;;  %v5195_v39 = vrot.slane %v5193_v52, 4  ;;  %v5945_v2 = vrot.slane %v5792_v12, 5  ;;  %v5948_v14 = vrot.slane %v5793_v34, 5  ;;  %v4978_v31 = vld [vmem:[#allocation2 + $0x74] sm:$0x1] }
 0x162   : > { %v5186_v63 = vor.u32 %v5185_v40, %v5182_v54  ;;  %v9307_v25 = vpop.f32.mrf.mxu1  ;;  %v5201_v57 = vrot.slane %v5199_v23, 5  ;;  %v1995_v55 = vadd.f32 %v9201_v35, %v8929_v53  ;;  %v5204_v21 = vshrl.u32 %v4976_v28, 16  ;;  %v5795_v35 = vld [vmem:[#allocation2 + $0x70] sm:$0xf]  ;;  %v5796_v23 = vld [vmem:[#allocation2 + $0x74] sm:$0x1] }
 0x163   : > { %v5207_v41 = vshll.u32 %v4976_v28, 16  ;;  %v5196_v27 = vor.u32 %v5195_v39, %v5191_v30  ;;  %v9313_v3 = vsel %vm8439_vm12, %v7123_v10, %v5945_v2  ;;  %v5947_v13 = vrot.slane %v5945_v2, 4 }
 0x164   : > { %v5187_v32 = vrot.slane %v5186_v63, 4  ;;  %v9318_v34 = vadd.f32 %v9192_v20, %v1995_v55  ;;  %v5206_v45 = vrot.slane %v5204_v21, 4  ;;  %v5213_v53 = vshll.u32 %v4977_v26, 16 }
 0x165   : > { %v5209_v17 = vrot.slane %v5207_v41, 5  ;;  %v5197_v40 = vrot.slane %v5196_v27, 4  ;;  %v5949_v52 = vsel %vm8439_vm12, %v5947_v13, %v5948_v14  ;;  %v5217_v28 = vshrl.u32 %v4977_v26, 16 }
 0x166   : > { %7913 = vmatmul.mubr.bf16.gmra.mxu1 %v7098_v24  ;;  %9957 = vst [vmem:[#allocation23_spill] sm:$0xff] %v9318_v34  ;;  %v5192_v54 = vsel %vm8445_vm13, %v5187_v32, %v5191_v30  ;;  %v9958_v24 = vcombine.low %v9207_v19, %v9224_v44  ;;  %v7155_v20 = vcombine.low %v9313_v3, %v5949_v52  ;;  %v5215_v39 = vrot.slane %v5213_v53, 5  ;;  %v4979_v32 = vld [vmem:[#allocation2 + $0x78] sm:$0xf]  ;;  %v4980_v53 = vld [vmem:[#allocation2 + $0x7c] sm:$0xf] }
 0x167   : > { %v5210_v63 = vor.u32 %v5209_v17, %v5206_v45  ;;  %v5223_v2 = vshll.u32 %v4978_v31, 16  ;;  %v9959_v30 = vcombine.low %v9239_v37, %v9253_v38  ;;  %v5202_v26 = vsel %vm8445_vm13, %v5197_v40, %v5201_v57 }
 0x168   : > { %v9315_v12 = vpop.f32.mrf.mxu0  ;;  %7957 = vmatmul.mubr.bf16.gmra.mxu0 %v9958_v24  ;;  %v5219_v14 = vrot.slane %v5217_v28, 4  ;;  %v7124_v21 = vrot.slane %v5794_v6, 9  ;;  %v5952_v41 = vrot.slane %v5795_v35, 5  ;;  %v7099_v19 = vcombine.low %v5192_v54, %v5202_v26  ;;  %v4981_v35 = vld [vmem:[#allocation2 + $0x80] sm:$0x1] }
 0x169   : > { %v9324_v10 = vpop.f32.mrf.mxu1  ;;  %7960 = vmatprep.mubr.bf16.mxu0 %v9959_v30  ;;  %v5211_v44 = vrot.slane %v5210_v63, 4  ;;  %v5225_v27 = vrot.slane %v5223_v2, 5  ;;  %v5955_v3 = vrot.slane %v5796_v23, 5  ;;  %v1993_v38 = vadd.f32 %v9216_v0, %v8935_v59  ;;  %v5797_v23 = vld [vmem:[#allocation2 + $0x78] sm:$0xe] }
 0x16a   : > { %v9330_v55 = vpop.f32.mrf.mxu0  ;;  %v5220_v31 = vor.u32 %v5219_v14, %v5215_v39  ;;  %v9341_v45 = vsel %vm8439_vm12, %v7124_v21, %v5952_v41  ;;  %v5954_v37 = vrot.slane %v5952_v41, 4  ;;  %7916 = vmatprep.mubr.bf16.mxu1 %v7099_v19  ;;  %v1996_v6 = vadd.f32 %v9228_v58, %v8943_v60  ;;  %v5798_v24 = vld [vmem:[#allocation2 + $0x7c] sm:$0xf]  ;;  %v5799_v63 = vld [vmem:[#allocation2 + $0x80] sm:$0x1] }
 0x16b   : > { %v9337_v13 = vpop.f32.mrf.mxu1  ;;  %v5216_v57 = vsel %vm8445_vm13, %v5211_v44, %v5215_v39  ;;  %v1994_v17 = vadd.f32 %v9235_v18, %v8962_v46  ;;  %v5228_v54 = vshrl.u32 %v4979_v32, 16  ;;  %v9356_v59 = vadd.f32 %v9203_v7, %v1993_v38 }
 0x16c   : > { %v9351_v40 = vpop.f32.mrf.mxu0  ;;  %v5221_v52 = vrot.slane %v5220_v31, 4  ;;  %v5956_v28 = vsel %vm8439_vm12, %v5954_v37, %v5955_v3  ;;  %v5231_v0 = vshll.u32 %v4979_v32, 16  ;;  %v9360_v58 = vadd.f32 %v9218_v4, %v1996_v6 }
 0x16d   : > { %9960 = vst [vmem:[#allocation24_spill] sm:$0xff] %v9356_v59  ;;  %v7156_v60 = vcombine.low %v9341_v45, %v5956_v28  ;;  %v9363_v46 = vadd.f32 %v9230_v36, %v1994_v17  ;;  %v5230_v18 = vrot.slane %v5228_v54, 4  ;;  %v9365_v39 = vpop.f32.mrf.mxu1  ;;  %v5237_v30 = vshll.u32 %v4980_v53, 16  ;;  %v4982_v36 = vld [vmem:[#allocation2 + $0x84] sm:$0xf] }
 0x16e   : > { %9961 = vst [vmem:[#allocation25_spill] sm:$0xff] %v9360_v58  ;;  %v5226_v2 = vsel %vm8445_vm13, %v5221_v52, %v5225_v27  ;;  %v5233_v7 = vrot.slane %v5231_v0, 5  ;;  %v5241_v26 = vshrl.u32 %v4980_v53, 16  ;;  %v9963_v14 = vcombine.low %v9269_v61, %v9285_v15  ;;  %v9372_v19 = vpop.f32.mrf.mxu0  ;;  %v4983_v27 = vld [vmem:[#allocation2 + $0x88] sm:$0xf] }
 0x16f   : > { %9962 = vst [vmem:[#allocation26_spill] sm:$0xff] %v9363_v46  ;;  %v7100_v21 = vcombine.low %v5216_v57, %v5226_v2  ;;  %v5247_v4 = vshll.u32 %v4981_v35, 16  ;;  %v7125_v41 = vrot.slane %v5797_v23, 9  ;;  %v5959_v32 = vrot.slane %v5798_v24, 5  ;;  %v4984_v57 = vld [vmem:[#allocation2 + $0x8c] sm:$0x1]  ;;  %v9378_v6 = vpop.f32.mrf.mxu1 }
 0x170   : > { %7961 = vmatmul.mubr.bf16.gmra.mxu0 %v9963_v14  ;;  %v5234_v44 = vor.u32 %v5233_v7, %v5230_v18  ;;  %v5239_v3 = vrot.slane %v5237_v30, 5  ;;  %v5243_v31 = vrot.slane %v5241_v26, 4  ;;  %v5962_v45 = vrot.slane %v5799_v63, 5  ;;  %v5800_v54 = vld [vmem:[#allocation2 + $0x84] sm:$0xe] }
 0x171   : > { %7964 = vmatprep.mubr.bf16.mxu0 %v7155_v20  ;;  %7917 = vmatmul.mubr.bf16.gmra.mxu1 %v7100_v21  ;;  %v5249_v37 = vrot.slane %v5247_v4, 5  ;;  %v5960_v38 = vsel %vm8439_vm12, %v7125_v41, %v5959_v32  ;;  %v5961_v61 = vrot.slane %v5959_v32, 4  ;;  %v1999_v15 = vadd.f32 %v9257_v43, %v8819_v9  ;;  %v5801_v24 = vld [vmem:[#allocation2 + $0x88] sm:$0xf]  ;;  %v5802_v18 = vld [vmem:[#allocation2 + $0x8c] sm:$0x1] }
 0x172   : > { %v5235_v17 = vrot.slane %v5234_v44, 4  ;;  %v5244_v53 = vor.u32 %v5243_v31, %v5239_v3  ;;  %v5252_v20 = vshrl.u32 %v4982_v36, 16  ;;  %v5255_v35 = vshll.u32 %v4982_v36, 16  ;;  %v4985_v31 = vld [vmem:[#allocation2 + $0x90] sm:$0xf] }
 0x173   : > { %v5963_v52 = vsel %vm8439_vm12, %v5961_v61, %v5962_v45  ;;  %v9383_v28 = vadd.f32 %v9244_v48, %v1999_v15  ;;  %v5261_v0 = vshll.u32 %v4983_v27, 16  ;;  %v5265_v23 = vshrl.u32 %v4983_v27, 16 }
 0x174   : > { %v5240_v9 = vsel %vm8445_vm13, %v5235_v17, %v5239_v3  ;;  %v5245_v43 = vrot.slane %v5244_v53, 4  ;;  %v7157_v2 = vcombine.low %v5960_v38, %v5963_v52  ;;  %v5254_v7 = vrot.slane %v5252_v20, 4  ;;  %v4987_v52 = vld [vmem:[#allocation2 + $0x98] sm:$0x1] }
 0x175   : > { %9964 = vst [vmem:[#allocation27_spill] sm:$0xff] %v9383_v28  ;;  %v9385_v63 = vpop.f32.mrf.mxu0  ;;  %v5257_v30 = vrot.slane %v5255_v35, 5  ;;  %v5263_v26 = vrot.slane %v5261_v0, 5  ;;  %v5267_v14 = vrot.slane %v5265_v23, 4  ;;  %v5271_v21 = vshll.u32 %v4984_v57, 16 }
 0x176   : > { %v5250_v41 = vsel %vm8445_vm13, %v5245_v43, %v5249_v37  ;;  %v7126_v32 = vrot.slane %v5800_v54, 9  ;;  %v5966_v36 = vrot.slane %v5801_v24, 5  ;;  %v5969_v44 = vrot.slane %v5802_v18, 5 }
 0x177   : > { %v9389_v4 = vpop.f32.mrf.mxu1  ;;  %v9391_v48 = vpop.f32.mrf.mxu0  ;;  %v7101_v3 = vcombine.low %v5240_v9, %v5250_v41  ;;  %v5258_v45 = vor.u32 %v5257_v30, %v5254_v7  ;;  %v5268_v27 = vor.u32 %v5267_v14, %v5263_v26  ;;  %v5273_v38 = vrot.slane %v5271_v21, 5  ;;  %v5804_v9 = vld [vmem:[#allocation2 + $0x94] sm:$0xf]  ;;  %v5805_v7 = vld [vmem:[#allocation2 + $0x98] sm:$0x1] }
 0x178   : > { %7965 = vmatmul.mubr.bf16.gmra.mxu0 %v7156_v60  ;;  %v5967_v57 = vsel %vm8439_vm12, %v7126_v32, %v5966_v36  ;;  %v5968_v17 = vrot.slane %v5966_v36, 4  ;;  %v1997_v37 = vadd.f32 %v9265_v8, %v8827_v22  ;;  %v2000_v53 = vadd.f32 %v9287_v16, %v8835_v51  ;;  %v4986_v60 = vld [vmem:[#allocation2 + $0x94] sm:$0xf]  ;;  %v5803_v16 = vld [vmem:[#allocation2 + $0x90] sm:$0xe] }
 0x179   : > { %v9395_v61 = vpop.f32.mrf.mxu1  ;;  %v9397_v15 = vpop.f32.mrf.mxu0  ;;  %7968 = vmatprep.mubr.bf16.mxu0 %v7157_v2  ;;  %7920 = vmatprep.mubr.bf16.mxu1 %v7101_v3  ;;  %v5259_v20 = vrot.slane %v5258_v45, 4  ;;  %v5269_v35 = vrot.slane %v5268_v27, 4  ;;  %v1998_v54 = vadd.f32 %v9307_v25, %v8839_v56  ;;  %v5276_v0 = vshrl.u32 %v4985_v31, 16 }
 0x17a   : > { %v5970_v18 = vsel %vm8439_vm12, %v5968_v17, %v5969_v44  ;;  %v9414_v22 = vadd.f32 %v9259_v1, %v1997_v37  ;;  %v9417_v51 = vadd.f32 %v9271_v11, %v2000_v53  ;;  %v5279_v8 = vshll.u32 %v4985_v31, 16  ;;  %v4988_v31 = vld [vmem:[#allocation2 + $0x9c] sm:$0xf] }
 0x17b   : > { %v9407_v23 = vpop.f32.mrf.mxu1  ;;  %v9409_v24 = vpop.f32.mrf.mxu0  ;;  %v5264_v56 = vsel %vm8445_vm13, %v5259_v20, %v5263_v26  ;;  %v5274_v25 = vsel %vm8445_vm13, %v5269_v35, %v5273_v38  ;;  %v7158_v43 = vcombine.low %v5967_v57, %v5970_v18  ;;  %v9424_v2 = vadd.f32 %v9305_v49, %v1998_v54  ;;  %v4989_v38 = vld [vmem:[#allocation2 + $0xa0] sm:$0xf] }
 0x17c   : > { %9965 = vst [vmem:[#allocation28_spill] sm:$0xff] %v9414_v22  ;;  %9966 = vst [vmem:[#allocation29_spill] sm:$0xff] %v9417_v51  ;;  %v7102_v1 = vcombine.low %v5264_v56, %v5274_v25  ;;  %v5278_v14 = vrot.slane %v5276_v0, 4  ;;  %v5281_v11 = vrot.slane %v5279_v8, 5  ;;  %v5285_v21 = vshll.u32 %v4986_v60, 16 }
 0x17d   : > { %9967 = vst [vmem:[#allocation30_spill] sm:$0xff] %v9424_v2  ;;  %v9426_v30 = vpop.f32.mrf.mxu1  ;;  %v5289_v41 = vshrl.u32 %v4986_v60, 16  ;;  %v5295_v32 = vshll.u32 %v4987_v52, 16  ;;  %v7127_v36 = vrot.slane %v5803_v16, 9  ;;  %v5973_v44 = vrot.slane %v5804_v9, 5 }
 0x17e   : > { %7921 = vmatmul.mubr.bf16.gmra.mxu1 %v7102_v1  ;;  %v5282_v3 = vor.u32 %v5281_v11, %v5278_v14  ;;  %v5287_v45 = vrot.slane %v5285_v21, 5  ;;  %v5976_v27 = vrot.slane %v5805_v7, 5  ;;  %v2003_v49 = vadd.f32 %v9324_v10, %v8849_v29  ;;  %v4990_v60 = vld [vmem:[#allocation2 + $0xa4] sm:$0x1]  ;;  %v5806_v29 = vld [vmem:[#allocation2 + $0x9c] sm:$0xe] }
 0x17f   : > { %v9428_v26 = vpop.f32.mrf.mxu0  ;;  %v5291_v57 = vrot.slane %v5289_v41, 4  ;;  %v5297_v17 = vrot.slane %v5295_v32, 5  ;;  %v5974_v37 = vsel %vm8439_vm12, %v7127_v36, %v5973_v44  ;;  %v5975_v53 = vrot.slane %v5973_v44, 4  ;;  %v5807_v56 = vld [vmem:[#allocation2 + $0xa0] sm:$0xf] }
 0x180   : > { %7969 = vmatmul.mubr.bf16.gmra.mxu0 %v7158_v43  ;;  %v5283_v54 = vrot.slane %v5282_v3, 4  ;;  %v9439_v52 = vadd.f32 %v9315_v12, %v2003_v49  ;;  %v5300_v0 = vshrl.u32 %v4988_v31, 16  ;;  %v5303_v18 = vshll.u32 %v4988_v31, 16  ;;  %v5808_v25 = vld [vmem:[#allocation2 + $0xa4] sm:$0x1] }
 0x181   : > { %v9434_v20 = vpop.f32.mrf.mxu1  ;;  %v9436_v35 = vpop.f32.mrf.mxu0  ;;  %v5292_v10 = vor.u32 %v5291_v57, %v5287_v45  ;;  %v5977_v8 = vsel %vm8439_vm12, %v5975_v53, %v5976_v27  ;;  %v5309_v16 = vshll.u32 %v4989_v38, 16  ;;  %v5313_v9 = vshrl.u32 %v4989_v38, 16 }
 0x182   : > { %9968 = vst [vmem:[#allocation31_spill] sm:$0xff] %v9439_v52  ;;  %v5288_v1 = vsel %vm8445_vm13, %v5283_v54, %v5287_v45  ;;  %v7159_v12 = vcombine.low %v5974_v37, %v5977_v8  ;;  %v5302_v14 = vrot.slane %v5300_v0, 4  ;;  %v5305_v11 = vrot.slane %v5303_v18, 5  ;;  %v9969_v45 = vld [vmem:[#allocation4_spill] sm:$0xff]  ;;  %v4991_v54 = vld [vmem:[#allocation2 + $0xa8] sm:$0xf] }
 0x183   : > { %v9443_v43 = vpop.f32.mrf.mxu1  ;;  %v9445_v7 = vpop.f32.mrf.mxu0  ;;  %v5293_v21 = vrot.slane %v5292_v10, 4  ;;  %v5311_v41 = vrot.slane %v5309_v16, 5  ;;  %v5315_v32 = vrot.slane %v5313_v9, 4  ;;  %v5319_v36 = vshll.u32 %v4990_v60, 16 }
 0x184   : > { %7972 = vmatprep.mubr.bf16.mxu0 %v7159_v12  ;;  %v5306_v31 = vor.u32 %v5305_v11, %v5302_v14  ;;  %v7128_v3 = vrot.slane %v5806_v29, 9  ;;  %v5980_v27 = vrot.slane %v5807_v56, 5  ;;  %v5983_v49 = vrot.slane %v5808_v25, 5  ;;  %v9972_v25 = vld [vmem:[#allocation6_spill] sm:$0xff]  ;;  %v4993_v14 = vld [vmem:[#allocation2 + $0xb0] sm:$0x1] }
 0x185   : > { %v9449_v44 = vpop.f32.mrf.mxu1  ;;  %v5298_v38 = vsel %vm8445_vm13, %v5293_v21, %v5297_v17  ;;  %v5316_v57 = vor.u32 %v5315_v32, %v5311_v41  ;;  %v5321_v53 = vrot.slane %v5319_v36, 5  ;;  %v2001_v37 = vadd.f32 %v9337_v13, %v9969_v45  ;;  %v9457_v18 = vpop.f32.mrf.mxu0  ;;  %v9971_v17 = vld [vmem:[#allocation5_spill] sm:$0xff]  ;;  %v4992_v12 = vld [vmem:[#allocation2 + $0xac] sm:$0xf]  ;;  %v5809_v36 = vld [vmem:[#allocation2 + $0xa8] sm:$0xe] }
 0x186   : > { %v7103_v60 = vcombine.low %v5288_v1, %v5298_v38  ;;  %v5307_v10 = vrot.slane %v5306_v31, 4  ;;  %v5981_v29 = vsel %vm8439_vm12, %v7128_v3, %v5980_v27  ;;  %v5982_v8 = vrot.slane %v5980_v27, 4  ;;  %v5810_v31 = vld [vmem:[#allocation2 + $0xac] sm:$0xf]  ;;  %v5811_v38 = vld [vmem:[#allocation2 + $0xb0] sm:$0x1] }
 0x187   : > { %v9455_v0 = vpop.f32.mrf.mxu1  ;;  %v5317_v16 = vrot.slane %v5316_v57, 4  ;;  %v9462_v9 = vadd.f32 %v9330_v55, %v2001_v37  ;;  %v2004_v56 = vadd.f32 %v9365_v39, %v9971_v17  ;;  %v2002_v13 = vadd.f32 %v9378_v6, %v9972_v25  ;;  %v9975_v25 = vld [vmem:[#allocation7_spill] sm:$0xff] }
 0x188   : > { %7924 = vmatprep.mubr.bf16.mxu1 %v7103_v60  ;;  %v5312_v1 = vsel %vm8445_vm13, %v5307_v10, %v5311_v41  ;;  %v5984_v21 = vsel %vm8439_vm12, %v5982_v8, %v5983_v49  ;;  %v5324_v32 = vshrl.u32 %v4991_v54, 16  ;;  %v5327_v55 = vshll.u32 %v4991_v54, 16  ;;  %v4994_v8 = vld [vmem:[#allocation2 + $0xb4] sm:$0xf] }
 0x189   : > { %9970 = vst [vmem:[#allocation4_spill] sm:$0xff] %v9462_v9  ;;  %v9468_v11 = vpop.f32.mrf.mxu1  ;;  %v5322_v39 = vsel %vm8445_vm13, %v5317_v16, %v5321_v53  ;;  %v7160_v3 = vcombine.low %v5981_v29, %v5984_v21  ;;  %v9477_v6 = vadd.f32 %v9351_v40, %v2004_v56  ;;  %v9480_v27 = vadd.f32 %v9372_v19, %v2002_v13 }
 0x18a   : > { %v7104_v49 = vcombine.low %v5312_v1, %v5322_v39  ;;  %v5326_v45 = vrot.slane %v5324_v32, 4  ;;  %v5329_v37 = vrot.slane %v5327_v55, 5  ;;  %v5333_v54 = vshll.u32 %v4992_v12, 16  ;;  %v4995_v1 = vld [vmem:[#allocation2 + $0xb8] sm:$0xf] }
 0x18b   : > { %9973 = vst [vmem:[#allocation5_spill] sm:$0xff] %v9477_v6  ;;  %9974 = vst [vmem:[#allocation6_spill] sm:$0xff] %v9480_v27  ;;  %v9482_v57 = vpop.f32.mrf.mxu0  ;;  %v9484_v41 = vpop.f32.mrf.mxu1  ;;  %7973 = vmatmul.mubr.bf16.gmra.mxu0 %v7160_v3  ;;  %v5337_v60 = vshrl.u32 %v4992_v12, 16  ;;  %v5343_v10 = vshll.u32 %v4993_v14, 16  ;;  %v7129_v53 = vrot.slane %v5809_v36, 9  ;;  %v5987_v29 = vrot.slane %v5810_v31, 5 }
 0x18c   : > { %7925 = vmatmul.mubr.bf16.gmra.mxu1 %v7104_v49  ;;  %v5330_v19 = vor.u32 %v5329_v37, %v5326_v45  ;;  %v5335_v17 = vrot.slane %v5333_v54, 5  ;;  %v5990_v56 = vrot.slane %v5811_v38, 5  ;;  %v2007_v13 = vadd.f32 %v9389_v4, %v9975_v25  ;;  %v4996_v55 = vld [vmem:[#allocation2 + $0xbc] sm:$0x1]  ;;  %v5812_v45 = vld [vmem:[#allocation2 + $0xb4] sm:$0xe] }
 0x18d   : > { %v9486_v40 = vpop.f32.mrf.mxu0  ;;  %v9488_v16 = vpop.f32.mrf.mxu1  ;;  %v5339_v21 = vrot.slane %v5337_v60, 4  ;;  %v5345_v32 = vrot.slane %v5343_v10, 5  ;;  %v5988_v12 = vsel %vm8439_vm12, %v7129_v53, %v5987_v29  ;;  %v5989_v14 = vrot.slane %v5987_v29, 4  ;;  %v5813_v10 = vld [vmem:[#allocation2 + $0xb8] sm:$0xf] }
 0x18e   : > { %v5331_v39 = vrot.slane %v5330_v19, 4  ;;  %v9499_v3 = vadd.f32 %v9385_v63, %v2007_v13  ;;  %v5348_v38 = vshrl.u32 %v4994_v8, 16  ;;  %v5351_v49 = vshll.u32 %v4994_v8, 16  ;;  %v5814_v53 = vld [vmem:[#allocation2 + $0xbc] sm:$0x1] }
 0x18f   : > { %v9494_v36 = vpop.f32.mrf.mxu0  ;;  %v9496_v31 = vpop.f32.mrf.mxu1  ;;  %v5340_v4 = vor.u32 %v5339_v21, %v5335_v17  ;;  %v5991_v37 = vsel %vm8439_vm12, %v5989_v14, %v5990_v56  ;;  %v5357_v54 = vshll.u32 %v4995_v1, 16  ;;  %v5361_v60 = vshrl.u32 %v4995_v1, 16 }
 0x190   : > { %9976 = vst [vmem:[#allocation7_spill] sm:$0xff] %v9499_v3  ;;  %v5336_v19 = vsel %vm8445_vm13, %v5331_v39, %v5335_v17  ;;  %v7161_v63 = vcombine.low %v5988_v12, %v5991_v37  ;;  %v5350_v13 = vrot.slane %v5348_v38, 4  ;;  %v5353_v3 = vrot.slane %v5351_v49, 5  ;;  %v9977_v39 = vld [vmem:[#allocation8_spill] sm:$0xff]  ;;  %v4997_v49 = vld [vmem:[#allocation2 + $0xc0] sm:$0xf] }
 0x191   : > { %v9503_v29 = vpop.f32.mrf.mxu0  ;;  %v9505_v25 = vpop.f32.mrf.mxu1  ;;  %v5341_v8 = vrot.slane %v5340_v4, 4  ;;  %v5359_v27 = vrot.slane %v5357_v54, 5  ;;  %v5363_v21 = vrot.slane %v5361_v60, 4  ;;  %v5367_v6 = vshll.u32 %v4996_v55, 16 }
 0x192   : > { %7976 = vmatprep.mubr.bf16.mxu0 %v7161_v63  ;;  %v5354_v1 = vor.u32 %v5353_v3, %v5350_v13  ;;  %v7130_v14 = vrot.slane %v5812_v45, 9  ;;  %v5994_v52 = vrot.slane %v5813_v10, 5  ;;  %v5997_v2 = vrot.slane %v5814_v53, 5  ;;  %v9980_v53 = vld [vmem:[#allocation10_spill] sm:$0xff]  ;;  %v4998_v63 = vld [vmem:[#allocation2 + $0xc4] sm:$0xf] }
 0x193   : > { %v9509_v9 = vpop.f32.mrf.mxu0  ;;  %v9511_v56 = vpop.f32.mrf.mxu1  ;;  %v5346_v51 = vsel %vm8445_vm13, %v5341_v8, %v5345_v32  ;;  %v5364_v17 = vor.u32 %v5363_v21, %v5359_v27  ;;  %v5369_v12 = vrot.slane %v5367_v6, 5  ;;  %v2005_v38 = vadd.f32 %v9395_v61, %v9977_v39  ;;  %v9979_v32 = vld [vmem:[#allocation9_spill] sm:$0xff]  ;;  %v4999_v13 = vld [vmem:[#allocation2 + $0xc8] sm:$0x1] }
 0x194   : > { %v7105_v37 = vcombine.low %v5336_v19, %v5346_v51  ;;  %v5355_v54 = vrot.slane %v5354_v1, 4  ;;  %v5995_v3 = vsel %vm8439_vm12, %v7130_v14, %v5994_v52  ;;  %v5996_v45 = vrot.slane %v5994_v52, 4  ;;  %v5815_v1 = vld [vmem:[#allocation2 + $0xc0] sm:$0xe] }
 0x195   : > { %v9517_v4 = vpop.f32.mrf.mxu0  ;;  %v9519_v55 = vpop.f32.mrf.mxu1  ;;  %v5365_v60 = vrot.slane %v5364_v17, 4  ;;  %v9524_v10 = vadd.f32 %v9391_v48, %v2005_v38  ;;  %v2008_v6 = vadd.f32 %v9407_v23, %v9979_v32  ;;  %v2006_v61 = vadd.f32 %v9426_v30, %v9980_v53  ;;  %v5816_v23 = vld [vmem:[#allocation2 + $0xc4] sm:$0xf]  ;;  %v5817_v38 = vld [vmem:[#allocation2 + $0xc8] sm:$0x1] }
 0x196   : > { %7928 = vmatprep.mubr.bf16.mxu1 %v7105_v37  ;;  %v5360_v52 = vsel %vm8445_vm13, %v5355_v54, %v5359_v27  ;;  %v5998_v48 = vsel %vm8439_vm12, %v5996_v45, %v5997_v2  ;;  %v5372_v19 = vshrl.u32 %v4997_v49, 16  ;;  %v5375_v21 = vshll.u32 %v4997_v49, 16 }
 0x197   : > { %9978 = vst [vmem:[#allocation8_spill] sm:$0xff] %v9524_v10  ;;  %v9530_v8 = vpop.f32.mrf.mxu0  ;;  %v9532_v51 = vpop.f32.mrf.mxu1  ;;  %v5370_v30 = vsel %vm8445_vm13, %v5365_v60, %v5369_v12  ;;  %v7162_v14 = vcombine.low %v5995_v3, %v5998_v48  ;;  %v9541_v17 = vadd.f32 %v9397_v15, %v2008_v6  ;;  %v9544_v39 = vadd.f32 %v9409_v24, %v2006_v61  ;;  %v5000_v60 = vld [vmem:[#allocation2 + $0xcc] sm:$0xf] }
 0x198   : > { %v7106_v2 = vcombine.low %v5360_v52, %v5370_v30  ;;  %v5374_v54 = vrot.slane %v5372_v19, 4  ;;  %v5377_v49 = vrot.slane %v5375_v21, 5  ;;  %v5381_v45 = vshll.u32 %v4998_v63, 16  ;;  %v5001_v19 = vld [vmem:[#allocation2 + $0xd0] sm:$0xf] }
 0x199   : > { %9981 = vst [vmem:[#allocation9_spill] sm:$0xff] %v9541_v17  ;;  %9982 = vst [vmem:[#allocation10_spill] sm:$0xff] %v9544_v39  ;;  %v9546_v37 = vpop.f32.mrf.mxu0  ;;  %v9548_v27 = vpop.f32.mrf.mxu1  ;;  %7977 = vmatmul.mubr.bf16.gmra.mxu0 %v7162_v14  ;;  %v5385_v32 = vshrl.u32 %v4998_v63, 16  ;;  %v5391_v53 = vshll.u32 %v4999_v13, 16  ;;  %v7131_v12 = vrot.slane %v5815_v1, 9  ;;  %v6001_v3 = vrot.slane %v5816_v23, 5 }
 0x19a   : > { %7929 = vmatmul.mubr.bf16.gmra.mxu1 %v7106_v2  ;;  %v5378_v24 = vor.u32 %v5377_v49, %v5374_v54  ;;  %v5383_v61 = vrot.slane %v5381_v45, 5  ;;  %v6004_v48 = vrot.slane %v5817_v38, 5  ;;  %v9983_v39 = vld [vmem:[#allocation11_spill] sm:$0xff]  ;;  %v5396_v38 = vshrl.u32 %v5000_v60, 16  ;;  %v5818_v49 = vld [vmem:[#allocation2 + $0xcc] sm:$0xe] }
 0x19b   : > { %v9552_v6 = vpop.f32.mrf.mxu1  ;;  %v2011_v52 = vadd.f32 %v9434_v20, %v9983_v39  ;;  %v5387_v21 = vrot.slane %v5385_v32, 4  ;;  %v5393_v30 = vrot.slane %v5391_v53, 5  ;;  %v6002_v63 = vsel %vm8439_vm12, %v7131_v12, %v6001_v3  ;;  %v5002_v1 = vld [vmem:[#allocation2 + $0xd4] sm:$0x1]  ;;  %v5819_v53 = vld [vmem:[#allocation2 + $0xd0] sm:$0xf] }
 0x19c   : > { %v9550_v15 = vpop.f32.mrf.mxu0  ;;  %v6003_v13 = vrot.slane %v6001_v3, 4  ;;  %v5379_v17 = vrot.slane %v5378_v24, 4  ;;  %v5399_v54 = vshll.u32 %v5000_v60, 16  ;;  %v5405_v45 = vshll.u32 %v5001_v19, 16  ;;  %v5820_v12 = vld [vmem:[#allocation2 + $0xd4] sm:$0x1] }
 0x19d   : > { %v9560_v14 = vpop.f32.mrf.mxu1  ;;  %v9563_v2 = vadd.f32 %v9428_v26, %v2011_v52  ;;  %v5388_v20 = vor.u32 %v5387_v21, %v5383_v61  ;;  %v5409_v32 = vshrl.u32 %v5001_v19, 16  ;;  %v5398_v52 = vrot.slane %v5396_v38, 4 }
 0x19e   : > { %v9558_v23 = vpop.f32.mrf.mxu0  ;;  %v6005_v39 = vsel %vm8439_vm12, %v6003_v13, %v6004_v48  ;;  %v5384_v24 = vsel %vm8445_vm13, %v5379_v17, %v5383_v61  ;;  %v5407_v22 = vrot.slane %v5405_v45, 5  ;;  %v5415_v28 = vshll.u32 %v5002_v1, 16  ;;  %v9986_v61 = vld [vmem:[#allocation12_spill] sm:$0xff] }
 0x19f   : > { %9984 = vst [vmem:[#allocation11_spill] sm:$0xff] %v9563_v2  ;;  %v9569_v10 = vpop.f32.mrf.mxu1  ;;  %v7163_v26 = vcombine.low %v6002_v63, %v6005_v39  ;;  %v5401_v2 = vrot.slane %v5399_v54, 5  ;;  %v5389_v60 = vrot.slane %v5388_v20, 4  ;;  %v5411_v21 = vrot.slane %v5409_v32, 4 }
 0x1a0   : > { %v9567_v3 = vpop.f32.mrf.mxu0  ;;  %v7132_v13 = vrot.slane %v5818_v49, 9  ;;  %v6008_v58 = vrot.slane %v5819_v53, 5  ;;  %v5417_v17 = vrot.slane %v5415_v28, 5  ;;  %v2009_v63 = vadd.f32 %v9443_v43, %v9986_v61  ;;  %v9987_v49 = vld [vmem:[#allocation13_spill] sm:$0xff] }
 0x1a1   : > { %9985 = vst [vmem:[#allocation32_spill] sm:$0xff] %v9567_v3  ;;  %v7726_v48 = vpop.f32.mrf.mxu1  ;;  %7980 = vmatprep.mubr.bf16.mxu0 %v7163_v26  ;;  %v5402_v19 = vor.u32 %v5401_v2, %v5398_v52  ;;  %v6011_v3 = vrot.slane %v5820_v12, 5  ;;  %v5394_v59 = vsel %vm8445_vm13, %v5389_v60, %v5393_v30  ;;  %v5412_v34 = vor.u32 %v5411_v21, %v5407_v22  ;;  %v9988_v30 = vld [vmem:[#allocation14_spill] sm:$0xff] }
 0x1a2   : > { %v9573_v46 = vpop.f32.mrf.mxu0  ;;  %v7107_v54 = vcombine.low %v5384_v24, %v5394_v59  ;;  %v6009_v1 = vsel %vm8439_vm12, %v7132_v13, %v6008_v58  ;;  %v6010_v39 = vrot.slane %v6008_v58, 4  ;;  %v9582_v2 = vadd.f32 %v9436_v35, %v2009_v63  ;;  %v9989_v58 = vld [vmem:[#allocation15_spill] sm:$0xff]  ;;  %v9990_v35 = vld [vmem:[#allocation16_spill] sm:$0xff]  ;;  %v9992_v21 = vld [vmem:[#allocation18_spill] sm:$0xff] }
 0x1a3   : > { %v2949_v38 = vpop.f32.mrf.mxu1  ;;  %v5403_v20 = vrot.slane %v5402_v19, 4  ;;  %v5413_v45 = vrot.slane %v5412_v34, 4  ;;  %v2012_v32 = vadd.f32 %v9449_v44, %v9987_v49  ;;  %v2010_v28 = vadd.f32 %v9455_v0, %v9988_v30  ;;  %v9993_v19 = vld [vmem:[#allocation19_spill] sm:$0xff]  ;;  %v9994_v13 = vld [vmem:[#allocation20_spill] sm:$0xff]  ;;  %v9999_v49 = vld [vmem:[#allocation25_spill] sm:$0xff] }
 0x1a4   : > { %7932 = vmatprep.mubr.bf16.mxu1 %v7107_v54  ;;  %v6012_v43 = vsel %vm8439_vm12, %v6010_v39, %v6011_v3  ;;  %v3030_v34 = vadd.f32 %v9468_v11, %v9989_v58  ;;  %v3028_v24 = vadd.f32 %v9484_v41, %v9990_v35  ;;  %v9991_v41 = vld [vmem:[#allocation17_spill] sm:$0xff] }
 0x1a5   : > { %v7727_v12 = vpop.f32.mrf.mxu1  ;;  %v5408_v59 = vsel %vm8445_vm13, %v5403_v20, %v5407_v22  ;;  %v5418_v44 = vsel %vm8445_vm13, %v5413_v45, %v5417_v17  ;;  %v7164_v26 = vcombine.low %v6009_v1, %v6012_v43  ;;  %v9599_v0 = vadd.f32 %v9445_v7, %v2012_v32  ;;  %v9996_v20 = vld [vmem:[#allocation22_spill] sm:$0xff]  ;;  %v10002_v43 = vld [vmem:[#allocation27_spill] sm:$0xff] }
 0x1a6   : > { %v7774_v53 = vpop.f32.mrf.mxu0  ;;  %v9602_v52 = vadd.f32 %v9457_v18, %v2010_v28  ;;  %v7108_v33 = vcombine.low %v5408_v59, %v5418_v44  ;;  %v9605_v3 = vadd.f32 %v9482_v57, %v3030_v34  ;;  %v9608_v11 = vadd.f32 %v9486_v40, %v3028_v24  ;;  %v10001_v59 = vld [vmem:[#allocation26_spill] sm:$0xff]  ;;  %v10003_v34 = vld [vmem:[#allocation28_spill] sm:$0xff] }
 0x1a7   : > { %v2952_v60 = vpop.f32.mrf.mxu1  ;;  %v3031_v42 = vadd.f32 %v9488_v16, %v9991_v41  ;;  %7981 = vmatmul.mubr.bf16.gmra.mxu0 %v7164_v26  ;;  %v3029_v7 = vadd.f32 %v9496_v31, %v9992_v21  ;;  %v3034_v18 = vadd.f32 %v9505_v25, %v9993_v19  ;;  %v3032_v17 = vadd.f32 %v9511_v56, %v9994_v13  ;;  %v9995_v16 = vld [vmem:[#allocation21_spill] sm:$0xff]  ;;  %v10005_v41 = vld [vmem:[#allocation30_spill] sm:$0xff]  ;;  %v10007_v13 = vld [vmem:[#allocation4_spill] sm:$0xff] }
 0x1a8   : > { %v3767_v22 = vpop.f32.mrf.mxu0  ;;  %v3035_v57 = vadd.f32 %v9519_v55, %v9197_v47  ;;  %7933 = vmatmul.mubr.bf16.gmra.mxu1 %v7108_v33  ;;  %v3033_v54 = vadd.f32 %v9532_v51, %v9995_v16  ;;  %v3038_v31 = vadd.f32 %v9548_v27, %v9996_v20  ;;  %v3036_v25 = vadd.f32 %v9552_v6, %v9277_v5  ;;  %v9998_v6 = vld [vmem:[#allocation24_spill] sm:$0xff]  ;;  %v10004_v26 = vld [vmem:[#allocation29_spill] sm:$0xff] }
 0x1a9   : > { %v7730_v63 = vpop.f32.mrf.mxu1  ;;  %v9621_v40 = vadd.f32 %v9494_v36, %v3031_v42  ;;  %v9630_v56 = vadd.f32 %v9503_v29, %v3029_v7  ;;  %v9633_v47 = vadd.f32 %v9509_v9, %v3034_v18  ;;  %v9636_v55 = vadd.f32 %v9517_v4, %v3032_v17  ;;  %v9997_v4 = vld [vmem:[#allocation23_spill] sm:$0xff]  ;;  %v10000_v28 = vld [vmem:[#allocation32_spill] sm:$0xff] }
 0x1aa   : > { %v7775_v61 = vpop.f32.mrf.mxu0  ;;  %v9639_v36 = vadd.f32 %v9530_v8, %v3035_v57  ;;  %v9642_v39 = vadd.f32 %v9546_v37, %v3033_v54  ;;  %v9645_v27 = vadd.f32 %v9550_v15, %v3038_v31  ;;  %v9648_v5 = vadd.f32 %v9558_v23, %v3036_v25  ;;  %v10009_v31 = vld [vmem:[#allocation6_spill] sm:$0xff] }
 0x1ab   : > { %v2965_v51 = vpop.f32.mrf.mxu1  ;;  %v3039_v9 = vadd.f32 %v9560_v14, %v9295_v62  ;;  %v3037_v29 = vadd.f32 %v9569_v10, %v9298_v50  ;;  %v3042_v8 = vadd.f32 %v7726_v48, %v9997_v4  ;;  %v3040_v45 = vadd.f32 %v2949_v38, %v9998_v6 }
 0x1ac   : > { %v3770_v1 = vpop.f32.mrf.mxu0  ;;  %v3043_v32 = vadd.f32 %v7727_v12, %v9999_v49  ;;  %v3041_v23 = vadd.f32 %v2952_v60, %v10001_v59  ;;  %v3046_v58 = vadd.f32 %v7730_v63, %v10002_v43  ;;  %v3044_v62 = vadd.f32 %v2965_v51, %v10003_v34  ;;  %v10011_v49 = vld [vmem:[#allocation8_spill] sm:$0xff]  ;;  %v10012_v59 = vld [vmem:[#allocation9_spill] sm:$0xff] }
 0x1ad   : > { %v7731_v30 = vpop.f32.mrf.mxu1  ;;  %v9658_v15 = vadd.f32 %v10000_v28, %v3039_v9  ;;  %v9664_v14 = vadd.f32 %v9573_v46, %v3037_v29  ;;  %v9666_v50 = vadd.f32 %v7774_v53, %v3042_v8  ;;  %v9668_v10 = vadd.f32 %v3767_v22, %v3040_v45  ;;  %v10006_v22 = vld [vmem:[#allocation31_spill] sm:$0xff] }
 0x1ae   : > { %v7778_v37 = vpop.f32.mrf.mxu0  ;;  %v9670_v48 = vadd.f32 %v7775_v61, %v3043_v32  ;;  %v9672_v35 = vadd.f32 %v3770_v1, %v3041_v23  ;;  %v3047_v60 = vadd.f32 %v7731_v30, %v10004_v26  ;;  %v10008_v61 = vld [vmem:[#allocation5_spill] sm:$0xff]  ;;  %v10010_v29 = vld [vmem:[#allocation7_spill] sm:$0xff] }
 0x1af   : > { %v2968_v12 = vpop.f32.mrf.mxu1  ;;  %v9674_v24 = vadd.f32 %v7778_v37, %v3046_v58  ;;  %v10013_v58 = vld [vmem:[#allocation10_spill] sm:$0xff] }
 0x1b0   : > { %v3783_v38 = vpop.f32.mrf.mxu0  ;;  %v3045_v46 = vadd.f32 %v2968_v12, %v10005_v41 }
 0x1b1   : > { %v9676_v44 = vadd.f32 %v3783_v38, %v3044_v62  ;;  %v7734_v42 = vpop.f32.mrf.mxu1 }
 0x1b2   : > { %v7779_v33 = vpop.f32.mrf.mxu0  ;;  %v3050_v21 = vadd.f32 %v7734_v42, %v10006_v22  ;;  %v10014_v22 = vld [vmem:[#allocation11_spill] sm:$0xff] }
 0x1b3   : > { %v9680_v53 = vadd.f32 %v7779_v33, %v3047_v60  ;;  %v2981_v19 = vpop.f32.mrf.mxu1 }
 0x1b4   : > { %v3786_v7 = vpop.f32.mrf.mxu0  ;;  %v3048_v17 = vadd.f32 %v2981_v19, %v10007_v13 }
 0x1b5   : > { %v9683_v18 = vadd.f32 %v3786_v7, %v3045_v46  ;;  %v7735_v57 = vpop.f32.mrf.mxu1 }
 0x1b6   : > { %v3051_v63 = vadd.f32 %v7735_v57, %v10008_v61  ;;  %v7782_v16 = vpop.f32.mrf.mxu0 }
 0x1b7   : > { %v2984_v54 = vpop.f32.mrf.mxu1  ;;  %v9687_v20 = vadd.f32 %v7782_v16, %v3050_v21 }
 0x1b8   : > { %v3049_v25 = vadd.f32 %v2984_v54, %v10009_v31  ;;  %v3799_v1 = vpop.f32.mrf.mxu0 }
 0x1b9   : > { %v7738_v51 = vpop.f32.mrf.mxu1  ;;  %v9690_v9 = vadd.f32 %v3799_v1, %v3048_v17 }
 0x1ba   : > { %v3054_v4 = vadd.f32 %v7738_v51, %v10010_v29  ;;  %v7783_v8 = vpop.f32.mrf.mxu0 }
 0x1bb   : > { %v2997_v6 = vpop.f32.mrf.mxu1  ;;  %v9693_v45 = vadd.f32 %v7783_v8, %v3051_v63 }
 0x1bc   : > { %v3052_v32 = vadd.f32 %v2997_v6, %v10011_v49  ;;  %v3802_v37 = vpop.f32.mrf.mxu0 }
 0x1bd   : > { %v7739_v30 = vpop.f32.mrf.mxu1  ;;  %v9696_v28 = vadd.f32 %v3802_v37, %v3049_v25 }
 0x1be   : > { %v3055_v23 = vadd.f32 %v7739_v30, %v10012_v59  ;;  %v7786_v62 = vpop.f32.mrf.mxu0 }
 0x1bf   : > { %v3000_v43 = vpop.f32.mrf.mxu1  ;;  %v9700_v38 = vadd.f32 %v7786_v62, %v3054_v4 }
 0x1c0   : > { %v3053_v34 = vadd.f32 %v3000_v43, %v10013_v58  ;;  %v3815_v12 = vpop.f32.mrf.mxu0 }
 0x1c1   : > { %v9702_v26 = vadd.f32 %v3815_v12, %v3052_v32 }
 0x1c2   : > { %v7787_v60 = vpop.f32.mrf.mxu0 }
 0x1c3   : > { %v9704_v33 = vadd.f32 %v7787_v60, %v3055_v23 }
 0x1c4   : > { %v3818_v41 = vpop.f32.mrf.mxu0 }
 0x1c5   : > { %v9706_v46 = vadd.f32 %v3818_v41, %v3053_v34 }
 0x1c9   : > { %v7742_v42 = vpop.f32.mrf.mxu1 }
 0x1ca   : > { %v3058_v21 = vadd.f32 %v7742_v42, %v10014_v22 }
 0x1cb   : > { %v3013_v7 = vpop.f32.mrf.mxu1 }
 0x1cc   : > { %v3056_v19 = vadd.f32 %v3013_v7, %v9582_v2 }
 0x1cd   : > { %v7743_v13 = vpop.f32.mrf.mxu1 }
 0x1ce   : > { %v3059_v17 = vadd.f32 %v7743_v13, %v9599_v0 }
 0x1cf   : > { %v3016_v57 = vpop.f32.mrf.mxu1 }
 0x1d0   : > { %v3057_v61 = vadd.f32 %v3016_v57, %v9602_v52 }
 0x1d1   : > { %v7810_v63 = vpop.f32.mrf.mxu1 }
 0x1d2   : > { %v4442_v16 = vadd.f32 %v7810_v63, %v9605_v3 }
 0x1d3   : > { %v4313_v31 = vpop.f32.mrf.mxu1 }
 0x1d4   : > { %v4440_v1 = vadd.f32 %v4313_v31, %v9608_v11 }
 0x1d5   : > { %v7790_v54 = vpop.f32.mrf.mxu0  ;;  %v9716_v29 = vpop.f32.mrf.mxu1 }
 0x1d6   : > { %v9713_v25 = vadd.f32 %v7790_v54, %v3058_v21 }
 0x1d7   : > { %v3831_v51 = vpop.f32.mrf.mxu0  ;;  %v9720_v8 = vpop.f32.mrf.mxu1 }
 0x1d8   : > { %v9718_v4 = vadd.f32 %v3831_v51, %v3056_v19 }
 0x1d9   : > { %v7791_v2 = vpop.f32.mrf.mxu0  ;;  %v7814_v6 = vpop.f32.mrf.mxu1 }
 0x1da   : > { %v9722_v0 = vadd.f32 %v7791_v2, %v3059_v17  ;;  %v4446_v3 = vadd.f32 %v7814_v6, %v9633_v47 }
 0x1db   : > { %v3834_v52 = vpop.f32.mrf.mxu0  ;;  %v4329_v37 = vpop.f32.mrf.mxu1 }
 0x1dc   : > { %v9724_v49 = vadd.f32 %v3834_v52, %v3057_v61  ;;  %v4444_v11 = vadd.f32 %v4329_v37, %v9636_v55 }
 0x1dd   : > { %v7858_v32 = vpop.f32.mrf.mxu0  ;;  %v9730_v23 = vpop.f32.mrf.mxu1 }
 0x1de   : > { %v9727_v30 = vadd.f32 %v7858_v32, %v4442_v16 }
 0x1df   : > { %v4764_v59 = vpop.f32.mrf.mxu0  ;;  %v9736_v34 = vpop.f32.mrf.mxu1 }
 0x1e0   : > { %v9732_v43 = vadd.f32 %v4764_v59, %v4440_v1 }
 0x1e1   : > { %v9734_v58 = vpop.f32.mrf.mxu0  ;;  %v7818_v12 = vpop.f32.mrf.mxu1 }
 0x1e2   : > { %v4450_v47 = vadd.f32 %v7818_v12, %v9645_v27 }
 0x1e3   : > { %v9738_v62 = vpop.f32.mrf.mxu0  ;;  %v4345_v41 = vpop.f32.mrf.mxu1 }
 0x1e4   : > { %v4448_v55 = vadd.f32 %v4345_v41, %v9648_v5 }
 0x1e5   : > { %v7862_v60 = vpop.f32.mrf.mxu0  ;;  %v9744_v21 = vpop.f32.mrf.mxu1 }
 0x1e6   : > { %v9741_v42 = vadd.f32 %v7862_v60, %v4446_v3 }
 0x1e7   : > { %v4780_v22 = vpop.f32.mrf.mxu0  ;;  %v9750_v13 = vpop.f32.mrf.mxu1 }
 0x1e8   : > { %v9746_v7 = vadd.f32 %v4780_v22, %v4444_v11 }
 0x1e9   : > { %v9748_v19 = vpop.f32.mrf.mxu0 }
 0x1eb   : > { %v9752_v17 = vpop.f32.mrf.mxu0  ;;  %v7822_v57 = vpop.f32.mrf.mxu1 }
 0x1ec   : > { %v4454_v27 = vadd.f32 %v7822_v57, %v9666_v50 }
 0x1ed   : > { %v7866_v61 = vpop.f32.mrf.mxu0  ;;  %v4361_v63 = vpop.f32.mrf.mxu1 }
 0x1ee   : > { %v9755_v16 = vadd.f32 %v7866_v61, %v4450_v47  ;;  %v4452_v5 = vadd.f32 %v4361_v63, %v9668_v10 }
 0x1ef   : > { %v4796_v54 = vpop.f32.mrf.mxu0  ;;  %v9758_v31 = vpop.f32.mrf.mxu1 }
 0x1f0   : > { %v9760_v1 = vadd.f32 %v4796_v54, %v4448_v55 }
 0x1f1   : > { %v9762_v51 = vpop.f32.mrf.mxu0  ;;  %v9764_v2 = vpop.f32.mrf.mxu1 }
 0x1f3   : > { %v9766_v52 = vpop.f32.mrf.mxu0 }
 0x1f4   : > { %v7826_v6 = vpop.f32.mrf.mxu1 }
 0x1f5   : > { %v4458_v50 = vadd.f32 %v7826_v6, %v9674_v24  ;;  %v7870_v3 = vpop.f32.mrf.mxu0 }
 0x1f6   : > { %v4377_v32 = vpop.f32.mrf.mxu1  ;;  %v9769_v37 = vadd.f32 %v7870_v3, %v4454_v27 }
 0x1f7   : > { %v4456_v10 = vadd.f32 %v4377_v32, %v9676_v44  ;;  %v4812_v11 = vpop.f32.mrf.mxu0 }
 0x1f8   : > { %v9772_v59 = vpop.f32.mrf.mxu1  ;;  %v9774_v12 = vadd.f32 %v4812_v11, %v4452_v5 }
 0x1f9   : > { %v9776_v47 = vpop.f32.mrf.mxu0 }
 0x1fa   : > { %v9778_v60 = vpop.f32.mrf.mxu1 }
 0x1fb   : > { %v9780_v41 = vpop.f32.mrf.mxu0 }
 0x1fc   : > { %v7830_v55 = vpop.f32.mrf.mxu1 }
 0x1fd   : > { %v4462_v24 = vadd.f32 %v7830_v55, %v9687_v20  ;;  %v7874_v22 = vpop.f32.mrf.mxu0 }
 0x1fe   : > { %v4393_v57 = vpop.f32.mrf.mxu1  ;;  %v9783_v27 = vadd.f32 %v7874_v22, %v4458_v50 }
 0x1ff   : > { %v4460_v44 = vadd.f32 %v4393_v57, %v9690_v9  ;;  %v4828_v61 = vpop.f32.mrf.mxu0 }
 0x200   : > { %10015 = vst [vmem:[#allocation12_spill] sm:$0xff] %v9783_v27  ;;  %v7831_v63 = vpop.f32.mrf.mxu1  ;;  %v9786_v54 = vadd.f32 %v4828_v61, %v4456_v10 }
 0x201   : > { %v4463_v5 = vadd.f32 %v7831_v63, %v9693_v45  ;;  %v9789_v6 = vpop.f32.mrf.mxu0 }
 0x202   : > { %10016 = vst [vmem:[#allocation13_spill] sm:$0xff] %v9789_v6  ;;  %v4396_v3 = vpop.f32.mrf.mxu1 }
 0x203   : > { %v4461_v32 = vadd.f32 %v4396_v3, %v9696_v28  ;;  %v9792_v11 = vpop.f32.mrf.mxu0 }
 0x204   : > { %10017 = vst [vmem:[#allocation14_spill] sm:$0xff] %v9792_v11  ;;  %v7834_v20 = vpop.f32.mrf.mxu1 }
 0x205   : > { %v4466_v55 = vadd.f32 %v7834_v20, %v9700_v38  ;;  %v7878_v50 = vpop.f32.mrf.mxu0 }
 0x206   : > { %v4409_v22 = vpop.f32.mrf.mxu1  ;;  %v9795_v27 = vadd.f32 %v7878_v50, %v4462_v24 }
 0x207   : > { %v4464_v9 = vadd.f32 %v4409_v22, %v9702_v26  ;;  %v4844_v10 = vpop.f32.mrf.mxu0 }
 0x208   : > { %v7835_v57 = vpop.f32.mrf.mxu1  ;;  %v9798_v61 = vadd.f32 %v4844_v10, %v4460_v44 }
 0x209   : > { %v4467_v45 = vadd.f32 %v7835_v57, %v9704_v33  ;;  %v7879_v63 = vpop.f32.mrf.mxu0 }
 0x20a   : > { %v4412_v6 = vpop.f32.mrf.mxu1  ;;  %v9801_v28 = vadd.f32 %v7879_v63, %v4463_v5 }
 0x20b   : > { %v4465_v3 = vadd.f32 %v4412_v6, %v9706_v46  ;;  %v4847_v11 = vpop.f32.mrf.mxu0 }
 0x20c   : > { %v9804_v20 = vadd.f32 %v4847_v11, %v4461_v32 }
 0x20d   : > { %v7882_v50 = vpop.f32.mrf.mxu0 }
 0x20e   : > { %v7838_v38 = vpop.f32.mrf.mxu1  ;;  %v9807_v22 = vadd.f32 %v7882_v50, %v4466_v55 }
 0x20f   : > { %v4470_v24 = vadd.f32 %v7838_v38, %v9713_v25  ;;  %v4860_v10 = vpop.f32.mrf.mxu0 }
 0x210   : > { %v4425_v26 = vpop.f32.mrf.mxu1  ;;  %10018 = vst [vmem:[#allocation15_spill] sm:$0xff] %v9807_v22  ;;  %v9810_v57 = vadd.f32 %v4860_v10, %v4464_v9  ;;  %v4443_v9 = vadd.f32 %v9716_v29, %v9621_v40 }
 0x211   : > { %v4468_v44 = vadd.f32 %v4425_v26, %v9718_v4  ;;  %v7883_v63 = vpop.f32.mrf.mxu0 }
 0x212   : > { %v7839_v33 = vpop.f32.mrf.mxu1  ;;  %v9813_v6 = vadd.f32 %v7883_v63, %v4467_v45 }
 0x213   : > { %v4471_v5 = vadd.f32 %v7839_v33, %v9722_v0  ;;  %v4863_v11 = vpop.f32.mrf.mxu0 }
 0x214   : > { %v4428_v46 = vpop.f32.mrf.mxu1  ;;  %v9816_v38 = vadd.f32 %v4863_v11, %v4465_v3 }
 0x215   : > { %v4469_v32 = vadd.f32 %v4428_v46, %v9724_v49  ;;  %v7886_v55 = vpop.f32.mrf.mxu0  ;;  %v4441_v49 = vadd.f32 %v9720_v8, %v9630_v56  ;;  %v4894_v46 = vadd.f32 %v9734_v58, %v4443_v9  ;;  %v4447_v56 = vadd.f32 %v9730_v23, %v9639_v36 }
 0x216   : > { %v7906_v25 = vpop.f32.mrf.mxu1  ;;  %v9818_v22 = vadd.f32 %v7886_v55, %v4470_v24 }
 0x217   : > { %v4876_v4 = vpop.f32.mrf.mxu0  ;;  %v4892_v40 = vadd.f32 %v9738_v62, %v4441_v49  ;;  %v5711_v29 = vadd.f32 %v7906_v25, %v9727_v30  ;;  %v4445_v62 = vadd.f32 %v9736_v34, %v9642_v39 }
 0x218   : > { %v5582_v50 = vpop.f32.mrf.mxu1  ;;  %v9822_v0 = vadd.f32 %v4876_v4, %v4468_v44 }
 0x219   : > { %v7887_v10 = vpop.f32.mrf.mxu0  ;;  %v5709_v44 = vadd.f32 %v5582_v50, %v9732_v43 }
 0x21a   : > { %v7907_v26 = vpop.f32.mrf.mxu1  ;;  %v9826_v33 = vadd.f32 %v7887_v10, %v4471_v5 }
 0x21b   : > { %v4879_v3 = vpop.f32.mrf.mxu0  ;;  %v5712_v4 = vadd.f32 %v7907_v26, %v4894_v46  ;;  %v4896_v46 = vadd.f32 %v9752_v17, %v4445_v62 }
 0x21c   : > { %v5585_v45 = vpop.f32.mrf.mxu1  ;;  %10019 = vst [vmem:[#allocation16_spill] sm:$0xff] %v9826_v33  ;;  %v9829_v24 = vadd.f32 %v4879_v3, %v4469_v32 }
 0x21d   : > { %v5710_v10 = vadd.f32 %v5585_v45, %v4892_v40 }
 0x21e   : > { %v7910_v63 = vpop.f32.mrf.mxu1  ;;  %10020 = vst [vmem:[#allocation17_spill] sm:$0xff] %v9829_v24  ;;  %v4898_v24 = vadd.f32 %v9748_v19, %v4447_v56 }
 0x21f   : > { %v7954_v11 = vpop.f32.mrf.mxu0  ;;  %v5715_v50 = vadd.f32 %v7910_v63, %v9741_v42  ;;  %v4449_v63 = vadd.f32 %v9750_v13, %v9664_v14 }
 0x220   : > { %v5598_v55 = vpop.f32.mrf.mxu1  ;;  %v6305_v32 = vadd.f32 %v7954_v11, %v5711_v29  ;;  %v4451_v11 = vadd.f32 %v9744_v21, %v9658_v15 }
 0x221   : > { %v6176_v8 = vpop.f32.mrf.mxu0  ;;  %v5713_v25 = vadd.f32 %v5598_v55, %v9746_v7  ;;  %v4900_v13 = vadd.f32 %v9766_v52, %v4449_v63 }
 0x222   : > { %v7911_v5 = vpop.f32.mrf.mxu1  ;;  %v6303_v9 = vadd.f32 %v6176_v8, %v5709_v44  ;;  %v6439_v44 = vmul.f32 %v6305_v32, %v6305_v32  ;;  %v4902_v15 = vadd.f32 %v9762_v51, %v4451_v11 }
 0x223   : > { %v7955_v33 = vpop.f32.mrf.mxu0  ;;  %v5716_v26 = vadd.f32 %v7911_v5, %v4898_v24 }
 0x224   : > { %v5601_v58 = vpop.f32.mrf.mxu1  ;;  %v6306_v3 = vadd.f32 %v7955_v33, %v5712_v4  ;;  %v6437_v39 = vmul.f32 %v6303_v9, %v6303_v9 }
 0x225   : > { %v6179_v36 = vpop.f32.mrf.mxu0  ;;  %v5714_v56 = vadd.f32 %v5601_v58, %v4896_v46 }
 0x226   : > { %v7914_v30 = vpop.f32.mrf.mxu1  ;;  %v7249_v23 = vpack.c.bf16 %v6306_v3, %v6305_v32  ;;  %v6304_v43 = vadd.f32 %v6179_v36, %v5710_v10  ;;  %v6440_v24 = vmul.f32 %v6306_v3, %v6306_v3 }
 0x228   : > { %v7958_v19 = vpop.f32.mrf.mxu0  ;;  %v5614_v45 = vpop.f32.mrf.mxu1  ;;  %7321 = vst [vmem:[%s9844_s7 + $0x8] sm:$0xff] %v7249_v23   ;;  %v6399_v34 = vadd.f32 %v6304_v43, %v6303_v9  ;;  %v6438_v49 = vmul.f32 %v6304_v43, %v6304_v43  ;;  %v7244_v33 = vpack.c.bf16 %v6304_v43, %v6303_v9 }
 0x229   : > { %v6309_v5 = vadd.f32 %v7958_v19, %v5715_v50  ;;  %v5717_v14 = vadd.f32 %v5614_v45, %v9760_v1 }
 0x22a   : > { %v6192_v40 = vpop.f32.mrf.mxu0  ;;  %v7915_v29 = vpop.f32.mrf.mxu1  ;;  %v6400_v7 = vadd.f32 %v6399_v34, %v6305_v32  ;;  %v6469_v55 = vadd.f32 %v6438_v49, %v6437_v39  ;;  %7245 = vst [vmem:[%s9844_s7] sm:$0xff] %v7244_v33   ;;  %v4455_v49 = vadd.f32 %v9758_v31, %v9670_v48  ;;  %v4453_v33 = vadd.f32 %v9764_v2, %v9672_v35 }
 0x22b   : > { %v6307_v42 = vadd.f32 %v6192_v40, %v5713_v25  ;;  %v5720_v50 = vadd.f32 %v7915_v29, %v4902_v15  ;;  %v6443_v45 = vmul.f32 %v6309_v5, %v6309_v5 }
 0x22c   : > { %v7959_v4 = vpop.f32.mrf.mxu0  ;;  %v6470_v8 = vadd.f32 %v6469_v55, %v6439_v44  ;;  %v6401_v17 = vadd.f32 %v6400_v7, %v6306_v3  ;;  %v5617_v9 = vpop.f32.mrf.mxu1  ;;  %v5719_v3 = vadd.f32 %v7914_v30, %v9755_v16  ;;  %v4906_v48 = vadd.f32 %v9776_v47, %v4455_v49 }
 0x22d   : > { %v6310_v10 = vadd.f32 %v7959_v4, %v5716_v26  ;;  %v6441_v32 = vmul.f32 %v6307_v42, %v6307_v42  ;;  %v5718_v1 = vadd.f32 %v5617_v9, %v4900_v13  ;;  %v4904_v35 = vadd.f32 %v9780_v41, %v4453_v33 }
 0x22e   : > { %v6195_v21 = vpop.f32.mrf.mxu0  ;;  %v6402_v62 = vadd.f32 %v6401_v17, %v6307_v42  ;;  %v6471_v36 = vadd.f32 %v6470_v8, %v6440_v24 }
 0x22f   : > { %v7259_v23 = vpack.c.bf16 %v6310_v10, %v6309_v5  ;;  %v6308_v43 = vadd.f32 %v6195_v21, %v5714_v56  ;;  %v6444_v44 = vmul.f32 %v6310_v10, %v6310_v10 }
 0x230   : > { %v7962_v25 = vpop.f32.mrf.mxu0  ;;  %v6472_v58 = vadd.f32 %v6471_v36, %v6441_v32 }
 0x231   : > { %7323 = vst [vmem:[%s9844_s7 + $0x18] sm:$0xff] %v7259_v23   ;;  %v6403_v19 = vadd.f32 %v6402_v62, %v6308_v43  ;;  %v6442_v51 = vmul.f32 %v6308_v43, %v6308_v43  ;;  %v7254_v26 = vpack.c.bf16 %v6308_v43, %v6307_v42  ;;  %v7918_v34 = vpop.f32.mrf.mxu1  ;;  %v6313_v30 = vadd.f32 %v7962_v25, %v5719_v3 }
 0x232   : > { %v6208_v39 = vpop.f32.mrf.mxu0 }
 0x233   : > { %v6404_v52 = vadd.f32 %v6403_v19, %v6309_v5  ;;  %v6473_v46 = vadd.f32 %v6472_v58, %v6442_v51  ;;  %7322 = vst [vmem:[%s9844_s7 + $0x10] sm:$0xff] %v7254_v26   ;;  %v6311_v11 = vadd.f32 %v6208_v39, %v5717_v14  ;;  %v5630_v16 = vpop.f32.mrf.mxu1  ;;  %v6447_v36 = vmul.f32 %v6313_v30, %v6313_v30 }
 0x234   : > { %v7963_v40 = vpop.f32.mrf.mxu0  ;;  %v5721_v5 = vadd.f32 %v5630_v16, %v9774_v12  ;;  %v4457_v51 = vadd.f32 %v9778_v60, %v9683_v18  ;;  %v10022_v18 = vld [vmem:[#allocation14_spill] sm:$0xff] }
 0x235   : > { %v6314_v29 = vadd.f32 %v7963_v40, %v5720_v50  ;;  %v6474_v7 = vadd.f32 %v6473_v46, %v6443_v45  ;;  %v6405_v55 = vadd.f32 %v6404_v52, %v6310_v10  ;;  %v7919_v63 = vpop.f32.mrf.mxu1  ;;  %v6445_v4 = vmul.f32 %v6311_v11, %v6311_v11 }
 0x236   : > { %v6211_v42 = vpop.f32.mrf.mxu0  ;;  %v5723_v10 = vadd.f32 %v7918_v34, %v9769_v37  ;;  %v5724_v9 = vadd.f32 %v7919_v63, %v4906_v48  ;;  %v4459_v37 = vadd.f32 %v9772_v59, %v9680_v53  ;;  %v10021_v59 = vld [vmem:[#allocation13_spill] sm:$0xff]  ;;  %v4908_v60 = vadd.f32 %v10022_v18, %v4457_v51 }
 0x237   : > { %v7269_v31 = vpack.c.bf16 %v6314_v29, %v6313_v30  ;;  %v6312_v2 = vadd.f32 %v6211_v42, %v5718_v1  ;;  %v6406_v24 = vadd.f32 %v6405_v55, %v6311_v11  ;;  %v6475_v56 = vadd.f32 %v6474_v7, %v6444_v44  ;;  %v5633_v17 = vpop.f32.mrf.mxu1  ;;  %v10023_v44 = vld [vmem:[#allocation12_spill] sm:$0xff] }
 0x238   : > { %v7966_v8 = vpop.f32.mrf.mxu0  ;;  %v5722_v41 = vadd.f32 %v5633_v17, %v4904_v35  ;;  %v6448_v58 = vmul.f32 %v6314_v29, %v6314_v29 }
 0x239   : > { %7325 = vst [vmem:[%s9844_s7 + $0x28] sm:$0xff] %v7269_v31   ;;  %v6446_v15 = vmul.f32 %v6312_v2, %v6312_v2  ;;  %v7264_v21 = vpack.c.bf16 %v6312_v2, %v6311_v11  ;;  %v6476_v62 = vadd.f32 %v6475_v56, %v6445_v4  ;;  %v6407_v47 = vadd.f32 %v6406_v24, %v6312_v2 }
 0x23a   : > { %v6224_v32 = vpop.f32.mrf.mxu0  ;;  %v6317_v13 = vadd.f32 %v7966_v8, %v5723_v10 }
 0x23b   : > { %7324 = vst [vmem:[%s9844_s7 + $0x20] sm:$0xff] %v7264_v21   ;;  %v6408_v23 = vadd.f32 %v6407_v47, %v6313_v30  ;;  %v6477_v43 = vadd.f32 %v6476_v62, %v6446_v15  ;;  %v6315_v25 = vadd.f32 %v6224_v32, %v5721_v5 }
 0x23c   : > { %v7967_v14 = vpop.f32.mrf.mxu0  ;;  %v6451_v42 = vmul.f32 %v6317_v13, %v6317_v13 }
 0x23d   : > { %v6318_v12 = vadd.f32 %v7967_v14, %v5724_v9  ;;  %v6478_v3 = vadd.f32 %v6477_v43, %v6447_v36  ;;  %v6409_v50 = vadd.f32 %v6408_v23, %v6314_v29  ;;  %v6449_v33 = vmul.f32 %v6315_v25, %v6315_v25 }
 0x23e   : > { %v6227_v19 = vpop.f32.mrf.mxu0  ;;  %v7922_v34 = vpop.f32.mrf.mxu1  ;;  %v4910_v29 = vadd.f32 %v10021_v59, %v4459_v37 }
 0x23f   : > { %v7279_v26 = vpack.c.bf16 %v6318_v12, %v6317_v13  ;;  %v6316_v39 = vadd.f32 %v6227_v19, %v5722_v41  ;;  %v6410_v49 = vadd.f32 %v6409_v50, %v6315_v25  ;;  %v6479_v1 = vadd.f32 %v6478_v3, %v6448_v58 }
 0x240   : > { %v7970_v45 = vpop.f32.mrf.mxu0  ;;  %v5646_v11 = vpop.f32.mrf.mxu1  ;;  %v5727_v7 = vadd.f32 %v7922_v34, %v10023_v44  ;;  %v6452_v4 = vmul.f32 %v6318_v12, %v6318_v12 }
 0x241   : > { %7327 = vst [vmem:[%s9844_s7 + $0x38] sm:$0xff] %v7279_v26   ;;  %v6450_v52 = vmul.f32 %v6316_v39, %v6316_v39  ;;  %v7274_v46 = vpack.c.bf16 %v6316_v39, %v6315_v25  ;;  %v6480_v40 = vadd.f32 %v6479_v1, %v6449_v33  ;;  %v6411_v16 = vadd.f32 %v6410_v49, %v6316_v39 }
 0x242   : > { %v5725_v30 = vadd.f32 %v5646_v11, %v9786_v54  ;;  %v6240_v53 = vpop.f32.mrf.mxu0  ;;  %v7923_v55 = vpop.f32.mrf.mxu1  ;;  %v6321_v5 = vadd.f32 %v7970_v45, %v5727_v7 }
 0x243   : > { %7326 = vst [vmem:[%s9844_s7 + $0x30] sm:$0xff] %v7274_v46   ;;  %v6412_v63 = vadd.f32 %v6411_v16, %v6317_v13  ;;  %v6481_v48 = vadd.f32 %v6480_v40, %v6450_v52  ;;  %v5728_v2 = vadd.f32 %v7923_v55, %v4910_v29 }
 0x244   : > { %v6319_v35 = vadd.f32 %v6240_v53, %v5725_v30  ;;  %v7971_v31 = vpop.f32.mrf.mxu0  ;;  %v5649_v24 = vpop.f32.mrf.mxu1  ;;  %v6455_v43 = vmul.f32 %v6321_v5, %v6321_v5 }
 0x245   : > { %v6482_v56 = vadd.f32 %v6481_v48, %v6451_v42  ;;  %v6413_v54 = vadd.f32 %v6412_v63, %v6318_v12  ;;  %v5726_v8 = vadd.f32 %v5649_v24, %v4908_v60  ;;  %v6322_v17 = vadd.f32 %v7971_v31, %v5728_v2  ;;  %v10024_v31 = vld [vmem:[#allocation15_spill] sm:$0xff] }
 0x246   : > { %v6243_v15 = vpop.f32.mrf.mxu0  ;;  %v6453_v10 = vmul.f32 %v6319_v35, %v6319_v35 }
 0x247   : > { %v6414_v21 = vadd.f32 %v6413_v54, %v6319_v35  ;;  %v6483_v9 = vadd.f32 %v6482_v56, %v6452_v4  ;;  %v6320_v62 = vadd.f32 %v6243_v15, %v5726_v8  ;;  %v7289_v47 = vpack.c.bf16 %v6322_v17, %v6321_v5 }
 0x248   : > { %v6456_v58 = vmul.f32 %v6322_v17, %v6322_v17 }
 0x249   : > { %v6484_v32 = vadd.f32 %v6483_v9, %v6453_v10  ;;  %v6415_v41 = vadd.f32 %v6414_v21, %v6320_v62  ;;  %v6454_v36 = vmul.f32 %v6320_v62, %v6320_v62  ;;  %v7284_v23 = vpack.c.bf16 %v6320_v62, %v6319_v35  ;;  %7329 = vst [vmem:[%s9844_s7 + $0x48] sm:$0xff] %v7289_v47  }
 0x24b   : > { %v6416_v25 = vadd.f32 %v6415_v41, %v6321_v5  ;;  %v6485_v14 = vadd.f32 %v6484_v32, %v6454_v36  ;;  %7328 = vst [vmem:[%s9844_s7 + $0x40] sm:$0xff] %v7284_v23   ;;  %v7974_v13 = vpop.f32.mrf.mxu0 }
 0x24c   : > { %v7926_v12 = vpop.f32.mrf.mxu1 }
 0x24d   : > { %v6486_v3 = vadd.f32 %v6485_v14, %v6455_v43  ;;  %v6256_v50 = vpop.f32.mrf.mxu0  ;;  %v6417_v19 = vadd.f32 %v6416_v25, %v6322_v17  ;;  %v5731_v37 = vadd.f32 %v7926_v12, %v9795_v27 }
 0x24e   : > { %v5662_v51 = vpop.f32.mrf.mxu1 }
 0x24f   : > { %v5729_v26 = vadd.f32 %v5662_v51, %v9798_v61  ;;  %v6487_v39 = vadd.f32 %v6486_v3, %v6456_v58  ;;  %v7975_v49 = vpop.f32.mrf.mxu0  ;;  %v6325_v45 = vadd.f32 %v7974_v13, %v5731_v37 }
 0x250   : > { %v7927_v34 = vpop.f32.mrf.mxu1 }
 0x251   : > { %v6323_v33 = vadd.f32 %v6256_v50, %v5729_v26  ;;  %v5732_v1 = vadd.f32 %v7927_v34, %v9801_v28  ;;  %v6259_v30 = vpop.f32.mrf.mxu0  ;;  %v6459_v60 = vmul.f32 %v6325_v45, %v6325_v45 }
 0x252   : > { %v5665_v52 = vpop.f32.mrf.mxu1 }
 0x253   : > { %v6418_v46 = vadd.f32 %v6417_v19, %v6323_v33  ;;  %v6457_v11 = vmul.f32 %v6323_v33, %v6323_v33  ;;  %v6326_v40 = vadd.f32 %v7975_v49, %v5732_v1  ;;  %v5730_v16 = vadd.f32 %v5665_v52, %v9804_v20 }
 0x255   : > { %v6488_v27 = vadd.f32 %v6487_v39, %v6457_v11  ;;  %v7299_v53 = vpack.c.bf16 %v6326_v40, %v6325_v45  ;;  %v6324_v59 = vadd.f32 %v6259_v30, %v5730_v16  ;;  %v6460_v42 = vmul.f32 %v6326_v40, %v6326_v40  ;;  %v10026_v16 = vld [vmem:[#allocation17_spill] sm:$0xff] }
 0x257   : > { %7331 = vst [vmem:[%s9844_s7 + $0x58] sm:$0xff] %v7299_v53   ;;  %v6419_v61 = vadd.f32 %v6418_v46, %v6324_v59  ;;  %v6458_v29 = vmul.f32 %v6324_v59, %v6324_v59  ;;  %v7294_v18 = vpack.c.bf16 %v6324_v59, %v6323_v33  ;;  %v10025_v33 = vld [vmem:[#allocation16_spill] sm:$0xff] }
 0x259   : > { %v6420_v44 = vadd.f32 %v6419_v61, %v6325_v45  ;;  %v6489_v7 = vadd.f32 %v6488_v27, %v6458_v29  ;;  %7330 = vst [vmem:[%s9844_s7 + $0x50] sm:$0xff] %v7294_v18   ;;  %v7978_v28 = vpop.f32.mrf.mxu0 }
 0x25a   : > { %v7930_v55 = vpop.f32.mrf.mxu1 }
 0x25b   : > { %v6490_v63 = vadd.f32 %v6489_v7, %v6459_v60  ;;  %v6272_v48 = vpop.f32.mrf.mxu0  ;;  %v6421_v35 = vadd.f32 %v6420_v44, %v6326_v40  ;;  %v5735_v20 = vadd.f32 %v7930_v55, %v10024_v31 }
 0x25c   : > { %v5678_v2 = vpop.f32.mrf.mxu1 }
 0x25d   : > { %v5733_v24 = vadd.f32 %v5678_v2, %v9810_v57  ;;  %v6491_v4 = vadd.f32 %v6490_v63, %v6460_v42  ;;  %v7979_v54 = vpop.f32.mrf.mxu0  ;;  %v6329_v17 = vadd.f32 %v7978_v28, %v5735_v20 }
 0x25e   : > { %v7931_v56 = vpop.f32.mrf.mxu1 }
 0x25f   : > { %v6327_v8 = vadd.f32 %v6272_v48, %v5733_v24  ;;  %v5736_v5 = vadd.f32 %v7931_v56, %v9813_v6  ;;  %v6275_v47 = vpop.f32.mrf.mxu0  ;;  %v6463_v25 = vmul.f32 %v6329_v17, %v6329_v17 }
 0x260   : > { %v5681_v15 = vpop.f32.mrf.mxu1 }
 0x261   : > { %v6422_v21 = vadd.f32 %v6421_v35, %v6327_v8  ;;  %v6461_v10 = vmul.f32 %v6327_v8, %v6327_v8  ;;  %v6330_v9 = vadd.f32 %v7979_v54, %v5736_v5  ;;  %v5734_v62 = vadd.f32 %v5681_v15, %v9816_v38 }
 0x263   : > { %v6492_v32 = vadd.f32 %v6491_v4, %v6461_v10  ;;  %v7309_v41 = vpack.c.bf16 %v6330_v9, %v6329_v17  ;;  %v6328_v36 = vadd.f32 %v6275_v47, %v5734_v62  ;;  %v6464_v58 = vmul.f32 %v6330_v9, %v6330_v9 }
 0x265   : > { %7333 = vst [vmem:[%s9844_s7 + $0x68] sm:$0xff] %v7309_v41   ;;  %v6423_v57 = vadd.f32 %v6422_v21, %v6328_v36  ;;  %v6462_v23 = vmul.f32 %v6328_v36, %v6328_v36  ;;  %v7304_v43 = vpack.c.bf16 %v6328_v36, %v6327_v8 }
 0x267   : > { %v6424_v14 = vadd.f32 %v6423_v57, %v6329_v17  ;;  %v6493_v13 = vadd.f32 %v6492_v32, %v6462_v23  ;;  %7332 = vst [vmem:[%s9844_s7 + $0x60] sm:$0xff] %v7304_v43   ;;  %v7982_v6 = vpop.f32.mrf.mxu0 }
 0x268   : > { %v7934_v12 = vpop.f32.mrf.mxu1 }
 0x269   : > { %v6494_v3 = vadd.f32 %v6493_v13, %v6463_v25  ;;  %v6288_v50 = vpop.f32.mrf.mxu0  ;;  %v6425_v19 = vadd.f32 %v6424_v14, %v6330_v9  ;;  %v5739_v38 = vadd.f32 %v7934_v12, %v9818_v22 }
 0x26a   : > { %v5694_v37 = vpop.f32.mrf.mxu1 }
 0x26b   : > { %v5737_v51 = vadd.f32 %v5694_v37, %v9822_v0  ;;  %v6495_v26 = vadd.f32 %v6494_v3, %v6464_v58  ;;  %v7983_v34 = vpop.f32.mrf.mxu0  ;;  %v6333_v45 = vadd.f32 %v7982_v6, %v5739_v38 }
 0x26c   : > { %v7935_v39 = vpop.f32.mrf.mxu1 }
 0x26d   : > { %v6331_v49 = vadd.f32 %v6288_v50, %v5737_v51  ;;  %v5740_v1 = vadd.f32 %v7935_v39, %v10025_v33  ;;  %v6291_v27 = vpop.f32.mrf.mxu0  ;;  %v6467_v18 = vmul.f32 %v6333_v45, %v6333_v45 }
 0x26e   : > { %v5697_v52 = vpop.f32.mrf.mxu1 }
 0x26f   : > { %v6426_v46 = vadd.f32 %v6425_v19, %v6331_v49  ;;  %v6465_v11 = vmul.f32 %v6331_v49, %v6331_v49  ;;  %v6334_v40 = vadd.f32 %v7983_v34, %v5740_v1  ;;  %v5738_v30 = vadd.f32 %v5697_v52, %v10026_v16 }
 0x271   : > { %v6496_v22 = vadd.f32 %v6495_v26, %v6465_v11  ;;  %v7319_v53 = vpack.c.bf16 %v6334_v40, %v6333_v45  ;;  %v6332_v59 = vadd.f32 %v6291_v27, %v5738_v30  ;;  %v6468_v7 = vmul.f32 %v6334_v40, %v6334_v40 }
 0x273   : > { %7335 = vst [vmem:[%s9844_s7 + $0x78] sm:$0xff] %v7319_v53   ;;  %v6427_v0 = vadd.f32 %v6426_v46, %v6332_v59  ;;  %v6466_v61 = vmul.f32 %v6332_v59, %v6332_v59  ;;  %v7314_v29 = vpack.c.bf16 %v6332_v59, %v6331_v49 }
 0x275   : > { %v6428_v60 = vadd.f32 %v6427_v0, %v6333_v45  ;;  %v6497_v44 = vadd.f32 %v6496_v22, %v6466_v61  ;;  %7334 = vst [vmem:[%s9844_s7 + $0x70] sm:$0xff] %v7314_v29  }
 0x277   : > { %v6429_v28 = vadd.f32 %v6428_v60, %v6334_v40  ;;  %v6498_v55 = vadd.f32 %v6497_v44, %v6467_v18 }
 0x279   : > { %v6430_v42 = vrot.slane %v6429_v28, 4  ;;  %v6499_v63 = vadd.f32 %v6498_v55, %v6468_v7 }
 0x27b   : > { %v6431_v48 = vadd.f32 %v6430_v42, %v6429_v28  ;;  %v6500_v35 = vrot.slane %v6499_v63, 4 }
 0x27d   : > { %v6432_v31 = vrot.slane %v6431_v48, 2  ;;  %v6501_v20 = vadd.f32 %v6500_v35, %v6499_v63 }
 0x27f   : > { %v6433_v2 = vadd.f32 %v6432_v31, %v6431_v48  ;;  %v6502_v24 = vrot.slane %v6501_v20, 2 }
 0x281   : > { %v6434_v4 = vrot.slane %v6433_v2, 1  ;;  %v6503_v56 = vadd.f32 %v6502_v24, %v6501_v20 }
 0x283   : > { %v6435_v54 = vadd.f32 %v6434_v4, %v6433_v2  ;;  %v6504_v8 = vrot.slane %v6503_v56, 1 }
 0x285   : > { %6436 = vst [vmem:[%s211_s9] sm:$0x1] %v6435_v54  ;;  %v6505_v5 = vadd.f32 %v6504_v8, %v6503_v56 }
 0x287   : > { %6506 = vst [vmem:[%s214_s12] sm:$0x1] %v6505_v5 }
 0x288 PF: > { %s15_s15 = sadd.s32 1, %s8135_s15  }
 0x289   : > { %p12_p4 = scmp.ge.s32.totalorder %s15_s15, 4  }
 0x28b   :  { %14 = sbr.rel (!%p12_p4) target bundleno = 1 (0x1), region = 92 }

// kernel: vgg_block_forward.4
= control target key start
LH: loop header
LB: loop body
LE: loop exit
PB: predicated region body
PF: predicated region fallthrough
CT: control target
= control target key end

     0   :  { %s8614_s21 = smov 0   ;;  %s10753_s0 = inlined_call_operand.vmem [shape: bf16[2,16,16,128], index: 0, kind: input, shape index: {}]   ;;  %s10754_s1 = inlined_call_operand.vmem [shape: f32[1,128], index: 1, kind: input, shape index: {}]   ;;  %s10755_s2 = inlined_call_operand.vmem [shape: f32[1,128], index: 2, kind: input, shape index: {}]   ;;  %s10756_s3 = inlined_call_operand.vmem [shape: bf16[9,128,128], index: 3, kind: input, shape index: {}]   ;;  %s10757_s4 = inlined_call_operand.vmem [shape: bf16[2,16,16,128], index: 4, kind: output, shape index: {0}]   ;;  %s10758_s5 = inlined_call_operand.vmem [shape: f32[2,1,128], index: 5, kind: output, shape index: {1}]   ;;  %s10759_s6 = inlined_call_operand.vmem [shape: f32[2,1,128], index: 6, kind: output, shape index: {2}]  }
   0x1 LB: > { %s7064_s22 = sadd.s32 4294967295, %s8576_s21   ;;  %p7068_p0 = scmp.ge.s32.totalorder %s8576_s21, 1  ;;  %s8576_s21 = sphi %s8614_s21, %s17_s21  }
   0x2   : > { %p217_p1 = scmp.lt.s32.totalorder %s8576_s21, 3 }
   0x4   : > { %p218_p2 = pnand %p7068_p0, %p217_p1 }
   0x6   : > { %221 = sbr.rel (%p218_p2) target bundleno = 658 (0x292), region = 36 }
   0xb   : > { %v8446_v0 = vld [vmem:[%s10756_s3 + $0x38] sm:$0xff]   ;;  %v8628_v1 = vld [vmem:[%s10756_s3 + $0x30] sm:$0xff]   ;;  %v8578_v2 = vmov 0   ;;  %p253_p3 = scmp.lt.s32.totalorder %s7064_s22, 1  ;;  %v8448_v3 = vld [vmem:[%s10756_s3 + $0x28] sm:$0xff]   ;;  %vm918_vm0 = vcmask 1043456  }
   0xc   : > { %460 = vst [vmem:[#allocation2] sm:$0xf] %v8578_v2  ;;  %461 = vst [vmem:[#allocation2 + $0x4] sm:$0xf] %v8578_v2  ;;  %7989 = vmatprep.subr.bf16.mxu0 %v8446_v0  ;;  %8421 = vmatprep.subr.bf16.mxu1 %v8446_v0  ;;  %v8449_v4 = vld [vmem:[%s10756_s3 + $0x20] sm:$0xff]   ;;  %v8450_v12 = vld [vmem:[%s10756_s3 + $0x18] sm:$0xff]  }
   0xd   : > { %462 = vst [vmem:[#allocation2 + $0x8] sm:$0x1] %v8578_v2  ;;  %463 = vst [vmem:[#allocation2 + $0xc] sm:$0xf] %v8578_v2  ;;  %7990 = vmatpush3.bf16.msra.mxu0 %v8446_v0  ;;  %8429 = vmatpush3.bf16.msra.mxu1 %v8446_v0  ;;  %s10931_s22 = smov (!%p253_p3, %s7064_s22), 1  ;;  %v8451_v26 = vld [vmem:[%s10756_s3 + $0x10] sm:$0xff]  }
   0xe   : > { %464 = vst [vmem:[#allocation2 + $0x10] sm:$0xf] %v8578_v2  ;;  %465 = vst [vmem:[#allocation2 + $0x14] sm:$0x1] %v8578_v2  ;;  %7991 = vmatprep.subr.bf16.mxu0 %v8628_v1  ;;  %8422 = vmatprep.subr.bf16.mxu1 %v8628_v1  ;;  %s7533_s29 = sshll.u32 %s10931_s22, 7  ;;  %vm925_vm4 = vcmask 1040384   ;;  %s265_s19 = scalar_lea.vmem %s10758_s5, %s10931_s22 }
   0xf   : > { %466 = vst [vmem:[#allocation2 + $0x18] sm:$0xf] %v8578_v2  ;;  %467 = vst [vmem:[#allocation2 + $0x1c] sm:$0xf] %v8578_v2  ;;  %s8647_s8 = scalar_lea.vmem %s10753_s0, %s7533_s29  ;;  %v8658_v7 = vld [vmem:[%s10754_s1] ss:$0 sm:$0xff]  ;;  %s10673_s17 = scalar_lea.vmem %s10757_s4, %s7533_s29 }
  0x10   : > { %468 = vst [vmem:[#allocation2 + $0x20] sm:$0x1] %v8578_v2  ;;  %469 = vst [vmem:[#allocation2 + $0x24] sm:$0xf] %v8578_v2  ;;  %v7749_v6 = vld [vmem:[%s8647_s8 + $0x38] sm:$0xff]   ;;  %v7600_v11 = vld [vmem:[%s8647_s8] sm:$0xff]   ;;  %s268_s24 = scalar_lea.vmem %s10759_s6, %s10931_s22 }
  0x11   : > { %470 = vst [vmem:[#allocation2 + $0x28] sm:$0xf] %v8578_v2  ;;  %471 = vst [vmem:[#allocation2 + $0x2c] sm:$0x1] %v8578_v2  ;;  %7992 = vmatpush3.bf16.msra.mxu0 %v8628_v1  ;;  %8430 = vmatpush3.bf16.msra.mxu1 %v8628_v1  ;;  %v7629_v8 = vunpack.c.l.bf16 %v7749_v6  ;;  %v7630_v9 = vunpack.c.h.bf16 %v7749_v6  ;;  %v8663_v10 = vld [vmem:[%s10755_s2] ss:$0 sm:$0xff]  ;;  %v7601_v15 = vunpack.c.l.bf16 %v7600_v11  ;;  %v7602_v16 = vunpack.c.h.bf16 %v7600_v11 }
  0x12   : > { %472 = vst [vmem:[#allocation2 + $0x30] sm:$0xf] %v8578_v2  ;;  %473 = vst [vmem:[#allocation2 + $0x34] sm:$0xf] %v8578_v2  ;;  %7993 = vmatprep.subr.bf16.mxu0 %v8448_v3  ;;  %8423 = vmatprep.subr.bf16.mxu1 %v8448_v3  ;;  %v7750_v17 = vld [vmem:[%s8647_s8 + $0x40] sm:$0xff]   ;;  %v7743_v33 = vld [vmem:[%s8647_s8 + $0x8] sm:$0xff]  }
  0x13   : > { %474 = vst [vmem:[#allocation2 + $0x38] sm:$0x1] %v8578_v2  ;;  %475 = vst [vmem:[#allocation2 + $0x3c] sm:$0xf] %v8578_v2  ;;  %v8454_v5 = vld [vmem:[#allocation2] sm:$0xff]   ;;  %v355_v13 = vmul.f32 %v7629_v8, %v8658_v7  ;;  %v356_v14 = vmul.f32 %v7630_v9, %v8658_v7  ;;  %v7633_v18 = vunpack.c.l.bf16 %v7750_v17  ;;  %v7634_v19 = vunpack.c.h.bf16 %v7750_v17  ;;  %v8452_v42 = vld [vmem:[%s10756_s3 + $0x8] sm:$0xff]  }
  0x14   : > { %476 = vst [vmem:[#allocation2 + $0x40] sm:$0xf] %v8578_v2  ;;  %477 = vst [vmem:[#allocation2 + $0x44] sm:$0x1] %v8578_v2  ;;  %8005 = vmatprep.mubr.bf16.mxu0 %v8454_v5  ;;  %vm594_vm1 = vsmask.f32 256  ;;  %v341_v22 = vmul.f32 %v7601_v15, %v8658_v7  ;;  %v342_v23 = vmul.f32 %v7602_v16, %v8658_v7  ;;  %v7605_v40 = vunpack.c.l.bf16 %v7743_v33 }
  0x15   : > { %478 = vst [vmem:[#allocation2 + $0x48] sm:$0xf] %v8578_v2  ;;  %479 = vst [vmem:[#allocation2 + $0x4c] sm:$0xf] %v8578_v2  ;;  %7994 = vmatpush3.bf16.msra.mxu0 %v8448_v3  ;;  %8431 = vmatpush3.bf16.msra.mxu1 %v8448_v3  ;;  %vm595_vm2 = vsmask.f32 4368  ;;  %v394_v20 = vadd.f32 %v8663_v10, %v355_v13  ;;  %v395_v21 = vadd.f32 %v8663_v10, %v356_v14  ;;  %v7606_v41 = vunpack.c.h.bf16 %v7743_v33 }
  0x16   : > { %480 = vst [vmem:[#allocation2 + $0x50] sm:$0x1] %v8578_v2  ;;  %481 = vst [vmem:[#allocation2 + $0x54] sm:$0xf] %v8578_v2  ;;  %7995 = vmatprep.subr.bf16.mxu0 %v8449_v4  ;;  %8424 = vmatprep.subr.bf16.mxu1 %v8449_v4  ;;  %vm919_vm3 = vsmask.f32 7938  ;;  %v357_v24 = vmul.f32 %v7633_v18, %v8658_v7  ;;  %v358_v25 = vmul.f32 %v7634_v19, %v8658_v7 }
  0x17   : > { %482 = vst [vmem:[#allocation2 + $0x58] sm:$0xf] %v8578_v2  ;;  %483 = vst [vmem:[#allocation2 + $0x5c] sm:$0x1] %v8578_v2  ;;  %v426_v27 = vmax.f32 %v394_v20, 0.0  ;;  %v427_v28 = vmax.f32 %v395_v21, 0.0  ;;  %v380_v29 = vadd.f32 %v8663_v10, %v341_v22  ;;  %v381_v30 = vadd.f32 %v8663_v10, %v342_v23 }
  0x18   : > { %484 = vst [vmem:[#allocation2 + $0x60] sm:$0xf] %v8578_v2  ;;  %485 = vst [vmem:[#allocation2 + $0x64] sm:$0xf] %v8578_v2  ;;  %v396_v31 = vadd.f32 %v8663_v10, %v357_v24  ;;  %v397_v32 = vadd.f32 %v8663_v10, %v358_v25  ;;  %v8453_v51 = vld [vmem:[%s10756_s3] sm:$0xff]   ;;  %v343_v55 = vmul.f32 %v7605_v40, %v8658_v7  ;;  %v7751_v16 = vld [vmem:[%s8647_s8 + $0x48] sm:$0xff]  }
  0x19   : > { %486 = vst [vmem:[#allocation2 + $0x68] sm:$0x1] %v8578_v2  ;;  %487 = vst [vmem:[#allocation2 + $0x6c] sm:$0xf] %v8578_v2  ;;  %7996 = vmatpush3.bf16.msra.mxu0 %v8449_v4  ;;  %8432 = vmatpush3.bf16.msra.mxu1 %v8449_v4  ;;  %v7549_v34 = vpack.c.bf16 %v426_v27, %v426_v27  ;;  %v7550_v35 = vpack.c.bf16 %v427_v28, %v427_v28  ;;  %v412_v36 = vmax.f32 %v380_v29, 0.0  ;;  %v8726_v23 = vld [vmem:[%s10756_s3 + $0x78] sm:$0xff]  }
  0x1a   : > { %488 = vst [vmem:[#allocation2 + $0x70] sm:$0xf] %v8578_v2  ;;  %489 = vst [vmem:[#allocation2 + $0x74] sm:$0x1] %v8578_v2  ;;  %7997 = vmatprep.subr.bf16.mxu0 %v8450_v12  ;;  %8425 = vmatprep.subr.bf16.mxu1 %v8450_v12  ;;  %v413_v37 = vmax.f32 %v381_v30, 0.0  ;;  %v428_v38 = vmax.f32 %v396_v31, 0.0  ;;  %v344_v56 = vmul.f32 %v7606_v41, %v8658_v7  ;;  %v7637_v31 = vunpack.c.l.bf16 %v7751_v16 }
  0x1b   : > { %490 = vst [vmem:[#allocation2 + $0x78] sm:$0xf] %v8578_v2  ;;  %491 = vst [vmem:[#allocation2 + $0x7c] sm:$0xf] %v8578_v2  ;;  %v429_v39 = vmax.f32 %v397_v32, 0.0  ;;  %v717_v43 = vshrl.u32 %v7549_v34, 16  ;;  %v7535_v47 = vpack.c.bf16 %v412_v36, %v412_v36  ;;  %v382_v25 = vadd.f32 %v8663_v10, %v343_v55 }
  0x1c   : > { %492 = vst [vmem:[#allocation2 + $0x80] sm:$0x1] %v8578_v2  ;;  %493 = vst [vmem:[#allocation2 + $0x84] sm:$0xf] %v8578_v2  ;;  %v720_v44 = vshll.u32 %v7549_v34, 16  ;;  %v725_v45 = vshrl.u32 %v7550_v35, 16  ;;  %v7536_v48 = vpack.c.bf16 %v413_v37, %v413_v37  ;;  %v7551_v49 = vpack.c.bf16 %v428_v38, %v428_v38 }
  0x1d   : > { %494 = vst [vmem:[#allocation2 + $0x88] sm:$0xf] %v8578_v2  ;;  %495 = vst [vmem:[#allocation2 + $0x8c] sm:$0x1] %v8578_v2  ;;  %7998 = vmatpush3.bf16.msra.mxu0 %v8450_v12  ;;  %8433 = vmatpush3.bf16.msra.mxu1 %v8450_v12  ;;  %v728_v46 = vshll.u32 %v7550_v35, 16  ;;  %v7552_v50 = vpack.c.bf16 %v429_v39, %v429_v39  ;;  %v719_v53 = vrot.slane %v717_v43, 7  ;;  %v7638_v40 = vunpack.c.h.bf16 %v7751_v16 }
  0x1e   : > { %496 = vst [vmem:[#allocation2 + $0x90] sm:$0xf] %v8578_v2  ;;  %497 = vst [vmem:[#allocation2 + $0x94] sm:$0xf] %v8578_v2  ;;  %7999 = vmatprep.subr.bf16.mxu0 %v8451_v26  ;;  %8426 = vmatprep.subr.bf16.mxu1 %v8451_v26  ;;  %v8698_v54 = vrot.slane %v725_v45, 7  ;;  %v598_v59 = vshrl.u32 %v7535_v47, 16  ;;  %v359_v41 = vmul.f32 %v7637_v31, %v8658_v7 }
  0x1f   : > { %498 = vst [vmem:[#allocation2 + $0x98] sm:$0x1] %v8578_v2  ;;  %499 = vst [vmem:[#allocation2 + $0x9c] sm:$0xf] %v8578_v2  ;;  %v972_v58 = vld [vmem:[#allocation2 + $0x60] sm:$0xf]  ;;  %v722_v63 = vor.u32 %v720_v44, %v719_v53 }
  0x20   : > { %500 = vst [vmem:[#allocation2 + $0xa0] sm:$0xf] %v8578_v2  ;;  %501 = vst [vmem:[#allocation2 + $0xa4] sm:$0x1] %v8578_v2  ;;  %v601_v60 = vshll.u32 %v7535_v47, 16  ;;  %v606_v61 = vshrl.u32 %v7536_v48, 16  ;;  %v730_v1 = vor.u32 %v728_v46, %v8698_v54 }
  0x21   : > { %502 = vst [vmem:[#allocation2 + $0xa8] sm:$0xf] %v8578_v2  ;;  %503 = vst [vmem:[#allocation2 + $0xac] sm:$0xf] %v8578_v2  ;;  %8000 = vmatpush3.bf16.msra.mxu0 %v8451_v26  ;;  %8434 = vmatpush3.bf16.msra.mxu1 %v8451_v26  ;;  %v609_v62 = vshll.u32 %v7536_v48, 16  ;;  %v723_v0 = vrot.slane %v719_v53, 4  ;;  %v383_v26 = vadd.f32 %v8663_v10, %v344_v56 }
  0x22   : > { %504 = vst [vmem:[#allocation2 + $0xb0] sm:$0x1] %v8578_v2  ;;  %505 = vst [vmem:[#allocation2 + $0xb4] sm:$0xf] %v8578_v2  ;;  %8001 = vmatprep.subr.bf16.mxu0 %v8452_v42  ;;  %8427 = vmatprep.subr.bf16.mxu1 %v8452_v42  ;;  %v921_v3 = vld [vmem:[#allocation2 + $0xc] sm:$0xf]  ;;  %v360_v48 = vmul.f32 %v7638_v40, %v8658_v7 }
  0x23   : > { %506 = vst [vmem:[#allocation2 + $0xb8] sm:$0xf] %v8578_v2  ;;  %507 = vst [vmem:[#allocation2 + $0xbc] sm:$0x1] %v8578_v2  ;;  %v927_v4 = vld [vmem:[#allocation2 + $0x14] sm:$0x1] }
  0x24   : > { %508 = vst [vmem:[#allocation2 + $0xc0] sm:$0xf] %v8578_v2  ;;  %509 = vst [vmem:[#allocation2 + $0xc4] sm:$0xf] %v8578_v2  ;;  %v600_v5 = vrot.slane %v598_v59, 7  ;;  %v608_v6 = vrot.slane %v606_v61, 7 }
  0x25   : > { %510 = vst [vmem:[#allocation2 + $0xc8] sm:$0x1] %v8578_v2  ;;  %511 = vst [vmem:[#allocation2 + $0xcc] sm:$0xf] %v8578_v2  ;;  %v734_v8 = vshrl.u32 %v7551_v49, 16  ;;  %v737_v9 = vshll.u32 %v7551_v49, 16  ;;  %8002 = vmatpush3.bf16.msra.mxu0 %v8452_v42  ;;  %8435 = vmatpush3.bf16.msra.mxu1 %v8452_v42  ;;  %v398_v49 = vadd.f32 %v8663_v10, %v359_v41 }
  0x26   : > { %512 = vst [vmem:[#allocation2 + $0xd0] sm:$0xf] %v8578_v2  ;;  %513 = vst [vmem:[#allocation2 + $0xd4] sm:$0x1] %v8578_v2  ;;  %v732_v2 = vrot.slane %v8698_v54, 4  ;;  %v742_v14 = vshrl.u32 %v7552_v50, 16  ;;  %v603_v17 = vor.u32 %v601_v60, %v600_v5  ;;  %v611_v19 = vor.u32 %v609_v62, %v608_v6  ;;  %8003 = vmatprep.subr.bf16.mxu0 %v8453_v51 }
  0x27   : > { %vm8694_vm5 = vmor %vm594_vm1, %vm595_vm2  ;;  %v745_v15 = vshll.u32 %v7552_v50, 16  ;;  %v604_v18 = vrot.slane %v600_v5, 4  ;;  %v613_v20 = vrot.slane %v608_v6, 4  ;;  %8428 = vmatprep.subr.bf16.mxu1 %v8453_v51  ;;  %v736_v21 = vrot.slane %v734_v8, 7  ;;  %v8731_v24 = vld [vmem:[%s10756_s3 + $0xb8] sm:$0xff]   ;;  %v7744_v32 = vld [vmem:[%s8647_s8 + $0x10] sm:$0xff]  }
  0x28   : > { %vm8704_vm6 = vmand %vm918_vm0, %vm919_vm3  ;;  %v731_v11 = vsel %vm8694_vm5, %v723_v0, %v730_v1  ;;  %v8721_v22 = vrot.slane %v742_v14, 7  ;;  %v979_v30 = vld [vmem:[#allocation2 + $0x6c] sm:$0xf]  ;;  %v7752_v37 = vld [vmem:[%s8647_s8 + $0x50] sm:$0xff]   ;;  %v414_v38 = vmax.f32 %v382_v25, 0.0  ;;  %v415_v39 = vmax.f32 %v383_v26, 0.0 }
  0x29   : > { %vm8714_vm7 = vmand %vm925_vm4, %vm594_vm1  ;;  %v973_v13 = vsel %vm8704_vm6, %v722_v63, %v972_v58  ;;  %975 = vst [vmem:[#allocation2 + $0x64] sm:$0xf] %v731_v11  ;;  %v612_v27 = vsel %vm8694_vm5, %v604_v18, %v611_v19  ;;  %v922_v28 = vsel %vm8704_vm6, %v603_v17, %v921_v3  ;;  %v739_v33 = vor.u32 %v737_v9, %v736_v21  ;;  %v8461_v62 = vld [vmem:[%s10756_s3 + $0xb0] sm:$0xff]   ;;  %v8466_v40 = vld [vmem:[%s10756_s3 + $0x68] sm:$0xff]  }
  0x2a   : > { %974 = vst [vmem:[#allocation2 + $0x60] sm:$0xf] %v973_v13  ;;  %v928_v29 = vsel %vm8714_vm7, %v613_v20, %v927_v4  ;;  %923 = vst [vmem:[#allocation2 + $0xc] sm:$0xf] %v922_v28  ;;  %v740_v34 = vrot.slane %v736_v21, 4  ;;  %v747_v35 = vor.u32 %v745_v15, %v8721_v22  ;;  %v749_v36 = vrot.slane %v8721_v22, 4  ;;  %8004 = vmatpush3.bf16.msra.mxu0 %v8453_v51 }
  0x2b   : > { %924 = vst [vmem:[#allocation2 + $0x10] sm:$0xf] %v612_v27  ;;  %929 = vst [vmem:[#allocation2 + $0x14] sm:$0x1] %v928_v29  ;;  %8436 = vmatpush3.bf16.msra.mxu1 %v8453_v51  ;;  %v980_v43 = vsel %vm8704_vm6, %v739_v33, %v979_v30  ;;  %8085 = vmatprep.subr.bf16.mxu0 %v8731_v24  ;;  %v7609_v44 = vunpack.c.l.bf16 %v7744_v32  ;;  %v7610_v45 = vunpack.c.h.bf16 %v7744_v32  ;;  %v7641_v55 = vunpack.c.l.bf16 %v7752_v37  ;;  %v8763_v4 = vld [vmem:[%s8647_s8 + $0x18] sm:$0xff]   ;;  %v8460_v17 = vld [vmem:[%s10756_s3 + $0x70] sm:$0xff]  }
  0x2c   : > { %v748_v42 = vsel %vm8694_vm5, %v740_v34, %v747_v35  ;;  %8037 = vmatprep.subr.bf16.mxu1 %v8726_v23  ;;  %981 = vst [vmem:[#allocation2 + $0x6c] sm:$0xf] %v980_v43  ;;  %v7537_v46 = vpack.c.bf16 %v414_v38, %v414_v38  ;;  %v7538_v47 = vpack.c.bf16 %v415_v39, %v415_v39  ;;  %v7642_v56 = vunpack.c.h.bf16 %v7752_v37  ;;  %v930_v13 = vld [vmem:[#allocation2 + $0x18] sm:$0xf]  ;;  %v8467_v34 = vld [vmem:[%s10756_s3 + $0xa8] sm:$0xff]  }
  0x2d   : > { %982 = vst [vmem:[#allocation2 + $0x70] sm:$0xf] %v748_v42  ;;  %v345_v51 = vmul.f32 %v7609_v44, %v8658_v7  ;;  %v346_v53 = vmul.f32 %v7610_v45, %v8658_v7  ;;  %v399_v63 = vadd.f32 %v8663_v10, %v360_v48  ;;  %v430_v0 = vmax.f32 %v398_v49, 0.0  ;;  %v986_v38 = vld [vmem:[#allocation2 + $0x78] sm:$0xf] }
  0x2e   : > { %v615_v58 = vshrl.u32 %v7537_v46, 16  ;;  %v618_v59 = vshll.u32 %v7537_v46, 16  ;;  %v623_v60 = vshrl.u32 %v7538_v47, 16  ;;  %v626_v61 = vshll.u32 %v7538_v47, 16  ;;  %v937_v45 = vld [vmem:[#allocation2 + $0x24] sm:$0xf] }
  0x2f   : > { %v384_v1 = vadd.f32 %v8663_v10, %v345_v51  ;;  %v385_v3 = vadd.f32 %v8663_v10, %v346_v53  ;;  %v361_v8 = vmul.f32 %v7641_v55, %v8658_v7  ;;  %v362_v9 = vmul.f32 %v7642_v56, %v8658_v7  ;;  %v8469_v46 = vld [vmem:[%s10756_s3 + $0xa0] sm:$0xff]   ;;  %v7753_v51 = vld [vmem:[%s8647_s8 + $0x58] sm:$0xff]  }
  0x30   : > { %v617_v6 = vrot.slane %v615_v58, 7  ;;  %v8767_v11 = vrot.slane %v623_v60, 7  ;;  %v431_v14 = vmax.f32 %v399_v63, 0.0  ;;  %v7553_v15 = vpack.c.bf16 %v430_v0, %v430_v0 }
  0x31   : > { %v8455_v50 = vld [vmem:[#allocation2 + $0x60] sm:$0xff]   ;;  %v416_v16 = vmax.f32 %v384_v1, 0.0  ;;  %v417_v20 = vmax.f32 %v385_v3, 0.0  ;;  %v7613_v21 = vunpack.c.l.bf16 %v8763_v4  ;;  %v400_v29 = vadd.f32 %v8663_v10, %v361_v8 }
  0x32   : > { %8021 = vmatprep.mubr.bf16.mxu1 %v8455_v50  ;;  %v8456_v5 = vld [vmem:[#allocation2 + $0xc] sm:$0xff]   ;;  %v620_v18 = vor.u32 %v618_v59, %v617_v6  ;;  %v621_v19 = vrot.slane %v617_v6, 4  ;;  %v628_v26 = vor.u32 %v626_v61, %v8767_v11  ;;  %v7554_v27 = vpack.c.bf16 %v431_v14, %v431_v14  ;;  %v8468_v8 = vld [vmem:[%s10756_s3 + $0x60] sm:$0xff]  }
  0x33   : > { %8006 = vmatmul.mubr.bf16.vlgmr.msra.gmra.mxu0 %v8456_v5  ;;  %v7539_v28 = vpack.c.bf16 %v416_v16, %v416_v16  ;;  %v751_v31 = vshrl.u32 %v7553_v15, 16  ;;  %v754_v32 = vshll.u32 %v7553_v15, 16  ;;  %v7540_v33 = vpack.c.bf16 %v417_v20, %v417_v20 }
  0x34   : > { %v8457_v25 = vld [vmem:[#allocation2 + $0x6c] sm:$0xff]   ;;  %8086 = vmatpush3.bf16.msra.mxu0 %v8731_v24  ;;  %v931_v30 = vsel %vm8704_vm6, %v620_v18, %v930_v13  ;;  %v629_v24 = vsel %vm8694_vm5, %v621_v19, %v628_v26  ;;  %v759_v35 = vshrl.u32 %v7554_v27, 16  ;;  %v762_v37 = vshll.u32 %v7554_v27, 16  ;;  %v8475_v27 = vld [vmem:[%s10756_s3 + $0x98] sm:$0xff]  }
  0x35   : > { %8087 = vmatprep.subr.bf16.mxu0 %v8461_v62  ;;  %8022 = vmatmul.mubr.bf16.vlgmr.msra.gmra.mxu1 %v8457_v25  ;;  %932 = vst [vmem:[#allocation2 + $0x18] sm:$0xf] %v931_v30  ;;  %v632_v39 = vshrl.u32 %v7539_v28, 16  ;;  %933 = vst [vmem:[#allocation2 + $0x1c] sm:$0xf] %v629_v24  ;;  %v753_v41 = vrot.slane %v751_v31, 7  ;;  %v401_v49 = vadd.f32 %v8663_v10, %v362_v9  ;;  %v7614_v56 = vunpack.c.h.bf16 %v8763_v4 }
  0x36   : > { %8038 = vmatpush3.bf16.msra.mxu1 %v8726_v23  ;;  %v635_v42 = vshll.u32 %v7539_v28, 16  ;;  %v640_v43 = vshrl.u32 %v7540_v33, 16  ;;  %v643_v44 = vshll.u32 %v7540_v33, 16  ;;  %v8790_v47 = vrot.slane %v759_v35, 7  ;;  %v993_v31 = vld [vmem:[#allocation2 + $0x84] sm:$0xf] }
  0x37   : > { %8039 = vmatprep.subr.bf16.mxu1 %v8460_v17  ;;  %v634_v48 = vrot.slane %v632_v39, 7  ;;  %v432_v50 = vmax.f32 %v400_v29, 0.0  ;;  %v756_v23 = vor.u32 %v754_v32, %v753_v41  ;;  %v757_v53 = vrot.slane %v753_v41, 4  ;;  %v8474_v24 = vld [vmem:[%s10756_s3 + $0x58] sm:$0xff]   ;;  %v8477_v35 = vld [vmem:[%s10756_s3 + $0x90] sm:$0xff]  }
  0x38   : > { %8088 = vmatpush3.bf16.msra.mxu0 %v8461_v62  ;;  %v8794_v55 = vrot.slane %v640_v43, 7  ;;  %v630_v58 = vrot.slane %v8767_v11, 4  ;;  %v764_v59 = vor.u32 %v762_v37, %v8790_v47  ;;  %v766_v62 = vrot.slane %v8790_v47, 4 }
  0x39   : > { %8089 = vmatprep.subr.bf16.mxu0 %v8467_v34  ;;  %v637_v60 = vor.u32 %v635_v42, %v634_v48  ;;  %v638_v61 = vrot.slane %v634_v48, 4  ;;  %v987_v63 = vsel %vm8704_vm6, %v756_v23, %v986_v38  ;;  %v433_v1 = vmax.f32 %v401_v49, 0.0 }
  0x3a   : > { %8040 = vmatpush3.bf16.msra.mxu1 %v8460_v17  ;;  %v645_v0 = vor.u32 %v643_v44, %v8794_v55  ;;  %v765_v3 = vsel %vm8694_vm5, %v757_v53, %v764_v59  ;;  %988 = vst [vmem:[#allocation2 + $0x78] sm:$0xf] %v987_v63  ;;  %v7555_v6 = vpack.c.bf16 %v432_v50, %v432_v50  ;;  %v7645_v9 = vunpack.c.l.bf16 %v7753_v51  ;;  %v8817_v17 = vld [vmem:[%s8647_s8 + $0x20] sm:$0xff]  }
  0x3b   : > { %v938_v5 = vsel %vm8704_vm6, %v637_v60, %v937_v45  ;;  %8041 = vmatprep.subr.bf16.mxu1 %v8466_v40  ;;  %989 = vst [vmem:[#allocation2 + $0x7c] sm:$0xf] %v765_v3  ;;  %v7556_v14 = vpack.c.bf16 %v433_v1, %v433_v1  ;;  %v347_v15 = vmul.f32 %v7613_v21, %v8658_v7  ;;  %v7646_v25 = vunpack.c.h.bf16 %v7753_v51  ;;  %v8476_v51 = vld [vmem:[%s10756_s3 + $0x50] sm:$0xff]  }
  0x3c   : > { %8090 = vmatpush3.bf16.msra.mxu0 %v8467_v34  ;;  %v646_v13 = vsel %vm8694_vm5, %v638_v61, %v645_v0  ;;  %939 = vst [vmem:[#allocation2 + $0x24] sm:$0xf] %v938_v5  ;;  %v348_v16 = vmul.f32 %v7614_v56, %v8658_v7  ;;  %v8462_v18 = vld [vmem:[#allocation2 + $0x18] sm:$0xff]   ;;  %v768_v19 = vshrl.u32 %v7555_v6, 16  ;;  %v771_v20 = vshll.u32 %v7555_v6, 16 }
  0x3d   : > { %8091 = vmatprep.subr.bf16.mxu0 %v8469_v46  ;;  %940 = vst [vmem:[#allocation2 + $0x28] sm:$0xf] %v646_v13  ;;  %v363_v26 = vmul.f32 %v7645_v9, %v8658_v7  ;;  %v776_v28 = vshrl.u32 %v7556_v14, 16  ;;  %v779_v29 = vshll.u32 %v7556_v14, 16  ;;  %v386_v4 = vadd.f32 %v8663_v10, %v347_v15  ;;  %8009 = vmatprep.mubr.bf16.mxu0 %v8462_v18  ;;  %v7754_v9 = vld [vmem:[%s8647_s8 + $0x60] sm:$0xff]   ;;  %v8483_v13 = vld [vmem:[%s10756_s3 + $0x88] sm:$0xff]  }
  0x3e   : > { %8042 = vmatpush3.bf16.msra.mxu1 %v8466_v40  ;;  %v387_v21 = vadd.f32 %v8663_v10, %v348_v16  ;;  %v770_v30 = vrot.slane %v768_v19, 7  ;;  %v364_v32 = vmul.f32 %v7646_v25, %v8658_v7  ;;  %v7617_v34 = vunpack.c.l.bf16 %v8817_v17  ;;  %v944_v16 = vld [vmem:[#allocation2 + $0x30] sm:$0xf] }
  0x3f   : > { %8043 = vmatprep.subr.bf16.mxu1 %v8468_v8  ;;  %v402_v33 = vadd.f32 %v8663_v10, %v363_v26  ;;  %v647_v37 = vrot.slane %v8794_v55, 4  ;;  %v8835_v38 = vrot.slane %v776_v28, 7  ;;  %v418_v39 = vmax.f32 %v386_v4, 0.0  ;;  %v2342_v55 = vld [vmem:[#allocation2 + $0x14] sm:$0x1] }
  0x40   : > { %8092 = vmatpush3.bf16.msra.mxu0 %v8469_v46  ;;  %v419_v40 = vmax.f32 %v387_v21, 0.0  ;;  %v773_v41 = vor.u32 %v771_v20, %v770_v30  ;;  %v774_v42 = vrot.slane %v770_v30, 4  ;;  %v403_v43 = vadd.f32 %v8663_v10, %v364_v32  ;;  %v1000_v21 = vld [vmem:[#allocation2 + $0x90] sm:$0xf] }
  0x41   : > { %v434_v44 = vmax.f32 %v402_v33, 0.0  ;;  %8093 = vmatprep.subr.bf16.mxu0 %v8475_v27  ;;  %v781_v45 = vor.u32 %v779_v29, %v8835_v38  ;;  %v7541_v48 = vpack.c.bf16 %v418_v39, %v418_v39  ;;  %v7618_v50 = vunpack.c.h.bf16 %v8817_v17  ;;  %v8485_v39 = vld [vmem:[%s10756_s3 + $0x80] sm:$0xff]  }
  0x42   : > { %8044 = vmatpush3.bf16.msra.mxu1 %v8468_v8  ;;  %v7542_v49 = vpack.c.bf16 %v419_v40, %v419_v40  ;;  %v8463_v46 = vld [vmem:[#allocation2 + $0x78] sm:$0xff]   ;;  %v994_v23 = vsel %vm8704_vm6, %v773_v41, %v993_v31  ;;  %v435_v53 = vmax.f32 %v403_v43, 0.0  ;;  %v349_v59 = vmul.f32 %v7617_v34, %v8658_v7  ;;  %v8873_v43 = vld [vmem:[%s8647_s8 + $0x68] sm:$0xff]  }
  0x43   : > { %v7557_v56 = vpack.c.bf16 %v434_v44, %v434_v44  ;;  %8045 = vmatprep.subr.bf16.mxu1 %v8474_v24  ;;  %v782_v61 = vsel %vm8694_vm5, %v774_v42, %v781_v45  ;;  %995 = vst [vmem:[#allocation2 + $0x84] sm:$0xf] %v994_v23  ;;  %v649_v63 = vshrl.u32 %v7541_v48, 16  ;;  %v652_v0 = vshll.u32 %v7541_v48, 16  ;;  %8025 = vmatprep.mubr.bf16.mxu1 %v8463_v46  ;;  %v8484_v44 = vld [vmem:[%s10756_s3 + $0x40] sm:$0xff]  }
  0x44   : > { %v8464_v60 = vld [vmem:[#allocation2 + $0x24] sm:$0xff]   ;;  %v657_v1 = vshrl.u32 %v7542_v49, 16  ;;  %8094 = vmatpush3.bf16.msra.mxu0 %v8475_v27  ;;  %996 = vst [vmem:[#allocation2 + $0x88] sm:$0xf] %v782_v61  ;;  %v660_v3 = vshll.u32 %v7542_v49, 16  ;;  %v7558_v5 = vpack.c.bf16 %v435_v53, %v435_v53  ;;  %v350_v17 = vmul.f32 %v7618_v50, %v8658_v7 }
  0x45   : > { %v785_v6 = vshrl.u32 %v7557_v56, 16  ;;  %v788_v8 = vshll.u32 %v7557_v56, 16  ;;  %8095 = vmatprep.subr.bf16.mxu0 %v8477_v35  ;;  %8010 = vmatmul.mubr.bf16.gmra.mxu0 %v8464_v60  ;;  %v651_v14 = vrot.slane %v649_v63, 7  ;;  %v388_v18 = vadd.f32 %v8663_v10, %v349_v59  ;;  %v8482_v27 = vld [vmem:[%s10756_s3 + $0x48] sm:$0xff]  }
  0x46   : > { %v8852_v15 = vrot.slane %v657_v1, 7  ;;  %8046 = vmatpush3.bf16.msra.mxu1 %v8474_v24  ;;  %v783_v19 = vrot.slane %v8835_v38, 4  ;;  %v793_v25 = vshrl.u32 %v7558_v5, 16  ;;  %v796_v26 = vshll.u32 %v7558_v5, 16  ;;  %v7747_v24 = vld [vmem:[%s8647_s8 + $0x28] sm:$0xff]  }
  0x47   : > { %v787_v20 = vrot.slane %v785_v6, 7  ;;  %8047 = vmatprep.subr.bf16.mxu1 %v8476_v51  ;;  %v654_v28 = vor.u32 %v652_v0, %v651_v14  ;;  %v655_v29 = vrot.slane %v651_v14, 4  ;;  %v7649_v30 = vunpack.c.l.bf16 %v7754_v9  ;;  %v8890_v0 = vld [vmem:[%s10756_s3 + $0x138] sm:$0xff]  }
  0x48   : > { %v662_v4 = vor.u32 %v660_v3, %v8852_v15  ;;  %8096 = vmatpush3.bf16.msra.mxu0 %v8477_v35  ;;  %v8861_v33 = vrot.slane %v793_v25, 7  ;;  %v389_v34 = vadd.f32 %v8663_v10, %v350_v17  ;;  %v420_v42 = vmax.f32 %v388_v18, 0.0  ;;  %v8900_v25 = vld [vmem:[%s10756_s3 + $0xf8] sm:$0xff]  }
  0x49   : > { %v790_v31 = vor.u32 %v788_v8, %v787_v20  ;;  %v791_v32 = vrot.slane %v787_v20, 4  ;;  %8097 = vmatprep.subr.bf16.mxu0 %v8483_v13  ;;  %v945_v41 = vsel %vm8704_vm6, %v654_v28, %v944_v16  ;;  %v7650_v35 = vunpack.c.h.bf16 %v7754_v9  ;;  %v951_v28 = vld [vmem:[#allocation2 + $0x3c] sm:$0xf] }
  0x4a   : > { %v663_v40 = vsel %vm8694_vm5, %v655_v29, %v662_v4  ;;  %8048 = vmatpush3.bf16.msra.mxu1 %v8476_v51  ;;  %v664_v45 = vrot.slane %v8852_v15, 4  ;;  %946 = vst [vmem:[#allocation2 + $0x30] sm:$0xf] %v945_v41  ;;  %v798_v48 = vor.u32 %v796_v26, %v8861_v33  ;;  %v421_v50 = vmax.f32 %v389_v34, 0.0 }
  0x4b   : > { %947 = vst [vmem:[#allocation2 + $0x34] sm:$0xf] %v663_v40  ;;  %v1001_v49 = vsel %vm8704_vm6, %v790_v31, %v1000_v21  ;;  %8049 = vmatprep.subr.bf16.mxu1 %v8482_v27  ;;  %v8465_v46 = vld [vmem:[#allocation2 + $0x84] sm:$0xff]   ;;  %v7543_v51 = vpack.c.bf16 %v420_v42, %v420_v42  ;;  %v365_v23 = vmul.f32 %v7649_v30, %v8658_v7  ;;  %v7621_v56 = vunpack.c.l.bf16 %v7747_v24 }
  0x4c   : > { %1002 = vst [vmem:[#allocation2 + $0x90] sm:$0xf] %v1001_v49  ;;  %v366_v53 = vmul.f32 %v7650_v35, %v8658_v7  ;;  %8098 = vmatpush3.bf16.msra.mxu0 %v8483_v13  ;;  %v799_v59 = vsel %vm8694_vm5, %v791_v32, %v798_v48  ;;  %v7544_v60 = vpack.c.bf16 %v421_v50, %v421_v50  ;;  %v7622_v61 = vunpack.c.h.bf16 %v7747_v24 }
  0x4d   : > { %v7653_v63 = vunpack.c.l.bf16 %v8873_v43  ;;  %8099 = vmatprep.subr.bf16.mxu0 %v8485_v39  ;;  %8026 = vmatmul.mubr.bf16.gmra.mxu1 %v8465_v46  ;;  %1003 = vst [vmem:[#allocation2 + $0x94] sm:$0xf] %v799_v59  ;;  %v666_v1 = vshrl.u32 %v7543_v51, 16  ;;  %v669_v3 = vshll.u32 %v7543_v51, 16  ;;  %v404_v5 = vadd.f32 %v8663_v10, %v365_v23 }
  0x4e   : > { %v405_v6 = vadd.f32 %v8663_v10, %v366_v53  ;;  %v674_v8 = vshrl.u32 %v7544_v60, 16  ;;  %v677_v9 = vshll.u32 %v7544_v60, 16  ;;  %v351_v13 = vmul.f32 %v7621_v56, %v8658_v7  ;;  %8050 = vmatpush3.bf16.msra.mxu1 %v8482_v27  ;;  %v1007_v56 = vld [vmem:[#allocation2 + $0x9c] sm:$0xf] }
  0x4f   : > { %v352_v14 = vmul.f32 %v7622_v61, %v8658_v7  ;;  %v668_v16 = vrot.slane %v666_v1, 7  ;;  %v436_v17 = vmax.f32 %v404_v5, 0.0  ;;  %v7654_v20 = vunpack.c.h.bf16 %v8873_v43  ;;  %8051 = vmatprep.subr.bf16.mxu1 %v8484_v44  ;;  %v7748_v61 = vld [vmem:[%s8647_s8 + $0x30] sm:$0xff]  }
  0x50   : > { %v437_v18 = vmax.f32 %v405_v6, 0.0  ;;  %8100 = vmatpush3.bf16.msra.mxu0 %v8485_v39  ;;  %v8902_v26 = vrot.slane %v674_v8, 7  ;;  %v390_v29 = vadd.f32 %v8663_v10, %v351_v13  ;;  %v367_v27 = vmul.f32 %v7653_v63, %v8658_v7 }
  0x51   : > { %v391_v4 = vadd.f32 %v8663_v10, %v352_v14  ;;  %8181 = vmatprep.subr.bf16.mxu0 %v8890_v0  ;;  %v671_v30 = vor.u32 %v669_v3, %v668_v16  ;;  %v672_v31 = vrot.slane %v668_v16, 4  ;;  %v7559_v32 = vpack.c.bf16 %v436_v17, %v436_v17 }
  0x52   : > { %v8470_v21 = vld [vmem:[#allocation2 + $0x30] sm:$0xff]   ;;  %v7560_v34 = vpack.c.bf16 %v437_v18, %v437_v18  ;;  %v800_v24 = vrot.slane %v8861_v33, 4  ;;  %v679_v39 = vor.u32 %v677_v9, %v8902_v26  ;;  %v422_v40 = vmax.f32 %v390_v29, 0.0  ;;  %8052 = vmatpush3.bf16.msra.mxu1 %v8484_v44  ;;  %v958_v29 = vld [vmem:[#allocation2 + $0x48] sm:$0xf] }
  0x53   : > { %v423_v41 = vmax.f32 %v391_v4, 0.0  ;;  %8013 = vmatprep.mubr.bf16.mxu0 %v8470_v21  ;;  %v952_v42 = vsel %vm8704_vm6, %v671_v30, %v951_v28  ;;  %v802_v35 = vshrl.u32 %v7559_v32, 16  ;;  %v805_v43 = vshll.u32 %v7559_v32, 16  ;;  %8133 = vmatprep.subr.bf16.mxu1 %v8900_v25  ;;  %v7756_v21 = vld [vmem:[%s8647_s8 + $0x70] sm:$0xff]  }
  0x54   : > { %v810_v48 = vshrl.u32 %v7560_v34, 16  ;;  %v8471_v49 = vld [vmem:[#allocation2 + $0x90] sm:$0xff]   ;;  %v680_v50 = vsel %vm8694_vm5, %v672_v31, %v679_v39  ;;  %953 = vst [vmem:[#allocation2 + $0x3c] sm:$0xf] %v952_v42  ;;  %v813_v46 = vshll.u32 %v7560_v34, 16  ;;  %v7545_v51 = vpack.c.bf16 %v422_v40, %v422_v40 }
  0x55   : > { %v7546_v23 = vpack.c.bf16 %v423_v41, %v423_v41  ;;  %954 = vst [vmem:[#allocation2 + $0x40] sm:$0xf] %v680_v50  ;;  %v804_v44 = vrot.slane %v802_v35, 7  ;;  %v368_v59 = vmul.f32 %v7654_v20, %v8658_v7  ;;  %v406_v60 = vadd.f32 %v8663_v10, %v367_v27  ;;  %8029 = vmatprep.mubr.bf16.mxu1 %v8471_v49 }
  0x56   : > { %v8915_v53 = vrot.slane %v810_v48, 7  ;;  %v683_v63 = vshrl.u32 %v7545_v51, 16  ;;  %v686_v1 = vshll.u32 %v7545_v51, 16  ;;  %v681_v6 = vrot.slane %v8902_v26, 4 }
  0x57   : > { %v691_v3 = vshrl.u32 %v7546_v23, 16  ;;  %v694_v5 = vshll.u32 %v7546_v23, 16  ;;  %v807_v8 = vor.u32 %v805_v43, %v804_v44  ;;  %v808_v9 = vrot.slane %v804_v44, 4 }
  0x58   : > { %v815_v13 = vor.u32 %v813_v46, %v8915_v53  ;;  %v685_v14 = vrot.slane %v683_v63, 7  ;;  %v407_v17 = vadd.f32 %v8663_v10, %v368_v59  ;;  %v438_v18 = vmax.f32 %v406_v60, 0.0  ;;  %v8566_v60 = vld [vmem:[%s10754_s1] ss:$0 sm:$0xff] }
  0x59   : > { %v8922_v16 = vrot.slane %v691_v3, 7  ;;  %v1008_v28 = vsel %vm8704_vm6, %v807_v8, %v1007_v56  ;;  %v7625_v4 = vunpack.c.l.bf16 %v7748_v61  ;;  %v7626_v27 = vunpack.c.h.bf16 %v7748_v61  ;;  %v8939_v56 = vld [vmem:[#allocation2] sm:$0xf] }
  0x5a   : > { %v816_v20 = vsel %vm8694_vm5, %v808_v9, %v815_v13  ;;  %v817_v30 = vrot.slane %v8915_v53, 4  ;;  %1009 = vst [vmem:[#allocation2 + $0x9c] sm:$0xf] %v1008_v28  ;;  %v688_v31 = vor.u32 %v686_v1, %v685_v14  ;;  %v689_v32 = vrot.slane %v685_v14, 4  ;;  %v934_v1 = vld [vmem:[#allocation2 + $0x20] sm:$0x1] }
  0x5b   : > { %1010 = vst [vmem:[#allocation2 + $0xa0] sm:$0xf] %v816_v20  ;;  %v696_v34 = vor.u32 %v694_v5, %v8922_v16  ;;  %v439_v39 = vmax.f32 %v407_v17, 0.0  ;;  %v7561_v40 = vpack.c.bf16 %v438_v18, %v438_v18  ;;  %v353_v41 = vmul.f32 %v7625_v4, %v8658_v7  ;;  %v1014_v13 = vld [vmem:[#allocation2 + $0xa8] sm:$0xf] }
  0x5c   : > { %v354_v42 = vmul.f32 %v7626_v27, %v8658_v7  ;;  %v8472_v35 = vld [vmem:[#allocation2 + $0x3c] sm:$0xff]   ;;  %v959_v48 = vsel %vm8704_vm6, %v688_v31, %v958_v29  ;;  %v7657_v49 = vunpack.c.l.bf16 %v7756_v21  ;;  %v7658_v50 = vunpack.c.h.bf16 %v7756_v21 }
  0x5d   : > { %v697_v43 = vsel %vm8694_vm5, %v689_v32, %v696_v34  ;;  %960 = vst [vmem:[#allocation2 + $0x48] sm:$0xf] %v959_v48  ;;  %v7562_v46 = vpack.c.bf16 %v439_v39, %v439_v39  ;;  %v819_v51 = vshrl.u32 %v7561_v40, 16  ;;  %v822_v23 = vshll.u32 %v7561_v40, 16  ;;  %8014 = vmatmul.mubr.bf16.gmra.mxu0 %v8472_v35  ;;  %v8567_v17 = vld [vmem:[%s10755_s2] ss:$0 sm:$0xff] }
  0x5e   : > { %961 = vst [vmem:[#allocation2 + $0x4c] sm:$0xf] %v697_v43  ;;  %v392_v44 = vadd.f32 %v8663_v10, %v353_v41  ;;  %v698_v7 = vrot.slane %v8922_v16, 4  ;;  %v393_v59 = vadd.f32 %v8663_v10, %v354_v42  ;;  %v369_v61 = vmul.f32 %v8566_v60, %v7657_v49 }
  0x5f   : > { %v370_v63 = vmul.f32 %v8566_v60, %v7658_v50  ;;  %v821_v3 = vrot.slane %v819_v51, 7  ;;  %v827_v5 = vshrl.u32 %v7562_v46, 16  ;;  %v830_v8 = vshll.u32 %v7562_v46, 16  ;;  %v965_v60 = vld [vmem:[#allocation2 + $0x54] sm:$0xf] }
  0x60   : > { %v424_v9 = vmax.f32 %v392_v44, 0.0  ;;  %v425_v14 = vmax.f32 %v393_v59, 0.0  ;;  %v408_v18 = vadd.f32 %v8567_v17, %v369_v61  ;;  %v1600_v10 = vshrl.u32 %v8939_v56, 16 }
  0x61   : > { %v409_v20 = vadd.f32 %v8567_v17, %v370_v63  ;;  %vm2465_vm8 = vcmask 1042432   ;;  %vm2466_vm9 = vcmask 1046532   ;;  %v824_v29 = vor.u32 %v822_v23, %v821_v3  ;;  %v1517_v23 = vld [vmem:[#allocation2 + $0x4] sm:$0xf]  ;;  %v2337_v17 = vld [vmem:[#allocation2] sm:$0xe] }
  0x62   : > { %v8473_v28 = vld [vmem:[#allocation2 + $0x9c] sm:$0xff]   ;;  %v825_v4 = vrot.slane %v821_v3, 4  ;;  %v7547_v27 = vpack.c.bf16 %v424_v9, %v424_v9  ;;  %vm1596_vm10 = vsmask.f32 3328  ;;  %vm1597_vm11 = vsmask.f32 7440  ;;  %vm8977_vm12 = vmor %vm2465_vm8, %vm2466_vm9 }
  0x63   : > { %v935_v21 = vsel %vm8714_vm7, %v630_v58, %v934_v1  ;;  %v8954_v31 = vrot.slane %v827_v5, 7  ;;  %v7548_v32 = vpack.c.bf16 %v425_v14, %v425_v14  ;;  %v440_v34 = vmax.f32 %v408_v18, 0.0  ;;  %8030 = vmatmul.mubr.bf16.gmra.mxu1 %v8473_v28  ;;  %v1518_v14 = vld [vmem:[#allocation2 + $0x8] sm:$0x1]  ;;  %v2338_v28 = vld [vmem:[#allocation2 + $0x4] sm:$0xf]  ;;  %vm8987_vm13 = vmor %vm1596_vm10, %vm1597_vm11 }
  0x64   : > { %v441_v39 = vmax.f32 %v409_v20, 0.0  ;;  %936 = vst [vmem:[#allocation2 + $0x20] sm:$0x1] %v935_v21  ;;  %v1015_v40 = vsel %vm8704_vm6, %v824_v29, %v1014_v13  ;;  %v700_v41 = vshrl.u32 %v7547_v27, 16  ;;  %v703_v42 = vshll.u32 %v7547_v27, 16 }
  0x65   : > { %v1602_v35 = vrot.slane %v1600_v10, 4  ;;  %v8478_v43 = vld [vmem:[#allocation2 + $0x48] sm:$0xff]   ;;  %v832_v48 = vor.u32 %v830_v8, %v8954_v31  ;;  %v834_v11 = vrot.slane %v8954_v31, 4  ;;  %1016 = vst [vmem:[#allocation2 + $0xa8] sm:$0xf] %v1015_v40  ;;  %v7563_v58 = vpack.c.bf16 %v440_v34, %v440_v34 }
  0x66   : > { %v7564_v49 = vpack.c.bf16 %v441_v39, %v441_v39  ;;  %v702_v50 = vrot.slane %v700_v41, 7  ;;  %v708_v46 = vshrl.u32 %v7548_v32, 16  ;;  %v711_v51 = vshll.u32 %v7548_v32, 16  ;;  %8017 = vmatprep.mubr.bf16.mxu0 %v8478_v43  ;;  %v1021_v13 = vld [vmem:[#allocation2 + $0xb4] sm:$0xf] }
  0x67   : > { %v1603_v44 = vshll.u32 %v8939_v56, 16  ;;  %v833_v59 = vsel %vm8694_vm5, %v825_v4, %v832_v48  ;;  %v836_v61 = vshrl.u32 %v7563_v58, 16  ;;  %v839_v63 = vshll.u32 %v7563_v58, 16  ;;  %v2339_v32 = vld [vmem:[#allocation2 + $0x8] sm:$0x1] }
  0x68   : > { %v844_v1 = vshrl.u32 %v7564_v49, 16  ;;  %1017 = vst [vmem:[#allocation2 + $0xac] sm:$0xf] %v833_v59  ;;  %v705_v3 = vor.u32 %v703_v42, %v702_v50  ;;  %v706_v5 = vrot.slane %v702_v50, 4  ;;  %v8963_v8 = vrot.slane %v708_v46, 7 }
  0x69   : > { %v847_v9 = vshll.u32 %v7564_v49, 16  ;;  %v838_v18 = vrot.slane %v836_v61, 7  ;;  %v1605_v56 = vrot.slane %v1603_v44, 5  ;;  %v1609_v10 = vshll.u32 %v1517_v23, 16  ;;  %v1519_v34 = vld [vmem:[#allocation2 + $0xc] sm:$0xf] }
  0x6a   : > { %v8965_v20 = vrot.slane %v844_v1, 7  ;;  %v713_v29 = vor.u32 %v711_v51, %v8963_v8  ;;  %v715_v4 = vrot.slane %v8963_v8, 4  ;;  %v966_v27 = vsel %vm8704_vm6, %v705_v3, %v965_v60  ;;  %v941_v46 = vld [vmem:[#allocation2 + $0x2c] sm:$0x1]  ;;  %v1520_v60 = vld [vmem:[#allocation2 + $0x10] sm:$0xf] }
  0x6b   : > { %v1613_v21 = vshrl.u32 %v1517_v23, 16  ;;  %967 = vst [vmem:[#allocation2 + $0x54] sm:$0xf] %v966_v27  ;;  %v841_v39 = vor.u32 %v839_v63, %v838_v18  ;;  %v842_v40 = vrot.slane %v838_v18, 4  ;;  %v1606_v48 = vor.u32 %v1605_v56, %v1602_v35  ;;  %v1521_v61 = vld [vmem:[#allocation2 + $0x14] sm:$0x1] }
  0x6c   : > { %v849_v41 = vor.u32 %v847_v9, %v8965_v20  ;;  %v851_v42 = vrot.slane %v8965_v20, 4  ;;  %v714_v43 = vsel %vm8694_vm5, %v706_v5, %v713_v29  ;;  %v1611_v58 = vrot.slane %v1609_v10, 5  ;;  %v2340_v9 = vld [vmem:[#allocation2 + $0xc] sm:$0xe]  ;;  %v2341_v29 = vld [vmem:[#allocation2 + $0x10] sm:$0xf] }
  0x6d   : > { %v1615_v49 = vrot.slane %v1613_v21, 4  ;;  %968 = vst [vmem:[#allocation2 + $0x58] sm:$0xf] %v714_v43  ;;  %v1022_v23 = vsel %vm8704_vm6, %v841_v39, %v1021_v13  ;;  %v1619_v44 = vshll.u32 %v1518_v14, 16  ;;  %v7171_v59 = vrot.slane %v2337_v17, 9 }
  0x6e   : > { %v850_v51 = vsel %vm8694_vm5, %v842_v40, %v849_v41  ;;  %1023 = vst [vmem:[#allocation2 + $0xb4] sm:$0xf] %v1022_v23  ;;  %v1607_v63 = vrot.slane %v1606_v48, 4  ;;  %v2470_v3 = vrot.slane %v2338_v28, 5  ;;  %v2473_v5 = vrot.slane %v2339_v32, 5 }
  0x6f   : > { %1024 = vst [vmem:[#allocation2 + $0xb8] sm:$0xf] %v850_v51  ;;  %v1616_v1 = vor.u32 %v1615_v49, %v1611_v58  ;;  %v8479_v18 = vld [vmem:[#allocation2 + $0xa8] sm:$0xff]   ;;  %v1621_v56 = vrot.slane %v1619_v44, 5  ;;  %v1624_v13 = vshrl.u32 %v1519_v34, 16  ;;  %v1627_v10 = vshll.u32 %v1519_v34, 16 }
  0x70   : > { %v942_v14 = vsel %vm8714_vm7, %v647_v37, %v941_v46  ;;  %v1612_v17 = vsel %vm8987_vm13, %v1607_v63, %v1611_v58  ;;  %v2471_v21 = vsel %vm8977_vm12, %v7171_v59, %v2470_v3  ;;  %v2472_v28 = vrot.slane %v2470_v3, 4  ;;  %v948_v32 = vld [vmem:[#allocation2 + $0x38] sm:$0x1]  ;;  %v955_v39 = vld [vmem:[#allocation2 + $0x44] sm:$0x1]  ;;  %8033 = vmatprep.mubr.bf16.mxu1 %v8479_v18 }
  0x71   : > { %v1617_v27 = vrot.slane %v1616_v1, 4  ;;  %943 = vst [vmem:[#allocation2 + $0x2c] sm:$0x1] %v942_v14  ;;  %v1626_v40 = vrot.slane %v1624_v13, 4  ;;  %v1629_v34 = vrot.slane %v1627_v10, 5  ;;  %v1633_v41 = vshll.u32 %v1520_v60, 16 }
  0x72   : > { %v1637_v43 = vshrl.u32 %v1520_v60, 16  ;;  %v962_v48 = vld [vmem:[#allocation2 + $0x50] sm:$0x1]  ;;  %v2474_v58 = vsel %vm8977_vm12, %v2472_v28, %v2473_v5  ;;  %v1643_v49 = vshll.u32 %v1521_v61, 16  ;;  %v7172_v46 = vrot.slane %v2340_v9, 9 }
  0x73   : > { %v1622_v37 = vsel %vm8987_vm13, %v1617_v27, %v1621_v56  ;;  %v1522_v51 = vld [vmem:[#allocation2 + $0x18] sm:$0xf]  ;;  %v969_v23 = vld [vmem:[#allocation2 + $0x5c] sm:$0x1]  ;;  %v7203_v59 = vcombine.low %v2471_v21, %v2474_v58  ;;  %v1630_v63 = vor.u32 %v1629_v34, %v1626_v40  ;;  %v1635_v1 = vrot.slane %v1633_v41, 5 }
  0x74   : > { %v7147_v44 = vcombine.low %v1612_v17, %v1622_v37  ;;  %v1523_v3 = vld [vmem:[#allocation2 + $0x1c] sm:$0xf]  ;;  %v1524_v18 = vld [vmem:[#allocation2 + $0x20] sm:$0x1]  ;;  %v8480_v13 = vld [vmem:[#allocation2 + $0x54] sm:$0xff]   ;;  %v1639_v60 = vrot.slane %v1637_v43, 4  ;;  %v949_v56 = vsel %vm8714_vm7, %v664_v45, %v948_v32  ;;  %v956_v9 = vsel %vm8714_vm7, %v681_v6, %v955_v39 }
  0x75   : > { %v1645_v10 = vrot.slane %v1643_v49, 5  ;;  %v2477_v14 = vrot.slane %v2341_v29, 5  ;;  %v1631_v61 = vrot.slane %v1630_v63, 4  ;;  %950 = vst [vmem:[#allocation2 + $0x38] sm:$0x1] %v949_v56  ;;  %v963_v17 = vsel %vm8714_vm7, %v698_v7, %v962_v48  ;;  %8018 = vmatmul.mubr.bf16.gmra.mxu0 %v8480_v13  ;;  %v8489_v56 = vld [vmem:[%s10756_s3 + $0x130] sm:$0xff]  }
  0x76   : > { %v8481_v5 = vld [vmem:[#allocation2 + $0xb4] sm:$0xff]   ;;  %v970_v15 = vsel %vm8714_vm7, %v715_v4, %v969_v23  ;;  %v1640_v45 = vor.u32 %v1639_v60, %v1635_v1  ;;  %v2480_v26 = vrot.slane %v2342_v55, 5  ;;  %v2344_v28 = vld [vmem:[#allocation2 + $0x1c] sm:$0xf]  ;;  %957 = vst [vmem:[#allocation2 + $0x44] sm:$0x1] %v956_v9  ;;  %8101 = vmatprep.mubr.bf16.mxu0 %v7203_v59 }
  0x77   : > { %v2478_v29 = vsel %vm8977_vm12, %v7172_v46, %v2477_v14  ;;  %v2479_v27 = vrot.slane %v2477_v14, 4  ;;  %v2343_v21 = vld [vmem:[#allocation2 + $0x18] sm:$0xe]  ;;  %964 = vst [vmem:[#allocation2 + $0x50] sm:$0x1] %v963_v17  ;;  %8034 = vmatmul.mubr.bf16.gmra.mxu1 %v8481_v5  ;;  %v1636_v6 = vsel %vm8987_vm13, %v1631_v61, %v1635_v1  ;;  %v1648_v16 = vshrl.u32 %v1522_v51, 16 }
  0x78   : > { %971 = vst [vmem:[#allocation2 + $0x5c] sm:$0x1] %v970_v15  ;;  %v1651_v7 = vshll.u32 %v1522_v51, 16  ;;  %v1657_v8 = vshll.u32 %v1523_v3, 16  ;;  %v1525_v4 = vld [vmem:[#allocation2 + $0x24] sm:$0xf]  ;;  %8053 = vmatprep.mubr.bf16.mxu1 %v7147_v44 }
  0x79   : > { %v1641_v32 = vrot.slane %v1640_v45, 4  ;;  %v2481_v39 = vsel %vm8977_vm12, %v2479_v27, %v2480_v26  ;;  %v1661_v40 = vshrl.u32 %v1523_v3, 16  ;;  %v1667_v34 = vshll.u32 %v1524_v18, 16  ;;  %v2345_v41 = vld [vmem:[#allocation2 + $0x20] sm:$0x1]  ;;  %v8488_v15 = vld [vmem:[%s10756_s3 + $0xf0] sm:$0xff]  }
  0x7a   : > { %v7204_v43 = vcombine.low %v2478_v29, %v2481_v39  ;;  %v1650_v55 = vrot.slane %v1648_v16, 4  ;;  %v1653_v48 = vrot.slane %v1651_v7, 5  ;;  %v1659_v37 = vrot.slane %v1657_v8, 5  ;;  %v1526_v58 = vld [vmem:[#allocation2 + $0x28] sm:$0xf] }
  0x7b   : > { %v1646_v49 = vsel %vm8987_vm13, %v1641_v32, %v1645_v10  ;;  %v1663_v46 = vrot.slane %v1661_v40, 4  ;;  %v1669_v51 = vrot.slane %v1667_v34, 5  ;;  %v7173_v23 = vrot.slane %v2343_v21, 9  ;;  %v1527_v60 = vld [vmem:[#allocation2 + $0x2c] sm:$0x1] }
  0x7c   : > { %v7148_v59 = vcombine.low %v1636_v6, %v1646_v49  ;;  %v1654_v44 = vor.u32 %v1653_v48, %v1650_v55  ;;  %v2484_v63 = vrot.slane %v2344_v28, 5  ;;  %v2487_v1 = vrot.slane %v2345_v41, 5  ;;  %v2346_v17 = vld [vmem:[#allocation2 + $0x24] sm:$0xe]  ;;  %v2347_v21 = vld [vmem:[#allocation2 + $0x28] sm:$0xf] }
  0x7d   : > { %v1664_v13 = vor.u32 %v1663_v46, %v1659_v37  ;;  %v1672_v3 = vshrl.u32 %v1525_v4, 16  ;;  %v1675_v18 = vshll.u32 %v1525_v4, 16  ;;  %v1681_v14 = vshll.u32 %v1526_v58, 16  ;;  %8102 = vmatmul.mubr.bf16.vlgmr.msra.gmra.mxu0 %v7204_v43  ;;  %v2348_v8 = vld [vmem:[#allocation2 + $0x2c] sm:$0x1] }
  0x7e   : > { %v1655_v5 = vrot.slane %v1654_v44, 4  ;;  %v2485_v10 = vsel %vm8977_vm12, %v7173_v23, %v2484_v63  ;;  %v2486_v61 = vrot.slane %v2484_v63, 4  ;;  %v1685_v9 = vshrl.u32 %v1526_v58, 16  ;;  %8182 = vmatpush3.bf16.msra.mxu0 %v8890_v0  ;;  %v1528_v4 = vld [vmem:[#allocation2 + $0x30] sm:$0xf]  ;;  %v8490_v41 = vld [vmem:[%s10756_s3 + $0xe8] sm:$0xff]  }
  0x7f   : > { %v1665_v45 = vrot.slane %v1664_v13, 4  ;;  %v1674_v29 = vrot.slane %v1672_v3, 4  ;;  %v1677_v27 = vrot.slane %v1675_v18, 5  ;;  %v1683_v26 = vrot.slane %v1681_v14, 5  ;;  %8054 = vmatmul.mubr.bf16.vlgmr.msra.gmra.mxu1 %v7148_v59  ;;  %8183 = vmatprep.subr.bf16.mxu0 %v8489_v56  ;;  %v1529_v0 = vld [vmem:[#allocation2 + $0x34] sm:$0xf] }
  0x80   : > { %v1660_v28 = vsel %vm8987_vm13, %v1655_v5, %v1659_v37  ;;  %v2488_v6 = vsel %vm8977_vm12, %v2486_v61, %v2487_v1  ;;  %v1687_v16 = vrot.slane %v1685_v9, 4  ;;  %v1691_v7 = vshll.u32 %v1527_v60, 16  ;;  %8134 = vmatpush3.bf16.msra.mxu1 %v8900_v25  ;;  %v8491_v43 = vld [vmem:[%s10756_s3 + $0x128] sm:$0xff]   ;;  %v1530_v58 = vld [vmem:[#allocation2 + $0x38] sm:$0x1] }
  0x81   : > { %v1670_v32 = vsel %vm8987_vm13, %v1665_v45, %v1669_v51  ;;  %v7205_v39 = vcombine.low %v2485_v10, %v2488_v6  ;;  %v1678_v40 = vor.u32 %v1677_v27, %v1674_v29  ;;  %v7174_v34 = vrot.slane %v2346_v17, 9  ;;  %8135 = vmatprep.subr.bf16.mxu1 %v8488_v15  ;;  %v2349_v59 = vld [vmem:[#allocation2 + $0x30] sm:$0xe]  ;;  %v2350_v60 = vld [vmem:[#allocation2 + $0x34] sm:$0xf]  ;;  %v8493_v29 = vld [vmem:[%s10756_s3 + $0x120] sm:$0xff]  }
  0x82   : > { %v7149_v55 = vcombine.low %v1660_v28, %v1670_v32  ;;  %v1688_v48 = vor.u32 %v1687_v16, %v1683_v26  ;;  %v1693_v37 = vrot.slane %v1691_v7, 5  ;;  %v2491_v25 = vrot.slane %v2347_v21, 5  ;;  %8184 = vmatpush3.bf16.msra.mxu0 %v8489_v56  ;;  %v2351_v10 = vld [vmem:[#allocation2 + $0x38] sm:$0x1]  ;;  %v1531_v56 = vld [vmem:[#allocation2 + $0x3c] sm:$0xf] }
  0x83   : > { %8105 = vmatprep.mubr.bf16.mxu0 %v7205_v39  ;;  %v1679_v49 = vrot.slane %v1678_v40, 4  ;;  %v2494_v46 = vrot.slane %v2348_v8, 5  ;;  %v1696_v51 = vshrl.u32 %v1528_v4, 16  ;;  %v1699_v23 = vshll.u32 %v1528_v4, 16  ;;  %8185 = vmatprep.subr.bf16.mxu0 %v8491_v43  ;;  %v1532_v28 = vld [vmem:[#allocation2 + $0x40] sm:$0xf] }
  0x84   : > { %8057 = vmatprep.mubr.bf16.mxu1 %v7149_v55  ;;  %v1689_v44 = vrot.slane %v1688_v48, 4  ;;  %v2492_v63 = vsel %vm8977_vm12, %v7174_v34, %v2491_v25  ;;  %v2493_v1 = vrot.slane %v2491_v25, 4  ;;  %v1705_v13 = vshll.u32 %v1529_v0, 16  ;;  %8136 = vmatpush3.bf16.msra.mxu1 %v8488_v15  ;;  %v8492_v6 = vld [vmem:[%s10756_s3 + $0xe0] sm:$0xff]   ;;  %v2352_v32 = vld [vmem:[#allocation2 + $0x3c] sm:$0xe] }
  0x85   : > { %v1684_v3 = vsel %vm8987_vm13, %v1679_v49, %v1683_v26  ;;  %v1698_v18 = vrot.slane %v1696_v51, 4  ;;  %v1701_v14 = vrot.slane %v1699_v23, 5  ;;  %v1709_v5 = vshrl.u32 %v1529_v0, 16  ;;  %8137 = vmatprep.subr.bf16.mxu1 %v8490_v41  ;;  %v1533_v34 = vld [vmem:[#allocation2 + $0x44] sm:$0x1] }
  0x86   : > { %v1694_v61 = vsel %vm8987_vm13, %v1689_v44, %v1693_v37  ;;  %v2495_v9 = vsel %vm8977_vm12, %v2493_v1, %v2494_v46  ;;  %v1707_v17 = vrot.slane %v1705_v13, 5  ;;  %v1715_v45 = vshll.u32 %v1530_v58, 16  ;;  %8186 = vmatpush3.bf16.msra.mxu0 %v8491_v43  ;;  %v2353_v48 = vld [vmem:[#allocation2 + $0x40] sm:$0xf]  ;;  %v8495_v37 = vld [vmem:[%s10756_s3 + $0x118] sm:$0xff]  }
  0x87   : > { %v7150_v15 = vcombine.low %v1684_v3, %v1694_v61  ;;  %v7206_v27 = vcombine.low %v2492_v63, %v2495_v9  ;;  %v1702_v26 = vor.u32 %v1701_v14, %v1698_v18  ;;  %v1711_v21 = vrot.slane %v1709_v5, 4  ;;  %v1534_v43 = vld [vmem:[#allocation2 + $0x48] sm:$0xf]  ;;  %8187 = vmatprep.subr.bf16.mxu0 %v8493_v29  ;;  %v2354_v63 = vld [vmem:[#allocation2 + $0x44] sm:$0x1]  ;;  %v8494_v13 = vld [vmem:[%s10756_s3 + $0xd8] sm:$0xff]  }
  0x88   : > { %v1717_v16 = vrot.slane %v1715_v45, 5  ;;  %v7175_v7 = vrot.slane %v2349_v59, 9  ;;  %v2498_v8 = vrot.slane %v2350_v60, 5  ;;  %v2501_v4 = vrot.slane %v2351_v10, 5  ;;  %8138 = vmatpush3.bf16.msra.mxu1 %v8490_v41  ;;  %v1535_v1 = vld [vmem:[#allocation2 + $0x4c] sm:$0xf] }
  0x89   : > { %8058 = vmatmul.mubr.bf16.gmra.mxu1 %v7150_v15  ;;  %8106 = vmatmul.mubr.bf16.gmra.mxu0 %v7206_v27  ;;  %v1703_v39 = vrot.slane %v1702_v26, 4  ;;  %v1712_v40 = vor.u32 %v1711_v21, %v1707_v17  ;;  %v1720_v0 = vshrl.u32 %v1531_v56, 16  ;;  %v1723_v55 = vshll.u32 %v1531_v56, 16  ;;  %v8497_v9 = vld [vmem:[%s10756_s3 + $0x110] sm:$0xff]  }
  0x8a   : > { %v2499_v25 = vsel %vm8977_vm12, %v7175_v7, %v2498_v8  ;;  %v2500_v58 = vrot.slane %v2498_v8, 4  ;;  %v1729_v49 = vshll.u32 %v1532_v28, 16  ;;  %v1733_v46 = vshrl.u32 %v1532_v28, 16  ;;  %8139 = vmatprep.subr.bf16.mxu1 %v8492_v6  ;;  %8188 = vmatpush3.bf16.msra.mxu0 %v8493_v29  ;;  %v8496_v29 = vld [vmem:[%s10756_s3 + $0xd0] sm:$0xff]   ;;  %v2355_v7 = vld [vmem:[#allocation2 + $0x48] sm:$0xe] }
  0x8b   : > { %v1708_v51 = vsel %vm8987_vm13, %v1703_v39, %v1707_v17  ;;  %v1713_v23 = vrot.slane %v1712_v40, 4  ;;  %v1722_v59 = vrot.slane %v1720_v0, 4  ;;  %v1725_v44 = vrot.slane %v1723_v55, 5  ;;  %8189 = vmatprep.subr.bf16.mxu0 %v8495_v37  ;;  %v1536_v21 = vld [vmem:[#allocation2 + $0x50] sm:$0x1] }
  0x8c   : > { %v2502_v60 = vsel %vm8977_vm12, %v2500_v58, %v2501_v4  ;;  %v1731_v3 = vrot.slane %v1729_v49, 5  ;;  %v1735_v41 = vrot.slane %v1733_v46, 4  ;;  %v1739_v18 = vshll.u32 %v1533_v34, 16  ;;  %8140 = vmatpush3.bf16.msra.mxu1 %v8492_v6  ;;  %v2356_v6 = vld [vmem:[#allocation2 + $0x4c] sm:$0xf] }
  0x8d   : > { %v1718_v14 = vsel %vm8987_vm13, %v1713_v23, %v1717_v16  ;;  %v7207_v5 = vcombine.low %v2499_v25, %v2502_v60  ;;  %v1726_v10 = vor.u32 %v1725_v44, %v1722_v59  ;;  %v7176_v61 = vrot.slane %v2352_v32, 9  ;;  %8141 = vmatprep.subr.bf16.mxu1 %v8494_v13  ;;  %v3385_v20 = vld [vmem:[#allocation2 + $0x10] sm:$0xf] }
  0x8e   : > { %v7151_v17 = vcombine.low %v1708_v51, %v1718_v14  ;;  %v1736_v45 = vor.u32 %v1735_v41, %v1731_v3  ;;  %v1741_v56 = vrot.slane %v1739_v18, 5  ;;  %v2505_v15 = vrot.slane %v2353_v48, 5  ;;  %8190 = vmatpush3.bf16.msra.mxu0 %v8495_v37  ;;  %v2357_v48 = vld [vmem:[#allocation2 + $0x50] sm:$0x1]  ;;  %v8499_v37 = vld [vmem:[%s10756_s3 + $0x108] sm:$0xff]  }
  0x8f   : > { %8109 = vmatprep.mubr.bf16.mxu0 %v7207_v5  ;;  %v1727_v27 = vrot.slane %v1726_v10, 4  ;;  %v2508_v26 = vrot.slane %v2354_v63, 5  ;;  %v1744_v28 = vshrl.u32 %v1534_v43, 16  ;;  %v1747_v16 = vshll.u32 %v1534_v43, 16  ;;  %8191 = vmatprep.subr.bf16.mxu0 %v8497_v9  ;;  %v1537_v43 = vld [vmem:[#allocation2 + $0x54] sm:$0xf] }
  0x90   : > { %8061 = vmatprep.mubr.bf16.mxu1 %v7151_v17  ;;  %v1737_v8 = vrot.slane %v1736_v45, 4  ;;  %v2506_v4 = vsel %vm8977_vm12, %v7176_v61, %v2505_v15  ;;  %v2507_v32 = vrot.slane %v2505_v15, 4  ;;  %v1753_v39 = vshll.u32 %v1535_v1, 16  ;;  %8142 = vmatpush3.bf16.msra.mxu1 %v8494_v13  ;;  %v1538_v63 = vld [vmem:[#allocation2 + $0x58] sm:$0xf] }
  0x91   : > { %v1732_v40 = vsel %vm8987_vm13, %v1727_v27, %v1731_v3  ;;  %v1746_v34 = vrot.slane %v1744_v28, 4  ;;  %v1749_v0 = vrot.slane %v1747_v16, 5  ;;  %v1757_v55 = vshrl.u32 %v1535_v1, 16  ;;  %8143 = vmatprep.subr.bf16.mxu1 %v8496_v29  ;;  %v8498_v1 = vld [vmem:[%s10756_s3 + $0xc8] sm:$0xff]   ;;  %v2358_v14 = vld [vmem:[#allocation2 + $0x54] sm:$0xe] }
  0x92   : > { %v1742_v25 = vsel %vm8987_vm13, %v1737_v8, %v1741_v56  ;;  %v2509_v58 = vsel %vm8977_vm12, %v2507_v32, %v2508_v26  ;;  %v1755_v49 = vrot.slane %v1753_v39, 5  ;;  %v1763_v46 = vshll.u32 %v1536_v21, 16  ;;  %8192 = vmatpush3.bf16.msra.mxu0 %v8497_v9  ;;  %v1539_v10 = vld [vmem:[#allocation2 + $0x5c] sm:$0x1]  ;;  %v2359_v45 = vld [vmem:[#allocation2 + $0x58] sm:$0xf] }
  0x93   : > { %v7152_v51 = vcombine.low %v1732_v40, %v1742_v25  ;;  %v7208_v23 = vcombine.low %v2506_v4, %v2509_v58  ;;  %v1750_v59 = vor.u32 %v1749_v0, %v1746_v34  ;;  %v1759_v44 = vrot.slane %v1757_v55, 4  ;;  %v8501_v56 = vld [vmem:[%s10756_s3 + $0x100] sm:$0xff]   ;;  %v2360_v28 = vld [vmem:[#allocation2 + $0x5c] sm:$0x1]  ;;  %v976_v9 = vld [vmem:[#allocation2 + $0x68] sm:$0x1]  ;;  %8193 = vmatprep.subr.bf16.mxu0 %v8499_v37 }
  0x94   : > { %v1765_v60 = vrot.slane %v1763_v46, 5  ;;  %v7177_v3 = vrot.slane %v2355_v7, 9  ;;  %v2512_v41 = vrot.slane %v2356_v6, 5  ;;  %v2515_v18 = vrot.slane %v2357_v48, 5  ;;  %v1540_v16 = vld [vmem:[#allocation2 + $0x60] sm:$0xf]  ;;  %8144 = vmatpush3.bf16.msra.mxu1 %v8496_v29 }
  0x95   : > { %8062 = vmatmul.mubr.bf16.gmra.mxu1 %v7152_v51  ;;  %8110 = vmatmul.mubr.bf16.gmra.mxu0 %v7208_v23  ;;  %v1751_v13 = vrot.slane %v1750_v59, 4  ;;  %v1760_v5 = vor.u32 %v1759_v44, %v1755_v49  ;;  %v1768_v61 = vshrl.u32 %v1537_v43, 16  ;;  %v1771_v17 = vshll.u32 %v1537_v43, 16  ;;  %v8500_v39 = vld [vmem:[%s10756_s3 + $0xc0] sm:$0xff]  }
  0x96   : > { %v2513_v15 = vsel %vm8977_vm12, %v7177_v3, %v2512_v41  ;;  %v2514_v27 = vrot.slane %v2512_v41, 4  ;;  %v1777_v26 = vshll.u32 %v1538_v63, 16  ;;  %v1781_v21 = vshrl.u32 %v1538_v63, 16  ;;  %8145 = vmatprep.subr.bf16.mxu1 %v8498_v1  ;;  %v1541_v55 = vld [vmem:[#allocation2 + $0x64] sm:$0xf]  ;;  %8194 = vmatpush3.bf16.msra.mxu0 %v8499_v37 }
  0x97   : > { %v1756_v7 = vsel %vm8987_vm13, %v1751_v13, %v1755_v49  ;;  %v1761_v8 = vrot.slane %v1760_v5, 4  ;;  %v1770_v4 = vrot.slane %v1768_v61, 4  ;;  %v1773_v32 = vrot.slane %v1771_v17, 5  ;;  %8195 = vmatprep.subr.bf16.mxu0 %v8501_v56  ;;  %v9114_v49 = vld [vmem:[%s10756_s3 + $0x1b8] sm:$0xff]   ;;  %v2361_v59 = vld [vmem:[#allocation2 + $0x60] sm:$0xe] }
  0x98   : > { %v2516_v6 = vsel %vm8977_vm12, %v2514_v27, %v2515_v18  ;;  %v1779_v40 = vrot.slane %v1777_v26, 5  ;;  %v1783_v34 = vrot.slane %v1781_v21, 4  ;;  %v1787_v0 = vshll.u32 %v1539_v10, 16  ;;  %8146 = vmatpush3.bf16.msra.mxu1 %v8498_v1  ;;  %v2362_v3 = vld [vmem:[#allocation2 + $0x64] sm:$0xf]  ;;  %v9123_v18 = vld [vmem:[%s10756_s3 + $0x178] sm:$0xff]  }
  0x99   : > { %v1766_v29 = vsel %vm8987_vm13, %v1761_v8, %v1765_v60  ;;  %v7209_v48 = vcombine.low %v2513_v15, %v2516_v6  ;;  %v1774_v25 = vor.u32 %v1773_v32, %v1770_v4  ;;  %v7178_v58 = vrot.slane %v2358_v14, 9  ;;  %v983_v41 = vld [vmem:[#allocation2 + $0x74] sm:$0x1]  ;;  %8147 = vmatprep.subr.bf16.mxu1 %v8500_v39  ;;  %v1543_v5 = vld [vmem:[#allocation2 + $0x6c] sm:$0xf] }
  0x9a   : > { %v7153_v46 = vcombine.low %v1756_v7, %v1766_v29  ;;  %v1784_v43 = vor.u32 %v1783_v34, %v1779_v40  ;;  %v1789_v51 = vrot.slane %v1787_v0, 5  ;;  %v2519_v23 = vrot.slane %v2359_v45, 5  ;;  %8196 = vmatpush3.bf16.msra.mxu0 %v8501_v56  ;;  %v1544_v21 = vld [vmem:[#allocation2 + $0x70] sm:$0xf]  ;;  %v990_v7 = vld [vmem:[#allocation2 + $0x80] sm:$0x1] }
  0x9b   : > { %8113 = vmatprep.mubr.bf16.mxu0 %v7209_v48  ;;  %v1775_v37 = vrot.slane %v1774_v25, 4  ;;  %v2522_v44 = vrot.slane %v2360_v28, 5  ;;  %v977_v63 = vsel %vm8714_vm7, %v732_v2, %v976_v9  ;;  %v1792_v60 = vshrl.u32 %v1540_v16, 16  ;;  %8277 = vmatprep.subr.bf16.mxu0 %v9114_v49  ;;  %v997_v8 = vld [vmem:[#allocation2 + $0x8c] sm:$0x1] }
  0x9c   : > { %8065 = vmatprep.mubr.bf16.mxu1 %v7153_v46  ;;  %v1785_v14 = vrot.slane %v1784_v43, 4  ;;  %v2520_v1 = vsel %vm8977_vm12, %v7178_v58, %v2519_v23  ;;  %v2521_v13 = vrot.slane %v2519_v23, 4  ;;  %978 = vst [vmem:[#allocation2 + $0x68] sm:$0x1] %v977_v63  ;;  %v1795_v54 = vshll.u32 %v1540_v16, 16  ;;  %8148 = vmatpush3.bf16.msra.mxu1 %v8500_v39 }
  0x9d   : > { %v1780_v2 = vsel %vm8987_vm13, %v1775_v37, %v1779_v40  ;;  %v1794_v10 = vrot.slane %v1792_v60, 4  ;;  %v1801_v61 = vshll.u32 %v1541_v55, 16  ;;  %v1805_v17 = vshrl.u32 %v1541_v55, 16  ;;  %8229 = vmatprep.subr.bf16.mxu1 %v9123_v18  ;;  %v2364_v34 = vld [vmem:[#allocation2 + $0x6c] sm:$0xe] }
  0x9e   : > { %v1790_v45 = vsel %vm8987_vm13, %v1785_v14, %v1789_v51  ;;  %v2523_v15 = vsel %vm8977_vm12, %v2521_v13, %v2522_v44  ;;  %v1797_v27 = vrot.slane %v1795_v54, 5  ;;  %v7179_v26 = vrot.slane %v2361_v59, 9  ;;  %v2365_v0 = vld [vmem:[#allocation2 + $0x70] sm:$0xf]  ;;  %v1546_v25 = vld [vmem:[#allocation2 + $0x78] sm:$0xf] }
  0x9f   : > { %v7154_v28 = vcombine.low %v1780_v2, %v1790_v45  ;;  %v7210_v56 = vcombine.low %v2520_v1, %v2523_v15  ;;  %v1803_v9 = vrot.slane %v1801_v61, 5  ;;  %v1807_v16 = vrot.slane %v1805_v17, 4  ;;  %v1004_v63 = vld [vmem:[#allocation2 + $0x98] sm:$0x1] }
  0xa0   : > { %v1798_v4 = vor.u32 %v1797_v27, %v1794_v10  ;;  %v2526_v32 = vrot.slane %v2362_v3, 5  ;;  %v984_v6 = vsel %vm8714_vm7, %v749_v36, %v983_v41  ;;  %v1816_v40 = vshrl.u32 %v1543_v5, 16  ;;  %v2367_v10 = vld [vmem:[#allocation2 + $0x78] sm:$0xe]  ;;  %v1011_v27 = vld [vmem:[#allocation2 + $0xa4] sm:$0x1] }
  0xa1   : > { %8066 = vmatmul.mubr.bf16.gmra.mxu1 %v7154_v28  ;;  %8114 = vmatmul.mubr.bf16.gmra.mxu0 %v7210_v56  ;;  %v1808_v39 = vor.u32 %v1807_v16, %v1803_v9  ;;  %985 = vst [vmem:[#allocation2 + $0x74] sm:$0x1] %v984_v6  ;;  %v1819_v55 = vshll.u32 %v1543_v5, 16  ;;  %v1825_v29 = vshll.u32 %v1544_v21, 16  ;;  %v1829_v48 = vshrl.u32 %v1544_v21, 16 }
  0xa2   : > { %v1799_v58 = vrot.slane %v1798_v4, 4  ;;  %v2527_v46 = vsel %vm8977_vm12, %v7179_v26, %v2526_v32  ;;  %v2528_v43 = vrot.slane %v2526_v32, 4  ;;  %v1818_v22 = vrot.slane %v1816_v40, 4  ;;  %v1547_v5 = vld [vmem:[#allocation2 + $0x7c] sm:$0xf] }
  0xa3   : > { %v1542_v51 = vld [vmem:[#allocation2 + $0x68] sm:$0x1]  ;;  %v1809_v23 = vrot.slane %v1808_v39, 4  ;;  %v1821_v59 = vrot.slane %v1819_v55, 5  ;;  %v991_v37 = vsel %vm8714_vm7, %v766_v62, %v990_v7  ;;  %v998_v44 = vsel %vm8714_vm7, %v783_v19, %v997_v8  ;;  %v1018_v26 = vld [vmem:[#allocation2 + $0xb0] sm:$0x1] }
  0xa4   : > { %v2363_v36 = vld [vmem:[#allocation2 + $0x68] sm:$0x1]  ;;  %v1804_v60 = vsel %vm8987_vm13, %v1799_v58, %v1803_v9  ;;  %v1811_v3 = vshll.u32 %v1542_v51, 16  ;;  %v1827_v14 = vrot.slane %v1825_v29, 5  ;;  %992 = vst [vmem:[#allocation2 + $0x80] sm:$0x1] %v991_v37  ;;  %v1005_v7 = vsel %vm8714_vm7, %v800_v24, %v1004_v63 }
  0xa5   : > { %v2529_v41 = vrot.slane %v2363_v36, 5  ;;  %999 = vst [vmem:[#allocation2 + $0x8c] sm:$0x1] %v998_v44  ;;  %v1822_v1 = vor.u32 %v1821_v59, %v1818_v22  ;;  %v1831_v13 = vrot.slane %v1829_v48, 4  ;;  %v7180_v47 = vrot.slane %v2364_v34, 9 }
  0xa6   : > { %v2533_v54 = vrot.slane %v2365_v0, 5  ;;  %v1813_v62 = vrot.slane %v1811_v3, 5  ;;  %v1840_v2 = vshrl.u32 %v1546_v25, 16  ;;  %v1843_v19 = vshll.u32 %v1546_v25, 16  ;;  %1006 = vst [vmem:[#allocation2 + $0x98] sm:$0x1] %v1005_v7 }
  0xa7   : > { %v2530_v38 = vsel %vm8977_vm12, %v2528_v43, %v2529_v41  ;;  %v1823_v17 = vrot.slane %v1822_v1, 4  ;;  %v1832_v45 = vor.u32 %v1831_v13, %v1827_v14  ;;  %v1849_v0 = vshll.u32 %v1547_v5, 16  ;;  %v2368_v55 = vld [vmem:[#allocation2 + $0x7c] sm:$0xf]  ;;  %v1550_v37 = vld [vmem:[#allocation2 + $0x88] sm:$0xf] }
  0xa8   : > { %v7211_v61 = vcombine.low %v2527_v46, %v2530_v38  ;;  %v2534_v15 = vsel %vm8977_vm12, %v7180_v47, %v2533_v54  ;;  %v1814_v21 = vsel %vm8987_vm13, %v1809_v23, %v1813_v62  ;;  %v1545_v28 = vld [vmem:[#allocation2 + $0x74] sm:$0x1]  ;;  %v2535_v9 = vrot.slane %v2533_v54, 4  ;;  %v1549_v23 = vld [vmem:[#allocation2 + $0x84] sm:$0xf] }
  0xa9   : > { %v2366_v56 = vld [vmem:[#allocation2 + $0x74] sm:$0x1]  ;;  %v1842_v16 = vrot.slane %v1840_v2, 4  ;;  %v7155_v8 = vcombine.low %v1804_v60, %v1814_v21  ;;  %v1828_v4 = vsel %vm8987_vm13, %v1823_v17, %v1827_v14  ;;  %v1833_v32 = vrot.slane %v1832_v45, 4  ;;  %v2370_v3 = vld [vmem:[#allocation2 + $0x84] sm:$0xe] }
  0xaa   : > { %8117 = vmatprep.mubr.bf16.mxu0 %v7211_v61  ;;  %v1835_v6 = vshll.u32 %v1545_v28, 16  ;;  %v2536_v40 = vrot.slane %v2366_v56, 5  ;;  %v1845_v34 = vrot.slane %v1843_v19, 5  ;;  %v1853_v39 = vshrl.u32 %v1547_v5, 16  ;;  %v2371_v47 = vld [vmem:[#allocation2 + $0x88] sm:$0xf] }
  0xab   : > { %8069 = vmatprep.mubr.bf16.mxu1 %v7155_v8  ;;  %v1548_v48 = vld [vmem:[#allocation2 + $0x80] sm:$0x1]  ;;  %v7181_v25 = vrot.slane %v2367_v10, 9  ;;  %v1012_v24 = vsel %vm8714_vm7, %v817_v30, %v1011_v27  ;;  %v1019_v58 = vsel %vm8714_vm7, %v834_v11, %v1018_v26  ;;  %v1851_v22 = vrot.slane %v1849_v0, 5  ;;  %v1552_v54 = vld [vmem:[#allocation2 + $0x90] sm:$0xf] }
  0xac   : > { %v1837_v29 = vrot.slane %v1835_v6, 5  ;;  %v2369_v33 = vld [vmem:[#allocation2 + $0x80] sm:$0x1]  ;;  %v2537_v46 = vsel %vm8977_vm12, %v2535_v9, %v2536_v40  ;;  %v1846_v43 = vor.u32 %v1845_v34, %v1842_v16  ;;  %v1855_v51 = vrot.slane %v1853_v39, 4  ;;  %1013 = vst [vmem:[#allocation2 + $0xa4] sm:$0x1] %v1012_v24 }
  0xad   : > { %1020 = vst [vmem:[#allocation2 + $0xb0] sm:$0x1] %v1019_v58  ;;  %v7212_v36 = vcombine.low %v2534_v15, %v2537_v46  ;;  %v1859_v59 = vshll.u32 %v1548_v48, 16  ;;  %v2540_v30 = vrot.slane %v2368_v55, 5  ;;  %v1551_v31 = vld [vmem:[#allocation2 + $0x8c] sm:$0x1] }
  0xae   : > { %v1838_v53 = vsel %vm8987_vm13, %v1833_v32, %v1837_v29  ;;  %v1847_v63 = vrot.slane %v1846_v43, 4  ;;  %v1856_v11 = vor.u32 %v1855_v51, %v1851_v22  ;;  %v2543_v60 = vrot.slane %v2369_v33, 5  ;;  %v1553_v19 = vld [vmem:[#allocation2 + $0x94] sm:$0xf]  ;;  %v2372_v15 = vld [vmem:[#allocation2 + $0x8c] sm:$0x1] }
  0xaf   : > { %v7156_v44 = vcombine.low %v1828_v4, %v1838_v53  ;;  %8118 = vmatmul.mubr.bf16.gmra.mxu0 %v7212_v36  ;;  %v1861_v41 = vrot.slane %v1859_v59, 5  ;;  %v2541_v14 = vsel %vm8977_vm12, %v7181_v25, %v2540_v30  ;;  %v2542_v1 = vrot.slane %v2540_v30, 4  ;;  %v2373_v40 = vld [vmem:[#allocation2 + $0x90] sm:$0xe]  ;;  %v1554_v0 = vld [vmem:[#allocation2 + $0x98] sm:$0x1] }
  0xb0   : > { %v1864_v13 = vshrl.u32 %v1549_v23, 16  ;;  %v1852_v5 = vsel %vm8987_vm13, %v1847_v63, %v1851_v22  ;;  %v1857_v62 = vrot.slane %v1856_v11, 4  ;;  %v1867_v38 = vshll.u32 %v1549_v23, 16  ;;  %v2374_v48 = vld [vmem:[#allocation2 + $0x94] sm:$0xf] }
  0xb1   : > { %8070 = vmatmul.mubr.bf16.gmra.mxu1 %v7156_v44  ;;  %v1873_v2 = vshll.u32 %v1550_v37, 16  ;;  %v2544_v10 = vsel %vm8977_vm12, %v2542_v1, %v2543_v60  ;;  %v1877_v17 = vshrl.u32 %v1550_v37, 16  ;;  %v1883_v45 = vshll.u32 %v1551_v31, 16  ;;  %v2375_v46 = vld [vmem:[#allocation2 + $0x98] sm:$0x1] }
  0xb2   : > { %v1866_v61 = vrot.slane %v1864_v13, 4  ;;  %v1862_v27 = vsel %vm8987_vm13, %v1857_v62, %v1861_v41  ;;  %v7213_v26 = vcombine.low %v2541_v14, %v2544_v10  ;;  %v1869_v21 = vrot.slane %v1867_v38, 5  ;;  %v1555_v37 = vld [vmem:[#allocation2 + $0x9c] sm:$0xf]  ;;  %v1556_v60 = vld [vmem:[#allocation2 + $0xa0] sm:$0xf] }
  0xb3   : > { %v1875_v28 = vrot.slane %v1873_v2, 5  ;;  %v7157_v56 = vcombine.low %v1852_v5, %v1862_v27  ;;  %v1879_v9 = vrot.slane %v1877_v17, 4  ;;  %v1885_v16 = vrot.slane %v1883_v45, 5  ;;  %v2376_v13 = vld [vmem:[#allocation2 + $0x9c] sm:$0xe] }
  0xb4   : > { %v7182_v7 = vrot.slane %v2370_v3, 9  ;;  %8121 = vmatprep.mubr.bf16.mxu0 %v7213_v26  ;;  %v1870_v8 = vor.u32 %v1869_v21, %v1866_v61  ;;  %v2547_v4 = vrot.slane %v2371_v47, 5  ;;  %v2550_v32 = vrot.slane %v2372_v15, 5  ;;  %v1557_v5 = vld [vmem:[#allocation2 + $0xa4] sm:$0x1] }
  0xb5   : > { %v1888_v6 = vshrl.u32 %v1552_v54, 16  ;;  %8073 = vmatprep.mubr.bf16.mxu1 %v7157_v56  ;;  %v1880_v34 = vor.u32 %v1879_v9, %v1875_v28  ;;  %v1891_v39 = vshll.u32 %v1552_v54, 16  ;;  %v1897_v55 = vshll.u32 %v1553_v19, 16  ;;  %v2377_v2 = vld [vmem:[#allocation2 + $0xa0] sm:$0xf] }
  0xb6   : > { %v1901_v29 = vshrl.u32 %v1553_v19, 16  ;;  %v1871_v33 = vrot.slane %v1870_v8, 4  ;;  %v2548_v25 = vsel %vm8977_vm12, %v7182_v7, %v2547_v4  ;;  %v2549_v24 = vrot.slane %v2547_v4, 4  ;;  %v1558_v19 = vld [vmem:[#allocation2 + $0xa8] sm:$0xf] }
  0xb7   : > { %v1890_v58 = vrot.slane %v1888_v6, 4  ;;  %v1881_v43 = vrot.slane %v1880_v34, 4  ;;  %v1893_v22 = vrot.slane %v1891_v39, 5  ;;  %v1899_v51 = vrot.slane %v1897_v55, 5  ;;  %v2378_v15 = vld [vmem:[#allocation2 + $0xa4] sm:$0x1] }
  0xb8   : > { %v1903_v23 = vrot.slane %v1901_v29, 4  ;;  %v1876_v53 = vsel %vm8987_vm13, %v1871_v33, %v1875_v28  ;;  %v2551_v36 = vsel %vm8977_vm12, %v2549_v24, %v2550_v32  ;;  %v1907_v59 = vshll.u32 %v1554_v0, 16  ;;  %v1559_v27 = vld [vmem:[#allocation2 + $0xac] sm:$0xf]  ;;  %v2379_v29 = vld [vmem:[#allocation2 + $0xa8] sm:$0xe] }
  0xb9   : > { %v7183_v30 = vrot.slane %v2373_v40, 9  ;;  %v1886_v31 = vsel %vm8987_vm13, %v1881_v43, %v1885_v16  ;;  %v7214_v44 = vcombine.low %v2548_v25, %v2551_v36  ;;  %v1894_v63 = vor.u32 %v1893_v22, %v1890_v58  ;;  %v1560_v25 = vld [vmem:[#allocation2 + $0xb0] sm:$0x1]  ;;  %v1025_v43 = vld [vmem:[#allocation2 + $0xbc] sm:$0x1] }
  0xba   : > { %v1904_v11 = vor.u32 %v1903_v23, %v1899_v51  ;;  %v7158_v3 = vcombine.low %v1876_v53, %v1886_v31  ;;  %v1909_v41 = vrot.slane %v1907_v59, 5  ;;  %v2554_v14 = vrot.slane %v2374_v48, 5  ;;  %v2381_v36 = vld [vmem:[#allocation2 + $0xb0] sm:$0x1] }
  0xbb   : > { %v2557_v1 = vrot.slane %v2375_v46, 5  ;;  %8122 = vmatmul.mubr.bf16.gmra.mxu0 %v7214_v44  ;;  %v1895_v47 = vrot.slane %v1894_v63, 4  ;;  %v1912_v62 = vshrl.u32 %v1555_v37, 16  ;;  %v1915_v38 = vshll.u32 %v1555_v37, 16  ;;  %v2380_v46 = vld [vmem:[#allocation2 + $0xac] sm:$0xf] }
  0xbc   : > { %v1905_v54 = vrot.slane %v1904_v11, 4  ;;  %8074 = vmatmul.mubr.bf16.gmra.mxu1 %v7158_v3  ;;  %v2555_v10 = vsel %vm8977_vm12, %v7183_v30, %v2554_v14  ;;  %v2556_v61 = vrot.slane %v2554_v14, 4  ;;  %v1921_v17 = vshll.u32 %v1556_v60, 16  ;;  %v1561_v3 = vld [vmem:[#allocation2 + $0xb4] sm:$0xf] }
  0xbd   : > { %v1925_v45 = vshrl.u32 %v1556_v60, 16  ;;  %v1900_v26 = vsel %vm8987_vm13, %v1895_v47, %v1899_v51  ;;  %v1914_v28 = vrot.slane %v1912_v62, 4  ;;  %v1917_v56 = vrot.slane %v1915_v38, 5  ;;  %v1562_v47 = vld [vmem:[#allocation2 + $0xb8] sm:$0xf] }
  0xbe   : > { %v1910_v21 = vsel %vm8987_vm13, %v1905_v54, %v1909_v41  ;;  %v2558_v16 = vsel %vm8977_vm12, %v2556_v61, %v2557_v1  ;;  %v1923_v7 = vrot.slane %v1921_v17, 5  ;;  %v1931_v6 = vshll.u32 %v1557_v5, 16  ;;  %v2382_v54 = vld [vmem:[#allocation2 + $0xb4] sm:$0xe] }
  0xbf   : > { %v7159_v9 = vcombine.low %v1900_v26, %v1910_v21  ;;  %v1927_v8 = vrot.slane %v1925_v45, 4  ;;  %v7215_v4 = vcombine.low %v2555_v10, %v2558_v16  ;;  %v1918_v32 = vor.u32 %v1917_v56, %v1914_v28 }
  0xc0   : > { %v7184_v40 = vrot.slane %v2376_v13, 9  ;;  %v2561_v0 = vrot.slane %v2377_v2, 5  ;;  %v2564_v39 = vrot.slane %v2378_v15, 5  ;;  %v1936_v55 = vshrl.u32 %v1558_v19, 16  ;;  %v3384_v15 = vld [vmem:[#allocation2 + $0xc] sm:$0xf] }
  0xc1   : > { %8077 = vmatprep.mubr.bf16.mxu1 %v7159_v9  ;;  %v1928_v34 = vor.u32 %v1927_v8, %v1923_v7  ;;  %8125 = vmatprep.mubr.bf16.mxu0 %v7215_v4  ;;  %v1919_v48 = vrot.slane %v1918_v32, 4  ;;  %v1933_v33 = vrot.slane %v1931_v6, 5  ;;  %v1939_v24 = vshll.u32 %v1558_v19, 16  ;;  %v2383_v19 = vld [vmem:[#allocation2 + $0xb8] sm:$0xf] }
  0xc2   : > { %v1945_v58 = vshll.u32 %v1559_v27, 16  ;;  %v2562_v51 = vsel %vm8977_vm12, %v7184_v40, %v2561_v0  ;;  %v2563_v23 = vrot.slane %v2561_v0, 4  ;;  %v1938_v53 = vrot.slane %v1936_v55, 4 }
  0xc3   : > { %v1929_v22 = vrot.slane %v1928_v34, 4  ;;  %v1924_v59 = vsel %vm8987_vm13, %v1919_v48, %v1923_v7  ;;  %v1941_v30 = vrot.slane %v1939_v24, 5  ;;  %v1949_v31 = vshrl.u32 %v1559_v27, 16  ;;  %v3386_v48 = vld [vmem:[#allocation2 + $0x14] sm:$0x1] }
  0xc4   : > { %v1947_v37 = vrot.slane %v1945_v58, 5  ;;  %v2565_v63 = vsel %vm8977_vm12, %v2563_v23, %v2564_v39  ;;  %v1955_v11 = vshll.u32 %v1560_v25, 16  ;;  %v7185_v60 = vrot.slane %v2379_v29, 9  ;;  %v9220_v39 = vld [vmem:[%s8647_s8 + $0x78] sm:$0xff]  }
  0xc5   : > { %v1934_v44 = vsel %vm8987_vm13, %v1929_v22, %v1933_v33  ;;  %v7216_v14 = vcombine.low %v2562_v51, %v2565_v63  ;;  %v1942_v1 = vor.u32 %v1941_v30, %v1938_v53  ;;  %v1951_v13 = vrot.slane %v1949_v31, 4  ;;  %v3387_v24 = vld [vmem:[#allocation2 + $0x18] sm:$0xf] }
  0xc6   : > { %v7160_v41 = vcombine.low %v1924_v59, %v1934_v44  ;;  %v1957_v5 = vrot.slane %v1955_v11, 5  ;;  %v2568_v62 = vrot.slane %v2380_v46, 5  ;;  %v2571_v38 = vrot.slane %v2381_v36, 5 }
  0xc7   : > { %v1026_v2 = vsel %vm8714_vm7, %v851_v42, %v1025_v43  ;;  %8126 = vmatmul.mubr.bf16.gmra.mxu0 %v7216_v14  ;;  %v1943_v10 = vrot.slane %v1942_v1, 4  ;;  %v1952_v61 = vor.u32 %v1951_v13, %v1947_v37  ;;  %v1960_v17 = vshrl.u32 %v1561_v3, 16 }
  0xc8   : > { %8078 = vmatmul.mubr.bf16.gmra.mxu1 %v7160_v41  ;;  %1027 = vst [vmem:[#allocation2 + $0xbc] sm:$0x1] %v1026_v2  ;;  %v1963_v45 = vshll.u32 %v1561_v3, 16  ;;  %v2569_v27 = vsel %vm8977_vm12, %v7185_v60, %v2568_v62  ;;  %v2570_v26 = vrot.slane %v2568_v62, 4  ;;  %v1969_v21 = vshll.u32 %v1562_v47, 16 }
  0xc9   : > { %v1973_v28 = vshrl.u32 %v1562_v47, 16  ;;  %v1948_v42 = vsel %vm8987_vm13, %v1943_v10, %v1947_v37  ;;  %v1953_v56 = vrot.slane %v1952_v61, 4  ;;  %v1962_v9 = vrot.slane %v1960_v17, 4  ;;  %v3388_v41 = vld [vmem:[#allocation2 + $0x1c] sm:$0xf] }
  0xca   : > { %v1965_v16 = vrot.slane %v1963_v45, 5  ;;  %v2572_v7 = vsel %vm8977_vm12, %v2570_v26, %v2571_v38  ;;  %v1971_v8 = vrot.slane %v1969_v21, 5  ;;  %v7186_v32 = vrot.slane %v2382_v54, 9  ;;  %v3389_v54 = vld [vmem:[#allocation2 + $0x20] sm:$0x1]  ;;  %v8502_v45 = vld [vmem:[#allocation2 + $0xc] sm:$0xff]  }
  0xcb   : > { %v1975_v4 = vrot.slane %v1973_v28, 4  ;;  %v1958_v6 = vsel %vm8987_vm13, %v1953_v56, %v1957_v5  ;;  %v7217_v40 = vcombine.low %v2569_v27, %v2572_v7  ;;  %v2575_v0 = vrot.slane %v2383_v19, 5  ;;  %v3390_v62 = vld [vmem:[#allocation2 + $0x24] sm:$0xf]  ;;  %v3391_v61 = vld [vmem:[#allocation2 + $0x28] sm:$0xf] }
  0xcc   : > { %v1966_v34 = vor.u32 %v1965_v16, %v1962_v9  ;;  %v7161_v55 = vcombine.low %v1948_v42, %v1958_v6  ;;  %v3465_v33 = vshrl.u32 %v3384_v15, 16  ;;  %v3468_v25 = vshll.u32 %v3384_v15, 16  ;;  %v3392_v21 = vld [vmem:[#allocation2 + $0x2c] sm:$0x1] }
  0xcd   : > { %v1976_v29 = vor.u32 %v1975_v4, %v1971_v8  ;;  %8129 = vmatprep.mubr.bf16.mxu0 %v7217_v40  ;;  %v2576_v46 = vsel %vm8977_vm12, %v7186_v32, %v2575_v0  ;;  %v2577_v43 = vrot.slane %v2575_v0, 4  ;;  %v3474_v22 = vshll.u32 %v3385_v20, 16 }
  0xce   : > { %v1967_v58 = vrot.slane %v1966_v34, 4  ;;  %8081 = vmatprep.mubr.bf16.mxu1 %v7161_v55  ;;  %v3467_v36 = vrot.slane %v3465_v33, 4  ;;  %v7661_v59 = vunpack.c.l.bf16 %v9220_v39  ;;  %v7662_v30 = vunpack.c.h.bf16 %v9220_v39 }
  0xcf   : > { %v1563_v51 = vld [vmem:[#allocation2 + $0xbc] sm:$0x1]  ;;  %v1977_v23 = vrot.slane %v1976_v29, 4  ;;  %v3470_v63 = vrot.slane %v3468_v25, 5  ;;  %v3476_v11 = vrot.slane %v3474_v22, 5  ;;  %v3478_v60 = vshrl.u32 %v3385_v20, 16 }
  0xd0   : > { %v2384_v53 = vld [vmem:[#allocation2 + $0xbc] sm:$0x1]  ;;  %v1972_v37 = vsel %vm8987_vm13, %v1967_v58, %v1971_v8  ;;  %v1979_v31 = vshll.u32 %v1563_v51, 16  ;;  %v3484_v3 = vshll.u32 %v3386_v48, 16  ;;  %v3489_v14 = vshrl.u32 %v3387_v24, 16 }
  0xd1   : > { %v2578_v44 = vrot.slane %v2384_v53, 5  ;;  %v3471_v47 = vor.u32 %v3470_v63, %v3467_v36  ;;  %v3492_v5 = vshll.u32 %v3387_v24, 16  ;;  %v3480_v2 = vrot.slane %v3478_v60, 4  ;;  %v3393_v48 = vld [vmem:[#allocation2 + $0x30] sm:$0xf]  ;;  %v8503_v36 = vld [vmem:[#allocation2 + $0x18] sm:$0xff]  }
  0xd2   : > { %v1981_v1 = vrot.slane %v1979_v31, 5  ;;  %v3486_v19 = vrot.slane %v3484_v3, 5  ;;  %v3491_v10 = vrot.slane %v3489_v14, 4  ;;  %v3498_v26 = vshll.u32 %v3388_v41, 16  ;;  %v3395_v53 = vld [vmem:[#allocation2 + $0x38] sm:$0x1] }
  0xd3   : > { %v2579_v13 = vsel %vm8977_vm12, %v2577_v43, %v2578_v44  ;;  %v3472_v15 = vrot.slane %v3471_v47, 4  ;;  %v3494_v27 = vrot.slane %v3492_v5, 5  ;;  %v3481_v20 = vor.u32 %v3480_v2, %v3476_v11  ;;  %v8506_v60 = vld [vmem:[#allocation2 + $0x24] sm:$0xff]  }
  0xd4   : > { %v7218_v38 = vcombine.low %v2576_v46, %v2579_v13  ;;  %v1982_v17 = vsel %vm8987_vm13, %v1977_v23, %v1981_v1  ;;  %v3502_v42 = vshrl.u32 %v3388_v41, 16  ;;  %v3508_v56 = vshll.u32 %v3389_v54, 16  ;;  %v3394_v46 = vld [vmem:[#allocation2 + $0x34] sm:$0xf]  ;;  %v3397_v13 = vld [vmem:[#allocation2 + $0x40] sm:$0xf] }
  0xd5   : > { %v7162_v28 = vcombine.low %v1972_v37, %v1982_v17  ;;  %v3477_v9 = vsel %vm8987_vm13, %v3472_v15, %v3476_v11  ;;  %v3495_v16 = vor.u32 %v3494_v27, %v3491_v10  ;;  %v3500_v7 = vrot.slane %v3498_v26, 5  ;;  %v3396_v11 = vld [vmem:[#allocation2 + $0x3c] sm:$0xf]  ;;  %v3398_v2 = vld [vmem:[#allocation2 + $0x44] sm:$0x1] }
  0xd6   : > { %8130 = vmatmul.mubr.bf16.gmra.mxu0 %v7218_v38  ;;  %v3513_v8 = vshrl.u32 %v3390_v62, 16  ;;  %v3482_v4 = vrot.slane %v3481_v20, 4  ;;  %v3504_v32 = vrot.slane %v3502_v42, 4  ;;  %v3510_v6 = vrot.slane %v3508_v56, 5  ;;  %v8508_v38 = vld [vmem:[%s10756_s3 + $0x170] sm:$0xff]   ;;  %v9251_v20 = vld [vmem:[%s10756_s3 + $0x168] sm:$0xff]  }
  0xd7   : > { %8082 = vmatmul.mubr.bf16.gmra.mxu1 %v7162_v28  ;;  %v3516_v40 = vshll.u32 %v3390_v62, 16  ;;  %v3496_v34 = vrot.slane %v3495_v16, 4  ;;  %v3522_v55 = vshll.u32 %v3391_v61, 16  ;;  %v3526_v29 = vshrl.u32 %v3391_v61, 16  ;;  %v3399_v15 = vld [vmem:[#allocation2 + $0x48] sm:$0xf] }
  0xd8   : > { %8149 = vmatprep.mubr.bf16.mxu1 %v8502_v45  ;;  %v3515_v0 = vrot.slane %v3513_v8, 4  ;;  %v3487_v33 = vsel %vm8987_vm13, %v3482_v4, %v3486_v19  ;;  %v3505_v25 = vor.u32 %v3504_v32, %v3500_v7  ;;  %v3532_v58 = vshll.u32 %v3392_v21, 16  ;;  %v8509_v45 = vld [vmem:[%s10756_s3 + $0x1b0] sm:$0xff]  }
  0xd9   : > { %v3518_v24 = vrot.slane %v3516_v40, 5  ;;  %v7283_v43 = vcombine.low %v3477_v9, %v3487_v33  ;;  %v3501_v22 = vsel %vm8987_vm13, %v3496_v34, %v3500_v7  ;;  %v3524_v51 = vrot.slane %v3522_v55, 5  ;;  %v8513_v7 = vld [vmem:[%s10756_s3 + $0x1a8] sm:$0xff]   ;;  %v8507_v4 = vld [vmem:[#allocation2 + $0x30] sm:$0xff]  }
  0xda   : > { %v3528_v23 = vrot.slane %v3526_v29, 4  ;;  %v3506_v37 = vrot.slane %v3505_v25, 4  ;;  %v3534_v44 = vrot.slane %v3532_v58, 5  ;;  %v3537_v63 = vshrl.u32 %v3393_v48, 16  ;;  %v3400_v34 = vld [vmem:[#allocation2 + $0x4c] sm:$0xf] }
  0xdb   : > { %v3519_v31 = vor.u32 %v3518_v24, %v3515_v0  ;;  %8197 = vmatprep.mubr.bf16.mxu0 %v7283_v43  ;;  %v3540_v41 = vshll.u32 %v3393_v48, 16  ;;  %v3546_v14 = vshll.u32 %v3394_v46, 16  ;;  %v3550_v1 = vshrl.u32 %v3394_v46, 16  ;;  %v8510_v0 = vld [vmem:[#allocation2 + $0x3c] sm:$0xff]   ;;  %v3401_v33 = vld [vmem:[#allocation2 + $0x50] sm:$0x1] }
  0xdc   : > { %v3529_v3 = vor.u32 %v3528_v23, %v3524_v51  ;;  %v3511_v47 = vsel %vm8987_vm13, %v3506_v37, %v3510_v6  ;;  %v3539_v5 = vrot.slane %v3537_v63, 4  ;;  %v3556_v62 = vshll.u32 %v3395_v53, 16  ;;  %v3402_v46 = vld [vmem:[#allocation2 + $0x54] sm:$0xf]  ;;  %v8516_v63 = vld [vmem:[%s10756_s3 + $0x160] sm:$0xff]  }
  0xdd   : > { %v3520_v54 = vrot.slane %v3519_v31, 4  ;;  %v7284_v19 = vcombine.low %v3501_v22, %v3511_v47  ;;  %v3542_v61 = vrot.slane %v3540_v41, 5  ;;  %v3548_v17 = vrot.slane %v3546_v14, 5  ;;  %v3404_v14 = vld [vmem:[#allocation2 + $0x5c] sm:$0x1] }
  0xde   : > { %v3530_v10 = vrot.slane %v3529_v3, 4  ;;  %v3552_v26 = vrot.slane %v3550_v1, 4  ;;  %v3558_v21 = vrot.slane %v3556_v62, 5  ;;  %v3561_v28 = vshrl.u32 %v3396_v11, 16  ;;  %v3405_v1 = vld [vmem:[#allocation2 + $0x60] sm:$0xf] }
  0xdf   : > { %8150 = vmatmul.mubr.bf16.vlgmr.msra.gmra.mxu1 %v8503_v36  ;;  %v3525_v27 = vsel %vm8987_vm13, %v3520_v54, %v3524_v51  ;;  %8198 = vmatmul.mubr.bf16.vlgmr.msra.gmra.mxu0 %v7284_v19  ;;  %v3543_v56 = vor.u32 %v3542_v61, %v3539_v5  ;;  %v3564_v9 = vshll.u32 %v3396_v11, 16  ;;  %v3570_v16 = vshll.u32 %v3397_v13, 16 }
  0xe0   : > { %8230 = vmatpush3.bf16.msra.mxu1 %v9123_v18  ;;  %v3535_v42 = vsel %vm8987_vm13, %v3530_v10, %v3534_v44  ;;  %8278 = vmatpush3.bf16.msra.mxu0 %v9114_v49  ;;  %v3553_v32 = vor.u32 %v3552_v26, %v3548_v17  ;;  %v3563_v6 = vrot.slane %v3561_v28, 4  ;;  %v3574_v40 = vshrl.u32 %v3397_v13, 16  ;;  %v3403_v44 = vld [vmem:[#allocation2 + $0x58] sm:$0xf]  ;;  %v8517_v13 = vld [vmem:[%s10756_s3 + $0x1a0] sm:$0xff]  }
  0xe1   : > { %8153 = vmatprep.mubr.bf16.mxu1 %v8506_v60  ;;  %v7285_v8 = vcombine.low %v3525_v27, %v3535_v42  ;;  %v3544_v18 = vrot.slane %v3543_v56, 4  ;;  %8231 = vmatprep.subr.bf16.mxu1 %v8508_v38  ;;  %v3566_v55 = vrot.slane %v3564_v9, 5  ;;  %v3572_v29 = vrot.slane %v3570_v16, 5  ;;  %v8511_v16 = vld [vmem:[#allocation2 + $0x48] sm:$0xff]  }
  0xe2   : > { %8279 = vmatprep.subr.bf16.mxu0 %v8509_v45  ;;  %v3580_v48 = vshll.u32 %v3398_v2, 16  ;;  %v3554_v25 = vrot.slane %v3553_v32, 4  ;;  %v3576_v24 = vrot.slane %v3574_v40, 4  ;;  %v3585_v58 = vshrl.u32 %v3399_v15, 16 }
  0xe3   : > { %8201 = vmatprep.mubr.bf16.mxu0 %v7285_v8  ;;  %v3588_v49 = vshll.u32 %v3399_v15, 16  ;;  %v3549_v43 = vsel %vm8987_vm13, %v3544_v18, %v3548_v17  ;;  %v3567_v22 = vor.u32 %v3566_v55, %v3563_v6  ;;  %v3594_v23 = vshll.u32 %v3400_v34, 16  ;;  %v8520_v17 = vld [vmem:[%s10756_s3 + $0x158] sm:$0xff]  }
  0xe4   : > { %8232 = vmatpush3.bf16.msra.mxu1 %v8508_v38  ;;  %v3582_v51 = vrot.slane %v3580_v48, 5  ;;  %v3559_v53 = vsel %vm8987_vm13, %v3554_v25, %v3558_v21  ;;  %8280 = vmatpush3.bf16.msra.mxu0 %v8509_v45  ;;  %v3577_v36 = vor.u32 %v3576_v24, %v3572_v29  ;;  %v3587_v37 = vrot.slane %v3585_v58, 4  ;;  %v3406_v38 = vld [vmem:[#allocation2 + $0x64] sm:$0xf]  ;;  %v8521_v21 = vld [vmem:[%s10756_s3 + $0x198] sm:$0xff]  }
  0xe5   : > { %v3590_v31 = vrot.slane %v3588_v49, 5  ;;  %8233 = vmatprep.subr.bf16.mxu1 %v9251_v20  ;;  %v7286_v11 = vcombine.low %v3549_v43, %v3559_v53  ;;  %v3568_v60 = vrot.slane %v3567_v22, 4  ;;  %v3596_v3 = vrot.slane %v3594_v23, 5  ;;  %8281 = vmatprep.subr.bf16.mxu0 %v8513_v7  ;;  %v8514_v6 = vld [vmem:[#allocation2 + $0x54] sm:$0xff]   ;;  %v3408_v25 = vld [vmem:[#allocation2 + $0x6c] sm:$0xf] }
  0xe6   : > { %v3598_v41 = vshrl.u32 %v3400_v34, 16  ;;  %v3578_v47 = vrot.slane %v3577_v36, 4  ;;  %v3604_v5 = vshll.u32 %v3401_v33, 16  ;;  %v3609_v62 = vshrl.u32 %v3402_v46, 16  ;;  %v3407_v34 = vld [vmem:[#allocation2 + $0x68] sm:$0x1] }
  0xe7   : > { %8154 = vmatmul.mubr.bf16.gmra.mxu1 %v8507_v4  ;;  %v3591_v54 = vor.u32 %v3590_v31, %v3587_v37  ;;  %8202 = vmatmul.mubr.bf16.gmra.mxu0 %v7286_v11  ;;  %v3573_v2 = vsel %vm8987_vm13, %v3568_v60, %v3572_v29  ;;  %v3612_v10 = vshll.u32 %v3402_v46, 16  ;;  %v3618_v61 = vshll.u32 %v3403_v44, 16  ;;  %v3409_v43 = vld [vmem:[#allocation2 + $0x70] sm:$0xf]  ;;  %v3410_v37 = vld [vmem:[#allocation2 + $0x74] sm:$0x1] }
  0xe8   : > { %8157 = vmatprep.mubr.bf16.mxu1 %v8510_v0  ;;  %v3600_v19 = vrot.slane %v3598_v41, 4  ;;  %v3583_v45 = vsel %vm8987_vm13, %v3578_v47, %v3582_v51  ;;  %v3606_v27 = vrot.slane %v3604_v5, 5  ;;  %8234 = vmatpush3.bf16.msra.mxu1 %v9251_v20  ;;  %v3611_v26 = vrot.slane %v3609_v62, 4  ;;  %v8524_v22 = vld [vmem:[%s10756_s3 + $0x150] sm:$0xff]  }
  0xe9   : > { %v3592_v15 = vrot.slane %v3591_v54, 4  ;;  %8282 = vmatpush3.bf16.msra.mxu0 %v8513_v7  ;;  %v7287_v28 = vcombine.low %v3573_v2, %v3583_v45  ;;  %v3614_v56 = vrot.slane %v3612_v10, 5  ;;  %v9282_v9 = vrot.slane %v3618_v61, 5  ;;  %8235 = vmatprep.subr.bf16.mxu1 %v8516_v63  ;;  %v8525_v31 = vld [vmem:[%s10756_s3 + $0x190] sm:$0xff]   ;;  %v8528_v54 = vld [vmem:[%s10756_s3 + $0x148] sm:$0xff]  }
  0xea   : > { %v3601_v42 = vor.u32 %v3600_v19, %v3596_v3  ;;  %8283 = vmatprep.subr.bf16.mxu0 %v8517_v13  ;;  %v3622_v4 = vshrl.u32 %v3403_v44, 16  ;;  %v3628_v32 = vshll.u32 %v3404_v14, 16  ;;  %v3633_v20 = vshrl.u32 %v3405_v1, 16  ;;  %v8515_v14 = vld [vmem:[#allocation2 + $0x60] sm:$0xff]   ;;  %v8518_v62 = vld [vmem:[#allocation2 + $0x6c] sm:$0xff]  }
  0xeb   : > { %v3597_v8 = vsel %vm8987_vm13, %v3592_v15, %v3596_v3  ;;  %8205 = vmatprep.mubr.bf16.mxu0 %v7287_v28  ;;  %v3615_v40 = vor.u32 %v3614_v56, %v3611_v26  ;;  %v3636_v18 = vshll.u32 %v3405_v1, 16  ;;  %v3642_v0 = vshll.u32 %v3406_v38, 16  ;;  %v3411_v3 = vld [vmem:[#allocation2 + $0x78] sm:$0xf] }
  0xec   : > { %v3602_v7 = vrot.slane %v3601_v42, 4  ;;  %v3624_v55 = vrot.slane %v3622_v4, 4  ;;  %v3630_v29 = vrot.slane %v3628_v32, 5  ;;  %v3635_v48 = vrot.slane %v3633_v20, 4  ;;  %8236 = vmatpush3.bf16.msra.mxu1 %v8516_v63 }
  0xed   : > { %v3646_v33 = vshrl.u32 %v3406_v38, 16  ;;  %8284 = vmatpush3.bf16.msra.mxu0 %v8517_v13  ;;  %v3616_v58 = vrot.slane %v3615_v40, 4  ;;  %v3638_v49 = vrot.slane %v3636_v18, 5  ;;  %v3644_v46 = vrot.slane %v3642_v0, 5  ;;  %8237 = vmatprep.subr.bf16.mxu1 %v8520_v17  ;;  %v3415_v0 = vld [vmem:[#allocation2 + $0x88] sm:$0xf] }
  0xee   : > { %v3607_v24 = vsel %vm8987_vm13, %v3602_v7, %v3606_v27  ;;  %8285 = vmatprep.subr.bf16.mxu0 %v8521_v21  ;;  %v3625_v23 = vor.u32 %v3624_v55, %v9282_v9  ;;  %v3652_v36 = vshll.u32 %v3407_v34, 16  ;;  %v3657_v11 = vshrl.u32 %v3408_v25, 16  ;;  %v3412_v27 = vld [vmem:[#allocation2 + $0x7c] sm:$0xf]  ;;  %v8533_v7 = vld [vmem:[%s10756_s3 + $0x180] sm:$0xff]  }
  0xef   : > { %8158 = vmatmul.mubr.bf16.gmra.mxu1 %v8511_v16  ;;  %v7288_v51 = vcombine.low %v3597_v8, %v3607_v24  ;;  %v3648_v53 = vrot.slane %v3646_v33, 4  ;;  %v3621_v44 = vsel %vm8987_vm13, %v3616_v58, %v9282_v9  ;;  %v3639_v63 = vor.u32 %v3638_v49, %v3635_v48  ;;  %v3414_v9 = vld [vmem:[#allocation2 + $0x84] sm:$0xf] }
  0xf0   : > { %8161 = vmatprep.mubr.bf16.mxu1 %v8514_v6  ;;  %v3660_v60 = vshll.u32 %v3408_v25, 16  ;;  %v3626_v41 = vrot.slane %v3625_v23, 4  ;;  %v3654_v13 = vrot.slane %v3652_v36, 5  ;;  %v3666_v47 = vshll.u32 %v3409_v43, 16  ;;  %8238 = vmatpush3.bf16.msra.mxu1 %v8520_v17  ;;  %v8529_v17 = vld [vmem:[%s10756_s3 + $0x188] sm:$0xff]   ;;  %v8532_v16 = vld [vmem:[%s10756_s3 + $0x140] sm:$0xff]  }
  0xf1   : > { %8206 = vmatmul.mubr.bf16.gmra.mxu0 %v7288_v51  ;;  %v3649_v1 = vor.u32 %v3648_v53, %v3644_v46  ;;  %v3640_v5 = vrot.slane %v3639_v63, 4  ;;  %v3659_v38 = vrot.slane %v3657_v11, 4  ;;  %v3670_v19 = vshrl.u32 %v3409_v43, 16  ;;  %8239 = vmatprep.subr.bf16.mxu1 %v8524_v22  ;;  %v3416_v25 = vld [vmem:[#allocation2 + $0x8c] sm:$0x1]  ;;  %v8522_v63 = vld [vmem:[#allocation2 + $0x84] sm:$0xff]  }
  0xf2   : > { %v3662_v2 = vrot.slane %v3660_v60, 5  ;;  %8286 = vmatpush3.bf16.msra.mxu0 %v8521_v21  ;;  %v3631_v10 = vsel %vm8987_vm13, %v3626_v41, %v3630_v29  ;;  %v3668_v45 = vrot.slane %v3666_v47, 5  ;;  %v3676_v15 = vshll.u32 %v3410_v37, 16  ;;  %v3413_v21 = vld [vmem:[#allocation2 + $0x80] sm:$0x1]  ;;  %v9328_v41 = vld [vmem:[%s10756_s3 + $0x238] sm:$0xff]  }
  0xf3   : > { %v3650_v61 = vrot.slane %v3649_v1, 4  ;;  %8287 = vmatprep.subr.bf16.mxu0 %v8525_v31  ;;  %v7289_v26 = vcombine.low %v3621_v44, %v3631_v10  ;;  %v3645_v28 = vsel %vm8987_vm13, %v3640_v5, %v3644_v46  ;;  %v3672_v56 = vrot.slane %v3670_v19, 4  ;;  %v3417_v43 = vld [vmem:[#allocation2 + $0x90] sm:$0xf]  ;;  %v3418_v37 = vld [vmem:[#allocation2 + $0x94] sm:$0xf] }
  0xf4   : > { %v3663_v42 = vor.u32 %v3662_v2, %v3659_v38  ;;  %v3678_v4 = vrot.slane %v3676_v15, 5  ;;  %v3681_v32 = vshrl.u32 %v3411_v3, 16  ;;  %v3684_v20 = vshll.u32 %v3411_v3, 16  ;;  %8240 = vmatpush3.bf16.msra.mxu1 %v8524_v22  ;;  %v8519_v22 = vld [vmem:[#allocation2 + $0x78] sm:$0xff]  }
  0xf5   : > { %v3655_v8 = vsel %vm8987_vm13, %v3650_v61, %v3654_v13  ;;  %8209 = vmatprep.mubr.bf16.mxu0 %v7289_v26  ;;  %v3673_v34 = vor.u32 %v3672_v56, %v3668_v45  ;;  %v3690_v18 = vshll.u32 %v3412_v27, 16  ;;  %v3694_v48 = vshrl.u32 %v3412_v27, 16  ;;  %8241 = vmatprep.subr.bf16.mxu1 %v8528_v54  ;;  %v3419_v61 = vld [vmem:[#allocation2 + $0x98] sm:$0x1] }
  0xf6   : > { %v7290_v6 = vcombine.low %v3645_v28, %v3655_v8  ;;  %v3664_v40 = vrot.slane %v3663_v42, 4  ;;  %8288 = vmatpush3.bf16.msra.mxu0 %v8525_v31  ;;  %v3683_v55 = vrot.slane %v3681_v32, 4  ;;  %v3686_v29 = vrot.slane %v3684_v20, 5  ;;  %v9321_v31 = vld [vmem:[%s10756_s3 + $0x1f8] sm:$0xff]   ;;  %v3421_v8 = vld [vmem:[#allocation2 + $0xa0] sm:$0xf] }
  0xf7   : > { %8162 = vmatmul.mubr.bf16.gmra.mxu1 %v8515_v14  ;;  %v3700_v33 = vshll.u32 %v3413_v21, 16  ;;  %v3674_v58 = vrot.slane %v3673_v34, 4  ;;  %v3692_v49 = vrot.slane %v3690_v18, 5  ;;  %v3705_v46 = vshrl.u32 %v3414_v9, 16  ;;  %8289 = vmatprep.subr.bf16.mxu0 %v8529_v17  ;;  %v3420_v28 = vld [vmem:[#allocation2 + $0x9c] sm:$0xf] }
  0xf8   : > { %8165 = vmatprep.mubr.bf16.mxu1 %v8518_v62  ;;  %v3669_v24 = vsel %vm8987_vm13, %v3664_v40, %v3668_v45  ;;  %v3687_v51 = vor.u32 %v3686_v29, %v3683_v55  ;;  %v3696_v23 = vrot.slane %v3694_v48, 4  ;;  %v3708_v36 = vshll.u32 %v3414_v9, 16  ;;  %8242 = vmatpush3.bf16.msra.mxu1 %v8528_v54  ;;  %v3422_v18 = vld [vmem:[#allocation2 + $0xa4] sm:$0x1]  ;;  %v8526_v48 = vld [vmem:[#allocation2 + $0x9c] sm:$0xff]  }
  0xf9   : > { %8210 = vmatmul.mubr.bf16.gmra.mxu0 %v7290_v6  ;;  %v3702_v53 = vrot.slane %v3700_v33, 5  ;;  %v3679_v44 = vsel %vm8987_vm13, %v3674_v58, %v3678_v4  ;;  %v3707_v11 = vrot.slane %v3705_v46, 4  ;;  %v3714_v60 = vshll.u32 %v3415_v0, 16  ;;  %8243 = vmatprep.subr.bf16.mxu1 %v8532_v16  ;;  %v8523_v6 = vld [vmem:[#allocation2 + $0x90] sm:$0xff]  }
  0xfa   : > { %v3718_v3 = vshrl.u32 %v3415_v0, 16  ;;  %8290 = vmatpush3.bf16.msra.mxu0 %v8529_v17  ;;  %v7291_v14 = vcombine.low %v3669_v24, %v3679_v44  ;;  %v3688_v1 = vrot.slane %v3687_v51, 4  ;;  %v3697_v13 = vor.u32 %v3696_v23, %v3692_v49  ;;  %v3423_v24 = vld [vmem:[#allocation2 + $0xa8] sm:$0xf]  ;;  %v3426_v44 = vld [vmem:[#allocation2 + $0xb4] sm:$0xf] }
  0xfb   : > { %v3710_v47 = vrot.slane %v3708_v36, 5  ;;  %8291 = vmatprep.subr.bf16.mxu0 %v8533_v7  ;;  %v3716_v54 = vrot.slane %v3714_v60, 5  ;;  %v3724_v62 = vshll.u32 %v3416_v25, 16  ;;  %v3729_v38 = vshrl.u32 %v3417_v43, 16 }
  0xfc   : > { %v3720_v5 = vrot.slane %v3718_v3, 4  ;;  %8213 = vmatprep.mubr.bf16.mxu0 %v7291_v14  ;;  %v3693_v2 = vsel %vm8987_vm13, %v3688_v1, %v3692_v49  ;;  %v3698_v19 = vrot.slane %v3697_v13, 4  ;;  %v3732_v45 = vshll.u32 %v3417_v43, 16  ;;  %8244 = vmatpush3.bf16.msra.mxu1 %v8532_v16  ;;  %v3427_v14 = vld [vmem:[#allocation2 + $0xb8] sm:$0xf] }
  0xfd   : > { %v3711_v10 = vor.u32 %v3710_v47, %v3707_v11  ;;  %v3726_v27 = vrot.slane %v3724_v62, 5  ;;  %v3731_v17 = vrot.slane %v3729_v38, 4  ;;  %v3738_v26 = vshll.u32 %v3418_v37, 16  ;;  %8325 = vmatprep.subr.bf16.mxu1 %v9321_v31 }
  0xfe   : > { %v3721_v15 = vor.u32 %v3720_v5, %v3716_v54  ;;  %8292 = vmatpush3.bf16.msra.mxu0 %v8533_v7  ;;  %v3703_v42 = vsel %vm8987_vm13, %v3698_v19, %v3702_v53  ;;  %v3734_v21 = vrot.slane %v3732_v45, 5  ;;  %v3742_v9 = vshrl.u32 %v3418_v37, 16  ;;  %v3425_v37 = vld [vmem:[#allocation2 + $0xb0] sm:$0x1] }
  0xff   : > { %8166 = vmatmul.mubr.bf16.gmra.mxu1 %v8519_v22  ;;  %v3712_v56 = vrot.slane %v3711_v10, 4  ;;  %8373 = vmatprep.subr.bf16.mxu0 %v9328_v41  ;;  %v7292_v4 = vcombine.low %v3693_v2, %v3703_v42  ;;  %v3740_v32 = vrot.slane %v3738_v26, 5  ;;  %v3748_v20 = vshll.u32 %v3419_v61, 16  ;;  %v3424_v22 = vld [vmem:[#allocation2 + $0xac] sm:$0xf]  ;;  %v9346_v42 = vpop.f32.mrf.mxu1 }
 0x100   : > { %8169 = vmatprep.mubr.bf16.mxu1 %v8522_v63  ;;  %v3722_v16 = vrot.slane %v3721_v15, 4  ;;  %v3735_v40 = vor.u32 %v3734_v21, %v3731_v17  ;;  %v3744_v34 = vrot.slane %v3742_v9, 4  ;;  %v3753_v0 = vshrl.u32 %v3420_v28, 16  ;;  %v9344_v15 = vpop.f32.mrf.mxu0  ;;  %10775 = vst [vmem:[#allocation4_spill] sm:$0xff] %v9346_v42  ;;  %v3428_v9 = vld [vmem:[#allocation2 + $0xbc] sm:$0x1] }
 0x101   : > { %v3717_v7 = vsel %vm8987_vm13, %v3712_v56, %v3716_v54  ;;  %8214 = vmatmul.mubr.bf16.gmra.mxu0 %v7292_v4  ;;  %v3750_v29 = vrot.slane %v3748_v20, 5  ;;  %v3756_v33 = vshll.u32 %v3420_v28, 16  ;;  %v3762_v25 = vshll.u32 %v3421_v8, 16  ;;  %v9559_v42 = vld [vmem:[#allocation2 + $0x90] sm:$0xe] }
 0x102   : > { %v3727_v55 = vsel %vm8987_vm13, %v3722_v16, %v3726_v27  ;;  %v3736_v49 = vrot.slane %v3735_v40, 4  ;;  %v3745_v46 = vor.u32 %v3744_v34, %v3740_v32  ;;  %v3755_v43 = vrot.slane %v3753_v0, 4  ;;  %v8527_v16 = vld [vmem:[#allocation2 + $0xa8] sm:$0xff]   ;;  %v8530_v34 = vld [vmem:[#allocation2 + $0xb4] sm:$0xff]  }
 0x103   : > { %v7293_v58 = vcombine.low %v3717_v7, %v3727_v55  ;;  %v3758_v51 = vrot.slane %v3756_v33, 5  ;;  %v3764_v23 = vrot.slane %v3762_v25, 5  ;;  %v3766_v53 = vshrl.u32 %v3421_v8, 16 }
 0x104   : > { %v3772_v36 = vshll.u32 %v3422_v18, 16  ;;  %v3741_v63 = vsel %vm8987_vm13, %v3736_v49, %v3740_v32  ;;  %v3746_v11 = vrot.slane %v3745_v46, 4  ;;  %v3777_v60 = vshrl.u32 %v3423_v24, 16 }
 0x105   : > { %8217 = vmatprep.mubr.bf16.mxu0 %v7293_v58  ;;  %v3780_v3 = vshll.u32 %v3423_v24, 16  ;;  %v3759_v1 = vor.u32 %v3758_v51, %v3755_v43  ;;  %v3768_v13 = vrot.slane %v3766_v53, 4  ;;  %v3786_v54 = vshll.u32 %v3424_v22, 16  ;;  %v9356_v58 = vpop.f32.mrf.mxu1  ;;  %v8568_v43 = vld [vmem:[%s10754_s1] ss:$0 sm:$0xff] }
 0x106   : > { %v3774_v47 = vrot.slane %v3772_v36, 5  ;;  %v3751_v5 = vsel %vm8987_vm13, %v3746_v11, %v3750_v29  ;;  %v3779_v62 = vrot.slane %v3777_v60, 4  ;;  %v3790_v2 = vshrl.u32 %v3424_v22, 16  ;;  %v9352_v29 = vpop.f32.mrf.mxu0  ;;  %10776 = vst [vmem:[#allocation5_spill] sm:$0xff] %v9356_v58 }
 0x107   : > { %8170 = vmatmul.mubr.bf16.gmra.mxu1 %v8523_v6  ;;  %v3782_v38 = vrot.slane %v3780_v3, 5  ;;  %v7294_v19 = vcombine.low %v3741_v63, %v3751_v5  ;;  %v3760_v10 = vrot.slane %v3759_v1, 4  ;;  %v3769_v61 = vor.u32 %v3768_v13, %v3764_v23  ;;  %v8569_v63 = vld [vmem:[%s10755_s2] ss:$0 sm:$0xff]  ;;  %v9372_v39 = vpop.f32.mrf.mxu1  ;;  %v9376_v1 = vld [vmem:[#allocation2 + $0x10] sm:$0xf] }
 0x108   : > { %8173 = vmatprep.mubr.bf16.mxu1 %v8526_v48  ;;  %v3788_v45 = vrot.slane %v3786_v54, 5  ;;  %v3792_v17 = vrot.slane %v3790_v2, 4  ;;  %v3796_v26 = vshll.u32 %v3425_v37, 16  ;;  %v3801_v28 = vshrl.u32 %v3426_v44, 16  ;;  %v9370_v60 = vpop.f32.mrf.mxu0  ;;  %10777 = vst [vmem:[#allocation6_spill] sm:$0xff] %v9372_v39 }
 0x109   : > { %v3783_v27 = vor.u32 %v3782_v38, %v3779_v62  ;;  %8218 = vmatmul.mubr.bf16.gmra.mxu0 %v7294_v19  ;;  %v3765_v56 = vsel %vm8987_vm13, %v3760_v10, %v3764_v23  ;;  %v3770_v21 = vrot.slane %v3769_v61, 4  ;;  %v3804_v8 = vshll.u32 %v3426_v44, 16  ;;  %v9382_v2 = vld [vmem:[#allocation2 + $0xc] sm:$0xe]  ;;  %v9385_v10 = vpop.f32.mrf.mxu1 }
 0x10a   : > { %v3810_v4 = vshll.u32 %v3427_v14, 16  ;;  %v3793_v20 = vor.u32 %v3792_v17, %v3788_v45  ;;  %v3798_v7 = vrot.slane %v3796_v26, 5  ;;  %v3803_v6 = vrot.slane %v3801_v28, 4  ;;  %v9380_v5 = vpop.f32.mrf.mxu0  ;;  %10778 = vst [vmem:[#allocation7_spill] sm:$0xff] %v9385_v10  ;;  %v9389_v17 = vld [vmem:[#allocation2 + $0x28] sm:$0xf] }
 0x10b   : > { %v3784_v32 = vrot.slane %v3783_v27, 4  ;;  %v3775_v40 = vsel %vm8987_vm13, %v3770_v21, %v3774_v47  ;;  %v3806_v18 = vrot.slane %v3804_v8, 5  ;;  %v3814_v55 = vshrl.u32 %v3427_v14, 16  ;;  %v9387_v27 = vld [vmem:[#allocation2 + $0x1c] sm:$0xf] }
 0x10c   : > { %v3812_v0 = vrot.slane %v3810_v4, 5  ;;  %v7295_v48 = vcombine.low %v3765_v56, %v3775_v40  ;;  %v3794_v25 = vrot.slane %v3793_v20, 4  ;;  %v3820_v24 = vshll.u32 %v3428_v9, 16  ;;  %v1028_v56 = vld [vmem:[#allocation2 + $0xc0] sm:$0xf] }
 0x10d   : > { %v3789_v33 = vsel %vm8987_vm13, %v3784_v32, %v3788_v45  ;;  %v3807_v49 = vor.u32 %v3806_v18, %v3803_v6  ;;  %v3816_v46 = vrot.slane %v3814_v55, 4  ;;  %v371_v22 = vmul.f32 %v8568_v43, %v7661_v59  ;;  %v4204_v21 = vld [vmem:[#allocation2 + $0x14] sm:$0x1]  ;;  %v9391_v9 = vld [vmem:[#allocation2 + $0x18] sm:$0xe]  ;;  %v9401_v6 = vpop.f32.mrf.mxu0 }
 0x10e   : > { %v372_v51 = vmul.f32 %v8568_v43, %v7662_v30  ;;  %8221 = vmatprep.mubr.bf16.mxu0 %v7295_v48  ;;  %v3799_v23 = vsel %vm8987_vm13, %v3794_v25, %v3798_v7  ;;  %v3822_v53 = vrot.slane %v3820_v24, 5  ;;  %v4332_v19 = vrot.slane %v9376_v1, 5  ;;  %v9393_v8 = vld [vmem:[#allocation2 + $0x20] sm:$0x1]  ;;  %v9395_v4 = vld [vmem:[#allocation2 + $0x34] sm:$0xf]  ;;  %v9413_v25 = vpop.f32.mrf.mxu1 }
 0x10f   : > { %8174 = vmatmul.mubr.bf16.gmra.mxu1 %v8527_v16  ;;  %v7296_v36 = vcombine.low %v3789_v33, %v3799_v23  ;;  %v3808_v37 = vrot.slane %v3807_v49, 4  ;;  %v3817_v44 = vor.u32 %v3816_v46, %v3812_v0  ;;  %v410_v11 = vadd.f32 %v8569_v63, %v371_v22  ;;  %v9397_v16 = vld [vmem:[#allocation2 + $0x40] sm:$0xf]  ;;  %v1032_v20 = vld [vmem:[#allocation2 + $0xc8] sm:$0x1]  ;;  %10779 = vst [vmem:[#allocation8_spill] sm:$0xff] %v9413_v25 }
 0x110   : > { %8177 = vmatprep.mubr.bf16.mxu1 %v8530_v34  ;;  %v411_v59 = vadd.f32 %v8569_v63, %v372_v51  ;;  %v9399_v7 = vld [vmem:[#allocation2 + $0x24] sm:$0xe]  ;;  %v7307_v34 = vrot.slane %v9382_v2, 9  ;;  %v4334_v18 = vrot.slane %v4332_v19, 4  ;;  %v9407_v55 = vld [vmem:[#allocation2 + $0x2c] sm:$0x1] }
 0x111   : > { %8222 = vmatmul.mubr.bf16.gmra.mxu0 %v7296_v36  ;;  %v3813_v30 = vsel %vm8987_vm13, %v3808_v37, %v3812_v0  ;;  %v3818_v3 = vrot.slane %v3817_v44, 4  ;;  %v442_v14 = vmax.f32 %v410_v11, 0.0  ;;  %v4339_v0 = vrot.slane %v9387_v27, 5  ;;  %v9409_v48 = vld [vmem:[#allocation2 + $0x30] sm:$0xe] }
 0x112   : > { %v443_v13 = vmax.f32 %v411_v59, 0.0  ;;  %v9411_v33 = vld [vmem:[#allocation2 + $0x38] sm:$0x1]  ;;  %v4346_v46 = vrot.slane %v9389_v17, 5  ;;  %v9416_v43 = vld [vmem:[#allocation2 + $0x3c] sm:$0xe] }
 0x113   : > { %v3823_v47 = vsel %vm8987_vm13, %v3818_v3, %v3822_v53  ;;  %v7565_v54 = vpack.c.bf16 %v442_v14, %v442_v14  ;;  %v9418_v22 = vld [vmem:[#allocation2 + $0x4c] sm:$0xf]  ;;  %v10762_v53 = vrot.slane %v9395_v4, 5  ;;  %v10760_v36 = vrot.slane %v9397_v16, 5  ;;  %v9426_v59 = vld [vmem:[#allocation2 + $0x44] sm:$0x1] }
 0x114   : > { %v7297_v62 = vcombine.low %v3813_v30, %v3823_v47  ;;  %v7566_v38 = vpack.c.bf16 %v443_v13, %v443_v13  ;;  %v4335_v44 = vrot.slane %v4204_v21, 5  ;;  %v7308_v63 = vrot.slane %v9391_v9, 9  ;;  %v9428_v30 = vld [vmem:[#allocation2 + $0x48] sm:$0xe]  ;;  %v9430_v3 = vld [vmem:[#allocation2 + $0x50] sm:$0x1]  ;;  %v9434_v13 = vpop.f32.mrf.mxu0 }
 0x115   : > { %v853_v61 = vshrl.u32 %v7565_v54, 16  ;;  %v856_v45 = vshll.u32 %v7565_v54, 16  ;;  %v4342_v11 = vrot.slane %v9393_v8, 5  ;;  %v9432_v14 = vld [vmem:[#allocation2 + $0x54] sm:$0xe]  ;;  %v4341_v54 = vrot.slane %v4339_v0, 4 }
 0x116   : > { %8225 = vmatprep.mubr.bf16.mxu0 %v7297_v62  ;;  %v861_v26 = vshrl.u32 %v7566_v38, 16  ;;  %v864_v28 = vshll.u32 %v7566_v38, 16  ;;  %v7309_v62 = vrot.slane %v9399_v7, 9  ;;  %v9441_v38 = vld [vmem:[#allocation2 + $0x58] sm:$0xf]  ;;  %v4349_v52 = vrot.slane %v9407_v55, 5 }
 0x117   : > { %v855_v32 = vrot.slane %v853_v61, 7  ;;  %v9443_v2 = vld [vmem:[#allocation2 + $0x5c] sm:$0x1]  ;;  %v9445_v61 = vpop.f32.mrf.mxu1  ;;  %v9461_v21 = vrot.slane %v10760_v36, 4  ;;  %v10761_v9 = vrot.slane %v9418_v22, 5  ;;  %v10763_v1 = vrot.slane %v9441_v38, 5 }
 0x118   : > { %v863_v40 = vrot.slane %v861_v26, 7  ;;  %10780 = vst [vmem:[#allocation9_spill] sm:$0xff] %v9445_v61  ;;  %v9452_v26 = vld [vmem:[#allocation2 + $0x60] sm:$0xe]  ;;  %v9464_v8 = vld [vmem:[#allocation2 + $0x64] sm:$0xf] }
 0x119   : > { %v858_v24 = vor.u32 %v856_v45, %v855_v32  ;;  %v859_v49 = vrot.slane %v855_v32, 4  ;;  %v4348_v45 = vrot.slane %v4346_v46, 4  ;;  %v4333_v32 = vsel %vm8977_vm12, %v7307_v34, %v4332_v19  ;;  %v9472_v7 = vld [vmem:[#allocation2 + $0x70] sm:$0xf]  ;;  %v9484_v34 = vld [vmem:[#allocation2 + $0x68] sm:$0x1] }
 0x11a   : > { %v866_v51 = vor.u32 %v864_v28, %v863_v40  ;;  %v868_v23 = vrot.slane %v863_v40, 4  ;;  %v9456_v28 = vrot.slane %v10762_v53, 4  ;;  %v9474_v40 = vpop.f32.mrf.mxu0  ;;  %v9498_v19 = vld [vmem:[#allocation2 + $0x74] sm:$0x1]  ;;  %v9541_v25 = vld [vmem:[#allocation2 + $0x8c] sm:$0x1] }
 0x11b   : > { %v1029_v37 = vsel %vm8704_vm6, %v858_v24, %v1028_v56  ;;  %v9515_v24 = vrot.slane %v10763_v1, 4  ;;  %v10790_v58 = vrot.slane %v9411_v33, 5  ;;  %v10792_v33 = vrot.slane %v9397_v16, 5 }
 0x11c   : > { %v867_v47 = vsel %vm8694_vm5, %v859_v49, %v866_v51  ;;  %1030 = vst [vmem:[#allocation2 + $0xc0] sm:$0xf] %v1029_v37  ;;  %v1033_v57 = vsel %vm8714_vm7, %v868_v23, %v1032_v20  ;;  %v4336_v20 = vsel %vm8977_vm12, %v4334_v18, %v4335_v44  ;;  %v9480_v23 = vpop.f32.mrf.mxu1  ;;  %v9486_v18 = vld [vmem:[#allocation2 + $0x7c] sm:$0xf]  ;;  %v9490_v37 = vrot.slane %v10761_v9, 4  ;;  %v9501_v56 = vpop.f32.mrf.mxu0 }
 0x11d   : > { %1031 = vst [vmem:[#allocation2 + $0xc4] sm:$0xf] %v867_v47  ;;  %1034 = vst [vmem:[#allocation2 + $0xc8] sm:$0x1] %v1033_v57  ;;  %v9493_v47 = vld [vmem:[#allocation2 + $0x6c] sm:$0xe]  ;;  %v7339_v51 = vcombine.low %v4333_v32, %v4336_v20  ;;  %v4340_v49 = vsel %vm8977_vm12, %v7308_v63, %v4339_v0  ;;  %v4343_v44 = vsel %vm8977_vm12, %v4341_v54, %v4342_v11 }
 0x11e   : > { %10781 = vst [vmem:[#allocation10_spill] sm:$0xff] %v9480_v23  ;;  %v4347_v32 = vsel %vm8977_vm12, %v7309_v62, %v4346_v46  ;;  %v4350_v0 = vsel %vm8977_vm12, %v4348_v45, %v4349_v52  ;;  %v9511_v63 = vpop.f32.mrf.mxu1  ;;  %v9517_v23 = vld [vmem:[#allocation2 + $0x78] sm:$0xe]  ;;  %v9520_v54 = vld [vmem:[#allocation2 + $0x80] sm:$0x1]  ;;  %v9526_v1 = vpop.f32.mrf.mxu0  ;;  %v7340_v62 = vcombine.low %v4340_v49, %v4343_v44 }
 0x11f   : > { %10782 = vst [vmem:[#allocation11_spill] sm:$0xff] %v9511_v63  ;;  %v9524_v63 = vld [vmem:[#allocation2 + $0x88] sm:$0xf]  ;;  %v7341_v49 = vcombine.low %v4347_v32, %v4350_v0  ;;  %v9553_v44 = vld [vmem:[#allocation2 + $0x94] sm:$0xf]  ;;  %v10788_v32 = vrot.slane %v9395_v4, 5 }
 0x120   : > { %v10789_v0 = vrot.slane %v9409_v48, 9  ;;  %v10764_v48 = vrot.slane %v9553_v44, 5 }
 0x123   : > { %v3429_v57 = vld [vmem:[#allocation2 + $0xc0] sm:$0xf] }
 0x124   : > { %v8531_v36 = vld [vmem:[#allocation2 + $0xc0] sm:$0xff]   ;;  %v3825_v12 = vshrl.u32 %v3429_v57, 16  ;;  %v3431_v20 = vld [vmem:[#allocation2 + $0xc8] sm:$0x1]  ;;  %v3828_v27 = vshll.u32 %v3429_v57, 16 }
 0x125   : > { %v3430_v9 = vld [vmem:[#allocation2 + $0xc4] sm:$0xf]  ;;  %8178 = vmatmul.mubr.bf16.gmra.mxu1 %v8531_v36  ;;  %v3844_v11 = vshll.u32 %v3431_v20, 16  ;;  %v10783_v36 = vrot.slane %v9464_v8, 5  ;;  %v10784_v20 = vrot.slane %v9472_v7, 5 }
 0x126   : > { %v3834_v53 = vshll.u32 %v3430_v9, 16  ;;  %v3838_v55 = vshrl.u32 %v3430_v9, 16  ;;  %v3827_v17 = vrot.slane %v3825_v12, 4  ;;  %v3830_v45 = vrot.slane %v3828_v27, 5  ;;  %8245 = vmatprep.mubr.bf16.mxu1 %v7339_v51 }
 0x127   : > { %v3846_v61 = vrot.slane %v3844_v11, 5  ;;  %v9530_v12 = vrot.slane %v10783_v36, 4  ;;  %v9534_v46 = vrot.slane %v10784_v20, 4  ;;  %v8540_v11 = vld [vmem:[%s10756_s3 + $0x1f0] sm:$0xff]   ;;  %v10786_v20 = vrot.slane %v9486_v18, 5 }
 0x128   : > { %v3836_v52 = vrot.slane %v3834_v53, 5  ;;  %v3840_v57 = vrot.slane %v3838_v55, 4  ;;  %v9537_v53 = vld [vmem:[#allocation2 + $0x84] sm:$0xe]  ;;  %v9539_v55 = vpop.f32.mrf.mxu1  ;;  %v3831_v51 = vor.u32 %v3830_v45, %v3827_v17  ;;  %v8534_v45 = vld [vmem:[#allocation2 + $0x18] sm:$0xff]   ;;  %v4357_v36 = vsel %vm8977_vm12, %v9456_v28, %v10790_v58 }
 0x129   : > { %10785 = vst [vmem:[#allocation12_spill] sm:$0xff] %v9539_v55  ;;  %v9549_v10 = vrot.slane %v10786_v20, 4  ;;  %v10793_v58 = vrot.slane %v9416_v43, 9  ;;  %v7318_v43 = vrot.slane %v9559_v42, 9  ;;  %v10799_v42 = vrot.slane %v9441_v38, 5  ;;  %v8535_v38 = vld [vmem:[#allocation2 + $0x24] sm:$0xff]  }
 0x12a   : > { %v3841_v9 = vor.u32 %v3840_v57, %v3836_v52  ;;  %v3832_v55 = vrot.slane %v3831_v51, 4  ;;  %v9555_v57 = vpop.f32.mrf.mxu0  ;;  %v9561_v20 = vpop.f32.mrf.mxu1  ;;  %v4354_v51 = vsel %vm8977_vm12, %v10789_v0, %v10788_v32 }
 0x12b   : > { %10787 = vst [vmem:[#allocation13_spill] sm:$0xff] %v9561_v20  ;;  %v4361_v28 = vsel %vm8977_vm12, %v10793_v58, %v10792_v33  ;;  %v7342_v32 = vcombine.low %v4354_v51, %v4357_v36  ;;  %v10797_v33 = vrot.slane %v9428_v30, 9  ;;  %v10800_v36 = vrot.slane %v9432_v14, 9  ;;  %v9642_v51 = vld [vmem:[#allocation2 + $0xac] sm:$0xf]  ;;  %v9649_v14 = vld [vmem:[%s10756_s3 + $0x1e0] sm:$0xff]  }
 0x12c   : > { %v3842_v17 = vrot.slane %v3841_v9, 4  ;;  %v3837_v27 = vsel %vm8987_vm13, %v3832_v55, %v3836_v52  ;;  %v8544_v52 = vld [vmem:[%s10756_s3 + $0x1e8] sm:$0xff]   ;;  %v9583_v55 = vld [vmem:[#allocation2 + $0x98] sm:$0x1]  ;;  %v9608_v0 = vpop.f32.mrf.mxu1  ;;  %v10801_v30 = vrot.slane %v9443_v2, 5  ;;  %v4411_v2 = vrot.slane %v10764_v48, 4 }
 0x12d   : > { %8246 = vmatmul.mubr.bf16.vlgmr.msra.gmra.mxu1 %v7340_v62  ;;  %v9593_v62 = vld [vmem:[#allocation2 + $0x9c] sm:$0xe]  ;;  %10795 = vst [vmem:[#allocation14_spill] sm:$0xff] %v9608_v0  ;;  %v4412_v58 = vrot.slane %v9583_v55, 5  ;;  %v10805_v55 = vrot.slane %v9484_v34, 5  ;;  %v10807_v48 = vrot.slane %v9493_v47, 9 }
 0x12e   : > { %v3847_v9 = vsel %vm8987_vm13, %v3842_v17, %v3846_v61  ;;  %v10791_v61 = vrot.slane %v9524_v63, 5  ;;  %8326 = vmatpush3.bf16.msra.mxu1 %v9321_v31  ;;  %8249 = vmatprep.mubr.bf16.mxu1 %v7341_v49  ;;  %v9597_v17 = vld [vmem:[#allocation2 + $0xa4] sm:$0x1]  ;;  %v10794_v31 = vrot.slane %v9426_v59, 5  ;;  %v10798_v59 = vrot.slane %v9430_v3, 5 }
 0x12f   : > { %v7298_v39 = vcombine.low %v3837_v27, %v3847_v9  ;;  %v9595_v27 = vld [vmem:[#allocation2 + $0xa0] sm:$0xf]  ;;  %v9599_v9 = vpop.f32.mrf.mxu0  ;;  %8327 = vmatprep.subr.bf16.mxu1 %v8540_v11  ;;  %v9640_v3 = vld [vmem:[#allocation2 + $0xa8] sm:$0xe]  ;;  %v10808_v34 = vrot.slane %v9498_v19, 5  ;;  %v10810_v47 = vrot.slane %v9517_v23, 9 }
 0x130   : > { %v4404_v4 = vrot.slane %v10791_v61, 4  ;;  %v4364_v16 = vsel %vm8977_vm12, %v9461_v21, %v10794_v31  ;;  %v4416_v49 = vrot.slane %v9595_v27, 5  ;;  %v10796_v61 = vrot.slane %v9418_v22, 5  ;;  %v8538_v31 = vld [vmem:[#allocation2 + $0x30] sm:$0xff]   ;;  %v9727_v23 = vld [vmem:[%s10756_s3 + $0x1d8] sm:$0xff]  }
 0x131   : > { %8226 = vmatmul.mubr.bf16.gmra.mxu0 %v7298_v39  ;;  %v9623_v21 = vsel %vm8977_vm12, %v9490_v37, %v10798_v59  ;;  %v9631_v22 = vsel %vm8977_vm12, %v10800_v36, %v10799_v42  ;;  %v9644_v37 = vld [vmem:[#allocation2 + $0xb0] sm:$0x1]  ;;  %v4423_v27 = vrot.slane %v9642_v51, 5  ;;  %v4419_v59 = vrot.slane %v9597_v17, 5  ;;  %v9657_v42 = vpop.f32.mrf.mxu0 }
 0x132   : > { %8293 = vmatprep.mubr.bf16.mxu0 %v8534_v45  ;;  %v9616_v39 = vsel %vm8977_vm12, %v10797_v33, %v10796_v61  ;;  %v9638_v45 = vsel %vm8977_vm12, %v9515_v24, %v10801_v30  ;;  %v7319_v24 = vrot.slane %v9593_v62, 9  ;;  %8328 = vmatpush3.bf16.msra.mxu1 %v8540_v11  ;;  %v7343_v61 = vcombine.low %v4361_v28, %v4364_v16  ;;  %v9662_v36 = vld [vmem:[%s10756_s3 + $0x230] sm:$0xff]   ;;  %v9668_v11 = vpop.f32.mrf.mxu1  ;;  %v9697_v28 = vld [vmem:[#allocation2 + $0xb8] sm:$0xf] }
 0x133   : > { %v4418_v33 = vrot.slane %v4416_v49, 4  ;;  %8329 = vmatprep.subr.bf16.mxu1 %v8544_v52  ;;  %v7320_v62 = vrot.slane %v9640_v3, 9  ;;  %v4426_v30 = vrot.slane %v9644_v37, 5  ;;  %10802 = vst [vmem:[#allocation15_spill] sm:$0xff] %v9668_v11  ;;  %v10803_v17 = vrot.slane %v9464_v8, 5 }
 0x134   : > { %v10804_v16 = vrot.slane %v9452_v26, 9  ;;  %v9685_v3 = vsel %vm8977_vm12, %v9530_v12, %v10805_v55  ;;  %v10806_v37 = vrot.slane %v9472_v7, 5  ;;  %v9695_v26 = vld [vmem:[#allocation2 + $0xb4] sm:$0xe]  ;;  %v9704_v12 = vsel %vm8977_vm12, %v9534_v46, %v10808_v34  ;;  %v9815_v11 = vld [vmem:[#allocation2 + $0x18] sm:$0xe] }
 0x135   : > { %8250 = vmatmul.mubr.bf16.gmra.mxu1 %v7342_v32  ;;  %v10809_v7 = vrot.slane %v9486_v18, 5  ;;  %v4425_v55 = vrot.slane %v4423_v27, 4  ;;  %v4430_v32 = vrot.slane %v9697_v28, 5  ;;  %v10811_v19 = vrot.slane %v9520_v54, 5  ;;  %v9744_v28 = vpop.f32.mrf.mxu0 }
 0x136   : > { %v9678_v51 = vsel %vm8977_vm12, %v10804_v16, %v10803_v17  ;;  %v9693_v8 = vsel %vm8977_vm12, %v10807_v48, %v10806_v37  ;;  %v9714_v17 = vld [vmem:[#allocation2 + $0xbc] sm:$0x1]  ;;  %8253 = vmatprep.mubr.bf16.mxu1 %v7343_v61  ;;  %8330 = vmatpush3.bf16.msra.mxu1 %v8544_v52  ;;  %v10812_v18 = vrot.slane %v9524_v63, 5  ;;  %v10813_v16 = vrot.slane %v9537_v53, 9  ;;  %10815 = vst [vmem:[#allocation16_spill] sm:$0xff] %v9744_v28  ;;  %v9749_v63 = vld [vmem:[%s10756_s3 + $0x228] sm:$0xff]  }
 0x137   : > { %v9712_v48 = vsel %vm8977_vm12, %v10810_v47, %v10809_v7  ;;  %v9722_v46 = vsel %vm8977_vm12, %v9549_v10, %v10811_v19  ;;  %v10814_v54 = vrot.slane %v9541_v25, 5  ;;  %v7321_v10 = vrot.slane %v9695_v26, 9  ;;  %v4247_v37 = vld [vmem:[#allocation2 + $0xc0] sm:$0xe]  ;;  %8331 = vmatprep.subr.bf16.mxu1 %v9649_v14  ;;  %v9763_v34 = vpop.f32.mrf.mxu1  ;;  %v4248_v7 = vld [vmem:[#allocation2 + $0xc4] sm:$0xf]  ;;  %v9774_v19 = vpop.f32.mrf.mxu0 }
 0x138   : > { %v9735_v61 = vsel %vm8977_vm12, %v10813_v16, %v10812_v18  ;;  %v10816_v53 = vrot.slane %v9553_v44, 5  ;;  %v4432_v26 = vrot.slane %v4430_v32, 4  ;;  %10817 = vst [vmem:[#allocation17_spill] sm:$0xff] %v9763_v34  ;;  %v4249_v47 = vld [vmem:[#allocation2 + $0xc8] sm:$0x1]  ;;  %v9768_v44 = vsel %vm8977_vm12, %v7319_v24, %v4416_v49  ;;  %10818 = vst [vmem:[#allocation18_spill] sm:$0xff] %v9774_v19 }
 0x139   : > { %v9741_v52 = vsel %vm8977_vm12, %v4404_v4, %v10814_v54  ;;  %8294 = vmatmul.mubr.bf16.vlgmr.msra.gmra.mxu0 %v8535_v38  ;;  %v9760_v4 = vsel %vm8977_vm12, %v4411_v2, %v4412_v58  ;;  %v4433_v38 = vrot.slane %v9714_v17, 5  ;;  %v7322_v2 = vrot.slane %v4247_v37, 9  ;;  %v8539_v17 = vld [vmem:[#allocation2 + $0x3c] sm:$0xff]   ;;  %v9784_v49 = vld [vmem:[%s10756_s3 + $0x1d0] sm:$0xff]  }
 0x13a   : > { %v9756_v25 = vsel %vm8977_vm12, %v7318_v43, %v10816_v53  ;;  %8374 = vmatpush3.bf16.msra.mxu0 %v9328_v41  ;;  %8297 = vmatprep.mubr.bf16.mxu0 %v8538_v31  ;;  %v9772_v43 = vsel %vm8977_vm12, %v4418_v33, %v4419_v59  ;;  %v4437_v58 = vrot.slane %v4248_v7, 5  ;;  %v9788_v24 = vsel %vm8977_vm12, %v7320_v62, %v4423_v27  ;;  %v9794_v33 = vpop.f32.mrf.mxu1  ;;  %v9801_v53 = vpop.f32.mrf.mxu0  ;;  %v5247_v27 = vld [vmem:[#allocation2 + $0x18] sm:$0xf]  ;;  %v5249_v7 = vld [vmem:[#allocation2 + $0x20] sm:$0x1] }
 0x13b   : > { %8375 = vmatprep.subr.bf16.mxu0 %v9662_v36  ;;  %v9792_v31 = vsel %vm8977_vm12, %v4425_v55, %v4426_v30  ;;  %10819 = vst [vmem:[#allocation19_spill] sm:$0xff] %v9794_v33  ;;  %8332 = vmatpush3.bf16.msra.mxu1 %v9649_v14  ;;  %v4440_v37 = vrot.slane %v4249_v47, 5  ;;  %10820 = vst [vmem:[#allocation20_spill] sm:$0xff] %v9801_v53  ;;  %v5248_v55 = vld [vmem:[#allocation2 + $0x1c] sm:$0xf]  ;;  %v5328_v59 = vshrl.u32 %v5247_v27, 16 }
 0x13c   : > { %v4439_v54 = vrot.slane %v4437_v58, 4  ;;  %8333 = vmatprep.subr.bf16.mxu1 %v9727_v23  ;;  %v9808_v14 = vpop.f32.mrf.mxu1  ;;  %v5331_v41 = vshll.u32 %v5247_v27, 16  ;;  %v8542_v47 = vld [vmem:[#allocation2 + $0x48] sm:$0xff]   ;;  %v9813_v18 = vpop.f32.mrf.mxu0  ;;  %v5337_v33 = vshll.u32 %v5248_v55, 16  ;;  %v5341_v34 = vshrl.u32 %v5248_v55, 16  ;;  %v8543_v19 = vld [vmem:[#allocation2 + $0x54] sm:$0xff]  }
 0x13d   : > { %10821 = vst [vmem:[#allocation21_spill] sm:$0xff] %v9808_v14  ;;  %10822 = vst [vmem:[#allocation22_spill] sm:$0xff] %v9813_v18  ;;  %v5347_v62 = vshll.u32 %v5249_v7, 16  ;;  %v10823_v30 = vcombine.low %v9616_v39, %v9623_v21  ;;  %v9826_v27 = vsel %vm8977_vm12, %v7321_v10, %v4430_v32  ;;  %v9830_v55 = vsel %vm8977_vm12, %v4432_v26, %v4433_v38  ;;  %v6066_v39 = vld [vmem:[#allocation2 + $0x1c] sm:$0xf] }
 0x13e   : > { %8376 = vmatpush3.bf16.msra.mxu0 %v9662_v36  ;;  %v8549_v36 = vld [vmem:[%s10756_s3 + $0x220] sm:$0xff]   ;;  %v9832_v7 = vpop.f32.mrf.mxu1  ;;  %v5330_v16 = vrot.slane %v5328_v59, 4  ;;  %v5333_v18 = vrot.slane %v5331_v41, 5  ;;  %v10825_v21 = vcombine.low %v9631_v22, %v9638_v45  ;;  %v9844_v32 = vsel %vm8977_vm12, %v4439_v54, %v4440_v37  ;;  %v8103_v41 = vpop.f32.mrf.mxu0  ;;  %v8560_v22 = vld [vmem:[%s10756_s3 + $0x1c8] sm:$0xff]  }
 0x13f   : > { %8254 = vmatmul.mubr.bf16.gmra.mxu1 %v10823_v30  ;;  %8377 = vmatprep.subr.bf16.mxu0 %v9749_v63  ;;  %10824 = vst [vmem:[#allocation23_spill] sm:$0xff] %v9832_v7  ;;  %v9840_v30 = vsel %vm8977_vm12, %v7322_v2, %v4437_v58  ;;  %v9846_v10 = vrot.slane %v5337_v33, 5  ;;  %v5343_v26 = vrot.slane %v5341_v34, 4  ;;  %v6067_v38 = vld [vmem:[#allocation2 + $0x20] sm:$0x1]  ;;  %v7443_v2 = vrot.slane %v9815_v11, 9 }
 0x140   : > { %8257 = vmatprep.mubr.bf16.mxu1 %v10825_v21  ;;  %8334 = vmatpush3.bf16.msra.mxu1 %v9727_v23  ;;  %v5250_v59 = vld [vmem:[#allocation2 + $0x24] sm:$0xf]  ;;  %v5334_v45 = vor.u32 %v5333_v18, %v5330_v16  ;;  %v9852_v23 = vrot.slane %v5347_v62, 5  ;;  %v6195_v58 = vrot.slane %v6066_v39, 5  ;;  %v8055_v54 = vpop.f32.mrf.mxu1  ;;  %v5251_v33 = vld [vmem:[#allocation2 + $0x28] sm:$0xf]  ;;  %v2743_v62 = vpop.f32.mrf.mxu0 }
 0x141   : > { %8298 = vmatmul.mubr.bf16.gmra.mxu0 %v8539_v17  ;;  %8335 = vmatprep.subr.bf16.mxu1 %v9784_v49  ;;  %v8553_v34 = vld [vmem:[%s10756_s3 + $0x218] sm:$0xff]   ;;  %v5344_v17 = vor.u32 %v5343_v26, %v9846_v10  ;;  %v2275_v37 = vadd.f32 %v8055_v54, %v9344_v15  ;;  %v5252_v21 = vld [vmem:[#allocation2 + $0x2c] sm:$0x1]  ;;  %v5352_v18 = vshrl.u32 %v5250_v59, 16  ;;  %v5355_v16 = vshll.u32 %v5250_v59, 16 }
 0x142   : > { %8301 = vmatprep.mubr.bf16.mxu0 %v8542_v47  ;;  %8378 = vmatpush3.bf16.msra.mxu0 %v9749_v63  ;;  %v9861_v11 = vrot.slane %v5334_v45, 4  ;;  %v6197_v39 = vrot.slane %v6195_v58, 4  ;;  %v6198_v7 = vrot.slane %v6067_v38, 5  ;;  %v5361_v47 = vshll.u32 %v5251_v33, 16  ;;  %v6068_v14 = vld [vmem:[#allocation2 + $0x24] sm:$0xe]  ;;  %v2146_v63 = vpop.f32.mrf.mxu1  ;;  %v8104_v54 = vpop.f32.mrf.mxu0 }
 0x143   : > { %8379 = vmatprep.subr.bf16.mxu0 %v8549_v36  ;;  %v5345_v0 = vrot.slane %v5344_v17, 4  ;;  %v9864_v20 = vadd.f32 %v8103_v41, %v2275_v37  ;;  %v5354_v26 = vrot.slane %v5352_v18, 4  ;;  %v5357_v53 = vrot.slane %v5355_v16, 5  ;;  %v6069_v15 = vld [vmem:[#allocation2 + $0x28] sm:$0xf]  ;;  %v8564_v45 = vld [vmem:[%s10756_s3 + $0x1c0] sm:$0xff]  }
 0x144   : > { %8336 = vmatpush3.bf16.msra.mxu1 %v9784_v49  ;;  %v9873_v49 = vrot.slane %v5361_v47, 5  ;;  %v5365_v41 = vshrl.u32 %v5251_v33, 16  ;;  %v6070_v17 = vld [vmem:[#allocation2 + $0x2c] sm:$0x1]  ;;  %v8056_v37 = vpop.f32.mrf.mxu1  ;;  %v8546_v18 = vld [vmem:[#allocation2 + $0x60] sm:$0xff]   ;;  %v5340_v16 = vsel %vm8987_vm13, %v9861_v11, %v9846_v10  ;;  %v9881_v59 = vsel %vm8977_vm12, %v7443_v2, %v6195_v58  ;;  %v2746_v28 = vpop.f32.mrf.mxu0 }
 0x145   : > { %10826 = vst [vmem:[#allocation24_spill] sm:$0xff] %v9864_v20  ;;  %8337 = vmatprep.subr.bf16.mxu1 %v8560_v22  ;;  %v5358_v38 = vor.u32 %v5357_v53, %v5354_v26  ;;  %v5371_v20 = vshll.u32 %v5252_v21, 16  ;;  %v10827_v47 = vcombine.low %v9678_v51, %v9685_v3  ;;  %v9891_v33 = vsel %vm8977_vm12, %v6197_v39, %v6198_v7  ;;  %v5253_v53 = vld [vmem:[#allocation2 + $0x30] sm:$0xf] }
 0x146   : > { %8380 = vmatpush3.bf16.msra.mxu0 %v8549_v36  ;;  %v8557_v36 = vld [vmem:[%s10756_s3 + $0x210] sm:$0xff]   ;;  %v5367_v10 = vrot.slane %v5365_v41, 4  ;;  %v7444_v11 = vrot.slane %v6068_v14, 9  ;;  %v6202_v2 = vrot.slane %v6069_v15, 5  ;;  %v2149_v58 = vpop.f32.mrf.mxu1  ;;  %v10828_v21 = vcombine.low %v9693_v8, %v9704_v12 }
 0x147   : > { %8258 = vmatmul.mubr.bf16.gmra.mxu1 %v10827_v47  ;;  %8381 = vmatprep.subr.bf16.mxu0 %v8553_v34  ;;  %v5350_v51 = vsel %vm8987_vm13, %v5345_v0, %v9852_v23  ;;  %v9899_v3 = vrot.slane %v5358_v38, 4  ;;  %v6205_v26 = vrot.slane %v6070_v17, 5  ;;  %v2273_v7 = vadd.f32 %v2146_v63, %v9352_v29  ;;  %v5254_v12 = vld [vmem:[#allocation2 + $0x34] sm:$0xf] }
 0x148   : > { %8261 = vmatprep.mubr.bf16.mxu1 %v10828_v21  ;;  %8338 = vmatpush3.bf16.msra.mxu1 %v8560_v22  ;;  %v5368_v14 = vor.u32 %v5367_v10, %v9873_v49  ;;  %v9903_v39 = vrot.slane %v5371_v20, 5  ;;  %v6204_v15 = vrot.slane %v6202_v2, 4  ;;  %v2276_v8 = vadd.f32 %v8056_v37, %v9370_v60  ;;  %v8561_v60 = vld [vmem:[%s10756_s3 + $0x208] sm:$0xff]   ;;  %v6072_v17 = vld [vmem:[#allocation2 + $0x34] sm:$0xf] }
 0x149   : > { %8302 = vmatmul.mubr.bf16.gmra.mxu0 %v8543_v19  ;;  %8339 = vmatprep.subr.bf16.mxu1 %v8564_v45  ;;  %v9908_v0 = vsel %vm8977_vm12, %v7444_v11, %v6202_v2  ;;  %v9910_v22 = vadd.f32 %v2743_v62, %v2273_v7  ;;  %v2274_v29 = vadd.f32 %v2149_v58, %v9380_v5  ;;  %v5255_v19 = vld [vmem:[#allocation2 + $0x38] sm:$0x1]  ;;  %v5376_v23 = vshrl.u32 %v5253_v53, 16  ;;  %v8059_v63 = vpop.f32.mrf.mxu1  ;;  %v8107_v38 = vpop.f32.mrf.mxu0  ;;  %v6071_v10 = vld [vmem:[#allocation2 + $0x30] sm:$0xe] }
 0x14a   : > { %8305 = vmatprep.mubr.bf16.mxu0 %v8546_v18  ;;  %8382 = vmatpush3.bf16.msra.mxu0 %v8553_v34  ;;  %v5369_v20 = vrot.slane %v5368_v14, 4  ;;  %v9918_v34 = vsel %vm8977_vm12, %v6204_v15, %v6205_v26  ;;  %v9920_v41 = vadd.f32 %v8104_v54, %v2276_v8  ;;  %v5379_v62 = vshll.u32 %v5253_v53, 16  ;;  %v6073_v11 = vld [vmem:[#allocation2 + $0x38] sm:$0x1]  ;;  %v8547_v21 = vld [vmem:[#allocation2 + $0x6c] sm:$0xff]  }
 0x14b   : > { %10829 = vst [vmem:[#allocation25_spill] sm:$0xff] %v9910_v22  ;;  %8383 = vmatprep.subr.bf16.mxu0 %v8557_v36  ;;  %v9922_v5 = vcombine.low %v5340_v16, %v5350_v51  ;;  %v5378_v18 = vrot.slane %v5376_v23, 4  ;;  %v5385_v47 = vshll.u32 %v5254_v12, 16  ;;  %v9926_v2 = vpop.f32.mrf.mxu1  ;;  %v9928_v58 = vpop.f32.mrf.mxu0  ;;  %v5364_v54 = vsel %vm8987_vm13, %v9899_v3, %v9873_v49  ;;  %v5256_v51 = vld [vmem:[#allocation2 + $0x3c] sm:$0xf] }
 0x14c   : > { %10830 = vst [vmem:[#allocation26_spill] sm:$0xff] %v9920_v41  ;;  %8340 = vmatpush3.bf16.msra.mxu1 %v8564_v45  ;;  %v5381_v45 = vrot.slane %v5379_v62, 5  ;;  %v5389_v16 = vshrl.u32 %v5254_v12, 16  ;;  %v5395_v53 = vshll.u32 %v5255_v19, 16  ;;  %v8550_v26 = vld [vmem:[#allocation2 + $0x78] sm:$0xff]   ;;  %v9936_v14 = vadd.f32 %v2746_v28, %v2274_v29 }
 0x14d   : > { %v9938_v15 = vrot.slane %v5385_v47, 5  ;;  %v6209_v8 = vrot.slane %v6072_v17, 5  ;;  %v5257_v23 = vld [vmem:[#allocation2 + $0x40] sm:$0xf]  ;;  %v8060_v37 = vpop.f32.mrf.mxu1  ;;  %v9940_v41 = vpop.f32.mrf.mxu0  ;;  %v10832_v49 = vcombine.low %v9712_v48, %v9722_v46  ;;  %v5374_v28 = vsel %vm8987_vm13, %v5369_v20, %v9903_v39  ;;  %v5258_v19 = vld [vmem:[#allocation2 + $0x44] sm:$0x1] }
 0x14e   : > { %8384 = vmatpush3.bf16.msra.mxu0 %v8557_v36  ;;  %10831 = vst [vmem:[#allocation27_spill] sm:$0xff] %v9936_v14  ;;  %v8565_v36 = vld [vmem:[%s10756_s3 + $0x200] sm:$0xff]   ;;  %v5382_v3 = vor.u32 %v5381_v45, %v5378_v18  ;;  %v5391_v12 = vrot.slane %v5389_v16, 4  ;;  %v7445_v29 = vrot.slane %v6071_v10, 9  ;;  %v10833_v62 = vcombine.low %v9735_v61, %v9741_v52 }
 0x14f   : > { %8262 = vmatmul.mubr.bf16.gmra.mxu1 %v10832_v49  ;;  %8385 = vmatprep.subr.bf16.mxu0 %v8561_v60  ;;  %v6211_v17 = vrot.slane %v6209_v8, 4  ;;  %v6212_v48 = vrot.slane %v6073_v11, 5  ;;  %v2279_v46 = vadd.f32 %v8059_v63, %v9401_v6  ;;  %v5400_v47 = vshrl.u32 %v5256_v51, 16  ;;  %v6074_v49 = vld [vmem:[#allocation2 + $0x3c] sm:$0xe]  ;;  %v2165_v11 = vpop.f32.mrf.mxu1  ;;  %v9958_v16 = vpop.f32.mrf.mxu0 }
 0x150   : > { %8265 = vmatprep.mubr.bf16.mxu1 %v10833_v62  ;;  %v5392_v7 = vor.u32 %v5391_v12, %v9938_v15  ;;  %v5397_v14 = vrot.slane %v5395_v53, 5  ;;  %v5403_v22 = vshll.u32 %v5256_v51, 16  ;;  %v5409_v39 = vshll.u32 %v5257_v23, 16  ;;  %v6075_v20 = vld [vmem:[#allocation2 + $0x40] sm:$0xf] }
 0x151   : > { %8306 = vmatmul.mubr.bf16.gmra.mxu0 %v8547_v21  ;;  %v5383_v18 = vrot.slane %v5382_v3, 4  ;;  %v9956_v10 = vadd.f32 %v8107_v38, %v2279_v46  ;;  %v5402_v61 = vrot.slane %v5400_v47, 4  ;;  %v5413_v52 = vshrl.u32 %v5257_v23, 16  ;;  %v6076_v45 = vld [vmem:[#allocation2 + $0x44] sm:$0x1] }
 0x152   : > { %8309 = vmatprep.mubr.bf16.mxu0 %v8550_v26  ;;  %8386 = vmatpush3.bf16.msra.mxu0 %v8561_v60  ;;  %v9960_v6 = vcombine.low %v5364_v54, %v5374_v28  ;;  %v5393_v63 = vrot.slane %v5392_v7, 4  ;;  %v9964_v21 = vsel %vm8977_vm12, %v7445_v29, %v6209_v8  ;;  %v5405_v53 = vrot.slane %v5403_v22, 5  ;;  %v8551_v23 = vld [vmem:[#allocation2 + $0x84] sm:$0xff]   ;;  %v8554_v7 = vld [vmem:[#allocation2 + $0x90] sm:$0xff]  }
 0x153   : > { %8387 = vmatprep.subr.bf16.mxu0 %v8565_v36  ;;  %v9968_v60 = vsel %vm8977_vm12, %v6211_v17, %v6212_v48  ;;  %v9970_v38 = vrot.slane %v5409_v39, 5  ;;  %v5415_v51 = vrot.slane %v5413_v52, 4  ;;  %v5419_v26 = vshll.u32 %v5258_v19, 16  ;;  %v5259_v28 = vld [vmem:[#allocation2 + $0x48] sm:$0xf] }
 0x154   : > { %v5406_v3 = vor.u32 %v5405_v53, %v5402_v61  ;;  %v7446_v12 = vrot.slane %v6074_v49, 9  ;;  %v6216_v62 = vrot.slane %v6075_v20, 5  ;;  %v6219_v54 = vrot.slane %v6076_v45, 5  ;;  %v6078_v52 = vld [vmem:[#allocation2 + $0x4c] sm:$0xf] }
 0x155   : > { %v5388_v22 = vsel %vm8987_vm13, %v5383_v18, %v9938_v15  ;;  %v5398_v8 = vsel %vm8987_vm13, %v5393_v63, %v5397_v14  ;;  %v5416_v29 = vor.u32 %v5415_v51, %v9970_v38  ;;  %v2277_v19 = vadd.f32 %v9926_v2, %v9434_v13  ;;  %v8063_v17 = vpop.f32.mrf.mxu1  ;;  %v8111_v48 = vpop.f32.mrf.mxu0 }
 0x156   : > { %8388 = vmatpush3.bf16.msra.mxu0 %v8565_v36  ;;  %v10834_v46 = vcombine.low %v9756_v25, %v9760_v4  ;;  %v9983_v47 = vrot.slane %v5406_v3, 4  ;;  %v9985_v36 = vrot.slane %v5419_v26, 5  ;;  %v6218_v49 = vrot.slane %v6216_v62, 4  ;;  %v5260_v25 = vld [vmem:[#allocation2 + $0x4c] sm:$0xf] }
 0x157   : > { %v2280_v15 = vadd.f32 %v8060_v37, %v9474_v40  ;;  %v10835_v14 = vcombine.low %v9768_v44, %v9772_v43  ;;  %v7477_v13 = vcombine.low %v9964_v21, %v9968_v60  ;;  %v5417_v2 = vrot.slane %v5416_v29, 4  ;;  %v5261_v4 = vld [vmem:[#allocation2 + $0x50] sm:$0x1]  ;;  %v9996_v18 = vpop.f32.mrf.mxu1  ;;  %v9998_v61 = vpop.f32.mrf.mxu0 }
 0x158   : > { %8266 = vmatmul.mubr.bf16.gmra.mxu1 %v10834_v46  ;;  %v9994_v39 = vadd.f32 %v9928_v58, %v2277_v19  ;;  %v5424_v20 = vshrl.u32 %v5259_v28, 16  ;;  %v10002_v40 = vsel %vm8977_vm12, %v7446_v12, %v6216_v62  ;;  %v10006_v44 = vsel %vm8977_vm12, %v6218_v49, %v6219_v54  ;;  %v6077_v58 = vld [vmem:[#allocation2 + $0x48] sm:$0xe]  ;;  %v6079_v26 = vld [vmem:[#allocation2 + $0x50] sm:$0x1] }
 0x159   : > { %8269 = vmatprep.mubr.bf16.mxu1 %v10835_v14  ;;  %8310 = vmatmul.mubr.bf16.gmra.mxu0 %v8551_v23  ;;  %v10009_v43 = vadd.f32 %v9940_v41, %v2280_v15  ;;  %v5427_v37 = vshll.u32 %v5259_v28, 16  ;;  %v10011_v45 = vcombine.low %v5388_v22, %v5398_v8  ;;  %v5412_v63 = vsel %vm8987_vm13, %v9983_v47, %v9970_v38  ;;  %v10018_v23 = vpop.f32.mrf.mxu1  ;;  %v10020_v3 = vpop.f32.mrf.mxu0  ;;  %v5262_v28 = vld [vmem:[#allocation2 + $0x54] sm:$0xf]  ;;  %v5263_v47 = vld [vmem:[#allocation2 + $0x58] sm:$0xf]  ;;  %v8558_v49 = vld [vmem:[#allocation2 + $0xa8] sm:$0xff]  }
 0x15a   : > { %8313 = vmatprep.mubr.bf16.mxu0 %v8554_v7  ;;  %v2278_v53 = vadd.f32 %v2165_v11, %v9501_v56  ;;  %v5426_v51 = vrot.slane %v5424_v20, 4  ;;  %v5422_v41 = vsel %vm8987_vm13, %v5417_v2, %v9985_v36  ;;  %v5433_v62 = vshll.u32 %v5260_v25, 16  ;;  %v8555_v11 = vld [vmem:[#allocation2 + $0x9c] sm:$0xff]  }
 0x15b   : > { %v5429_v12 = vrot.slane %v5427_v37, 5  ;;  %v5437_v54 = vshrl.u32 %v5260_v25, 16  ;;  %v5443_v38 = vshll.u32 %v5261_v4, 16  ;;  %v7447_v22 = vrot.slane %v6077_v58, 9  ;;  %v10033_v25 = vpop.f32.mrf.mxu1  ;;  %v10035_v4 = vpop.f32.mrf.mxu0 }
 0x15c   : > { %v6223_v56 = vrot.slane %v6078_v52, 5  ;;  %v10027_v29 = vrot.slane %v5433_v62, 5  ;;  %v2283_v46 = vadd.f32 %v8063_v17, %v9526_v1  ;;  %v10031_v36 = vadd.f32 %v9958_v16, %v2278_v53  ;;  %v5264_v17 = vld [vmem:[#allocation2 + $0x5c] sm:$0x1]  ;;  %v6080_v16 = vld [vmem:[#allocation2 + $0x54] sm:$0xe] }
 0x15d   : > { %v5430_v8 = vor.u32 %v5429_v12, %v5426_v51  ;;  %v5439_v19 = vrot.slane %v5437_v54, 4  ;;  %v6226_v14 = vrot.slane %v6079_v26, 5  ;;  %v5448_v2 = vshrl.u32 %v5262_v28, 16  ;;  %v6081_v54 = vld [vmem:[#allocation2 + $0x58] sm:$0xf] }
 0x15e   : > { %v6225_v15 = vrot.slane %v6223_v56, 4  ;;  %v10836_v20 = vcombine.low %v9788_v24, %v9792_v31  ;;  %v10041_v1 = vadd.f32 %v8111_v48, %v2283_v46  ;;  %v5451_v52 = vshll.u32 %v5262_v28, 16  ;;  %v6082_v28 = vld [vmem:[#allocation2 + $0x5c] sm:$0x1] }
 0x15f   : > { %v5431_v37 = vrot.slane %v5430_v8, 4  ;;  %v5440_v58 = vor.u32 %v5439_v19, %v10027_v29  ;;  %v10837_v53 = vcombine.low %v9826_v27, %v9830_v55  ;;  %v5445_v51 = vrot.slane %v5443_v38, 5 }
 0x160   : > { %8270 = vmatmul.mubr.bf16.gmra.mxu1 %v10836_v20  ;;  %v5450_v26 = vrot.slane %v5448_v2, 4  ;;  %v5457_v12 = vshll.u32 %v5263_v47, 16  ;;  %v5461_v62 = vshrl.u32 %v5263_v47, 16  ;;  %v10046_v24 = vcombine.low %v5412_v63, %v5422_v41  ;;  %v8559_v2 = vld [vmem:[#allocation2 + $0xb4] sm:$0xff]  }
 0x161   : > { %8273 = vmatprep.mubr.bf16.mxu1 %v10837_v53  ;;  %8314 = vmatmul.mubr.bf16.gmra.mxu0 %v8555_v11  ;;  %v5441_v31 = vrot.slane %v5440_v58, 4  ;;  %v10050_v48 = vsel %vm8977_vm12, %v7447_v22, %v6223_v56  ;;  %v5453_v8 = vrot.slane %v5451_v52, 5  ;;  %v10054_v27 = vsel %vm8977_vm12, %v6225_v15, %v6226_v14  ;;  %v8067_v46 = vpop.f32.mrf.mxu1  ;;  %v10056_v47 = vpop.f32.mrf.mxu0  ;;  %v5265_v11 = vld [vmem:[#allocation2 + $0x60] sm:$0xf] }
 0x162   : > { %8317 = vmatprep.mubr.bf16.mxu0 %v8558_v49  ;;  %v5459_v55 = vrot.slane %v5457_v12, 5  ;;  %v5463_v38 = vrot.slane %v5461_v62, 4  ;;  %v5467_v19 = vshll.u32 %v5264_v17, 16  ;;  %v5436_v63 = vsel %vm8987_vm13, %v5431_v37, %v10027_v29  ;;  %v8562_v17 = vld [vmem:[#allocation2 + $0xc0] sm:$0xff]  }
 0x163   : > { %v5454_v41 = vor.u32 %v5453_v8, %v5450_v26  ;;  %v7448_v22 = vrot.slane %v6080_v16, 9  ;;  %v6230_v56 = vrot.slane %v6081_v54, 5  ;;  %v5446_v49 = vsel %vm8987_vm13, %v5441_v31, %v5445_v51  ;;  %v10065_v58 = vpop.f32.mrf.mxu0  ;;  %v5266_v37 = vld [vmem:[#allocation2 + $0x64] sm:$0xf]  ;;  %v10069_v16 = vpop.f32.mrf.mxu1  ;;  %v6083_v54 = vld [vmem:[#allocation2 + $0x60] sm:$0xe] }
 0x164   : > { %v5464_v15 = vor.u32 %v5463_v38, %v5459_v55  ;;  %v6233_v14 = vrot.slane %v6082_v28, 5  ;;  %v2281_v20 = vadd.f32 %v9996_v18, %v9555_v57  ;;  %v5469_v53 = vrot.slane %v5467_v19, 5  ;;  %v5267_v57 = vld [vmem:[#allocation2 + $0x68] sm:$0x1]  ;;  %v6084_v38 = vld [vmem:[#allocation2 + $0x64] sm:$0xf] }
 0x165   : > { %v5455_v52 = vrot.slane %v5454_v41, 4  ;;  %v6232_v12 = vrot.slane %v6230_v56, 4  ;;  %v2284_v29 = vadd.f32 %v10018_v23, %v9599_v9  ;;  %v5472_v18 = vshrl.u32 %v5265_v11, 16  ;;  %v10099_v41 = vpop.f32.mrf.mxu0  ;;  %v5271_v51 = vld [vmem:[#allocation2 + $0x78] sm:$0xf] }
 0x166   : > { %v5465_v26 = vrot.slane %v5464_v15, 4  ;;  %v10074_v62 = vadd.f32 %v9998_v61, %v2281_v20  ;;  %v10838_v31 = vcombine.low %v9840_v30, %v9844_v32  ;;  %v10079_v8 = vcombine.low %v5436_v63, %v5446_v49  ;;  %v6085_v61 = vld [vmem:[#allocation2 + $0x68] sm:$0x1] }
 0x167   : > { %v10083_v9 = vsel %vm8977_vm12, %v7448_v22, %v6230_v56  ;;  %v10086_v23 = vadd.f32 %v10020_v3, %v2284_v29  ;;  %v5475_v28 = vshll.u32 %v5265_v11, 16  ;;  %v5460_v19 = vsel %vm8987_vm13, %v5455_v52, %v5459_v55  ;;  %v5268_v11 = vld [vmem:[#allocation2 + $0x6c] sm:$0xf]  ;;  %v8068_v55 = vpop.f32.mrf.mxu1 }
 0x168   : > { %8274 = vmatmul.mubr.bf16.gmra.mxu1 %v10838_v31  ;;  %v10093_v30 = vsel %vm8977_vm12, %v6232_v12, %v6233_v14  ;;  %v10097_v32 = vadd.f32 %v10033_v25, %v9657_v42  ;;  %v5474_v63 = vrot.slane %v5472_v18, 4  ;;  %v5470_v3 = vsel %vm8987_vm13, %v5465_v26, %v5469_v53  ;;  %v10839_v12 = vld [vmem:[#allocation16_spill] sm:$0xff]  ;;  %v8563_v18 = vld [vmem:[#allocation2 + $0xcc] sm:$0xff]   ;;  %v5270_v26 = vld [vmem:[#allocation2 + $0x74] sm:$0x1] }
 0x169   : > { %8341 = vmatprep.mubr.bf16.mxu1 %v9922_v5  ;;  %8318 = vmatmul.mubr.bf16.gmra.mxu0 %v8559_v2  ;;  %v5477_v22 = vrot.slane %v5475_v28, 5  ;;  %v5481_v5 = vshll.u32 %v5266_v37, 16  ;;  %v5485_v56 = vshrl.u32 %v5266_v37, 16  ;;  %v5491_v49 = vshll.u32 %v5267_v57, 16  ;;  %v5269_v2 = vld [vmem:[#allocation2 + $0x70] sm:$0xf]  ;;  %v10110_v57 = vpop.f32.mrf.mxu0 }
 0x16a   : > { %8321 = vmatprep.mubr.bf16.mxu0 %v8562_v17  ;;  %v7449_v15 = vrot.slane %v6083_v54, 9  ;;  %v6237_v14 = vrot.slane %v6084_v38, 5  ;;  %v6240_v20 = vrot.slane %v6085_v61, 5  ;;  %v2287_v29 = vadd.f32 %v8067_v46, %v10839_v12  ;;  %v6086_v46 = vld [vmem:[#allocation2 + $0x6c] sm:$0xe] }
 0x16b   : > { %v5478_v52 = vor.u32 %v5477_v22, %v5474_v63  ;;  %v10103_v42 = vrot.slane %v5481_v5, 5  ;;  %v5487_v25 = vrot.slane %v5485_v56, 4  ;;  %v10106_v31 = vcombine.low %v5460_v19, %v5470_v3  ;;  %v6087_v63 = vld [vmem:[#allocation2 + $0x70] sm:$0xf]  ;;  %v10116_v22 = vpop.f32.mrf.mxu1  ;;  %v6088_v12 = vld [vmem:[#allocation2 + $0x74] sm:$0x1] }
 0x16c   : > { %v6239_v37 = vrot.slane %v6237_v14, 4  ;;  %v5496_v17 = vshrl.u32 %v5268_v11, 16  ;;  %v10114_v38 = vadd.f32 %v10056_v47, %v2287_v29  ;;  %v5499_v61 = vshll.u32 %v5268_v11, 16 }
 0x16d   : > { %v5479_v54 = vrot.slane %v5478_v52, 4  ;;  %v5488_v28 = vor.u32 %v5487_v25, %v10103_v42  ;;  %v5493_v19 = vrot.slane %v5491_v49, 5  ;;  %v5505_v5 = vshll.u32 %v5269_v2, 16 }
 0x16e   : > { %v5498_v3 = vrot.slane %v5496_v17, 4  ;;  %v5509_v56 = vshrl.u32 %v5269_v2, 16  ;;  %v10121_v52 = vsel %vm8977_vm12, %v7449_v15, %v6237_v14  ;;  %v10125_v47 = vsel %vm8977_vm12, %v6239_v37, %v6240_v20 }
 0x16f   : > { %v5489_v53 = vrot.slane %v5488_v28, 4  ;;  %v5501_v11 = vrot.slane %v5499_v61, 5  ;;  %v5507_v25 = vrot.slane %v5505_v5, 5  ;;  %v5515_v29 = vshll.u32 %v5270_v26, 16  ;;  %v10128_v2 = vpop.f32.mrf.mxu0 }
 0x170   : > { %8342 = vmatmul.mubr.bf16.vlgmr.msra.gmra.mxu1 %v9960_v6  ;;  %v5511_v49 = vrot.slane %v5509_v56, 4  ;;  %v7450_v17 = vrot.slane %v6086_v46, 9  ;;  %v5484_v6 = vsel %vm8987_vm13, %v5479_v54, %v10103_v42  ;;  %v6244_v14 = vrot.slane %v6087_v63, 5  ;;  %v10841_v46 = vld [vmem:[#allocation18_spill] sm:$0xff] }
 0x171   : > { %8345 = vmatprep.mubr.bf16.mxu1 %v10011_v45  ;;  %8322 = vmatmul.mubr.bf16.gmra.mxu0 %v8563_v18  ;;  %v5502_v15 = vor.u32 %v5501_v11, %v5498_v3  ;;  %v6247_v28 = vrot.slane %v6088_v12, 5  ;;  %v8071_v20 = vpop.f32.mrf.mxu1  ;;  %v10840_v37 = vcombine.low %v9881_v59, %v9891_v33  ;;  %v5494_v45 = vsel %vm8987_vm13, %v5489_v53, %v5493_v19  ;;  %v10140_v5 = vpop.f32.mrf.mxu0  ;;  %v10842_v3 = vld [vmem:[#allocation20_spill] sm:$0xff] }
 0x172   : > { %v5512_v26 = vor.u32 %v5511_v49, %v5507_v25  ;;  %v5517_v61 = vrot.slane %v5515_v29, 5  ;;  %v2285_v18 = vadd.f32 %v10069_v16, %v10841_v46  ;;  %v10144_v54 = vsel %vm8977_vm12, %v7450_v17, %v6244_v14  ;;  %v5272_v59 = vld [vmem:[#allocation2 + $0x7c] sm:$0xf]  ;;  %v5273_v16 = vld [vmem:[#allocation2 + $0x80] sm:$0x1] }
 0x173   : > { %8389 = vmatprep.mubr.bf16.mxu0 %v10840_v37  ;;  %v5503_v42 = vrot.slane %v5502_v15, 4  ;;  %v6246_v63 = vrot.slane %v6244_v14, 4  ;;  %v2288_v56 = vadd.f32 %v8068_v55, %v10842_v3  ;;  %v10147_v33 = vpop.f32.mrf.mxu1  ;;  %v5520_v11 = vshrl.u32 %v5271_v51, 16  ;;  %v6089_v49 = vld [vmem:[#allocation2 + $0x78] sm:$0xe]  ;;  %v10154_v29 = vpop.f32.mrf.mxu0 }
 0x174   : > { %v5513_v19 = vrot.slane %v5512_v26, 4  ;;  %v10152_v12 = vadd.f32 %v10065_v58, %v2285_v18  ;;  %v5523_v14 = vshll.u32 %v5271_v51, 16  ;;  %v6090_v37 = vld [vmem:[#allocation2 + $0x7c] sm:$0xf]  ;;  %v6091_v26 = vld [vmem:[#allocation2 + $0x80] sm:$0x1]  ;;  %v7425_v46 = vcombine.low %v5484_v6, %v5494_v45 }
 0x175   : > { %v5508_v17 = vsel %vm8987_vm13, %v5503_v42, %v5507_v25  ;;  %v10160_v55 = vsel %vm8977_vm12, %v6246_v63, %v6247_v28  ;;  %v10163_v15 = vadd.f32 %v10099_v41, %v2288_v56  ;;  %v10165_v58 = vpop.f32.mrf.mxu1  ;;  %v5522_v25 = vrot.slane %v5520_v11, 4  ;;  %v5274_v51 = vld [vmem:[#allocation2 + $0x84] sm:$0xf]  ;;  %v10175_v7 = vpop.f32.mrf.mxu0 }
 0x176   : > { %v5518_v18 = vsel %vm8987_vm13, %v5513_v19, %v5517_v61  ;;  %v5525_v42 = vrot.slane %v5523_v14, 5  ;;  %v5529_v41 = vshll.u32 %v5272_v59, 16  ;;  %v5533_v63 = vshrl.u32 %v5272_v59, 16 }
 0x177   : > { %v10172_v28 = vcombine.low %v5508_v17, %v5518_v18  ;;  %v5539_v56 = vshll.u32 %v5273_v16, 16  ;;  %v7451_v53 = vrot.slane %v6089_v49, 9  ;;  %v6251_v6 = vrot.slane %v6090_v37, 5  ;;  %v10844_v17 = vld [vmem:[#allocation4_spill] sm:$0xff]  ;;  %v5275_v18 = vld [vmem:[#allocation2 + $0x88] sm:$0xf]  ;;  %v2213_v59 = vpop.f32.mrf.mxu1 }
 0x178   : > { %8346 = vmatmul.mubr.bf16.gmra.mxu1 %v10046_v24  ;;  %v6254_v45 = vrot.slane %v6091_v26, 5  ;;  %v10843_v61 = vcombine.low %v9908_v0, %v9918_v34  ;;  %v5526_v19 = vor.u32 %v5525_v42, %v5522_v25  ;;  %v5531_v24 = vrot.slane %v5529_v41, 5  ;;  %v5276_v37 = vld [vmem:[#allocation2 + $0x8c] sm:$0x1]  ;;  %v6092_v42 = vld [vmem:[#allocation2 + $0x84] sm:$0xe] }
 0x179   : > { %8349 = vmatprep.mubr.bf16.mxu1 %v10079_v8  ;;  %v5535_v11 = vrot.slane %v5533_v63, 4  ;;  %v2291_v14 = vadd.f32 %v8071_v20, %v10844_v17  ;;  %v5541_v8 = vrot.slane %v5539_v56, 5  ;;  %v10186_v16 = vsel %vm8977_vm12, %v7451_v53, %v6251_v6  ;;  %v6093_v41 = vld [vmem:[#allocation2 + $0x88] sm:$0xf]  ;;  %v6094_v53 = vld [vmem:[#allocation2 + $0x8c] sm:$0x1] }
 0x17a   : > { %8390 = vmatmul.mubr.bf16.vlgmr.msra.gmra.mxu0 %v10843_v61  ;;  %v6253_v49 = vrot.slane %v6251_v6, 4  ;;  %v5544_v0 = vshrl.u32 %v5274_v51, 16  ;;  %v5527_v34 = vrot.slane %v5526_v19, 4  ;;  %v5547_v20 = vshll.u32 %v5274_v51, 16 }
 0x17b   : > { %8393 = vmatprep.mubr.bf16.mxu0 %v7477_v13  ;;  %v5536_v26 = vor.u32 %v5535_v11, %v5531_v24  ;;  %v10189_v25 = vadd.f32 %v10128_v2, %v2291_v14  ;;  %v5553_v13 = vshll.u32 %v5275_v18, 16  ;;  %v5557_v63 = vshrl.u32 %v5275_v18, 16  ;;  %v10195_v56 = vpop.f32.mrf.mxu0 }
 0x17c   : > { %v10193_v21 = vsel %vm8977_vm12, %v6253_v49, %v6254_v45  ;;  %v5546_v60 = vrot.slane %v5544_v0, 4  ;;  %v5532_v6 = vsel %vm8987_vm13, %v5527_v34, %v5531_v24  ;;  %v5549_v51 = vrot.slane %v5547_v20, 5  ;;  %v8075_v19 = vpop.f32.mrf.mxu1  ;;  %v5277_v34 = vld [vmem:[#allocation2 + $0x90] sm:$0xf] }
 0x17d   : > { %v5537_v61 = vrot.slane %v5536_v26, 4  ;;  %v5555_v11 = vrot.slane %v5553_v13, 5  ;;  %v5559_v17 = vrot.slane %v5557_v63, 4  ;;  %v5563_v14 = vshll.u32 %v5276_v37, 16  ;;  %v10201_v49 = vpop.f32.mrf.mxu0  ;;  %v10845_v63 = vld [vmem:[#allocation5_spill] sm:$0xff] }
 0x17e   : > { %v7452_v45 = vrot.slane %v6092_v42, 9  ;;  %v5550_v0 = vor.u32 %v5549_v51, %v5546_v60  ;;  %v6258_v3 = vrot.slane %v6093_v41, 5  ;;  %v6261_v24 = vrot.slane %v6094_v53, 5  ;;  %v10206_v26 = vpop.f32.mrf.mxu1  ;;  %v10847_v53 = vld [vmem:[#allocation6_spill] sm:$0xff] }
 0x17f   : > { %v5542_v18 = vsel %vm8987_vm13, %v5537_v61, %v5541_v8  ;;  %v5560_v2 = vor.u32 %v5559_v17, %v5555_v11  ;;  %v5565_v13 = vrot.slane %v5563_v14, 5  ;;  %v2289_v37 = vadd.f32 %v10147_v33, %v10845_v63  ;;  %v10210_v42 = vpop.f32.mrf.mxu0  ;;  %v5279_v14 = vld [vmem:[#allocation2 + $0x98] sm:$0x1] }
 0x180   : > { %8350 = vmatmul.mubr.bf16.gmra.mxu1 %v10106_v31  ;;  %v7427_v20 = vcombine.low %v5532_v6, %v5542_v18  ;;  %v10846_v31 = vcombine.low %v10002_v40, %v10006_v44  ;;  %v5551_v8 = vrot.slane %v5550_v0, 4  ;;  %v10217_v41 = vsel %vm8977_vm12, %v7452_v45, %v6258_v3  ;;  %v5278_v6 = vld [vmem:[#allocation2 + $0x94] sm:$0xf]  ;;  %v10221_v61 = vpop.f32.mrf.mxu1  ;;  %v6095_v18 = vld [vmem:[#allocation2 + $0x90] sm:$0xe] }
 0x181   : > { %8353 = vmatprep.mubr.bf16.mxu1 %v7425_v46  ;;  %v6260_v60 = vrot.slane %v6258_v3, 4  ;;  %v2292_v46 = vadd.f32 %v10165_v58, %v10847_v53  ;;  %v10848_v33 = vcombine.low %v10050_v48, %v10054_v27  ;;  %v5561_v51 = vrot.slane %v5560_v2, 4  ;;  %v10849_v44 = vld [vmem:[#allocation7_spill] sm:$0xff]  ;;  %v6097_v2 = vld [vmem:[#allocation2 + $0x98] sm:$0x1] }
 0x182   : > { %8394 = vmatmul.mubr.bf16.gmra.mxu0 %v10846_v31  ;;  %v10227_v40 = vadd.f32 %v10140_v5, %v2289_v37  ;;  %v2290_v17 = vadd.f32 %v2213_v59, %v10849_v44  ;;  %v5568_v45 = vshrl.u32 %v5277_v34, 16  ;;  %v5556_v3 = vsel %vm8987_vm13, %v5551_v8, %v5555_v11  ;;  %v6096_v27 = vld [vmem:[#allocation2 + $0x94] sm:$0xf]  ;;  %v10246_v37 = vpop.f32.mrf.mxu1  ;;  %v5281_v59 = vld [vmem:[#allocation2 + $0xa0] sm:$0xf] }
 0x183   : > { %8397 = vmatprep.mubr.bf16.mxu0 %v10848_v33  ;;  %v10234_v58 = vsel %vm8977_vm12, %v6260_v60, %v6261_v24  ;;  %v10237_v0 = vadd.f32 %v10154_v29, %v2292_v46  ;;  %v5571_v48 = vshll.u32 %v5277_v34, 16  ;;  %v5566_v5 = vsel %vm8987_vm13, %v5561_v51, %v5565_v13  ;;  %v10248_v24 = vpop.f32.mrf.mxu0  ;;  %v5280_v60 = vld [vmem:[#allocation2 + $0x9c] sm:$0xf] }
 0x184   : > { %v10244_v63 = vadd.f32 %v10175_v7, %v2290_v17  ;;  %v5570_v11 = vrot.slane %v5568_v45, 4  ;;  %v7428_v31 = vcombine.low %v5556_v3, %v5566_v5  ;;  %v5577_v8 = vshll.u32 %v5278_v6, 16  ;;  %v10851_v17 = vld [vmem:[#allocation8_spill] sm:$0xff] }
 0x185   : > { %v5573_v29 = vrot.slane %v5571_v48, 5  ;;  %v5581_v34 = vshrl.u32 %v5278_v6, 16  ;;  %v5587_v53 = vshll.u32 %v5279_v14, 16  ;;  %v7453_v46 = vrot.slane %v6095_v18, 9  ;;  %v5282_v48 = vld [vmem:[#allocation2 + $0xa4] sm:$0x1] }
 0x186   : > { %10850 = vst [vmem:[#allocation16_spill] sm:$0xff] %v10244_v63  ;;  %v6265_v33 = vrot.slane %v6096_v27, 5  ;;  %v6268_v13 = vrot.slane %v6097_v2, 5  ;;  %v5579_v44 = vrot.slane %v5577_v8, 5  ;;  %v2295_v45 = vadd.f32 %v8075_v19, %v10851_v17 }
 0x187   : > { %v5574_v51 = vor.u32 %v5573_v29, %v5570_v11  ;;  %v5583_v7 = vrot.slane %v5581_v34, 4  ;;  %v5589_v63 = vrot.slane %v5587_v53, 5  ;;  %v5592_v14 = vshrl.u32 %v5280_v60, 16  ;;  %v10258_v27 = vpop.f32.mrf.mxu0  ;;  %v6098_v11 = vld [vmem:[#allocation2 + $0x9c] sm:$0xe] }
 0x188   : > { %8354 = vmatmul.mubr.bf16.gmra.mxu1 %v10172_v28  ;;  %v10254_v3 = vsel %vm8977_vm12, %v7453_v46, %v6265_v33  ;;  %v6267_v6 = vrot.slane %v6265_v33, 4  ;;  %v10256_v18 = vpop.f32.mrf.mxu1  ;;  %v10852_v28 = vcombine.low %v10083_v9, %v10093_v30  ;;  %v5595_v5 = vshll.u32 %v5280_v60, 16  ;;  %v6099_v29 = vld [vmem:[#allocation2 + $0xa0] sm:$0xf]  ;;  %v6100_v30 = vld [vmem:[#allocation2 + $0xa4] sm:$0x1] }
 0x189   : > { %8357 = vmatprep.mubr.bf16.mxu1 %v7427_v20  ;;  %v5575_v2 = vrot.slane %v5574_v51, 4  ;;  %v5584_v19 = vor.u32 %v5583_v7, %v5579_v44  ;;  %v10264_v20 = vadd.f32 %v10195_v56, %v2295_v45  ;;  %v10854_v8 = vcombine.low %v10121_v52, %v10125_v47  ;;  %v10273_v33 = vpop.f32.mrf.mxu0  ;;  %v10855_v51 = vld [vmem:[#allocation9_spill] sm:$0xff] }
 0x18a   : > { %8398 = vmatmul.mubr.bf16.gmra.mxu0 %v10852_v28  ;;  %v10271_v34 = vsel %vm8977_vm12, %v6267_v6, %v6268_v13  ;;  %v5594_v53 = vrot.slane %v5592_v14, 4  ;;  %v5601_v46 = vshll.u32 %v5281_v59, 16  ;;  %v5605_v9 = vshrl.u32 %v5281_v59, 16  ;;  %v10279_v52 = vpop.f32.mrf.mxu1 }
 0x18b   : > { %10853 = vst [vmem:[#allocation18_spill] sm:$0xff] %v10264_v20  ;;  %8401 = vmatprep.mubr.bf16.mxu0 %v10854_v8  ;;  %v5580_v56 = vsel %vm8987_vm13, %v5575_v2, %v5579_v44  ;;  %v5585_v60 = vrot.slane %v5584_v19, 4  ;;  %v5597_v7 = vrot.slane %v5595_v5, 5  ;;  %v5611_v13 = vshll.u32 %v5282_v48, 16  ;;  %v5283_v8 = vld [vmem:[#allocation2 + $0xa8] sm:$0xf]  ;;  %v10283_v20 = vpop.f32.mrf.mxu0 }
 0x18c   : > { %v5603_v47 = vrot.slane %v5601_v46, 5  ;;  %v5607_v17 = vrot.slane %v5605_v9, 4  ;;  %v7454_v45 = vrot.slane %v6098_v11, 9  ;;  %v6272_v14 = vrot.slane %v6099_v29, 5  ;;  %v10293_v9 = vpop.f32.mrf.mxu1 }
 0x18d   : > { %v5590_v59 = vsel %vm8987_vm13, %v5585_v60, %v5589_v63  ;;  %v5598_v6 = vor.u32 %v5597_v7, %v5594_v53  ;;  %v6275_v28 = vrot.slane %v6100_v30, 5  ;;  %v5613_v19 = vrot.slane %v5611_v13, 5  ;;  %v10856_v63 = vld [vmem:[#allocation10_spill] sm:$0xff]  ;;  %v10858_v60 = vld [vmem:[#allocation11_spill] sm:$0xff] }
 0x18e   : > { %v7429_v44 = vcombine.low %v5580_v56, %v5590_v59  ;;  %v5608_v2 = vor.u32 %v5607_v17, %v5603_v47  ;;  %v2293_v5 = vadd.f32 %v10206_v26, %v10855_v51  ;;  %v10289_v48 = vsel %vm8977_vm12, %v7454_v45, %v6272_v14  ;;  %v5284_v53 = vld [vmem:[#allocation2 + $0xac] sm:$0xf]  ;;  %v6101_v7 = vld [vmem:[#allocation2 + $0xa8] sm:$0xe] }
 0x18f   : > { %v5599_v46 = vrot.slane %v5598_v6, 4  ;;  %v6274_v11 = vrot.slane %v6272_v14, 4  ;;  %v2296_v29 = vadd.f32 %v10221_v61, %v10856_v63  ;;  %v2294_v26 = vadd.f32 %v10246_v37, %v10858_v60  ;;  %v6102_v59 = vld [vmem:[#allocation2 + $0xac] sm:$0xf]  ;;  %v6103_v37 = vld [vmem:[#allocation2 + $0xb0] sm:$0x1]  ;;  %v10312_v6 = vpop.f32.mrf.mxu0 }
 0x190   : > { %8358 = vmatmul.mubr.bf16.gmra.mxu1 %v7428_v31  ;;  %v5609_v30 = vrot.slane %v5608_v2, 4  ;;  %v10296_v56 = vadd.f32 %v10201_v49, %v2293_v5  ;;  %v5285_v31 = vld [vmem:[#allocation2 + $0xb0] sm:$0x1]  ;;  %v5616_v51 = vshrl.u32 %v5283_v8, 16  ;;  %v10859_v17 = vcombine.low %v10144_v54, %v10160_v55  ;;  %v5286_v5 = vld [vmem:[#allocation2 + $0xb4] sm:$0xf] }
 0x191   : > { %8361 = vmatprep.mubr.bf16.mxu1 %v7429_v44  ;;  %v5604_v61 = vsel %vm8987_vm13, %v5599_v46, %v5603_v47  ;;  %v10307_v13 = vsel %vm8977_vm12, %v6274_v11, %v6275_v28  ;;  %v10310_v49 = vadd.f32 %v10210_v42, %v2296_v29  ;;  %v5619_v45 = vshll.u32 %v5283_v8, 16  ;;  %v2245_v46 = vpop.f32.mrf.mxu1 }
 0x192   : > { %10857 = vst [vmem:[#allocation20_spill] sm:$0xff] %v10296_v56  ;;  %8402 = vmatmul.mubr.bf16.gmra.mxu0 %v10859_v17  ;;  %v10861_v14 = vcombine.low %v10186_v16, %v10193_v21  ;;  %v5614_v54 = vsel %vm8987_vm13, %v5609_v30, %v5613_v19  ;;  %v10322_v47 = vadd.f32 %v10248_v24, %v2294_v26  ;;  %v5618_v42 = vrot.slane %v5616_v51, 4  ;;  %v10863_v30 = vld [vmem:[#allocation12_spill] sm:$0xff] }
 0x193   : > { %10860 = vst [vmem:[#allocation4_spill] sm:$0xff] %v10310_v49  ;;  %v7430_v28 = vcombine.low %v5604_v61, %v5614_v54  ;;  %v5621_v8 = vrot.slane %v5619_v45, 5  ;;  %v5625_v44 = vshll.u32 %v5284_v53, 16  ;;  %v5629_v2 = vshrl.u32 %v5284_v53, 16  ;;  %v5288_v61 = vld [vmem:[#allocation2 + $0xbc] sm:$0x1] }
 0x194   : > { %8405 = vmatprep.mubr.bf16.mxu0 %v10861_v14  ;;  %10862 = vst [vmem:[#allocation5_spill] sm:$0xff] %v10322_v47  ;;  %v5635_v11 = vshll.u32 %v5285_v31, 16  ;;  %v7455_v63 = vrot.slane %v6101_v7, 9  ;;  %v6279_v16 = vrot.slane %v6102_v59, 5  ;;  %v6282_v21 = vrot.slane %v6103_v37, 5 }
 0x195   : > { %v5622_v29 = vor.u32 %v5621_v8, %v5618_v42  ;;  %v5627_v60 = vrot.slane %v5625_v44, 5  ;;  %v5631_v19 = vrot.slane %v5629_v2, 4  ;;  %v2299_v17 = vadd.f32 %v10256_v18, %v10863_v30  ;;  %v5287_v14 = vld [vmem:[#allocation2 + $0xb8] sm:$0xf]  ;;  %v6104_v54 = vld [vmem:[#allocation2 + $0xb4] sm:$0xe] }
 0x196   : > { %v10326_v24 = vpop.f32.mrf.mxu0  ;;  %v5637_v26 = vrot.slane %v5635_v11, 5  ;;  %v10330_v51 = vsel %vm8977_vm12, %v7455_v63, %v6279_v16  ;;  %v6281_v53 = vrot.slane %v6279_v16, 4  ;;  %v5640_v31 = vshrl.u32 %v5286_v5, 16  ;;  %v6105_v18 = vld [vmem:[#allocation2 + $0xb8] sm:$0xf] }
 0x197   : > { %v5623_v7 = vrot.slane %v5622_v29, 4  ;;  %v5632_v45 = vor.u32 %v5631_v19, %v5627_v60  ;;  %v10333_v59 = vadd.f32 %v10258_v27, %v2299_v17  ;;  %v5643_v37 = vshll.u32 %v5286_v5, 16  ;;  %v10335_v42 = vpop.f32.mrf.mxu1  ;;  %v6106_v16 = vld [vmem:[#allocation2 + $0xbc] sm:$0x1] }
 0x198   : > { %8362 = vmatmul.mubr.bf16.gmra.mxu1 %v7430_v28  ;;  %v10337_v8 = vpop.f32.mrf.mxu0  ;;  %v6283_v44 = vsel %vm8977_vm12, %v6281_v53, %v6282_v21  ;;  %v5642_v2 = vrot.slane %v5640_v31, 4  ;;  %v5649_v11 = vshll.u32 %v5287_v14, 16  ;;  %v5653_v63 = vshrl.u32 %v5287_v14, 16 }
 0x199   : > { %10864 = vst [vmem:[#allocation6_spill] sm:$0xff] %v10333_v59  ;;  %v10865_v28 = vcombine.low %v10217_v41, %v10234_v58  ;;  %v5628_v27 = vsel %vm8987_vm13, %v5623_v7, %v5627_v60  ;;  %v5633_v5 = vrot.slane %v5632_v45, 4  ;;  %v7487_v29 = vcombine.low %v10330_v51, %v6283_v44  ;;  %v10347_v30 = vpop.f32.mrf.mxu1  ;;  %v5289_v51 = vld [vmem:[#allocation2 + $0xc0] sm:$0xf] }
 0x19a   : > { %v5645_v19 = vrot.slane %v5643_v37, 5  ;;  %v10349_v17 = vpop.f32.mrf.mxu0  ;;  %v10866_v21 = vcombine.low %v10254_v3, %v10271_v34  ;;  %v5651_v14 = vrot.slane %v5649_v11, 5  ;;  %v5655_v53 = vrot.slane %v5653_v63, 4  ;;  %v10867_v59 = vld [vmem:[#allocation13_spill] sm:$0xff] }
 0x19b   : > { %8406 = vmatmul.mubr.bf16.gmra.mxu0 %v10865_v28  ;;  %v5659_v31 = vshll.u32 %v5288_v61, 16  ;;  %v7456_v41 = vrot.slane %v6104_v54, 9  ;;  %v5638_v58 = vsel %vm8987_vm13, %v5633_v5, %v5637_v26  ;;  %v6286_v7 = vrot.slane %v6105_v18, 5  ;;  %v10356_v37 = vpop.f32.mrf.mxu1  ;;  %v10868_v54 = vld [vmem:[#allocation14_spill] sm:$0xff] }
 0x19c   : > { %8409 = vmatprep.mubr.bf16.mxu0 %v10866_v21  ;;  %v5646_v60 = vor.u32 %v5645_v19, %v5642_v2  ;;  %v6289_v45 = vrot.slane %v6106_v16, 5  ;;  %v7431_v44 = vcombine.low %v5628_v27, %v5638_v58  ;;  %v5656_v28 = vor.u32 %v5655_v53, %v5651_v14  ;;  %v10360_v34 = vpop.f32.mrf.mxu0  ;;  %v5290_v2 = vld [vmem:[#allocation2 + $0xc4] sm:$0xf]  ;;  %v5291_v5 = vld [vmem:[#allocation2 + $0xc8] sm:$0x1] }
 0x19d   : > { %v5661_v55 = vrot.slane %v5659_v31, 5  ;;  %v2297_v3 = vadd.f32 %v10279_v52, %v10867_v59  ;;  %v10364_v61 = vsel %vm8977_vm12, %v7456_v41, %v6286_v7  ;;  %v6288_v26 = vrot.slane %v6286_v7, 4  ;;  %v10368_v63 = vpop.f32.mrf.mxu1  ;;  %v10870_v52 = vld [vmem:[#allocation15_spill] sm:$0xff]  ;;  %v6107_v21 = vld [vmem:[#allocation2 + $0xc0] sm:$0xe] }
 0x19e   : > { %v5647_v11 = vrot.slane %v5646_v60, 4  ;;  %v2300_v18 = vadd.f32 %v10293_v9, %v10868_v54  ;;  %8365 = vmatprep.mubr.bf16.mxu1 %v7431_v44  ;;  %v5657_v16 = vrot.slane %v5656_v28, 4  ;;  %v2298_v59 = vadd.f32 %v2245_v46, %v10870_v52  ;;  %v6108_v58 = vld [vmem:[#allocation2 + $0xc4] sm:$0xf]  ;;  %v6109_v60 = vld [vmem:[#allocation2 + $0xc8] sm:$0x1] }
 0x19f   : > { %v10371_v27 = vadd.f32 %v10273_v33, %v2297_v3  ;;  %v5664_v19 = vshrl.u32 %v5289_v51, 16  ;;  %v6290_v31 = vsel %vm8977_vm12, %v6288_v26, %v6289_v45  ;;  %v5667_v41 = vshll.u32 %v5289_v51, 16  ;;  %v10381_v7 = vpop.f32.mrf.mxu1  ;;  %v10389_v28 = vpop.f32.mrf.mxu0  ;;  %v5292_v26 = vld [vmem:[#allocation2 + $0xcc] sm:$0xf] }
 0x1a0   : > { %v5652_v53 = vsel %vm8987_vm13, %v5647_v11, %v5651_v14  ;;  %v10379_v9 = vadd.f32 %v10283_v20, %v2300_v18  ;;  %v5662_v33 = vsel %vm8987_vm13, %v5657_v16, %v5661_v55  ;;  %v7488_v46 = vcombine.low %v10364_v61, %v6290_v31 }
 0x1a1   : > { %10869 = vst [vmem:[#allocation7_spill] sm:$0xff] %v10371_v27  ;;  %v10387_v44 = vadd.f32 %v10312_v6, %v2298_v59  ;;  %v5666_v14 = vrot.slane %v5664_v19, 4  ;;  %v10873_v20 = vcombine.low %v10289_v48, %v10307_v13  ;;  %v7432_v45 = vcombine.low %v5652_v53, %v5662_v33  ;;  %v10394_v54 = vpop.f32.mrf.mxu1  ;;  %v10396_v16 = vpop.f32.mrf.mxu0  ;;  %v10874_v48 = vld [vmem:[#allocation17_spill] sm:$0xff]  ;;  %v5293_v53 = vld [vmem:[#allocation2 + $0xd0] sm:$0xf] }
 0x1a2   : > { %10871 = vst [vmem:[#allocation8_spill] sm:$0xff] %v10379_v9  ;;  %v5669_v51 = vrot.slane %v5667_v41, 5  ;;  %v5673_v3 = vshll.u32 %v5290_v2, 16  ;;  %v5677_v11 = vshrl.u32 %v5290_v2, 16  ;;  %v5683_v55 = vshll.u32 %v5291_v5, 16 }
 0x1a3   : > { %10872 = vst [vmem:[#allocation9_spill] sm:$0xff] %v10387_v44  ;;  %8410 = vmatmul.mubr.bf16.gmra.mxu0 %v10873_v20  ;;  %v7457_v61 = vrot.slane %v6107_v21, 9  ;;  %v6293_v18 = vrot.slane %v6108_v58, 5  ;;  %v6296_v6 = vrot.slane %v6109_v60, 5  ;;  %8366 = vmatmul.mubr.bf16.gmra.mxu1 %v7432_v45  ;;  %v2303_v13 = vadd.f32 %v10335_v42, %v10874_v48  ;;  %v10400_v31 = vpop.f32.mrf.mxu1  ;;  %v5294_v21 = vld [vmem:[#allocation2 + $0xd4] sm:$0x1]  ;;  %v10404_v58 = vpop.f32.mrf.mxu0 }
 0x1a4   : > { %8413 = vmatprep.mubr.bf16.mxu0 %v7487_v29  ;;  %v5670_v52 = vor.u32 %v5669_v51, %v5666_v14  ;;  %v5675_v59 = vrot.slane %v5673_v3, 5  ;;  %v5679_v19 = vrot.slane %v5677_v11, 4  ;;  %v5685_v2 = vrot.slane %v5683_v55, 5  ;;  %v6110_v45 = vld [vmem:[#allocation2 + $0xcc] sm:$0xe] }
 0x1a5   : > { %v6294_v29 = vsel %vm8977_vm12, %v7457_v61, %v6293_v18  ;;  %v6295_v5 = vrot.slane %v6293_v18, 4  ;;  %v5688_v41 = vshrl.u32 %v5292_v26, 16  ;;  %v10407_v14 = vadd.f32 %v10326_v24, %v2303_v13  ;;  %v6111_v42 = vld [vmem:[#allocation2 + $0xd0] sm:$0xf]  ;;  %v3196_v51 = vpop.f32.mrf.mxu1  ;;  %v6112_v18 = vld [vmem:[#allocation2 + $0xd4] sm:$0x1]  ;;  %v4014_v48 = vpop.f32.mrf.mxu0 }
 0x1a6   : > { %v5671_v60 = vrot.slane %v5670_v52, 4  ;;  %v5680_v33 = vor.u32 %v5679_v19, %v5675_v59  ;;  %v5691_v20 = vshll.u32 %v5292_v26, 16  ;;  %v5697_v55 = vshll.u32 %v5293_v53, 16 }
 0x1a7   : > { %10875 = vst [vmem:[#allocation10_spill] sm:$0xff] %v10407_v14  ;;  %v6297_v3 = vsel %vm8977_vm12, %v6295_v5, %v6296_v6  ;;  %v5690_v11 = vrot.slane %v5688_v41, 4  ;;  %v5701_v61 = vshrl.u32 %v5293_v53, 16  ;;  %v8155_v24 = vpop.f32.mrf.mxu1  ;;  %v5707_v14 = vshll.u32 %v5294_v21, 16  ;;  %v8203_v47 = vpop.f32.mrf.mxu0 }
 0x1a8   : > { %v5676_v44 = vsel %vm8987_vm13, %v5671_v60, %v5675_v59  ;;  %v5681_v52 = vrot.slane %v5680_v33, 4  ;;  %v7489_v19 = vcombine.low %v6294_v29, %v6297_v3  ;;  %v5693_v9 = vrot.slane %v5691_v20, 5  ;;  %v10876_v29 = vld [vmem:[#allocation19_spill] sm:$0xff] }
 0x1a9   : > { %v5699_v13 = vrot.slane %v5697_v55, 5  ;;  %v5703_v26 = vrot.slane %v5701_v61, 4  ;;  %v7458_v27 = vrot.slane %v6110_v45, 9  ;;  %v6300_v53 = vrot.slane %v6111_v42, 5  ;;  %v3209_v49 = vpop.f32.mrf.mxu1  ;;  %v4027_v20 = vpop.f32.mrf.mxu0  ;;  %v10877_v45 = vld [vmem:[#allocation21_spill] sm:$0xff]  ;;  %v10879_v55 = vld [vmem:[#allocation24_spill] sm:$0xff] }
 0x1aa   : > { %v5686_v6 = vsel %vm8987_vm13, %v5681_v52, %v5685_v2  ;;  %v5694_v5 = vor.u32 %v5693_v9, %v5690_v11  ;;  %v6303_v41 = vrot.slane %v6112_v18, 5  ;;  %v5709_v60 = vrot.slane %v5707_v14, 5  ;;  %v10878_v11 = vld [vmem:[#allocation23_spill] sm:$0xff] }
 0x1ab   : > { %8414 = vmatmul.mubr.bf16.gmra.mxu0 %v7488_v46  ;;  %v7433_v56 = vcombine.low %v5676_v44, %v5686_v6  ;;  %v5704_v59 = vor.u32 %v5703_v26, %v5699_v13  ;;  %v2301_v33 = vadd.f32 %v10347_v30, %v10876_v29  ;;  %v6301_v21 = vsel %vm8977_vm12, %v7458_v27, %v6300_v53  ;;  %v8156_v9 = vpop.f32.mrf.mxu1  ;;  %v8204_v61 = vpop.f32.mrf.mxu0 }
 0x1ac   : > { %8417 = vmatprep.mubr.bf16.mxu0 %v7489_v19  ;;  %v5695_v3 = vrot.slane %v5694_v5, 4  ;;  %v6302_v46 = vrot.slane %v6300_v53, 4  ;;  %v2304_v2 = vadd.f32 %v10356_v37, %v10877_v45  ;;  %v2302_v14 = vadd.f32 %v10368_v63, %v10878_v11 }
 0x1ad   : > { %8369 = vmatprep.mubr.bf16.mxu1 %v7433_v56  ;;  %v5705_v42 = vrot.slane %v5704_v59, 4  ;;  %v10422_v44 = vadd.f32 %v10337_v8, %v2301_v33  ;;  %v3322_v30 = vadd.f32 %v10381_v7, %v10879_v55  ;;  %v10880_v56 = vld [vmem:[#allocation25_spill] sm:$0xff]  ;;  %v3212_v52 = vpop.f32.mrf.mxu1  ;;  %v3326_v35 = vadd.f32 %v8155_v24, %v9956_v10 }
 0x1ae   : > { %v5700_v27 = vsel %vm8987_vm13, %v5695_v3, %v5699_v13  ;;  %v6304_v18 = vsel %vm8977_vm12, %v6302_v46, %v6303_v41  ;;  %v10433_v37 = vadd.f32 %v10349_v17, %v2304_v2  ;;  %v3320_v8 = vadd.f32 %v10394_v54, %v10880_v56  ;;  %v4030_v13 = vpop.f32.mrf.mxu0  ;;  %v10881_v17 = vld [vmem:[#allocation26_spill] sm:$0xff]  ;;  %v10882_v54 = vld [vmem:[#allocation27_spill] sm:$0xff] }
 0x1af   : > { %v5710_v63 = vsel %vm8987_vm13, %v5705_v42, %v5709_v60  ;;  %v7490_v19 = vcombine.low %v6301_v21, %v6304_v18  ;;  %v10440_v7 = vadd.f32 %v10360_v34, %v2302_v14  ;;  %v10443_v26 = vadd.f32 %v10389_v28, %v3322_v30  ;;  %v8159_v41 = vpop.f32.mrf.mxu1 }
 0x1b0   : > { %v7434_v50 = vcombine.low %v5700_v27, %v5710_v63  ;;  %v10446_v6 = vadd.f32 %v10396_v16, %v3320_v8  ;;  %v3323_v5 = vadd.f32 %v10400_v31, %v10881_v17  ;;  %v3321_v53 = vadd.f32 %v3196_v51, %v10882_v54 }
 0x1b1   : > { %v3324_v59 = vadd.f32 %v3209_v49, %v9994_v39  ;;  %v3327_v34 = vadd.f32 %v8156_v9, %v10009_v43  ;;  %v3325_v28 = vadd.f32 %v3212_v52, %v10031_v36  ;;  %v3330_v31 = vadd.f32 %v8159_v41, %v10041_v1  ;;  %v8207_v29 = vpop.f32.mrf.mxu0  ;;  %v3225_v51 = vpop.f32.mrf.mxu1  ;;  %v10883_v9 = vld [vmem:[#allocation22_spill] sm:$0xff] }
 0x1b2   : > { %8370 = vmatmul.mubr.bf16.gmra.mxu1 %v7434_v50  ;;  %v10456_v60 = vadd.f32 %v10404_v58, %v3323_v5  ;;  %v10458_v16 = vadd.f32 %v4014_v48, %v3321_v53  ;;  %v10461_v33 = vadd.f32 %v8203_v47, %v3326_v35  ;;  %v3328_v49 = vadd.f32 %v3225_v51, %v10074_v62 }
 0x1b3   : > { %8418 = vmatmul.mubr.bf16.gmra.mxu0 %v7490_v19  ;;  %v10463_v10 = vadd.f32 %v4027_v20, %v3324_v59  ;;  %v10465_v39 = vadd.f32 %v8204_v61, %v3327_v34  ;;  %v10467_v43 = vadd.f32 %v4030_v13, %v3325_v28  ;;  %v10469_v36 = vadd.f32 %v8207_v29, %v3330_v31  ;;  %v4043_v58 = vpop.f32.mrf.mxu0  ;;  %v8160_v24 = vpop.f32.mrf.mxu1  ;;  %v10884_v59 = vld [vmem:[#allocation16_spill] sm:$0xff]  ;;  %v10885_v29 = vld [vmem:[#allocation18_spill] sm:$0xff] }
 0x1b4   : > { %v2879_v48 = vadd.f32 %v10035_v4, %v10097_v32  ;;  %v3331_v1 = vadd.f32 %v8160_v24, %v10086_v23  ;;  %v10475_v3 = vadd.f32 %v4043_v58, %v3328_v49  ;;  %v2286_v42 = vadd.f32 %v10116_v22, %v10883_v9  ;;  %v10886_v24 = vld [vmem:[#allocation20_spill] sm:$0xff] }
 0x1b5   : > { %v8208_v47 = vpop.f32.mrf.mxu0  ;;  %v3228_v20 = vpop.f32.mrf.mxu1 }
 0x1b6   : > { %v10477_v21 = vadd.f32 %v8208_v47, %v3331_v1  ;;  %v3329_v46 = vadd.f32 %v3228_v20, %v2879_v48  ;;  %v2883_v61 = vadd.f32 %v10110_v57, %v2286_v42  ;;  %v10887_v20 = vld [vmem:[#allocation4_spill] sm:$0xff]  ;;  %v10888_v42 = vld [vmem:[#allocation5_spill] sm:$0xff] }
 0x1b7   : > { %v4046_v45 = vpop.f32.mrf.mxu0  ;;  %v8163_v2 = vpop.f32.mrf.mxu1 }
 0x1b8   : > { %v10481_v62 = vadd.f32 %v4046_v45, %v3329_v46  ;;  %v3334_v11 = vadd.f32 %v8163_v2, %v10114_v38 }
 0x1b9   : > { %v8211_v14 = vpop.f32.mrf.mxu0  ;;  %v3241_v4 = vpop.f32.mrf.mxu1 }
 0x1ba   : > { %v10484_v32 = vadd.f32 %v8211_v14, %v3334_v11  ;;  %v3332_v23 = vadd.f32 %v3241_v4, %v10152_v12 }
 0x1bb   : > { %v4059_v55 = vpop.f32.mrf.mxu0  ;;  %v8164_v30 = vpop.f32.mrf.mxu1 }
 0x1bc   : > { %v10488_v27 = vadd.f32 %v4059_v55, %v3332_v23  ;;  %v3335_v18 = vadd.f32 %v8164_v30, %v10163_v15  ;;  %v10889_v55 = vld [vmem:[#allocation6_spill] sm:$0xff] }
 0x1bd   : > { %v8212_v56 = vpop.f32.mrf.mxu0  ;;  %v3244_v22 = vpop.f32.mrf.mxu1 }
 0x1be   : > { %v10491_v8 = vadd.f32 %v8212_v56, %v3335_v18  ;;  %v3333_v52 = vadd.f32 %v3244_v22, %v2883_v61  ;;  %v10890_v22 = vld [vmem:[#allocation7_spill] sm:$0xff] }
 0x1bf   : > { %v4062_v38 = vpop.f32.mrf.mxu0  ;;  %v8167_v63 = vpop.f32.mrf.mxu1 }
 0x1c0   : > { %v10493_v19 = vadd.f32 %v4062_v38, %v3333_v52  ;;  %v3338_v13 = vadd.f32 %v8167_v63, %v10189_v25 }
 0x1c1   : > { %v3257_v12 = vpop.f32.mrf.mxu1  ;;  %v8215_v50 = vpop.f32.mrf.mxu0 }
 0x1c2   : > { %v3336_v17 = vadd.f32 %v3257_v12, %v10227_v40  ;;  %v10497_v57 = vadd.f32 %v8215_v50, %v3338_v13  ;;  %v10891_v12 = vld [vmem:[#allocation8_spill] sm:$0xff] }
 0x1c3   : > { %v8168_v5 = vpop.f32.mrf.mxu1  ;;  %v4075_v54 = vpop.f32.mrf.mxu0 }
 0x1c4   : > { %v3339_v15 = vadd.f32 %v8168_v5, %v10237_v0  ;;  %v10500_v53 = vadd.f32 %v4075_v54, %v3336_v17 }
 0x1c5   : > { %v3260_v41 = vpop.f32.mrf.mxu1  ;;  %v8216_v35 = vpop.f32.mrf.mxu0 }
 0x1c6   : > { %v3337_v34 = vadd.f32 %v3260_v41, %v10884_v59  ;;  %v10503_v28 = vadd.f32 %v8216_v35, %v3339_v15  ;;  %v10892_v15 = vld [vmem:[#allocation9_spill] sm:$0xff] }
 0x1c7   : > { %v8171_v31 = vpop.f32.mrf.mxu1  ;;  %v4078_v25 = vpop.f32.mrf.mxu0 }
 0x1c8   : > { %v3342_v51 = vadd.f32 %v8171_v31, %v10885_v29  ;;  %v10506_v49 = vadd.f32 %v4078_v25, %v3337_v34  ;;  %v10895_v25 = vld [vmem:[#allocation10_spill] sm:$0xff] }
 0x1c9   : > { %v3273_v40 = vpop.f32.mrf.mxu1  ;;  %v8219_v58 = vpop.f32.mrf.mxu0 }
 0x1ca   : > { %v3340_v48 = vadd.f32 %v3273_v40, %v10886_v24  ;;  %v10509_v1 = vadd.f32 %v8219_v58, %v3342_v51 }
 0x1cb   : > { %v8172_v0 = vpop.f32.mrf.mxu1  ;;  %v4091_v47 = vpop.f32.mrf.mxu0 }
 0x1cc   : > { %v3343_v46 = vadd.f32 %v8172_v0, %v10887_v20  ;;  %v10512_v45 = vadd.f32 %v4091_v47, %v3340_v48 }
 0x1cd   : > { %v3276_v2 = vpop.f32.mrf.mxu1  ;;  %v8220_v9 = vpop.f32.mrf.mxu0 }
 0x1ce   : > { %v3341_v11 = vadd.f32 %v3276_v2, %v10888_v42  ;;  %v10515_v14 = vadd.f32 %v8220_v9, %v3343_v46 }
 0x1cf   : > { %v8175_v4 = vpop.f32.mrf.mxu1  ;;  %v4094_v23 = vpop.f32.mrf.mxu0 }
 0x1d0   : > { %v3346_v30 = vadd.f32 %v8175_v4, %v10889_v55  ;;  %v10518_v61 = vadd.f32 %v4094_v23, %v3341_v11 }
 0x1d1   : > { %v3289_v18 = vpop.f32.mrf.mxu1  ;;  %v8223_v56 = vpop.f32.mrf.mxu0 }
 0x1d2   : > { %v3344_v52 = vadd.f32 %v3289_v18, %v10890_v22  ;;  %v10521_v38 = vadd.f32 %v8223_v56, %v3346_v30 }
 0x1d3   : > { %v8176_v63 = vpop.f32.mrf.mxu1  ;;  %v4107_v13 = vpop.f32.mrf.mxu0 }
 0x1d4   : > { %v3347_v50 = vadd.f32 %v8176_v63, %v10891_v12  ;;  %v10524_v17 = vadd.f32 %v4107_v13, %v3344_v52 }
 0x1d5   : > { %v3292_v5 = vpop.f32.mrf.mxu1  ;;  %v8224_v54 = vpop.f32.mrf.mxu0 }
 0x1d6   : > { %v3345_v41 = vadd.f32 %v3292_v5, %v10892_v15  ;;  %v10527_v35 = vadd.f32 %v8224_v54, %v3347_v50 }
 0x1d7   : > { %v4110_v59 = vpop.f32.mrf.mxu0 }
 0x1d8   : > { %10893 = vst [vmem:[#allocation11_spill] sm:$0xff] %v10527_v35  ;;  %v10529_v34 = vadd.f32 %v4110_v59, %v3345_v41 }
 0x1da   : > { %10894 = vst [vmem:[#allocation12_spill] sm:$0xff] %v10529_v34 }
 0x1e5   : > { %v8179_v31 = vpop.f32.mrf.mxu1 }
 0x1e6   : > { %v3350_v29 = vadd.f32 %v8179_v31, %v10895_v25 }
 0x1e7   : > { %v3305_v51 = vpop.f32.mrf.mxu1 }
 0x1e8   : > { %v3348_v40 = vadd.f32 %v3305_v51, %v10422_v44 }
 0x1e9   : > { %v8180_v58 = vpop.f32.mrf.mxu1 }
 0x1ea   : > { %v3351_v24 = vadd.f32 %v8180_v58, %v10433_v37 }
 0x1eb   : > { %v3308_v48 = vpop.f32.mrf.mxu1 }
 0x1ec   : > { %v3349_v0 = vadd.f32 %v3308_v48, %v10440_v7 }
 0x1ed   : > { %v8247_v47 = vpop.f32.mrf.mxu1 }
 0x1ee   : > { %v4734_v20 = vadd.f32 %v8247_v47, %v10443_v26 }
 0x1ef   : > { %v4605_v2 = vpop.f32.mrf.mxu1 }
 0x1f0   : > { %v4732_v42 = vadd.f32 %v4605_v2, %v10446_v6 }
 0x1f1   : > { %v8227_v46 = vpop.f32.mrf.mxu0  ;;  %v10539_v4 = vpop.f32.mrf.mxu1 }
 0x1f2   : > { %v10536_v9 = vadd.f32 %v8227_v46, %v3350_v29 }
 0x1f3   : > { %v4123_v11 = vpop.f32.mrf.mxu0  ;;  %v10543_v55 = vpop.f32.mrf.mxu1 }
 0x1f4   : > { %v10541_v23 = vadd.f32 %v4123_v11, %v3348_v40 }
 0x1f5   : > { %v8228_v44 = vpop.f32.mrf.mxu0  ;;  %v8251_v30 = vpop.f32.mrf.mxu1 }
 0x1f6   : > { %v10545_v37 = vadd.f32 %v8228_v44, %v3351_v24  ;;  %v4738_v26 = vadd.f32 %v8251_v30, %v10461_v33 }
 0x1f7   : > { %v4126_v7 = vpop.f32.mrf.mxu0  ;;  %v4621_v22 = vpop.f32.mrf.mxu1 }
 0x1f8   : > { %10896 = vst [vmem:[#allocation13_spill] sm:$0xff] %v10545_v37  ;;  %v10547_v18 = vadd.f32 %v4126_v7, %v3349_v0  ;;  %v4736_v6 = vadd.f32 %v4621_v22, %v10463_v10 }
 0x1f9   : > { %v8295_v56 = vpop.f32.mrf.mxu0  ;;  %v10553_v13 = vpop.f32.mrf.mxu1 }
 0x1fa   : > { %10897 = vst [vmem:[#allocation14_spill] sm:$0xff] %v10547_v18  ;;  %v10550_v52 = vadd.f32 %v8295_v56, %v4734_v20 }
 0x1fb   : > { %v5056_v63 = vpop.f32.mrf.mxu0  ;;  %v10559_v5 = vpop.f32.mrf.mxu1 }
 0x1fc   : > { %v10555_v12 = vadd.f32 %v5056_v63, %v4732_v42 }
 0x1fd   : > { %v10557_v50 = vpop.f32.mrf.mxu0 }
 0x1ff   : > { %v10561_v54 = vpop.f32.mrf.mxu0  ;;  %v8255_v15 = vpop.f32.mrf.mxu1 }
 0x200   : > { %v4742_v33 = vadd.f32 %v8255_v15, %v10469_v36 }
 0x201   : > { %v8299_v41 = vpop.f32.mrf.mxu0  ;;  %v4637_v59 = vpop.f32.mrf.mxu1 }
 0x202   : > { %v10564_v31 = vadd.f32 %v8299_v41, %v4738_v26  ;;  %v4740_v10 = vadd.f32 %v4637_v59, %v10475_v3 }
 0x203   : > { %v5072_v25 = vpop.f32.mrf.mxu0  ;;  %v10567_v29 = vpop.f32.mrf.mxu1 }
 0x204   : > { %v10569_v51 = vadd.f32 %v5072_v25, %v4736_v6 }
 0x205   : > { %v10571_v40 = vpop.f32.mrf.mxu0  ;;  %v10573_v58 = vpop.f32.mrf.mxu1 }
 0x207   : > { %v10575_v24 = vpop.f32.mrf.mxu0  ;;  %v8259_v48 = vpop.f32.mrf.mxu1 }
 0x208   : > { %v4746_v36 = vadd.f32 %v8259_v48, %v10484_v32 }
 0x209   : > { %v8303_v0 = vpop.f32.mrf.mxu0  ;;  %v4653_v47 = vpop.f32.mrf.mxu1 }
 0x20a   : > { %v10578_v20 = vadd.f32 %v8303_v0, %v4742_v33  ;;  %v4744_v3 = vadd.f32 %v4653_v47, %v10488_v27 }
 0x20b   : > { %v5088_v46 = vpop.f32.mrf.mxu0  ;;  %v10581_v2 = vpop.f32.mrf.mxu1 }
 0x20c   : > { %v10583_v42 = vadd.f32 %v5088_v46, %v4740_v10 }
 0x20d   : > { %v10585_v11 = vpop.f32.mrf.mxu0  ;;  %v10587_v44 = vpop.f32.mrf.mxu1 }
 0x20f   : > { %v10589_v7 = vpop.f32.mrf.mxu0  ;;  %v8263_v30 = vpop.f32.mrf.mxu1 }
 0x210   : > { %v4750_v32 = vadd.f32 %v8263_v30, %v10497_v57 }
 0x211   : > { %v8307_v26 = vpop.f32.mrf.mxu0  ;;  %v4669_v56 = vpop.f32.mrf.mxu1 }
 0x212   : > { %v10592_v22 = vadd.f32 %v8307_v26, %v4746_v36  ;;  %v4748_v27 = vadd.f32 %v4669_v56, %v10500_v53 }
 0x213   : > { %v5104_v6 = vpop.f32.mrf.mxu0  ;;  %v10595_v63 = vpop.f32.mrf.mxu1 }
 0x214   : > { %v10597_v15 = vadd.f32 %v5104_v6, %v4744_v3 }
 0x215   : > { %v10599_v33 = vpop.f32.mrf.mxu0  ;;  %v10601_v41 = vpop.f32.mrf.mxu1 }
 0x217   : > { %v10603_v59 = vpop.f32.mrf.mxu0 }
 0x218   : > { %v8267_v10 = vpop.f32.mrf.mxu1 }
 0x219   : > { %v4754_v57 = vadd.f32 %v8267_v10, %v10509_v1  ;;  %v8311_v25 = vpop.f32.mrf.mxu0 }
 0x21a   : > { %v4685_v48 = vpop.f32.mrf.mxu1  ;;  %v10606_v36 = vadd.f32 %v8311_v25, %v4750_v32 }
 0x21b   : > { %v4752_v53 = vadd.f32 %v4685_v48, %v10512_v45  ;;  %v5120_v0 = vpop.f32.mrf.mxu0 }
 0x21c   : > { %v10609_v47 = vpop.f32.mrf.mxu1  ;;  %v10611_v3 = vadd.f32 %v5120_v0, %v4748_v27 }
 0x21d   : > { %v10613_v46 = vpop.f32.mrf.mxu0 }
 0x21e   : > { %v10615_v30 = vpop.f32.mrf.mxu1 }
 0x21f   : > { %v10617_v26 = vpop.f32.mrf.mxu0 }
 0x220   : > { %v8271_v56 = vpop.f32.mrf.mxu1 }
 0x221   : > { %v4758_v1 = vadd.f32 %v8271_v56, %v10521_v38  ;;  %v8315_v6 = vpop.f32.mrf.mxu0 }
 0x222   : > { %v4701_v10 = vpop.f32.mrf.mxu1  ;;  %v10620_v32 = vadd.f32 %v8315_v6, %v4754_v57 }
 0x223   : > { %v4756_v45 = vadd.f32 %v4701_v10, %v10524_v17  ;;  %v5136_v25 = vpop.f32.mrf.mxu0 }
 0x224   : > { %10898 = vst [vmem:[#allocation15_spill] sm:$0xff] %v10620_v32  ;;  %v10623_v48 = vpop.f32.mrf.mxu1  ;;  %v10625_v27 = vadd.f32 %v5136_v25, %v4752_v53 }
 0x225   : > { %10899 = vst [vmem:[#allocation17_spill] sm:$0xff] %v10623_v48  ;;  %v10627_v0 = vpop.f32.mrf.mxu0 }
 0x226   : > { %10900 = vst [vmem:[#allocation19_spill] sm:$0xff] %v10625_v27  ;;  %v10629_v18 = vpop.f32.mrf.mxu1 }
 0x227   : > { %10901 = vst [vmem:[#allocation21_spill] sm:$0xff] %v10629_v18  ;;  %v10631_v37 = vpop.f32.mrf.mxu0 }
 0x228   : > { %v8275_v34 = vpop.f32.mrf.mxu1 }
 0x229   : > { %v4762_v38 = vadd.f32 %v8275_v34, %v10536_v9  ;;  %v8319_v56 = vpop.f32.mrf.mxu0 }
 0x22a   : > { %v4717_v35 = vpop.f32.mrf.mxu1  ;;  %v10634_v57 = vadd.f32 %v8319_v56, %v4758_v1 }
 0x22b   : > { %v4760_v17 = vadd.f32 %v4717_v35, %v10541_v23  ;;  %v5152_v6 = vpop.f32.mrf.mxu0  ;;  %v4735_v35 = vadd.f32 %v10539_v4, %v10456_v60 }
 0x22c   : > { %10902 = vst [vmem:[#allocation23_spill] sm:$0xff] %v10634_v57  ;;  %v10637_v10 = vpop.f32.mrf.mxu1  ;;  %v10639_v53 = vadd.f32 %v5152_v6, %v4756_v45 }
 0x22d   : > { %10903 = vst [vmem:[#allocation24_spill] sm:$0xff] %v10637_v10  ;;  %v10641_v25 = vpop.f32.mrf.mxu0 }
 0x22e   : > { %10904 = vst [vmem:[#allocation25_spill] sm:$0xff] %v10639_v53  ;;  %10905 = vst [vmem:[#allocation26_spill] sm:$0xff] %v10641_v25  ;;  %v10643_v48 = vpop.f32.mrf.mxu1  ;;  %v5186_v53 = vadd.f32 %v10557_v50, %v4735_v35 }
 0x22f   : > { %10906 = vst [vmem:[#allocation27_spill] sm:$0xff] %v10643_v48  ;;  %v10645_v18 = vpop.f32.mrf.mxu0  ;;  %v4733_v48 = vadd.f32 %v10543_v55, %v10458_v16 }
 0x230   : > { %10907 = vst [vmem:[#allocation22_spill] sm:$0xff] %v10645_v18  ;;  %v8343_v32 = vpop.f32.mrf.mxu1 }
 0x231   : > { %v8323_v27 = vpop.f32.mrf.mxu0  ;;  %v6003_v60 = vadd.f32 %v8343_v32, %v10550_v52 }
 0x232   : > { %v5874_v34 = vpop.f32.mrf.mxu1  ;;  %v10647_v9 = vadd.f32 %v8323_v27, %v4762_v38 }
 0x233   : > { %v5168_v1 = vpop.f32.mrf.mxu0  ;;  %v6001_v4 = vadd.f32 %v5874_v34, %v10555_v12 }
 0x234   : > { %10908 = vst [vmem:[#allocation16_spill] sm:$0xff] %v10647_v9  ;;  %v8344_v56 = vpop.f32.mrf.mxu1  ;;  %v10651_v23 = vadd.f32 %v5168_v1, %v4760_v17  ;;  %v5184_v9 = vadd.f32 %v10561_v54, %v4733_v48  ;;  %v4739_v1 = vadd.f32 %v10553_v13, %v10465_v39  ;;  %v4737_v54 = vadd.f32 %v10559_v5, %v10467_v43 }
 0x235   : > { %v10653_v45 = vpop.f32.mrf.mxu0  ;;  %v6004_v17 = vadd.f32 %v8344_v56, %v5186_v53 }
 0x236   : > { %10909 = vst [vmem:[#allocation18_spill] sm:$0xff] %v10651_v23  ;;  %10910 = vst [vmem:[#allocation20_spill] sm:$0xff] %v10653_v45  ;;  %v5877_v6 = vpop.f32.mrf.mxu1  ;;  %v5190_v25 = vadd.f32 %v10571_v40, %v4739_v1  ;;  %v5188_v56 = vadd.f32 %v10575_v24, %v4737_v54 }
 0x237   : > { %v10657_v10 = vpop.f32.mrf.mxu0  ;;  %v6002_v55 = vadd.f32 %v5877_v6, %v5184_v9 }
 0x238   : > { %10911 = vst [vmem:[#allocation4_spill] sm:$0xff] %v10657_v10  ;;  %v8347_v57 = vpop.f32.mrf.mxu1 }
 0x239   : > { %v6007_v48 = vadd.f32 %v8347_v57, %v10564_v31  ;;  %v4741_v57 = vadd.f32 %v10573_v58, %v10481_v62 }
 0x23a   : > { %v8391_v27 = vpop.f32.mrf.mxu0  ;;  %v5890_v38 = vpop.f32.mrf.mxu1 }
 0x23b   : > { %v6597_v18 = vadd.f32 %v8391_v27, %v6003_v60  ;;  %v6005_v32 = vadd.f32 %v5890_v38, %v10569_v51 }
 0x23c   : > { %v6468_v23 = vpop.f32.mrf.mxu0  ;;  %v8348_v16 = vpop.f32.mrf.mxu1 }
 0x23d   : > { %v6595_v50 = vadd.f32 %v6468_v23, %v6001_v4  ;;  %v4743_v23 = vadd.f32 %v10567_v29, %v10477_v21  ;;  %v6731_v60 = vmul.f32 %v6597_v18, %v6597_v18 }
 0x23e   : > { %v8392_v10 = vpop.f32.mrf.mxu0  ;;  %v5893_v45 = vpop.f32.mrf.mxu1 }
 0x23f   : > { %v6598_v35 = vadd.f32 %v8392_v10, %v6004_v17  ;;  %v6008_v10 = vadd.f32 %v8348_v16, %v5190_v25  ;;  %v6729_v43 = vmul.f32 %v6595_v50, %v6595_v50  ;;  %v6006_v17 = vadd.f32 %v5893_v45, %v5188_v56 }
 0x240   : > { %v6471_v39 = vpop.f32.mrf.mxu0  ;;  %v8351_v52 = vpop.f32.mrf.mxu1  ;;  %v5194_v21 = vadd.f32 %v10585_v11, %v4743_v23  ;;  %v5192_v45 = vadd.f32 %v10589_v7, %v4741_v57  ;;  %v4747_v56 = vadd.f32 %v10581_v2, %v10491_v8 }
 0x241   : > { %v7671_v13 = vpack.c.bf16 %v6598_v35, %v6597_v18  ;;  %v6596_v12 = vadd.f32 %v6471_v39, %v6002_v55  ;;  %v6732_v25 = vmul.f32 %v6598_v35, %v6598_v35 }
 0x242   : > { %v8395_v40 = vpop.f32.mrf.mxu0  ;;  %v5906_v53 = vpop.f32.mrf.mxu1  ;;  %v5198_v8 = vadd.f32 %v10599_v33, %v4747_v56 }
 0x243   : > { %7758 = vst [vmem:[%s10673_s17 + $0x8] sm:$0xff] %v7671_v13   ;;  %v6691_v5 = vadd.f32 %v6596_v12, %v6595_v50  ;;  %v6730_v34 = vmul.f32 %v6596_v12, %v6596_v12  ;;  %v7666_v9 = vpack.c.bf16 %v6596_v12, %v6595_v50  ;;  %v6601_v55 = vadd.f32 %v8395_v40, %v6007_v48 }
 0x244   : > { %v6484_v6 = vpop.f32.mrf.mxu0  ;;  %v8352_v27 = vpop.f32.mrf.mxu1  ;;  %v6009_v62 = vadd.f32 %v5906_v53, %v10583_v42  ;;  %v4745_v42 = vadd.f32 %v10587_v44, %v10493_v19 }
 0x245   : > { %v6692_v51 = vadd.f32 %v6691_v5, %v6597_v18  ;;  %v6761_v38 = vadd.f32 %v6730_v34, %v6729_v43  ;;  %7667 = vst [vmem:[%s10673_s17] sm:$0xff] %v7666_v9   ;;  %v6599_v31 = vadd.f32 %v6484_v6, %v6005_v32  ;;  %v6012_v40 = vadd.f32 %v8352_v27, %v5194_v21 }
 0x246   : > { %v8396_v4 = vpop.f32.mrf.mxu0  ;;  %v5909_v1 = vpop.f32.mrf.mxu1  ;;  %v6735_v23 = vmul.f32 %v6601_v55, %v6601_v55  ;;  %v5196_v19 = vadd.f32 %v10603_v59, %v4745_v42 }
 0x247   : > { %v6762_v16 = vadd.f32 %v6761_v38, %v6731_v60  ;;  %v6693_v24 = vadd.f32 %v6692_v51, %v6598_v35  ;;  %v6602_v50 = vadd.f32 %v8396_v4, %v6008_v10  ;;  %v6733_v39 = vmul.f32 %v6599_v31, %v6599_v31 }
 0x248   : > { %v6487_v29 = vpop.f32.mrf.mxu0  ;;  %v8355_v54 = vpop.f32.mrf.mxu1  ;;  %v6011_v35 = vadd.f32 %v8351_v52, %v10578_v20  ;;  %v6010_v53 = vadd.f32 %v5909_v1, %v5192_v45 }
 0x249   : > { %v6694_v18 = vadd.f32 %v6693_v24, %v6599_v31  ;;  %v6763_v13 = vadd.f32 %v6762_v16, %v6732_v25  ;;  %v7681_v12 = vpack.c.bf16 %v6602_v50, %v6601_v55  ;;  %v6600_v32 = vadd.f32 %v6487_v29, %v6006_v17 }
 0x24a   : > { %v8399_v43 = vpop.f32.mrf.mxu0  ;;  %v5922_v58 = vpop.f32.mrf.mxu1  ;;  %v6736_v38 = vmul.f32 %v6602_v50, %v6602_v50 }
 0x24b   : > { %v6764_v48 = vadd.f32 %v6763_v13, %v6733_v39  ;;  %7760 = vst [vmem:[%s10673_s17 + $0x18] sm:$0xff] %v7681_v12   ;;  %v6695_v11 = vadd.f32 %v6694_v18, %v6600_v32  ;;  %v6734_v10 = vmul.f32 %v6600_v32, %v6600_v32  ;;  %v7676_v5 = vpack.c.bf16 %v6600_v32, %v6599_v31 }
 0x24c   : > { %v6500_v34 = vpop.f32.mrf.mxu0  ;;  %v8356_v9 = vpop.f32.mrf.mxu1  ;;  %v6605_v52 = vadd.f32 %v8399_v43, %v6011_v35  ;;  %v6013_v24 = vadd.f32 %v5922_v58, %v10597_v15  ;;  %v4751_v32 = vadd.f32 %v10595_v63, %v10503_v28  ;;  %v4749_v43 = vadd.f32 %v10601_v41, %v10506_v49 }
 0x24d   : > { %v6696_v7 = vadd.f32 %v6695_v11, %v6601_v55  ;;  %v6765_v6 = vadd.f32 %v6764_v48, %v6734_v10  ;;  %7759 = vst [vmem:[%s10673_s17 + $0x10] sm:$0xff] %v7676_v5   ;;  %v6603_v60 = vadd.f32 %v6500_v34, %v6009_v62  ;;  %v6016_v39 = vadd.f32 %v8356_v9, %v5198_v8 }
 0x24e   : > { %v8400_v51 = vpop.f32.mrf.mxu0  ;;  %v5925_v20 = vpop.f32.mrf.mxu1  ;;  %v6739_v15 = vmul.f32 %v6605_v52, %v6605_v52  ;;  %v5202_v28 = vadd.f32 %v10613_v46, %v4751_v32  ;;  %v5200_v49 = vadd.f32 %v10617_v26, %v4749_v43 }
 0x24f   : > { %v6606_v27 = vadd.f32 %v8400_v51, %v6012_v40  ;;  %v6766_v31 = vadd.f32 %v6765_v6, %v6735_v23  ;;  %v6697_v57 = vadd.f32 %v6696_v7, %v6602_v50  ;;  %v6737_v1 = vmul.f32 %v6603_v60, %v6603_v60 }
 0x250   : > { %v6503_v25 = vpop.f32.mrf.mxu0  ;;  %v8359_v4 = vpop.f32.mrf.mxu1  ;;  %v6015_v50 = vadd.f32 %v8355_v54, %v10592_v22  ;;  %v6014_v62 = vadd.f32 %v5925_v20, %v5196_v19 }
 0x251   : > { %v7691_v2 = vpack.c.bf16 %v6606_v27, %v6605_v52  ;;  %v6604_v44 = vadd.f32 %v6503_v25, %v6010_v53  ;;  %v6698_v17 = vadd.f32 %v6697_v57, %v6603_v60  ;;  %v6767_v16 = vadd.f32 %v6766_v31, %v6736_v38 }
 0x252   : > { %v8403_v55 = vpop.f32.mrf.mxu0  ;;  %v5938_v21 = vpop.f32.mrf.mxu1  ;;  %v6740_v11 = vmul.f32 %v6606_v27, %v6606_v27  ;;  %v6019_v20 = vadd.f32 %v8359_v4, %v10606_v36  ;;  %v4755_v31 = vadd.f32 %v10609_v47, %v10515_v14  ;;  %v4753_v57 = vadd.f32 %v10615_v30, %v10518_v61 }
 0x253   : > { %7762 = vst [vmem:[%s10673_s17 + $0x28] sm:$0xff] %v7691_v2   ;;  %v6738_v29 = vmul.f32 %v6604_v44, %v6604_v44  ;;  %v7686_v18 = vpack.c.bf16 %v6604_v44, %v6603_v60  ;;  %v6768_v13 = vadd.f32 %v6767_v16, %v6737_v1  ;;  %v6699_v33 = vadd.f32 %v6698_v17, %v6604_v44 }
 0x254   : > { %v6516_v12 = vpop.f32.mrf.mxu0  ;;  %v8360_v59 = vpop.f32.mrf.mxu1  ;;  %v6609_v22 = vadd.f32 %v8403_v55, %v6015_v50  ;;  %v6017_v7 = vadd.f32 %v5938_v21, %v10611_v3  ;;  %v5206_v14 = vadd.f32 %v10627_v0, %v4755_v31  ;;  %v5204_v47 = vadd.f32 %v10631_v37, %v4753_v57  ;;  %v10914_v37 = vld [vmem:[#allocation11_spill] sm:$0xff]  ;;  %v10920_v31 = vld [vmem:[#allocation25_spill] sm:$0xff] }
 0x255   : > { %7761 = vst [vmem:[%s10673_s17 + $0x20] sm:$0xff] %v7686_v18   ;;  %v6700_v58 = vadd.f32 %v6699_v33, %v6605_v52  ;;  %v6769_v45 = vadd.f32 %v6768_v13, %v6738_v29  ;;  %v6607_v48 = vadd.f32 %v6516_v12, %v6013_v24  ;;  %v6020_v52 = vadd.f32 %v8360_v59, %v5202_v28  ;;  %v10913_v59 = vld [vmem:[#allocation15_spill] sm:$0xff] }
 0x256   : > { %v8404_v35 = vpop.f32.mrf.mxu0  ;;  %v5941_v40 = vpop.f32.mrf.mxu1  ;;  %v6743_v3 = vmul.f32 %v6609_v22, %v6609_v22 }
 0x257   : > { %v6610_v54 = vadd.f32 %v8404_v35, %v6016_v39  ;;  %v6770_v10 = vadd.f32 %v6769_v45, %v6739_v15  ;;  %v6701_v5 = vadd.f32 %v6700_v58, %v6606_v27  ;;  %v6741_v42 = vmul.f32 %v6607_v48, %v6607_v48  ;;  %v10912_v39 = vld [vmem:[#allocation19_spill] sm:$0xff]  ;;  %v10915_v45 = vld [vmem:[#allocation17_spill] sm:$0xff]  ;;  %v10916_v35 = vld [vmem:[#allocation12_spill] sm:$0xff] }
 0x258   : > { %v6519_v34 = vpop.f32.mrf.mxu0  ;;  %v8363_v9 = vpop.f32.mrf.mxu1  ;;  %v6018_v25 = vadd.f32 %v5941_v40, %v5200_v49  ;;  %v10917_v40 = vld [vmem:[#allocation21_spill] sm:$0xff] }
 0x259   : > { %v7701_v63 = vpack.c.bf16 %v6610_v54, %v6609_v22  ;;  %v6608_v41 = vadd.f32 %v6519_v34, %v6014_v62  ;;  %v6702_v56 = vadd.f32 %v6701_v5, %v6607_v48  ;;  %v6771_v53 = vadd.f32 %v6770_v10, %v6740_v11 }
 0x25a   : > { %v5954_v6 = vpop.f32.mrf.mxu1  ;;  %v6744_v4 = vmul.f32 %v6610_v54, %v6610_v54  ;;  %v6023_v32 = vadd.f32 %v8363_v9, %v10913_v59 }
 0x25b   : > { %v8407_v23 = vpop.f32.mrf.mxu0  ;;  %7764 = vst [vmem:[%s10673_s17 + $0x38] sm:$0xff] %v7701_v63   ;;  %v6742_v60 = vmul.f32 %v6608_v41, %v6608_v41  ;;  %v7696_v51 = vpack.c.bf16 %v6608_v41, %v6607_v48  ;;  %v6772_v27 = vadd.f32 %v6771_v53, %v6741_v42  ;;  %v6703_v46 = vadd.f32 %v6702_v56, %v6608_v41 }
 0x25c   : > { %v8364_v26 = vpop.f32.mrf.mxu1  ;;  %v6613_v17 = vadd.f32 %v8407_v23, %v6019_v20  ;;  %v6021_v13 = vadd.f32 %v5954_v6, %v10912_v39  ;;  %v4759_v48 = vadd.f32 %v10915_v45, %v10914_v37  ;;  %v10922_v39 = vld [vmem:[#allocation13_spill] sm:$0xff]  ;;  %v10925_v37 = vld [vmem:[#allocation27_spill] sm:$0xff] }
 0x25d   : > { %v6532_v38 = vpop.f32.mrf.mxu0  ;;  %7763 = vst [vmem:[%s10673_s17 + $0x30] sm:$0xff] %v7696_v51   ;;  %v6704_v8 = vadd.f32 %v6703_v46, %v6609_v22  ;;  %v6773_v19 = vadd.f32 %v6772_v27, %v6742_v60  ;;  %v6024_v43 = vadd.f32 %v8364_v26, %v5206_v14  ;;  %v4757_v22 = vadd.f32 %v10917_v40, %v10916_v35  ;;  %v10919_v60 = vld [vmem:[#allocation22_spill] sm:$0xff] }
 0x25e   : > { %v6611_v2 = vadd.f32 %v6532_v38, %v6017_v7  ;;  %v5957_v24 = vpop.f32.mrf.mxu1  ;;  %v6747_v11 = vmul.f32 %v6613_v17, %v6613_v17  ;;  %v10918_v7 = vld [vmem:[#allocation26_spill] sm:$0xff] }
 0x25f   : > { %v8408_v44 = vpop.f32.mrf.mxu0  ;;  %v6774_v1 = vadd.f32 %v6773_v19, %v6743_v3  ;;  %v6705_v16 = vadd.f32 %v6704_v8, %v6610_v54  ;;  %v6022_v54 = vadd.f32 %v5957_v24, %v5204_v47  ;;  %v5210_v6 = vadd.f32 %v10918_v7, %v4759_v48  ;;  %v10921_v19 = vld [vmem:[#allocation23_spill] sm:$0xff] }
 0x260   : > { %v6614_v36 = vadd.f32 %v8408_v44, %v6020_v52  ;;  %v6745_v29 = vmul.f32 %v6611_v2, %v6611_v2  ;;  %v5208_v51 = vadd.f32 %v10919_v60, %v4757_v22 }
 0x261   : > { %v6535_v55 = vpop.f32.mrf.mxu0  ;;  %v6706_v21 = vadd.f32 %v6705_v16, %v6611_v2  ;;  %v6775_v18 = vadd.f32 %v6774_v1, %v6744_v4 }
 0x262   : > { %v7711_v61 = vpack.c.bf16 %v6614_v36, %v6613_v17  ;;  %v6612_v30 = vadd.f32 %v6535_v55, %v6018_v25  ;;  %v6748_v41 = vmul.f32 %v6614_v36, %v6614_v36 }
 0x263   : > { %v8411_v50 = vpop.f32.mrf.mxu0  ;;  %v6776_v62 = vadd.f32 %v6775_v18, %v6745_v29  ;;  %v8367_v58 = vpop.f32.mrf.mxu1 }
 0x264   : > { %7766 = vst [vmem:[%s10673_s17 + $0x48] sm:$0xff] %v7711_v61   ;;  %v6746_v33 = vmul.f32 %v6612_v30, %v6612_v30  ;;  %v7706_v12 = vpack.c.bf16 %v6612_v30, %v6611_v2  ;;  %v6707_v15 = vadd.f32 %v6706_v21, %v6612_v30  ;;  %v6617_v9 = vadd.f32 %v8411_v50, %v6023_v32 }
 0x265   : > { %v6548_v0 = vpop.f32.mrf.mxu0  ;;  %v5970_v49 = vpop.f32.mrf.mxu1  ;;  %v6027_v2 = vadd.f32 %v8367_v58, %v10921_v19  ;;  %v10924_v58 = vld [vmem:[#allocation14_spill] sm:$0xff] }
 0x266   : > { %7765 = vst [vmem:[%s10673_s17 + $0x40] sm:$0xff] %v7706_v12   ;;  %v6708_v10 = vadd.f32 %v6707_v15, %v6613_v17  ;;  %v6777_v5 = vadd.f32 %v6776_v62, %v6746_v33  ;;  %v6615_v34 = vadd.f32 %v6548_v0, %v6021_v13  ;;  %v6025_v57 = vadd.f32 %v5970_v49, %v10920_v31  ;;  %v10923_v13 = vld [vmem:[#allocation24_spill] sm:$0xff]  ;;  %v10928_v49 = vld [vmem:[#allocation18_spill] sm:$0xff] }
 0x267   : > { %v8412_v28 = vpop.f32.mrf.mxu0  ;;  %v8368_v23 = vpop.f32.mrf.mxu1  ;;  %v6751_v16 = vmul.f32 %v6617_v9, %v6617_v9  ;;  %v4763_v33 = vadd.f32 %v10923_v13, %v10922_v39  ;;  %v4761_v45 = vadd.f32 %v10925_v37, %v10924_v58 }
 0x268   : > { %v6618_v63 = vadd.f32 %v8412_v28, %v6024_v43  ;;  %v6778_v56 = vadd.f32 %v6777_v5, %v6747_v11  ;;  %v6709_v42 = vadd.f32 %v6708_v10, %v6614_v36  ;;  %v6749_v46 = vmul.f32 %v6615_v34, %v6615_v34  ;;  %v10926_v10 = vld [vmem:[#allocation20_spill] sm:$0xff] }
 0x269   : > { %v6551_v53 = vpop.f32.mrf.mxu0  ;;  %v5973_v25 = vpop.f32.mrf.mxu1  ;;  %v6028_v44 = vadd.f32 %v8368_v23, %v5210_v6  ;;  %v5214_v5 = vadd.f32 %v10926_v10, %v4763_v33  ;;  %v10929_v23 = vld [vmem:[#allocation4_spill] sm:$0xff] }
 0x26a   : > { %v7721_v20 = vpack.c.bf16 %v6618_v63, %v6617_v9  ;;  %v6616_v52 = vadd.f32 %v6551_v53, %v6022_v54  ;;  %v6710_v27 = vadd.f32 %v6709_v42, %v6615_v34  ;;  %v6779_v38 = vadd.f32 %v6778_v56, %v6748_v41 }
 0x26b   : > { %v8415_v26 = vpop.f32.mrf.mxu0  ;;  %v6026_v1 = vadd.f32 %v5973_v25, %v5208_v51  ;;  %v6752_v21 = vmul.f32 %v6618_v63, %v6618_v63  ;;  %v5212_v7 = vadd.f32 %v10929_v23, %v4761_v45 }
 0x26c   : > { %7768 = vst [vmem:[%s10673_s17 + $0x58] sm:$0xff] %v7721_v20   ;;  %v6750_v3 = vmul.f32 %v6616_v52, %v6616_v52  ;;  %v7716_v8 = vpack.c.bf16 %v6616_v52, %v6615_v34  ;;  %v6780_v17 = vadd.f32 %v6779_v38, %v6749_v46  ;;  %v6711_v36 = vadd.f32 %v6710_v27, %v6616_v52  ;;  %v10927_v34 = vld [vmem:[#allocation16_spill] sm:$0xff] }
 0x26d   : > { %v6564_v4 = vpop.f32.mrf.mxu0  ;;  %v6621_v61 = vadd.f32 %v8415_v26, %v6027_v2 }
 0x26e   : > { %7767 = vst [vmem:[%s10673_s17 + $0x50] sm:$0xff] %v7716_v8   ;;  %v6712_v55 = vadd.f32 %v6711_v36, %v6617_v9  ;;  %v6781_v24 = vadd.f32 %v6780_v17, %v6750_v3  ;;  %v6619_v14 = vadd.f32 %v6564_v4, %v6025_v57 }
 0x26f   : > { %v8416_v47 = vpop.f32.mrf.mxu0 }
 0x270   : > { %v6622_v30 = vadd.f32 %v8416_v47, %v6028_v44  ;;  %v6782_v29 = vadd.f32 %v6781_v24, %v6751_v16  ;;  %v6713_v18 = vadd.f32 %v6712_v55, %v6618_v63  ;;  %v6753_v43 = vmul.f32 %v6619_v14, %v6619_v14 }
 0x271   : > { %v6567_v50 = vpop.f32.mrf.mxu0  ;;  %v6755_v63 = vmul.f32 %v6621_v61, %v6621_v61 }
 0x272   : > { %v7731_v12 = vpack.c.bf16 %v6622_v30, %v6621_v61  ;;  %v6620_v59 = vadd.f32 %v6567_v50, %v6026_v1  ;;  %v6714_v32 = vadd.f32 %v6713_v18, %v6619_v14  ;;  %v6783_v62 = vadd.f32 %v6782_v29, %v6752_v21  ;;  %v8371_v15 = vpop.f32.mrf.mxu1 }
 0x273   : > { %v8419_v0 = vpop.f32.mrf.mxu0  ;;  %v6031_v28 = vadd.f32 %v8371_v15, %v10927_v34  ;;  %v6756_v51 = vmul.f32 %v6622_v30, %v6622_v30 }
 0x274   : > { %7770 = vst [vmem:[%s10673_s17 + $0x68] sm:$0xff] %v7731_v12   ;;  %v6754_v48 = vmul.f32 %v6620_v59, %v6620_v59  ;;  %v7726_v35 = vpack.c.bf16 %v6620_v59, %v6619_v14  ;;  %v6784_v40 = vadd.f32 %v6783_v62, %v6753_v43  ;;  %v6715_v22 = vadd.f32 %v6714_v32, %v6620_v59  ;;  %v5986_v54 = vpop.f32.mrf.mxu1 }
 0x275   : > { %v6580_v11 = vpop.f32.mrf.mxu0  ;;  %v6029_v9 = vadd.f32 %v5986_v54, %v10928_v49  ;;  %v6625_v46 = vadd.f32 %v8419_v0, %v6031_v28 }
 0x276   : > { %7769 = vst [vmem:[%s10673_s17 + $0x60] sm:$0xff] %v7726_v35   ;;  %v6716_v41 = vadd.f32 %v6715_v22, %v6621_v61  ;;  %v6785_v56 = vadd.f32 %v6784_v40, %v6754_v48  ;;  %v8372_v42 = vpop.f32.mrf.mxu1 }
 0x277   : > { %v8420_v53 = vpop.f32.mrf.mxu0  ;;  %v6623_v6 = vadd.f32 %v6580_v11, %v6029_v9  ;;  %v6032_v60 = vadd.f32 %v8372_v42, %v5214_v5  ;;  %v6759_v4 = vmul.f32 %v6625_v46, %v6625_v46 }
 0x278   : > { %v6786_v20 = vadd.f32 %v6785_v56, %v6755_v63  ;;  %v6717_v52 = vadd.f32 %v6716_v41, %v6622_v30  ;;  %v5989_v27 = vpop.f32.mrf.mxu1 }
 0x279   : > { %v6626_v38 = vadd.f32 %v8420_v53, %v6032_v60  ;;  %v6030_v26 = vadd.f32 %v5989_v27, %v5212_v7  ;;  %v6757_v57 = vmul.f32 %v6623_v6, %v6623_v6  ;;  %v6583_v3 = vpop.f32.mrf.mxu0 }
 0x27a   : > { %v6718_v31 = vadd.f32 %v6717_v52, %v6623_v6  ;;  %v6787_v25 = vadd.f32 %v6786_v20, %v6756_v51 }
 0x27b   : > { %v7741_v8 = vpack.c.bf16 %v6626_v38, %v6625_v46  ;;  %v6624_v19 = vadd.f32 %v6583_v3, %v6030_v26  ;;  %v6760_v55 = vmul.f32 %v6626_v38, %v6626_v38 }
 0x27c   : > { %v6788_v2 = vadd.f32 %v6787_v25, %v6757_v57 }
 0x27d   : > { %7772 = vst [vmem:[%s10673_s17 + $0x78] sm:$0xff] %v7741_v8   ;;  %v6719_v44 = vadd.f32 %v6718_v31, %v6624_v19  ;;  %v6758_v17 = vmul.f32 %v6624_v19, %v6624_v19  ;;  %v7736_v36 = vpack.c.bf16 %v6624_v19, %v6623_v6 }
 0x27f   : > { %v6720_v1 = vadd.f32 %v6719_v44, %v6625_v46  ;;  %v6789_v16 = vadd.f32 %v6788_v2, %v6758_v17  ;;  %7771 = vst [vmem:[%s10673_s17 + $0x70] sm:$0xff] %v7736_v36  }
 0x281   : > { %v6721_v24 = vadd.f32 %v6720_v1, %v6626_v38  ;;  %v6790_v14 = vadd.f32 %v6789_v16, %v6759_v4 }
 0x283   : > { %v6722_v47 = vrot.slane %v6721_v24, 4  ;;  %v6791_v61 = vadd.f32 %v6790_v14, %v6760_v55 }
 0x285   : > { %v6723_v30 = vadd.f32 %v6722_v47, %v6721_v24  ;;  %v6792_v21 = vrot.slane %v6791_v61, 4 }
 0x287   : > { %v6724_v29 = vrot.slane %v6723_v30, 2  ;;  %v6793_v18 = vadd.f32 %v6792_v21, %v6791_v61 }
 0x289   : > { %v6725_v50 = vadd.f32 %v6724_v29, %v6723_v30  ;;  %v6794_v39 = vrot.slane %v6793_v18, 2 }
 0x28b   : > { %v6726_v13 = vrot.slane %v6725_v50, 1  ;;  %v6795_v33 = vadd.f32 %v6794_v39, %v6793_v18 }
 0x28d   : > { %v6727_v12 = vadd.f32 %v6726_v13, %v6725_v50  ;;  %v6796_v59 = vrot.slane %v6795_v33, 1 }
 0x28f   : > { %6728 = vst [vmem:[%s265_s19] sm:$0x1] %v6727_v12  ;;  %v6797_v32 = vadd.f32 %v6796_v59, %v6795_v33 }
 0x291   : > { %6798 = vst [vmem:[%s268_s24] sm:$0x1] %v6797_v32 }
 0x292 PF: > { %s17_s21 = sadd.s32 1, %s8576_s21  }
 0x293   : > { %p14_p4 = scmp.ge.s32.totalorder %s17_s21, 4  }
 0x295   :  { %16 = sbr.rel (!%p14_p4) target bundleno = 1 (0x1), region = 100 }

</bundles_post_ra>
